<compile_context>
chip_gen: v7x
topology: tpu7x:2x2x1
jax: 0.10.0
libtpu: 0.0.40
codegen_flags: <defaults>
</compile_context>

<pallas_src>
import math
from functools import partial

import jax
import jax.numpy as jnp
from jax import lax
from jax.experimental import pallas as pl
from jax.experimental.pallas import tpu as pltpu

# ------------------------- configuration (small shapes) -------------------------
B = 2                 # batch
D_EMB = 32            # d_embedding
NUM_HEADS = 4
D_HEAD = D_EMB // NUM_HEADS
D_FF = 64
LENGTH_SEQ = 16       # length_seq
KERNEL = 4            # conv kernel
STRIDE = 2            # conv stride
PADDING = 1           # find_optimal_cnn1d_padding(L_in=16, K=4, S=2) -> padding=1
L_RED = (LENGTH_SEQ + 2 * PADDING - KERNEL) // STRIDE + 1             # = 8
OUT_PAD = LENGTH_SEQ - ((L_RED - 1) * STRIDE - 2 * PADDING + KERNEL)  # = 0
assert OUT_PAD == 0, "chosen config yields zero output_padding"
ALPHABET = 21         # alphabet_size
A_PAD = 128           # lane-dense padded alphabet for the output store
NUM_LAYERS = 2        # num_mha_layers
EPS = 1e-6
BL = B * L_RED        # batch folded into sublanes:     16
BLS = B * LENGTH_SEQ  # batch-folded output rows:       32
NEG = -1e30           # additive mask value

_PREC = lax.Precision.HIGHEST


def _dot(a, b):
    """a @ b (2-D), f32 accumulation, explicit highest precision."""
    return lax.dot_general(a, b, (((1,), (0,)), ((), ())),
                           precision=_PREC, preferred_element_type=jnp.float32)


def _dot_t(a, b):
    """a @ b.T (2-D) without materializing a transpose."""
    return lax.dot_general(a, b, (((1,), (1,)), ((), ())),
                           precision=_PREC, preferred_element_type=jnp.float32)


# ------------------------------- fused kernel -----------------------------------
def decoder_fused_kernel(x_ref, pe_ref, bias_ref,
                         wq_ref, bq_ref, wk_ref, bk_ref, wv_ref, bv_ref,
                         wo_ref, bo_ref, g1_ref, be1_ref,
                         w1_ref, b1_ref, w2_ref, b2_ref, g2_ref, be2_ref,
                         wconv_ref, bconv_ref, scat_ref,
                         out_ref):
    # positional encoding (dropout = identity)
    x = x_ref[...].astype(jnp.float32) + pe_ref[...]              # [BL, D_EMB]
    bias = bias_ref[...]                                          # [BL, BL] block-diag mask

    for layer in range(NUM_LAYERS):                               # static unroll
        # ---------------- self multi-head attention ----------------
        a_acc = jnp.zeros((BL, D_EMB), jnp.float32)
        for h in range(NUM_HEADS):                                # static unroll
            qh = _dot(x, wq_ref[layer, h]) + bq_ref[layer, h]     # scale folded in
            kh = _dot(x, wk_ref[layer, h]) + bk_ref[layer, h]
            vh = _dot(x, wv_ref[layer, h]) + bv_ref[layer, h]
            s = _dot_t(qh, kh) + bias                             # [BL, BL]
            s = s - jnp.max(s, axis=-1, keepdims=True)
            p = jnp.exp(s)
            p = p * pl.reciprocal(jnp.sum(p, axis=-1, keepdims=True), approx=False)
            # per-head output projection accumulated (avoids concat / lane slices)
            a_acc = a_acc + _dot(_dot(p, vh), wo_ref[layer, h])
        # residual + LayerNorm1
        x = x + a_acc + bo_ref[layer]
        mu = jnp.mean(x, axis=-1, keepdims=True)
        var = jnp.mean((x - mu) ** 2, axis=-1, keepdims=True)
        x = (x - mu) * lax.rsqrt(var + EPS) * g1_ref[layer] + be1_ref[layer]

        # ---------------- MLP: Linear -> (Dropout=0) -> ReLU -> Linear ----------------
        h1 = jnp.maximum(_dot(x, w1_ref[layer]) + b1_ref[layer], 0.0)
        y = _dot(h1, w2_ref[layer]) + b2_ref[layer]
        # residual + LayerNorm2
        x = x + y
        mu = jnp.mean(x, axis=-1, keepdims=True)
        var = jnp.mean((x - mu) ** 2, axis=-1, keepdims=True)
        x = (x - mu) * lax.rsqrt(var + EPS) * g2_ref[layer] + be2_ref[layer]

    # ------------- ConvTranspose1d via precomputed scatter + softmax -------------
    acc = jnp.zeros((BLS, A_PAD), jnp.float32)
    for k in range(KERNEL):                                       # static unroll
        mk = _dot(x, wconv_ref[k])                                # [BL, A_PAD]
        acc = acc + _dot(scat_ref[k], mk)                         # [BLS, A_PAD]
    logits = acc + bconv_ref[...]                                 # padded lanes get NEG bias
    m = jnp.max(logits, axis=-1, keepdims=True)
    e = jnp.exp(logits - m)
    out = e * pl.reciprocal(jnp.sum(e, axis=-1, keepdims=True), approx=False)
    out_ref[...] = out.astype(out_ref.dtype)


# ------------------------------- wrapper -----------------------------------------
def _full_spec(arr):
    nd = arr.ndim
    return pl.BlockSpec(arr.shape, lambda i, nd=nd: (0,) * nd)


def make_attn_bias():
    row_b = jnp.arange(BL) // L_RED
    same = row_b[:, None] == row_b[None, :]
    return jnp.where(same, 0.0, NEG).astype(jnp.float32)


def make_scatter():
    # S_k[j_flat, i_flat] = 1 iff same batch and j == i*STRIDE - PADDING + k
    j = jnp.arange(BLS)
    i = jnp.arange(BL)
    jb, jl = j // LENGTH_SEQ, j % LENGTH_SEQ
    ib, il = i // L_RED, i % L_RED
    mats = []
    for k in range(KERNEL):
        hit = (jb[:, None] == ib[None, :]) & (jl[:, None] == il[None, :] * STRIDE - PADDING + k)
        mats.append(hit.astype(jnp.float32))
    return jnp.stack(mats, axis=0)                                # [K, BLS, BL]


@jax.jit
def decoder_pallas(q, pe, stacked, wconv_pad, bconv_pad):
    x_flat = q.reshape(BL, D_EMB)                                 # batch folded into sublanes
    pe_full = jnp.tile(pe, (B, 1))                                # [BL, D_EMB]
    attn_bias = make_attn_bias()
    scat = make_scatter()

    args = (x_flat, pe_full, attn_bias) + tuple(stacked) + (wconv_pad, bconv_pad, scat)
    out_full = pl.pallas_call(
        decoder_fused_kernel,
        out_shape=jax.ShapeDtypeStruct((BLS, A_PAD), jnp.float32),
        grid=(1,),
        in_specs=[_full_spec(a) for a in args],
        out_specs=pl.BlockSpec((BLS, A_PAD), lambda i: (0, 0)),
        compiler_params=pltpu.CompilerParams(dimension_semantics=("arbitrary",)),
    )(*args)
    # slice the lane-padded alphabet back to 21 classes
    return out_full.reshape(B, LENGTH_SEQ, A_PAD)[:, :, :ALPHABET]


# ------------------------- pure-JAX reference (for checking) --------------------
def _layernorm_ref(x, g, b):
    mu = jnp.mean(x, axis=-1, keepdims=True)
    var = jnp.mean((x - mu) ** 2, axis=-1, keepdims=True)
    return (x - mu) * lax.rsqrt(var + EPS) * g + b


def decoder_ref(q, pe, torch_params, w_conv, b_conv):
    mm = partial(jnp.matmul, precision=_PREC)
    z = q + pe[None]
    for p in torch_params:
        wqkv, bqkv, wo, bo, g1, be1, w1, b1, w2, b2, g2, be2 = p
        x = z
        qkv = mm(x, wqkv.T) + bqkv
        qq, kk, vv = qkv[..., :D_EMB], qkv[..., D_EMB:2 * D_EMB], qkv[..., 2 * D_EMB:]

        def split_heads(t):
            return t.reshape(B, L_RED, NUM_HEADS, D_HEAD).transpose(0, 2, 1, 3)

        qh = split_heads(qq) / math.sqrt(D_HEAD)
        kh = split_heads(kk)
        vh = split_heads(vv)
        s = jnp.einsum('bhqd,bhkd->bhqk', qh, kh, precision=_PREC)
        pw = jax.nn.softmax(s, axis=-1)
        o = jnp.einsum('bhqk,bhkd->bhqd', pw, vh, precision=_PREC)
        o = o.transpose(0, 2, 1, 3).reshape(B, L_RED, D_EMB)
        attn_out = mm(o, wo.T) + bo
        x = _layernorm_ref(x + attn_out, g1, be1)
        y = mm(jax.nn.relu(mm(x, w1.T) + b1), w2.T) + b2
        z = _layernorm_ref(x + y, g2, be2)

    # ConvTranspose1d reference (NCL layout)
    zc = jnp.transpose(z, (0, 2, 1))                              # [B, D, L_RED]
    full = jnp.zeros((B, ALPHABET, (L_RED - 1) * STRIDE + KERNEL), jnp.float32)
    for i in range(L_RED):
        for k in range(KERNEL):
            contrib = jnp.einsum('bc,co->bo', zc[:, :, i], w_conv[:, :, k], precision=_PREC)
            full = full.at[:, :, i * STRIDE + k].add(contrib)
    out = full[:, :, PADDING:PADDING + LENGTH_SEQ] + b_conv[None, :, None]
    out = jnp.transpose(out, (0, 2, 1))                           # [B, L, A]
    return jax.nn.softmax(out, axis=-1)


# ----------------------------- parameter init -----------------------------------
def init_layer_params(key):
    ks = jax.random.split(key, 12)
    s = 0.1
    wqkv = jax.random.normal(ks[0], (3 * D_EMB, D_EMB), jnp.float32) * s   # in_proj_weight
    bqkv = jax.random.normal(ks[1], (3 * D_EMB,), jnp.float32) * s
    wo = jax.random.normal(ks[2], (D_EMB, D_EMB), jnp.float32) * s         # out_proj
    bo = jax.random.normal(ks[3], (D_EMB,), jnp.float32) * s
    g1 = 1.0 + jax.random.normal(ks[4], (D_EMB,), jnp.float32) * 0.01
    be1 = jax.random.normal(ks[5], (D_EMB,), jnp.float32) * 0.01
    w1 = jax.random.normal(ks[6], (D_FF, D_EMB), jnp.float32) * s
    b1 = jax.random.normal(ks[7], (D_FF,), jnp.float32) * s
    w2 = jax.random.normal(ks[8], (D_EMB, D_FF), jnp.float32) * s
    b2 = jax.random.normal(ks[9], (D_EMB,), jnp.float32) * s
    g2 = 1.0 + jax.random.normal(ks[10], (D_EMB,), jnp.float32) * 0.01
    be2 = jax.random.normal(ks[11], (D_EMB,), jnp.float32) * 0.01
    return (wqkv, bqkv, wo, bo, g1, be1, w1, b1, w2, b2, g2, be2)


def pack_kernel_params(torch_params):
    """Convert torch-layout per-layer params to kernel-layout, stacked over layers."""
    scale = 1.0 / math.sqrt(D_HEAD)
    lists = [[] for _ in range(16)]
    for p in torch_params:
        wqkv, bqkv, wo, bo, g1, be1, w1, b1, w2, b2, g2, be2 = p

        def split_w(w, do_scale):
            wt = w.T.reshape(D_EMB, NUM_HEADS, D_HEAD).transpose(1, 0, 2)  # [H, D, D_HEAD]
            return wt * scale if do_scale else wt

        def split_b(b, do_scale):
            bb = b.reshape(NUM_HEADS, 1, D_HEAD)                           # [H, 1, D_HEAD]
            return bb * scale if do_scale else bb

        vals = (
            split_w(wqkv[0:D_EMB], True),            # wq  (scale folded)
            split_b(bqkv[0:D_EMB], True),            # bq  (scale folded)
            split_w(wqkv[D_EMB:2 * D_EMB], False),   # wk
            split_b(bqkv[D_EMB:2 * D_EMB], False),   # bk
            split_w(wqkv[2 * D_EMB:], False),        # wv
            split_b(bqkv[2 * D_EMB:], False),        # bv
            wo.T.reshape(NUM_HEADS, D_HEAD, D_EMB),  # wo per head
            bo[None, :], g1[None, :], be1[None, :],
            w1.T, b1[None, :], w2.T, b2[None, :],
            g2[None, :], be2[None, :],
        )
        for lst, v in zip(lists, vals):
            lst.append(v)
    return tuple(jnp.stack(lst, axis=0) for lst in lists)


def make_positional_encoding():
    position = jnp.arange(L_RED, dtype=jnp.float32)[:, None]
    div_term = jnp.exp(jnp.arange(0, D_EMB, 2, dtype=jnp.float32)
                       * (-math.log(10000.0) / D_EMB))
    pe = jnp.zeros((L_RED, D_EMB), jnp.float32)
    pe = pe.at[:, 0::2].set(jnp.sin(position * div_term))
    pe = pe.at[:, 1::2].set(jnp.cos(position * div_term))
    return pe


# --------------------------------- main ------------------------------------------
if __name__ == "__main__":
    root = jax.random.PRNGKey(0)
    k_q, k_conv_w, k_conv_b, *k_layers = jax.random.split(root, 3 + NUM_LAYERS)

    q = jax.random.normal(k_q, (B, L_RED, D_EMB), jnp.float32)

    pe = make_positional_encoding()
    torch_params = [init_layer_params(k) for k in k_layers]
    stacked = pack_kernel_params(torch_params)

    # ConvTranspose1d weight: [in_channels=D_EMB, out_channels=ALPHABET, K]
    w_conv = jax.random.normal(k_conv_w, (D_EMB, ALPHABET, KERNEL), jnp.float32) * 0.1
    b_conv = jax.random.normal(k_conv_b, (ALPHABET,), jnp.float32) * 0.1
    w_conv_kda = jnp.transpose(w_conv, (2, 0, 1))                        # [K, D_EMB, A]
    wconv_pad = jnp.zeros((KERNEL, D_EMB, A_PAD), jnp.float32).at[:, :, :ALPHABET].set(w_conv_kda)
    bconv_pad = jnp.full((1, A_PAD), NEG, jnp.float32).at[0, :ALPHABET].set(b_conv)

    out = decoder_pallas(q, pe, stacked, wconv_pad, bconv_pad)
    out = jax.block_until_ready(out)

    ref = decoder_ref(q, pe, torch_params, w_conv, b_conv)
    ref = jax.block_until_ready(ref)

    max_err = float(jnp.max(jnp.abs(out - ref)))
    row_sums_ok = bool(jnp.allclose(jnp.sum(out, axis=-1), 1.0, atol=1e-4))
    if max_err < 1e-4 and row_sums_ok and out.shape == (B, LENGTH_SEQ, ALPHABET):
        print("KERNEL_OK")
    else:
        raise SystemExit(f"mismatch: max_err={max_err}, row_sums_ok={row_sums_ok}")
</pallas_src>

<mosaic_0001>
module attributes {stable_mosaic.version = 11 : i64} {
  func.func @decoder_fused_kernel(%arg0: i32, %arg1: memref<16x32xf32, #tpu.memory_space<vmem>>, %arg2: memref<16x32xf32, #tpu.memory_space<vmem>>, %arg3: memref<16x16xf32, #tpu.memory_space<vmem>>, %arg4: memref<2x4x32x8xf32, #tpu.memory_space<vmem>>, %arg5: memref<2x4x1x8xf32, #tpu.memory_space<vmem>>, %arg6: memref<2x4x32x8xf32, #tpu.memory_space<vmem>>, %arg7: memref<2x4x1x8xf32, #tpu.memory_space<vmem>>, %arg8: memref<2x4x32x8xf32, #tpu.memory_space<vmem>>, %arg9: memref<2x4x1x8xf32, #tpu.memory_space<vmem>>, %arg10: memref<2x4x8x32xf32, #tpu.memory_space<vmem>>, %arg11: memref<2x1x32xf32, #tpu.memory_space<vmem>>, %arg12: memref<2x1x32xf32, #tpu.memory_space<vmem>>, %arg13: memref<2x1x32xf32, #tpu.memory_space<vmem>>, %arg14: memref<2x32x64xf32, #tpu.memory_space<vmem>>, %arg15: memref<2x1x64xf32, #tpu.memory_space<vmem>>, %arg16: memref<2x64x32xf32, #tpu.memory_space<vmem>>, %arg17: memref<2x1x32xf32, #tpu.memory_space<vmem>>, %arg18: memref<2x1x32xf32, #tpu.memory_space<vmem>>, %arg19: memref<2x1x32xf32, #tpu.memory_space<vmem>>, %arg20: memref<4x32x128xf32, #tpu.memory_space<vmem>>, %arg21: memref<1x128xf32, #tpu.memory_space<vmem>>, %arg22: memref<4x32x16xf32, #tpu.memory_space<vmem>>, %arg23: memref<32x128xf32, #tpu.memory_space<vmem>>) attributes {dimension_semantics = [#tpu.dimension_semantics<arbitrary>], iteration_bounds = array<i64: 1>, scalar_prefetch = 0 : i64, scratch_operands = 0 : i64, tpu.core_type = #tpu.core_type<tc>, window_params = [{pipeline_mode = #tpu.pipeline_mode<synchronous>, transform_indices = @transform_0, window_bounds = array<i64: 16, 32>}, {pipeline_mode = #tpu.pipeline_mode<synchronous>, transform_indices = @transform_1, window_bounds = array<i64: 16, 32>}, {pipeline_mode = #tpu.pipeline_mode<synchronous>, transform_indices = @transform_2, window_bounds = array<i64: 16, 16>}, {pipeline_mode = #tpu.pipeline_mode<synchronous>, transform_indices = @transform_3, window_bounds = array<i64: 2, 4, 32, 8>}, {pipeline_mode = #tpu.pipeline_mode<synchronous>, transform_indices = @transform_4, window_bounds = array<i64: 2, 4, 1, 8>}, {pipeline_mode = #tpu.pipeline_mode<synchronous>, transform_indices = @transform_5, window_bounds = array<i64: 2, 4, 32, 8>}, {pipeline_mode = #tpu.pipeline_mode<synchronous>, transform_indices = @transform_6, window_bounds = array<i64: 2, 4, 1, 8>}, {pipeline_mode = #tpu.pipeline_mode<synchronous>, transform_indices = @transform_7, window_bounds = array<i64: 2, 4, 32, 8>}, {pipeline_mode = #tpu.pipeline_mode<synchronous>, transform_indices = @transform_8, window_bounds = array<i64: 2, 4, 1, 8>}, {pipeline_mode = #tpu.pipeline_mode<synchronous>, transform_indices = @transform_9, window_bounds = array<i64: 2, 4, 8, 32>}, {pipeline_mode = #tpu.pipeline_mode<synchronous>, transform_indices = @transform_10, window_bounds = array<i64: 2, 1, 32>}, {pipeline_mode = #tpu.pipeline_mode<synchronous>, transform_indices = @transform_11, window_bounds = array<i64: 2, 1, 32>}, {pipeline_mode = #tpu.pipeline_mode<synchronous>, transform_indices = @transform_12, window_bounds = array<i64: 2, 1, 32>}, {pipeline_mode = #tpu.pipeline_mode<synchronous>, transform_indices = @transform_13, window_bounds = array<i64: 2, 32, 64>}, {pipeline_mode = #tpu.pipeline_mode<synchronous>, transform_indices = @transform_14, window_bounds = array<i64: 2, 1, 64>}, {pipeline_mode = #tpu.pipeline_mode<synchronous>, transform_indices = @transform_15, window_bounds = array<i64: 2, 64, 32>}, {pipeline_mode = #tpu.pipeline_mode<synchronous>, transform_indices = @transform_16, window_bounds = array<i64: 2, 1, 32>}, {pipeline_mode = #tpu.pipeline_mode<synchronous>, transform_indices = @transform_17, window_bounds = array<i64: 2, 1, 32>}, {pipeline_mode = #tpu.pipeline_mode<synchronous>, transform_indices = @transform_18, window_bounds = array<i64: 2, 1, 32>}, {pipeline_mode = #tpu.pipeline_mode<synchronous>, transform_indices = @transform_19, window_bounds = array<i64: 4, 32, 128>}, {pipeline_mode = #tpu.pipeline_mode<synchronous>, transform_indices = @transform_20, window_bounds = array<i64: 1, 128>}, {pipeline_mode = #tpu.pipeline_mode<synchronous>, transform_indices = @transform_21, window_bounds = array<i64: 4, 32, 16>}, {pipeline_mode = #tpu.pipeline_mode<synchronous>, transform_indices = @transform_22, window_bounds = array<i64: 32, 128>}]} {
    %c0 = arith.constant 0 : index
    %c0_0 = arith.constant 0 : index
    %0 = vector.load %arg1[%c0, %c0_0] : memref<16x32xf32, #tpu.memory_space<vmem>>, vector<16x32xf32>
    %c0_1 = arith.constant 0 : index
    %c0_2 = arith.constant 0 : index
    %1 = vector.load %arg2[%c0_1, %c0_2] : memref<16x32xf32, #tpu.memory_space<vmem>>, vector<16x32xf32>
    %2 = arith.addf %0, %1 : vector<16x32xf32>
    %c0_3 = arith.constant 0 : index
    %c0_4 = arith.constant 0 : index
    %3 = vector.load %arg3[%c0_3, %c0_4] : memref<16x16xf32, #tpu.memory_space<vmem>>, vector<16x16xf32>
    %cst = arith.constant 0.000000e+00 : f32
    %4 = vector.broadcast %cst : f32 to vector<16x32xf32>
    %c0_5 = arith.constant 0 : index
    %c0_6 = arith.constant 0 : index
    %c0_7 = arith.constant 0 : index
    %c0_8 = arith.constant 0 : index
    %5 = vector.load %arg4[%c0_5, %c0_6, %c0_7, %c0_8] : memref<2x4x32x8xf32, #tpu.memory_space<vmem>>, vector<1x1x32x8xf32>
    %6 = vector.shape_cast %5 : vector<1x1x32x8xf32> to vector<32x8xf32>
    %cst_9 = arith.constant dense<0.000000e+00> : vector<16x8xf32>
    %7 = tpu.matmul %2, %6, %cst_9 {dimension_numbers = #tpu.dot_dimension_numbers<[1], [0], [0], [1], [0, 0, 1, 1], [], []>, precision = #tpu.contract_precision<fp32>} : vector<16x32xf32>, vector<32x8xf32>, vector<16x8xf32> -> vector<16x8xf32>
    %c0_10 = arith.constant 0 : index
    %c0_11 = arith.constant 0 : index
    %c0_12 = arith.constant 0 : index
    %c0_13 = arith.constant 0 : index
    %8 = vector.load %arg5[%c0_10, %c0_11, %c0_12, %c0_13] : memref<2x4x1x8xf32, #tpu.memory_space<vmem>>, vector<1x1x1x8xf32>
    %9 = vector.shape_cast %8 : vector<1x1x1x8xf32> to vector<1x8xf32>
    %10 = vector.broadcast %9 : vector<1x8xf32> to vector<16x8xf32>
    %11 = arith.addf %7, %10 : vector<16x8xf32>
    %c0_14 = arith.constant 0 : index
    %c0_15 = arith.constant 0 : index
    %c0_16 = arith.constant 0 : index
    %c0_17 = arith.constant 0 : index
    %12 = vector.load %arg6[%c0_14, %c0_15, %c0_16, %c0_17] : memref<2x4x32x8xf32, #tpu.memory_space<vmem>>, vector<1x1x32x8xf32>
    %13 = vector.shape_cast %12 : vector<1x1x32x8xf32> to vector<32x8xf32>
    %cst_18 = arith.constant dense<0.000000e+00> : vector<16x8xf32>
    %14 = tpu.matmul %2, %13, %cst_18 {dimension_numbers = #tpu.dot_dimension_numbers<[1], [0], [0], [1], [0, 0, 1, 1], [], []>, precision = #tpu.contract_precision<fp32>} : vector<16x32xf32>, vector<32x8xf32>, vector<16x8xf32> -> vector<16x8xf32>
    %c0_19 = arith.constant 0 : index
    %c0_20 = arith.constant 0 : index
    %c0_21 = arith.constant 0 : index
    %c0_22 = arith.constant 0 : index
    %15 = vector.load %arg7[%c0_19, %c0_20, %c0_21, %c0_22] : memref<2x4x1x8xf32, #tpu.memory_space<vmem>>, vector<1x1x1x8xf32>
    %16 = vector.shape_cast %15 : vector<1x1x1x8xf32> to vector<1x8xf32>
    %17 = vector.broadcast %16 : vector<1x8xf32> to vector<16x8xf32>
    %18 = arith.addf %14, %17 : vector<16x8xf32>
    %c0_23 = arith.constant 0 : index
    %c0_24 = arith.constant 0 : index
    %c0_25 = arith.constant 0 : index
    %c0_26 = arith.constant 0 : index
    %19 = vector.load %arg8[%c0_23, %c0_24, %c0_25, %c0_26] : memref<2x4x32x8xf32, #tpu.memory_space<vmem>>, vector<1x1x32x8xf32>
    %20 = vector.shape_cast %19 : vector<1x1x32x8xf32> to vector<32x8xf32>
    %cst_27 = arith.constant dense<0.000000e+00> : vector<16x8xf32>
    %21 = tpu.matmul %2, %20, %cst_27 {dimension_numbers = #tpu.dot_dimension_numbers<[1], [0], [0], [1], [0, 0, 1, 1], [], []>, precision = #tpu.contract_precision<fp32>} : vector<16x32xf32>, vector<32x8xf32>, vector<16x8xf32> -> vector<16x8xf32>
    %c0_28 = arith.constant 0 : index
    %c0_29 = arith.constant 0 : index
    %c0_30 = arith.constant 0 : index
    %c0_31 = arith.constant 0 : index
    %22 = vector.load %arg9[%c0_28, %c0_29, %c0_30, %c0_31] : memref<2x4x1x8xf32, #tpu.memory_space<vmem>>, vector<1x1x1x8xf32>
    %23 = vector.shape_cast %22 : vector<1x1x1x8xf32> to vector<1x8xf32>
    %24 = vector.broadcast %23 : vector<1x8xf32> to vector<16x8xf32>
    %25 = arith.addf %21, %24 : vector<16x8xf32>
    %cst_32 = arith.constant dense<0.000000e+00> : vector<16x16xf32>
    %26 = tpu.matmul %11, %18, %cst_32 {dimension_numbers = #tpu.dot_dimension_numbers<[1], [1], [0], [0], [0, 0, 1, 0], [], []>, precision = #tpu.contract_precision<fp32>} : vector<16x8xf32>, vector<16x8xf32>, vector<16x16xf32> -> vector<16x16xf32>
    %27 = arith.addf %26, %3 : vector<16x16xf32>
    %cst_33 = arith.constant dense<0xFF800000> : vector<16xf32>
    %28 = vector.multi_reduction <maximumf>, %27, %cst_33 [1] : vector<16x16xf32> to vector<16xf32>
    %29 = vector.shape_cast %28 : vector<16xf32> to vector<16x1xf32>
    %30 = vector.broadcast %29 : vector<16x1xf32> to vector<16x16xf32>
    %31 = arith.subf %27, %30 : vector<16x16xf32>
    %32 = math.exp %31 : vector<16x16xf32>
    %cst_34 = arith.constant dense<0.000000e+00> : vector<16xf32>
    %33 = vector.multi_reduction <add>, %32, %cst_34 [1] : vector<16x16xf32> to vector<16xf32>
    %34 = vector.shape_cast %33 : vector<16xf32> to vector<16x1xf32>
    %35 = tpu.reciprocal %34 : vector<16x1xf32> -> vector<16x1xf32>
    %36 = vector.broadcast %35 : vector<16x1xf32> to vector<16x16xf32>
    %37 = arith.mulf %32, %36 : vector<16x16xf32>
    %cst_35 = arith.constant dense<0.000000e+00> : vector<16x8xf32>
    %38 = tpu.matmul %37, %25, %cst_35 {dimension_numbers = #tpu.dot_dimension_numbers<[1], [0], [0], [1], [0, 0, 1, 1], [], []>, precision = #tpu.contract_precision<fp32>} : vector<16x16xf32>, vector<16x8xf32>, vector<16x8xf32> -> vector<16x8xf32>
    %c0_36 = arith.constant 0 : index
    %c0_37 = arith.constant 0 : index
    %c0_38 = arith.constant 0 : index
    %c0_39 = arith.constant 0 : index
    %39 = vector.load %arg10[%c0_36, %c0_37, %c0_38, %c0_39] : memref<2x4x8x32xf32, #tpu.memory_space<vmem>>, vector<1x1x8x32xf32>
    %40 = vector.shape_cast %39 : vector<1x1x8x32xf32> to vector<8x32xf32>
    %cst_40 = arith.constant dense<0.000000e+00> : vector<16x32xf32>
    %41 = tpu.matmul %38, %40, %cst_40 {dimension_numbers = #tpu.dot_dimension_numbers<[1], [0], [0], [1], [0, 0, 1, 1], [], []>, precision = #tpu.contract_precision<fp32>} : vector<16x8xf32>, vector<8x32xf32>, vector<16x32xf32> -> vector<16x32xf32>
    %42 = arith.addf %4, %41 : vector<16x32xf32>
    %c0_41 = arith.constant 0 : index
    %c1 = arith.constant 1 : index
    %c0_42 = arith.constant 0 : index
    %c0_43 = arith.constant 0 : index
    %43 = vector.load %arg4[%c0_41, %c1, %c0_42, %c0_43] : memref<2x4x32x8xf32, #tpu.memory_space<vmem>>, vector<1x1x32x8xf32>
    %44 = vector.shape_cast %43 : vector<1x1x32x8xf32> to vector<32x8xf32>
    %cst_44 = arith.constant dense<0.000000e+00> : vector<16x8xf32>
    %45 = tpu.matmul %2, %44, %cst_44 {dimension_numbers = #tpu.dot_dimension_numbers<[1], [0], [0], [1], [0, 0, 1, 1], [], []>, precision = #tpu.contract_precision<fp32>} : vector<16x32xf32>, vector<32x8xf32>, vector<16x8xf32> -> vector<16x8xf32>
    %c0_45 = arith.constant 0 : index
    %c1_46 = arith.constant 1 : index
    %c0_47 = arith.constant 0 : index
    %c0_48 = arith.constant 0 : index
    %46 = vector.load %arg5[%c0_45, %c1_46, %c0_47, %c0_48] : memref<2x4x1x8xf32, #tpu.memory_space<vmem>>, vector<1x1x1x8xf32>
    %47 = vector.shape_cast %46 : vector<1x1x1x8xf32> to vector<1x8xf32>
    %48 = vector.broadcast %47 : vector<1x8xf32> to vector<16x8xf32>
    %49 = arith.addf %45, %48 : vector<16x8xf32>
    %c0_49 = arith.constant 0 : index
    %c1_50 = arith.constant 1 : index
    %c0_51 = arith.constant 0 : index
    %c0_52 = arith.constant 0 : index
    %50 = vector.load %arg6[%c0_49, %c1_50, %c0_51, %c0_52] : memref<2x4x32x8xf32, #tpu.memory_space<vmem>>, vector<1x1x32x8xf32>
    %51 = vector.shape_cast %50 : vector<1x1x32x8xf32> to vector<32x8xf32>
    %cst_53 = arith.constant dense<0.000000e+00> : vector<16x8xf32>
    %52 = tpu.matmul %2, %51, %cst_53 {dimension_numbers = #tpu.dot_dimension_numbers<[1], [0], [0], [1], [0, 0, 1, 1], [], []>, precision = #tpu.contract_precision<fp32>} : vector<16x32xf32>, vector<32x8xf32>, vector<16x8xf32> -> vector<16x8xf32>
    %c0_54 = arith.constant 0 : index
    %c1_55 = arith.constant 1 : index
    %c0_56 = arith.constant 0 : index
    %c0_57 = arith.constant 0 : index
    %53 = vector.load %arg7[%c0_54, %c1_55, %c0_56, %c0_57] : memref<2x4x1x8xf32, #tpu.memory_space<vmem>>, vector<1x1x1x8xf32>
    %54 = vector.shape_cast %53 : vector<1x1x1x8xf32> to vector<1x8xf32>
    %55 = vector.broadcast %54 : vector<1x8xf32> to vector<16x8xf32>
    %56 = arith.addf %52, %55 : vector<16x8xf32>
    %c0_58 = arith.constant 0 : index
    %c1_59 = arith.constant 1 : index
    %c0_60 = arith.constant 0 : index
    %c0_61 = arith.constant 0 : index
    %57 = vector.load %arg8[%c0_58, %c1_59, %c0_60, %c0_61] : memref<2x4x32x8xf32, #tpu.memory_space<vmem>>, vector<1x1x32x8xf32>
    %58 = vector.shape_cast %57 : vector<1x1x32x8xf32> to vector<32x8xf32>
    %cst_62 = arith.constant dense<0.000000e+00> : vector<16x8xf32>
    %59 = tpu.matmul %2, %58, %cst_62 {dimension_numbers = #tpu.dot_dimension_numbers<[1], [0], [0], [1], [0, 0, 1, 1], [], []>, precision = #tpu.contract_precision<fp32>} : vector<16x32xf32>, vector<32x8xf32>, vector<16x8xf32> -> vector<16x8xf32>
    %c0_63 = arith.constant 0 : index
    %c1_64 = arith.constant 1 : index
    %c0_65 = arith.constant 0 : index
    %c0_66 = arith.constant 0 : index
    %60 = vector.load %arg9[%c0_63, %c1_64, %c0_65, %c0_66] : memref<2x4x1x8xf32, #tpu.memory_space<vmem>>, vector<1x1x1x8xf32>
    %61 = vector.shape_cast %60 : vector<1x1x1x8xf32> to vector<1x8xf32>
    %62 = vector.broadcast %61 : vector<1x8xf32> to vector<16x8xf32>
    %63 = arith.addf %59, %62 : vector<16x8xf32>
    %cst_67 = arith.constant dense<0.000000e+00> : vector<16x16xf32>
    %64 = tpu.matmul %49, %56, %cst_67 {dimension_numbers = #tpu.dot_dimension_numbers<[1], [1], [0], [0], [0, 0, 1, 0], [], []>, precision = #tpu.contract_precision<fp32>} : vector<16x8xf32>, vector<16x8xf32>, vector<16x16xf32> -> vector<16x16xf32>
    %65 = arith.addf %64, %3 : vector<16x16xf32>
    %cst_68 = arith.constant dense<0xFF800000> : vector<16xf32>
    %66 = vector.multi_reduction <maximumf>, %65, %cst_68 [1] : vector<16x16xf32> to vector<16xf32>
    %67 = vector.shape_cast %66 : vector<16xf32> to vector<16x1xf32>
    %68 = vector.broadcast %67 : vector<16x1xf32> to vector<16x16xf32>
    %69 = arith.subf %65, %68 : vector<16x16xf32>
    %70 = math.exp %69 : vector<16x16xf32>
    %cst_69 = arith.constant dense<0.000000e+00> : vector<16xf32>
    %71 = vector.multi_reduction <add>, %70, %cst_69 [1] : vector<16x16xf32> to vector<16xf32>
    %72 = vector.shape_cast %71 : vector<16xf32> to vector<16x1xf32>
    %73 = tpu.reciprocal %72 : vector<16x1xf32> -> vector<16x1xf32>
    %74 = vector.broadcast %73 : vector<16x1xf32> to vector<16x16xf32>
    %75 = arith.mulf %70, %74 : vector<16x16xf32>
    %cst_70 = arith.constant dense<0.000000e+00> : vector<16x8xf32>
    %76 = tpu.matmul %75, %63, %cst_70 {dimension_numbers = #tpu.dot_dimension_numbers<[1], [0], [0], [1], [0, 0, 1, 1], [], []>, precision = #tpu.contract_precision<fp32>} : vector<16x16xf32>, vector<16x8xf32>, vector<16x8xf32> -> vector<16x8xf32>
    %c0_71 = arith.constant 0 : index
    %c1_72 = arith.constant 1 : index
    %c0_73 = arith.constant 0 : index
    %c0_74 = arith.constant 0 : index
    %77 = vector.load %arg10[%c0_71, %c1_72, %c0_73, %c0_74] : memref<2x4x8x32xf32, #tpu.memory_space<vmem>>, vector<1x1x8x32xf32>
    %78 = vector.shape_cast %77 : vector<1x1x8x32xf32> to vector<8x32xf32>
    %cst_75 = arith.constant dense<0.000000e+00> : vector<16x32xf32>
    %79 = tpu.matmul %76, %78, %cst_75 {dimension_numbers = #tpu.dot_dimension_numbers<[1], [0], [0], [1], [0, 0, 1, 1], [], []>, precision = #tpu.contract_precision<fp32>} : vector<16x8xf32>, vector<8x32xf32>, vector<16x32xf32> -> vector<16x32xf32>
    %80 = arith.addf %42, %79 : vector<16x32xf32>
    %c0_76 = arith.constant 0 : index
    %c2 = arith.constant 2 : index
    %c0_77 = arith.constant 0 : index
    %c0_78 = arith.constant 0 : index
    %81 = vector.load %arg4[%c0_76, %c2, %c0_77, %c0_78] : memref<2x4x32x8xf32, #tpu.memory_space<vmem>>, vector<1x1x32x8xf32>
    %82 = vector.shape_cast %81 : vector<1x1x32x8xf32> to vector<32x8xf32>
    %cst_79 = arith.constant dense<0.000000e+00> : vector<16x8xf32>
    %83 = tpu.matmul %2, %82, %cst_79 {dimension_numbers = #tpu.dot_dimension_numbers<[1], [0], [0], [1], [0, 0, 1, 1], [], []>, precision = #tpu.contract_precision<fp32>} : vector<16x32xf32>, vector<32x8xf32>, vector<16x8xf32> -> vector<16x8xf32>
    %c0_80 = arith.constant 0 : index
    %c2_81 = arith.constant 2 : index
    %c0_82 = arith.constant 0 : index
    %c0_83 = arith.constant 0 : index
    %84 = vector.load %arg5[%c0_80, %c2_81, %c0_82, %c0_83] : memref<2x4x1x8xf32, #tpu.memory_space<vmem>>, vector<1x1x1x8xf32>
    %85 = vector.shape_cast %84 : vector<1x1x1x8xf32> to vector<1x8xf32>
    %86 = vector.broadcast %85 : vector<1x8xf32> to vector<16x8xf32>
    %87 = arith.addf %83, %86 : vector<16x8xf32>
    %c0_84 = arith.constant 0 : index
    %c2_85 = arith.constant 2 : index
    %c0_86 = arith.constant 0 : index
    %c0_87 = arith.constant 0 : index
    %88 = vector.load %arg6[%c0_84, %c2_85, %c0_86, %c0_87] : memref<2x4x32x8xf32, #tpu.memory_space<vmem>>, vector<1x1x32x8xf32>
    %89 = vector.shape_cast %88 : vector<1x1x32x8xf32> to vector<32x8xf32>
    %cst_88 = arith.constant dense<0.000000e+00> : vector<16x8xf32>
    %90 = tpu.matmul %2, %89, %cst_88 {dimension_numbers = #tpu.dot_dimension_numbers<[1], [0], [0], [1], [0, 0, 1, 1], [], []>, precision = #tpu.contract_precision<fp32>} : vector<16x32xf32>, vector<32x8xf32>, vector<16x8xf32> -> vector<16x8xf32>
    %c0_89 = arith.constant 0 : index
    %c2_90 = arith.constant 2 : index
    %c0_91 = arith.constant 0 : index
    %c0_92 = arith.constant 0 : index
    %91 = vector.load %arg7[%c0_89, %c2_90, %c0_91, %c0_92] : memref<2x4x1x8xf32, #tpu.memory_space<vmem>>, vector<1x1x1x8xf32>
    %92 = vector.shape_cast %91 : vector<1x1x1x8xf32> to vector<1x8xf32>
    %93 = vector.broadcast %92 : vector<1x8xf32> to vector<16x8xf32>
    %94 = arith.addf %90, %93 : vector<16x8xf32>
    %c0_93 = arith.constant 0 : index
    %c2_94 = arith.constant 2 : index
    %c0_95 = arith.constant 0 : index
    %c0_96 = arith.constant 0 : index
    %95 = vector.load %arg8[%c0_93, %c2_94, %c0_95, %c0_96] : memref<2x4x32x8xf32, #tpu.memory_space<vmem>>, vector<1x1x32x8xf32>
    %96 = vector.shape_cast %95 : vector<1x1x32x8xf32> to vector<32x8xf32>
    %cst_97 = arith.constant dense<0.000000e+00> : vector<16x8xf32>
    %97 = tpu.matmul %2, %96, %cst_97 {dimension_numbers = #tpu.dot_dimension_numbers<[1], [0], [0], [1], [0, 0, 1, 1], [], []>, precision = #tpu.contract_precision<fp32>} : vector<16x32xf32>, vector<32x8xf32>, vector<16x8xf32> -> vector<16x8xf32>
    %c0_98 = arith.constant 0 : index
    %c2_99 = arith.constant 2 : index
    %c0_100 = arith.constant 0 : index
    %c0_101 = arith.constant 0 : index
    %98 = vector.load %arg9[%c0_98, %c2_99, %c0_100, %c0_101] : memref<2x4x1x8xf32, #tpu.memory_space<vmem>>, vector<1x1x1x8xf32>
    %99 = vector.shape_cast %98 : vector<1x1x1x8xf32> to vector<1x8xf32>
    %100 = vector.broadcast %99 : vector<1x8xf32> to vector<16x8xf32>
    %101 = arith.addf %97, %100 : vector<16x8xf32>
    %cst_102 = arith.constant dense<0.000000e+00> : vector<16x16xf32>
    %102 = tpu.matmul %87, %94, %cst_102 {dimension_numbers = #tpu.dot_dimension_numbers<[1], [1], [0], [0], [0, 0, 1, 0], [], []>, precision = #tpu.contract_precision<fp32>} : vector<16x8xf32>, vector<16x8xf32>, vector<16x16xf32> -> vector<16x16xf32>
    %103 = arith.addf %102, %3 : vector<16x16xf32>
    %cst_103 = arith.constant dense<0xFF800000> : vector<16xf32>
    %104 = vector.multi_reduction <maximumf>, %103, %cst_103 [1] : vector<16x16xf32> to vector<16xf32>
    %105 = vector.shape_cast %104 : vector<16xf32> to vector<16x1xf32>
    %106 = vector.broadcast %105 : vector<16x1xf32> to vector<16x16xf32>
    %107 = arith.subf %103, %106 : vector<16x16xf32>
    %108 = math.exp %107 : vector<16x16xf32>
    %cst_104 = arith.constant dense<0.000000e+00> : vector<16xf32>
    %109 = vector.multi_reduction <add>, %108, %cst_104 [1] : vector<16x16xf32> to vector<16xf32>
    %110 = vector.shape_cast %109 : vector<16xf32> to vector<16x1xf32>
    %111 = tpu.reciprocal %110 : vector<16x1xf32> -> vector<16x1xf32>
    %112 = vector.broadcast %111 : vector<16x1xf32> to vector<16x16xf32>
    %113 = arith.mulf %108, %112 : vector<16x16xf32>
    %cst_105 = arith.constant dense<0.000000e+00> : vector<16x8xf32>
    %114 = tpu.matmul %113, %101, %cst_105 {dimension_numbers = #tpu.dot_dimension_numbers<[1], [0], [0], [1], [0, 0, 1, 1], [], []>, precision = #tpu.contract_precision<fp32>} : vector<16x16xf32>, vector<16x8xf32>, vector<16x8xf32> -> vector<16x8xf32>
    %c0_106 = arith.constant 0 : index
    %c2_107 = arith.constant 2 : index
    %c0_108 = arith.constant 0 : index
    %c0_109 = arith.constant 0 : index
    %115 = vector.load %arg10[%c0_106, %c2_107, %c0_108, %c0_109] : memref<2x4x8x32xf32, #tpu.memory_space<vmem>>, vector<1x1x8x32xf32>
    %116 = vector.shape_cast %115 : vector<1x1x8x32xf32> to vector<8x32xf32>
    %cst_110 = arith.constant dense<0.000000e+00> : vector<16x32xf32>
    %117 = tpu.matmul %114, %116, %cst_110 {dimension_numbers = #tpu.dot_dimension_numbers<[1], [0], [0], [1], [0, 0, 1, 1], [], []>, precision = #tpu.contract_precision<fp32>} : vector<16x8xf32>, vector<8x32xf32>, vector<16x32xf32> -> vector<16x32xf32>
    %118 = arith.addf %80, %117 : vector<16x32xf32>
    %c0_111 = arith.constant 0 : index
    %c3 = arith.constant 3 : index
    %c0_112 = arith.constant 0 : index
    %c0_113 = arith.constant 0 : index
    %119 = vector.load %arg4[%c0_111, %c3, %c0_112, %c0_113] : memref<2x4x32x8xf32, #tpu.memory_space<vmem>>, vector<1x1x32x8xf32>
    %120 = vector.shape_cast %119 : vector<1x1x32x8xf32> to vector<32x8xf32>
    %cst_114 = arith.constant dense<0.000000e+00> : vector<16x8xf32>
    %121 = tpu.matmul %2, %120, %cst_114 {dimension_numbers = #tpu.dot_dimension_numbers<[1], [0], [0], [1], [0, 0, 1, 1], [], []>, precision = #tpu.contract_precision<fp32>} : vector<16x32xf32>, vector<32x8xf32>, vector<16x8xf32> -> vector<16x8xf32>
    %c0_115 = arith.constant 0 : index
    %c3_116 = arith.constant 3 : index
    %c0_117 = arith.constant 0 : index
    %c0_118 = arith.constant 0 : index
    %122 = vector.load %arg5[%c0_115, %c3_116, %c0_117, %c0_118] : memref<2x4x1x8xf32, #tpu.memory_space<vmem>>, vector<1x1x1x8xf32>
    %123 = vector.shape_cast %122 : vector<1x1x1x8xf32> to vector<1x8xf32>
    %124 = vector.broadcast %123 : vector<1x8xf32> to vector<16x8xf32>
    %125 = arith.addf %121, %124 : vector<16x8xf32>
    %c0_119 = arith.constant 0 : index
    %c3_120 = arith.constant 3 : index
    %c0_121 = arith.constant 0 : index
    %c0_122 = arith.constant 0 : index
    %126 = vector.load %arg6[%c0_119, %c3_120, %c0_121, %c0_122] : memref<2x4x32x8xf32, #tpu.memory_space<vmem>>, vector<1x1x32x8xf32>
    %127 = vector.shape_cast %126 : vector<1x1x32x8xf32> to vector<32x8xf32>
    %cst_123 = arith.constant dense<0.000000e+00> : vector<16x8xf32>
    %128 = tpu.matmul %2, %127, %cst_123 {dimension_numbers = #tpu.dot_dimension_numbers<[1], [0], [0], [1], [0, 0, 1, 1], [], []>, precision = #tpu.contract_precision<fp32>} : vector<16x32xf32>, vector<32x8xf32>, vector<16x8xf32> -> vector<16x8xf32>
    %c0_124 = arith.constant 0 : index
    %c3_125 = arith.constant 3 : index
    %c0_126 = arith.constant 0 : index
    %c0_127 = arith.constant 0 : index
    %129 = vector.load %arg7[%c0_124, %c3_125, %c0_126, %c0_127] : memref<2x4x1x8xf32, #tpu.memory_space<vmem>>, vector<1x1x1x8xf32>
    %130 = vector.shape_cast %129 : vector<1x1x1x8xf32> to vector<1x8xf32>
    %131 = vector.broadcast %130 : vector<1x8xf32> to vector<16x8xf32>
    %132 = arith.addf %128, %131 : vector<16x8xf32>
    %c0_128 = arith.constant 0 : index
    %c3_129 = arith.constant 3 : index
    %c0_130 = arith.constant 0 : index
    %c0_131 = arith.constant 0 : index
    %133 = vector.load %arg8[%c0_128, %c3_129, %c0_130, %c0_131] : memref<2x4x32x8xf32, #tpu.memory_space<vmem>>, vector<1x1x32x8xf32>
    %134 = vector.shape_cast %133 : vector<1x1x32x8xf32> to vector<32x8xf32>
    %cst_132 = arith.constant dense<0.000000e+00> : vector<16x8xf32>
    %135 = tpu.matmul %2, %134, %cst_132 {dimension_numbers = #tpu.dot_dimension_numbers<[1], [0], [0], [1], [0, 0, 1, 1], [], []>, precision = #tpu.contract_precision<fp32>} : vector<16x32xf32>, vector<32x8xf32>, vector<16x8xf32> -> vector<16x8xf32>
    %c0_133 = arith.constant 0 : index
    %c3_134 = arith.constant 3 : index
    %c0_135 = arith.constant 0 : index
    %c0_136 = arith.constant 0 : index
    %136 = vector.load %arg9[%c0_133, %c3_134, %c0_135, %c0_136] : memref<2x4x1x8xf32, #tpu.memory_space<vmem>>, vector<1x1x1x8xf32>
    %137 = vector.shape_cast %136 : vector<1x1x1x8xf32> to vector<1x8xf32>
    %138 = vector.broadcast %137 : vector<1x8xf32> to vector<16x8xf32>
    %139 = arith.addf %135, %138 : vector<16x8xf32>
    %cst_137 = arith.constant dense<0.000000e+00> : vector<16x16xf32>
    %140 = tpu.matmul %125, %132, %cst_137 {dimension_numbers = #tpu.dot_dimension_numbers<[1], [1], [0], [0], [0, 0, 1, 0], [], []>, precision = #tpu.contract_precision<fp32>} : vector<16x8xf32>, vector<16x8xf32>, vector<16x16xf32> -> vector<16x16xf32>
    %141 = arith.addf %140, %3 : vector<16x16xf32>
    %cst_138 = arith.constant dense<0xFF800000> : vector<16xf32>
    %142 = vector.multi_reduction <maximumf>, %141, %cst_138 [1] : vector<16x16xf32> to vector<16xf32>
    %143 = vector.shape_cast %142 : vector<16xf32> to vector<16x1xf32>
    %144 = vector.broadcast %143 : vector<16x1xf32> to vector<16x16xf32>
    %145 = arith.subf %141, %144 : vector<16x16xf32>
    %146 = math.exp %145 : vector<16x16xf32>
    %cst_139 = arith.constant dense<0.000000e+00> : vector<16xf32>
    %147 = vector.multi_reduction <add>, %146, %cst_139 [1] : vector<16x16xf32> to vector<16xf32>
    %148 = vector.shape_cast %147 : vector<16xf32> to vector<16x1xf32>
    %149 = tpu.reciprocal %148 : vector<16x1xf32> -> vector<16x1xf32>
    %150 = vector.broadcast %149 : vector<16x1xf32> to vector<16x16xf32>
    %151 = arith.mulf %146, %150 : vector<16x16xf32>
    %cst_140 = arith.constant dense<0.000000e+00> : vector<16x8xf32>
    %152 = tpu.matmul %151, %139, %cst_140 {dimension_numbers = #tpu.dot_dimension_numbers<[1], [0], [0], [1], [0, 0, 1, 1], [], []>, precision = #tpu.contract_precision<fp32>} : vector<16x16xf32>, vector<16x8xf32>, vector<16x8xf32> -> vector<16x8xf32>
    %c0_141 = arith.constant 0 : index
    %c3_142 = arith.constant 3 : index
    %c0_143 = arith.constant 0 : index
    %c0_144 = arith.constant 0 : index
    %153 = vector.load %arg10[%c0_141, %c3_142, %c0_143, %c0_144] : memref<2x4x8x32xf32, #tpu.memory_space<vmem>>, vector<1x1x8x32xf32>
    %154 = vector.shape_cast %153 : vector<1x1x8x32xf32> to vector<8x32xf32>
    %cst_145 = arith.constant dense<0.000000e+00> : vector<16x32xf32>
    %155 = tpu.matmul %152, %154, %cst_145 {dimension_numbers = #tpu.dot_dimension_numbers<[1], [0], [0], [1], [0, 0, 1, 1], [], []>, precision = #tpu.contract_precision<fp32>} : vector<16x8xf32>, vector<8x32xf32>, vector<16x32xf32> -> vector<16x32xf32>
    %156 = arith.addf %118, %155 : vector<16x32xf32>
    %157 = arith.addf %2, %156 : vector<16x32xf32>
    %c0_146 = arith.constant 0 : index
    %c0_147 = arith.constant 0 : index
    %c0_148 = arith.constant 0 : index
    %158 = vector.load %arg11[%c0_146, %c0_147, %c0_148] : memref<2x1x32xf32, #tpu.memory_space<vmem>>, vector<1x1x32xf32>
    %159 = vector.shape_cast %158 : vector<1x1x32xf32> to vector<1x32xf32>
    %160 = vector.broadcast %159 : vector<1x32xf32> to vector<16x32xf32>
    %161 = arith.addf %157, %160 : vector<16x32xf32>
    %cst_149 = arith.constant dense<0.000000e+00> : vector<16xf32>
    %162 = vector.multi_reduction <add>, %161, %cst_149 [1] : vector<16x32xf32> to vector<16xf32>
    %163 = vector.shape_cast %162 : vector<16xf32> to vector<16x1xf32>
    %cst_150 = arith.constant 3.200000e+01 : f32
    %164 = vector.broadcast %cst_150 : f32 to vector<16x1xf32>
    %165 = arith.divf %163, %164 : vector<16x1xf32>
    %166 = vector.broadcast %165 : vector<16x1xf32> to vector<16x32xf32>
    %167 = arith.subf %161, %166 : vector<16x32xf32>
    %168 = arith.mulf %167, %167 : vector<16x32xf32>
    %cst_151 = arith.constant dense<0.000000e+00> : vector<16xf32>
    %169 = vector.multi_reduction <add>, %168, %cst_151 [1] : vector<16x32xf32> to vector<16xf32>
    %170 = vector.shape_cast %169 : vector<16xf32> to vector<16x1xf32>
    %cst_152 = arith.constant 3.200000e+01 : f32
    %171 = vector.broadcast %cst_152 : f32 to vector<16x1xf32>
    %172 = arith.divf %170, %171 : vector<16x1xf32>
    %173 = vector.broadcast %165 : vector<16x1xf32> to vector<16x32xf32>
    %174 = arith.subf %161, %173 : vector<16x32xf32>
    %cst_153 = arith.constant 9.99999997E-7 : f32
    %175 = vector.broadcast %cst_153 : f32 to vector<16x1xf32>
    %176 = arith.addf %172, %175 : vector<16x1xf32>
    %177 = math.rsqrt %176 : vector<16x1xf32>
    %178 = vector.broadcast %177 : vector<16x1xf32> to vector<16x32xf32>
    %179 = arith.mulf %174, %178 : vector<16x32xf32>
    %c0_154 = arith.constant 0 : index
    %c0_155 = arith.constant 0 : index
    %c0_156 = arith.constant 0 : index
    %180 = vector.load %arg12[%c0_154, %c0_155, %c0_156] : memref<2x1x32xf32, #tpu.memory_space<vmem>>, vector<1x1x32xf32>
    %181 = vector.shape_cast %180 : vector<1x1x32xf32> to vector<1x32xf32>
    %182 = vector.broadcast %181 : vector<1x32xf32> to vector<16x32xf32>
    %183 = arith.mulf %179, %182 : vector<16x32xf32>
    %c0_157 = arith.constant 0 : index
    %c0_158 = arith.constant 0 : index
    %c0_159 = arith.constant 0 : index
    %184 = vector.load %arg13[%c0_157, %c0_158, %c0_159] : memref<2x1x32xf32, #tpu.memory_space<vmem>>, vector<1x1x32xf32>
    %185 = vector.shape_cast %184 : vector<1x1x32xf32> to vector<1x32xf32>
    %186 = vector.broadcast %185 : vector<1x32xf32> to vector<16x32xf32>
    %187 = arith.addf %183, %186 : vector<16x32xf32>
    %c0_160 = arith.constant 0 : index
    %c0_161 = arith.constant 0 : index
    %c0_162 = arith.constant 0 : index
    %188 = vector.load %arg14[%c0_160, %c0_161, %c0_162] : memref<2x32x64xf32, #tpu.memory_space<vmem>>, vector<1x32x64xf32>
    %189 = vector.shape_cast %188 : vector<1x32x64xf32> to vector<32x64xf32>
    %cst_163 = arith.constant dense<0.000000e+00> : vector<16x64xf32>
    %190 = tpu.matmul %187, %189, %cst_163 {dimension_numbers = #tpu.dot_dimension_numbers<[1], [0], [0], [1], [0, 0, 1, 1], [], []>, precision = #tpu.contract_precision<fp32>} : vector<16x32xf32>, vector<32x64xf32>, vector<16x64xf32> -> vector<16x64xf32>
    %c0_164 = arith.constant 0 : index
    %c0_165 = arith.constant 0 : index
    %c0_166 = arith.constant 0 : index
    %191 = vector.load %arg15[%c0_164, %c0_165, %c0_166] : memref<2x1x64xf32, #tpu.memory_space<vmem>>, vector<1x1x64xf32>
    %192 = vector.shape_cast %191 : vector<1x1x64xf32> to vector<1x64xf32>
    %193 = vector.broadcast %192 : vector<1x64xf32> to vector<16x64xf32>
    %194 = arith.addf %190, %193 : vector<16x64xf32>
    %cst_167 = arith.constant 0.000000e+00 : f32
    %195 = vector.broadcast %cst_167 : f32 to vector<16x64xf32>
    %196 = arith.maximumf %194, %195 : vector<16x64xf32>
    %c0_168 = arith.constant 0 : index
    %c0_169 = arith.constant 0 : index
    %c0_170 = arith.constant 0 : index
    %197 = vector.load %arg16[%c0_168, %c0_169, %c0_170] : memref<2x64x32xf32, #tpu.memory_space<vmem>>, vector<1x64x32xf32>
    %198 = vector.shape_cast %197 : vector<1x64x32xf32> to vector<64x32xf32>
    %cst_171 = arith.constant dense<0.000000e+00> : vector<16x32xf32>
    %199 = tpu.matmul %196, %198, %cst_171 {dimension_numbers = #tpu.dot_dimension_numbers<[1], [0], [0], [1], [0, 0, 1, 1], [], []>, precision = #tpu.contract_precision<fp32>} : vector<16x64xf32>, vector<64x32xf32>, vector<16x32xf32> -> vector<16x32xf32>
    %c0_172 = arith.constant 0 : index
    %c0_173 = arith.constant 0 : index
    %c0_174 = arith.constant 0 : index
    %200 = vector.load %arg17[%c0_172, %c0_173, %c0_174] : memref<2x1x32xf32, #tpu.memory_space<vmem>>, vector<1x1x32xf32>
    %201 = vector.shape_cast %200 : vector<1x1x32xf32> to vector<1x32xf32>
    %202 = vector.broadcast %201 : vector<1x32xf32> to vector<16x32xf32>
    %203 = arith.addf %199, %202 : vector<16x32xf32>
    %204 = arith.addf %187, %203 : vector<16x32xf32>
    %cst_175 = arith.constant dense<0.000000e+00> : vector<16xf32>
    %205 = vector.multi_reduction <add>, %204, %cst_175 [1] : vector<16x32xf32> to vector<16xf32>
    %206 = vector.shape_cast %205 : vector<16xf32> to vector<16x1xf32>
    %cst_176 = arith.constant 3.200000e+01 : f32
    %207 = vector.broadcast %cst_176 : f32 to vector<16x1xf32>
    %208 = arith.divf %206, %207 : vector<16x1xf32>
    %209 = vector.broadcast %208 : vector<16x1xf32> to vector<16x32xf32>
    %210 = arith.subf %204, %209 : vector<16x32xf32>
    %211 = arith.mulf %210, %210 : vector<16x32xf32>
    %cst_177 = arith.constant dense<0.000000e+00> : vector<16xf32>
    %212 = vector.multi_reduction <add>, %211, %cst_177 [1] : vector<16x32xf32> to vector<16xf32>
    %213 = vector.shape_cast %212 : vector<16xf32> to vector<16x1xf32>
    %cst_178 = arith.constant 3.200000e+01 : f32
    %214 = vector.broadcast %cst_178 : f32 to vector<16x1xf32>
    %215 = arith.divf %213, %214 : vector<16x1xf32>
    %216 = vector.broadcast %208 : vector<16x1xf32> to vector<16x32xf32>
    %217 = arith.subf %204, %216 : vector<16x32xf32>
    %cst_179 = arith.constant 9.99999997E-7 : f32
    %218 = vector.broadcast %cst_179 : f32 to vector<16x1xf32>
    %219 = arith.addf %215, %218 : vector<16x1xf32>
    %220 = math.rsqrt %219 : vector<16x1xf32>
    %221 = vector.broadcast %220 : vector<16x1xf32> to vector<16x32xf32>
    %222 = arith.mulf %217, %221 : vector<16x32xf32>
    %c0_180 = arith.constant 0 : index
    %c0_181 = arith.constant 0 : index
    %c0_182 = arith.constant 0 : index
    %223 = vector.load %arg18[%c0_180, %c0_181, %c0_182] : memref<2x1x32xf32, #tpu.memory_space<vmem>>, vector<1x1x32xf32>
    %224 = vector.shape_cast %223 : vector<1x1x32xf32> to vector<1x32xf32>
    %225 = vector.broadcast %224 : vector<1x32xf32> to vector<16x32xf32>
    %226 = arith.mulf %222, %225 : vector<16x32xf32>
    %c0_183 = arith.constant 0 : index
    %c0_184 = arith.constant 0 : index
    %c0_185 = arith.constant 0 : index
    %227 = vector.load %arg19[%c0_183, %c0_184, %c0_185] : memref<2x1x32xf32, #tpu.memory_space<vmem>>, vector<1x1x32xf32>
    %228 = vector.shape_cast %227 : vector<1x1x32xf32> to vector<1x32xf32>
    %229 = vector.broadcast %228 : vector<1x32xf32> to vector<16x32xf32>
    %230 = arith.addf %226, %229 : vector<16x32xf32>
    %cst_186 = arith.constant 0.000000e+00 : f32
    %231 = vector.broadcast %cst_186 : f32 to vector<16x32xf32>
    %c1_187 = arith.constant 1 : index
    %c0_188 = arith.constant 0 : index
    %c0_189 = arith.constant 0 : index
    %c0_190 = arith.constant 0 : index
    %232 = vector.load %arg4[%c1_187, %c0_188, %c0_189, %c0_190] : memref<2x4x32x8xf32, #tpu.memory_space<vmem>>, vector<1x1x32x8xf32>
    %233 = vector.shape_cast %232 : vector<1x1x32x8xf32> to vector<32x8xf32>
    %cst_191 = arith.constant dense<0.000000e+00> : vector<16x8xf32>
    %234 = tpu.matmul %230, %233, %cst_191 {dimension_numbers = #tpu.dot_dimension_numbers<[1], [0], [0], [1], [0, 0, 1, 1], [], []>, precision = #tpu.contract_precision<fp32>} : vector<16x32xf32>, vector<32x8xf32>, vector<16x8xf32> -> vector<16x8xf32>
    %c1_192 = arith.constant 1 : index
    %c0_193 = arith.constant 0 : index
    %c0_194 = arith.constant 0 : index
    %c0_195 = arith.constant 0 : index
    %235 = vector.load %arg5[%c1_192, %c0_193, %c0_194, %c0_195] : memref<2x4x1x8xf32, #tpu.memory_space<vmem>>, vector<1x1x1x8xf32>
    %236 = vector.shape_cast %235 : vector<1x1x1x8xf32> to vector<1x8xf32>
    %237 = vector.broadcast %236 : vector<1x8xf32> to vector<16x8xf32>
    %238 = arith.addf %234, %237 : vector<16x8xf32>
    %c1_196 = arith.constant 1 : index
    %c0_197 = arith.constant 0 : index
    %c0_198 = arith.constant 0 : index
    %c0_199 = arith.constant 0 : index
    %239 = vector.load %arg6[%c1_196, %c0_197, %c0_198, %c0_199] : memref<2x4x32x8xf32, #tpu.memory_space<vmem>>, vector<1x1x32x8xf32>
    %240 = vector.shape_cast %239 : vector<1x1x32x8xf32> to vector<32x8xf32>
    %cst_200 = arith.constant dense<0.000000e+00> : vector<16x8xf32>
    %241 = tpu.matmul %230, %240, %cst_200 {dimension_numbers = #tpu.dot_dimension_numbers<[1], [0], [0], [1], [0, 0, 1, 1], [], []>, precision = #tpu.contract_precision<fp32>} : vector<16x32xf32>, vector<32x8xf32>, vector<16x8xf32> -> vector<16x8xf32>
    %c1_201 = arith.constant 1 : index
    %c0_202 = arith.constant 0 : index
    %c0_203 = arith.constant 0 : index
    %c0_204 = arith.constant 0 : index
    %242 = vector.load %arg7[%c1_201, %c0_202, %c0_203, %c0_204] : memref<2x4x1x8xf32, #tpu.memory_space<vmem>>, vector<1x1x1x8xf32>
    %243 = vector.shape_cast %242 : vector<1x1x1x8xf32> to vector<1x8xf32>
    %244 = vector.broadcast %243 : vector<1x8xf32> to vector<16x8xf32>
    %245 = arith.addf %241, %244 : vector<16x8xf32>
    %c1_205 = arith.constant 1 : index
    %c0_206 = arith.constant 0 : index
    %c0_207 = arith.constant 0 : index
    %c0_208 = arith.constant 0 : index
    %246 = vector.load %arg8[%c1_205, %c0_206, %c0_207, %c0_208] : memref<2x4x32x8xf32, #tpu.memory_space<vmem>>, vector<1x1x32x8xf32>
    %247 = vector.shape_cast %246 : vector<1x1x32x8xf32> to vector<32x8xf32>
    %cst_209 = arith.constant dense<0.000000e+00> : vector<16x8xf32>
    %248 = tpu.matmul %230, %247, %cst_209 {dimension_numbers = #tpu.dot_dimension_numbers<[1], [0], [0], [1], [0, 0, 1, 1], [], []>, precision = #tpu.contract_precision<fp32>} : vector<16x32xf32>, vector<32x8xf32>, vector<16x8xf32> -> vector<16x8xf32>
    %c1_210 = arith.constant 1 : index
    %c0_211 = arith.constant 0 : index
    %c0_212 = arith.constant 0 : index
    %c0_213 = arith.constant 0 : index
    %249 = vector.load %arg9[%c1_210, %c0_211, %c0_212, %c0_213] : memref<2x4x1x8xf32, #tpu.memory_space<vmem>>, vector<1x1x1x8xf32>
    %250 = vector.shape_cast %249 : vector<1x1x1x8xf32> to vector<1x8xf32>
    %251 = vector.broadcast %250 : vector<1x8xf32> to vector<16x8xf32>
    %252 = arith.addf %248, %251 : vector<16x8xf32>
    %cst_214 = arith.constant dense<0.000000e+00> : vector<16x16xf32>
    %253 = tpu.matmul %238, %245, %cst_214 {dimension_numbers = #tpu.dot_dimension_numbers<[1], [1], [0], [0], [0, 0, 1, 0], [], []>, precision = #tpu.contract_precision<fp32>} : vector<16x8xf32>, vector<16x8xf32>, vector<16x16xf32> -> vector<16x16xf32>
    %254 = arith.addf %253, %3 : vector<16x16xf32>
    %cst_215 = arith.constant dense<0xFF800000> : vector<16xf32>
    %255 = vector.multi_reduction <maximumf>, %254, %cst_215 [1] : vector<16x16xf32> to vector<16xf32>
    %256 = vector.shape_cast %255 : vector<16xf32> to vector<16x1xf32>
    %257 = vector.broadcast %256 : vector<16x1xf32> to vector<16x16xf32>
    %258 = arith.subf %254, %257 : vector<16x16xf32>
    %259 = math.exp %258 : vector<16x16xf32>
    %cst_216 = arith.constant dense<0.000000e+00> : vector<16xf32>
    %260 = vector.multi_reduction <add>, %259, %cst_216 [1] : vector<16x16xf32> to vector<16xf32>
    %261 = vector.shape_cast %260 : vector<16xf32> to vector<16x1xf32>
    %262 = tpu.reciprocal %261 : vector<16x1xf32> -> vector<16x1xf32>
    %263 = vector.broadcast %262 : vector<16x1xf32> to vector<16x16xf32>
    %264 = arith.mulf %259, %263 : vector<16x16xf32>
    %cst_217 = arith.constant dense<0.000000e+00> : vector<16x8xf32>
    %265 = tpu.matmul %264, %252, %cst_217 {dimension_numbers = #tpu.dot_dimension_numbers<[1], [0], [0], [1], [0, 0, 1, 1], [], []>, precision = #tpu.contract_precision<fp32>} : vector<16x16xf32>, vector<16x8xf32>, vector<16x8xf32> -> vector<16x8xf32>
    %c1_218 = arith.constant 1 : index
    %c0_219 = arith.constant 0 : index
    %c0_220 = arith.constant 0 : index
    %c0_221 = arith.constant 0 : index
    %266 = vector.load %arg10[%c1_218, %c0_219, %c0_220, %c0_221] : memref<2x4x8x32xf32, #tpu.memory_space<vmem>>, vector<1x1x8x32xf32>
    %267 = vector.shape_cast %266 : vector<1x1x8x32xf32> to vector<8x32xf32>
    %cst_222 = arith.constant dense<0.000000e+00> : vector<16x32xf32>
    %268 = tpu.matmul %265, %267, %cst_222 {dimension_numbers = #tpu.dot_dimension_numbers<[1], [0], [0], [1], [0, 0, 1, 1], [], []>, precision = #tpu.contract_precision<fp32>} : vector<16x8xf32>, vector<8x32xf32>, vector<16x32xf32> -> vector<16x32xf32>
    %269 = arith.addf %231, %268 : vector<16x32xf32>
    %c1_223 = arith.constant 1 : index
    %c1_224 = arith.constant 1 : index
    %c0_225 = arith.constant 0 : index
    %c0_226 = arith.constant 0 : index
    %270 = vector.load %arg4[%c1_223, %c1_224, %c0_225, %c0_226] : memref<2x4x32x8xf32, #tpu.memory_space<vmem>>, vector<1x1x32x8xf32>
    %271 = vector.shape_cast %270 : vector<1x1x32x8xf32> to vector<32x8xf32>
    %cst_227 = arith.constant dense<0.000000e+00> : vector<16x8xf32>
    %272 = tpu.matmul %230, %271, %cst_227 {dimension_numbers = #tpu.dot_dimension_numbers<[1], [0], [0], [1], [0, 0, 1, 1], [], []>, precision = #tpu.contract_precision<fp32>} : vector<16x32xf32>, vector<32x8xf32>, vector<16x8xf32> -> vector<16x8xf32>
    %c1_228 = arith.constant 1 : index
    %c1_229 = arith.constant 1 : index
    %c0_230 = arith.constant 0 : index
    %c0_231 = arith.constant 0 : index
    %273 = vector.load %arg5[%c1_228, %c1_229, %c0_230, %c0_231] : memref<2x4x1x8xf32, #tpu.memory_space<vmem>>, vector<1x1x1x8xf32>
    %274 = vector.shape_cast %273 : vector<1x1x1x8xf32> to vector<1x8xf32>
    %275 = vector.broadcast %274 : vector<1x8xf32> to vector<16x8xf32>
    %276 = arith.addf %272, %275 : vector<16x8xf32>
    %c1_232 = arith.constant 1 : index
    %c1_233 = arith.constant 1 : index
    %c0_234 = arith.constant 0 : index
    %c0_235 = arith.constant 0 : index
    %277 = vector.load %arg6[%c1_232, %c1_233, %c0_234, %c0_235] : memref<2x4x32x8xf32, #tpu.memory_space<vmem>>, vector<1x1x32x8xf32>
    %278 = vector.shape_cast %277 : vector<1x1x32x8xf32> to vector<32x8xf32>
    %cst_236 = arith.constant dense<0.000000e+00> : vector<16x8xf32>
    %279 = tpu.matmul %230, %278, %cst_236 {dimension_numbers = #tpu.dot_dimension_numbers<[1], [0], [0], [1], [0, 0, 1, 1], [], []>, precision = #tpu.contract_precision<fp32>} : vector<16x32xf32>, vector<32x8xf32>, vector<16x8xf32> -> vector<16x8xf32>
    %c1_237 = arith.constant 1 : index
    %c1_238 = arith.constant 1 : index
    %c0_239 = arith.constant 0 : index
    %c0_240 = arith.constant 0 : index
    %280 = vector.load %arg7[%c1_237, %c1_238, %c0_239, %c0_240] : memref<2x4x1x8xf32, #tpu.memory_space<vmem>>, vector<1x1x1x8xf32>
    %281 = vector.shape_cast %280 : vector<1x1x1x8xf32> to vector<1x8xf32>
    %282 = vector.broadcast %281 : vector<1x8xf32> to vector<16x8xf32>
    %283 = arith.addf %279, %282 : vector<16x8xf32>
    %c1_241 = arith.constant 1 : index
    %c1_242 = arith.constant 1 : index
    %c0_243 = arith.constant 0 : index
    %c0_244 = arith.constant 0 : index
    %284 = vector.load %arg8[%c1_241, %c1_242, %c0_243, %c0_244] : memref<2x4x32x8xf32, #tpu.memory_space<vmem>>, vector<1x1x32x8xf32>
    %285 = vector.shape_cast %284 : vector<1x1x32x8xf32> to vector<32x8xf32>
    %cst_245 = arith.constant dense<0.000000e+00> : vector<16x8xf32>
    %286 = tpu.matmul %230, %285, %cst_245 {dimension_numbers = #tpu.dot_dimension_numbers<[1], [0], [0], [1], [0, 0, 1, 1], [], []>, precision = #tpu.contract_precision<fp32>} : vector<16x32xf32>, vector<32x8xf32>, vector<16x8xf32> -> vector<16x8xf32>
    %c1_246 = arith.constant 1 : index
    %c1_247 = arith.constant 1 : index
    %c0_248 = arith.constant 0 : index
    %c0_249 = arith.constant 0 : index
    %287 = vector.load %arg9[%c1_246, %c1_247, %c0_248, %c0_249] : memref<2x4x1x8xf32, #tpu.memory_space<vmem>>, vector<1x1x1x8xf32>
    %288 = vector.shape_cast %287 : vector<1x1x1x8xf32> to vector<1x8xf32>
    %289 = vector.broadcast %288 : vector<1x8xf32> to vector<16x8xf32>
    %290 = arith.addf %286, %289 : vector<16x8xf32>
    %cst_250 = arith.constant dense<0.000000e+00> : vector<16x16xf32>
    %291 = tpu.matmul %276, %283, %cst_250 {dimension_numbers = #tpu.dot_dimension_numbers<[1], [1], [0], [0], [0, 0, 1, 0], [], []>, precision = #tpu.contract_precision<fp32>} : vector<16x8xf32>, vector<16x8xf32>, vector<16x16xf32> -> vector<16x16xf32>
    %292 = arith.addf %291, %3 : vector<16x16xf32>
    %cst_251 = arith.constant dense<0xFF800000> : vector<16xf32>
    %293 = vector.multi_reduction <maximumf>, %292, %cst_251 [1] : vector<16x16xf32> to vector<16xf32>
    %294 = vector.shape_cast %293 : vector<16xf32> to vector<16x1xf32>
    %295 = vector.broadcast %294 : vector<16x1xf32> to vector<16x16xf32>
    %296 = arith.subf %292, %295 : vector<16x16xf32>
    %297 = math.exp %296 : vector<16x16xf32>
    %cst_252 = arith.constant dense<0.000000e+00> : vector<16xf32>
    %298 = vector.multi_reduction <add>, %297, %cst_252 [1] : vector<16x16xf32> to vector<16xf32>
    %299 = vector.shape_cast %298 : vector<16xf32> to vector<16x1xf32>
    %300 = tpu.reciprocal %299 : vector<16x1xf32> -> vector<16x1xf32>
    %301 = vector.broadcast %300 : vector<16x1xf32> to vector<16x16xf32>
    %302 = arith.mulf %297, %301 : vector<16x16xf32>
    %cst_253 = arith.constant dense<0.000000e+00> : vector<16x8xf32>
    %303 = tpu.matmul %302, %290, %cst_253 {dimension_numbers = #tpu.dot_dimension_numbers<[1], [0], [0], [1], [0, 0, 1, 1], [], []>, precision = #tpu.contract_precision<fp32>} : vector<16x16xf32>, vector<16x8xf32>, vector<16x8xf32> -> vector<16x8xf32>
    %c1_254 = arith.constant 1 : index
    %c1_255 = arith.constant 1 : index
    %c0_256 = arith.constant 0 : index
    %c0_257 = arith.constant 0 : index
    %304 = vector.load %arg10[%c1_254, %c1_255, %c0_256, %c0_257] : memref<2x4x8x32xf32, #tpu.memory_space<vmem>>, vector<1x1x8x32xf32>
    %305 = vector.shape_cast %304 : vector<1x1x8x32xf32> to vector<8x32xf32>
    %cst_258 = arith.constant dense<0.000000e+00> : vector<16x32xf32>
    %306 = tpu.matmul %303, %305, %cst_258 {dimension_numbers = #tpu.dot_dimension_numbers<[1], [0], [0], [1], [0, 0, 1, 1], [], []>, precision = #tpu.contract_precision<fp32>} : vector<16x8xf32>, vector<8x32xf32>, vector<16x32xf32> -> vector<16x32xf32>
    %307 = arith.addf %269, %306 : vector<16x32xf32>
    %c1_259 = arith.constant 1 : index
    %c2_260 = arith.constant 2 : index
    %c0_261 = arith.constant 0 : index
    %c0_262 = arith.constant 0 : index
    %308 = vector.load %arg4[%c1_259, %c2_260, %c0_261, %c0_262] : memref<2x4x32x8xf32, #tpu.memory_space<vmem>>, vector<1x1x32x8xf32>
    %309 = vector.shape_cast %308 : vector<1x1x32x8xf32> to vector<32x8xf32>
    %cst_263 = arith.constant dense<0.000000e+00> : vector<16x8xf32>
    %310 = tpu.matmul %230, %309, %cst_263 {dimension_numbers = #tpu.dot_dimension_numbers<[1], [0], [0], [1], [0, 0, 1, 1], [], []>, precision = #tpu.contract_precision<fp32>} : vector<16x32xf32>, vector<32x8xf32>, vector<16x8xf32> -> vector<16x8xf32>
    %c1_264 = arith.constant 1 : index
    %c2_265 = arith.constant 2 : index
    %c0_266 = arith.constant 0 : index
    %c0_267 = arith.constant 0 : index
    %311 = vector.load %arg5[%c1_264, %c2_265, %c0_266, %c0_267] : memref<2x4x1x8xf32, #tpu.memory_space<vmem>>, vector<1x1x1x8xf32>
    %312 = vector.shape_cast %311 : vector<1x1x1x8xf32> to vector<1x8xf32>
    %313 = vector.broadcast %312 : vector<1x8xf32> to vector<16x8xf32>
    %314 = arith.addf %310, %313 : vector<16x8xf32>
    %c1_268 = arith.constant 1 : index
    %c2_269 = arith.constant 2 : index
    %c0_270 = arith.constant 0 : index
    %c0_271 = arith.constant 0 : index
    %315 = vector.load %arg6[%c1_268, %c2_269, %c0_270, %c0_271] : memref<2x4x32x8xf32, #tpu.memory_space<vmem>>, vector<1x1x32x8xf32>
    %316 = vector.shape_cast %315 : vector<1x1x32x8xf32> to vector<32x8xf32>
    %cst_272 = arith.constant dense<0.000000e+00> : vector<16x8xf32>
    %317 = tpu.matmul %230, %316, %cst_272 {dimension_numbers = #tpu.dot_dimension_numbers<[1], [0], [0], [1], [0, 0, 1, 1], [], []>, precision = #tpu.contract_precision<fp32>} : vector<16x32xf32>, vector<32x8xf32>, vector<16x8xf32> -> vector<16x8xf32>
    %c1_273 = arith.constant 1 : index
    %c2_274 = arith.constant 2 : index
    %c0_275 = arith.constant 0 : index
    %c0_276 = arith.constant 0 : index
    %318 = vector.load %arg7[%c1_273, %c2_274, %c0_275, %c0_276] : memref<2x4x1x8xf32, #tpu.memory_space<vmem>>, vector<1x1x1x8xf32>
    %319 = vector.shape_cast %318 : vector<1x1x1x8xf32> to vector<1x8xf32>
    %320 = vector.broadcast %319 : vector<1x8xf32> to vector<16x8xf32>
    %321 = arith.addf %317, %320 : vector<16x8xf32>
    %c1_277 = arith.constant 1 : index
    %c2_278 = arith.constant 2 : index
    %c0_279 = arith.constant 0 : index
    %c0_280 = arith.constant 0 : index
    %322 = vector.load %arg8[%c1_277, %c2_278, %c0_279, %c0_280] : memref<2x4x32x8xf32, #tpu.memory_space<vmem>>, vector<1x1x32x8xf32>
    %323 = vector.shape_cast %322 : vector<1x1x32x8xf32> to vector<32x8xf32>
    %cst_281 = arith.constant dense<0.000000e+00> : vector<16x8xf32>
    %324 = tpu.matmul %230, %323, %cst_281 {dimension_numbers = #tpu.dot_dimension_numbers<[1], [0], [0], [1], [0, 0, 1, 1], [], []>, precision = #tpu.contract_precision<fp32>} : vector<16x32xf32>, vector<32x8xf32>, vector<16x8xf32> -> vector<16x8xf32>
    %c1_282 = arith.constant 1 : index
    %c2_283 = arith.constant 2 : index
    %c0_284 = arith.constant 0 : index
    %c0_285 = arith.constant 0 : index
    %325 = vector.load %arg9[%c1_282, %c2_283, %c0_284, %c0_285] : memref<2x4x1x8xf32, #tpu.memory_space<vmem>>, vector<1x1x1x8xf32>
    %326 = vector.shape_cast %325 : vector<1x1x1x8xf32> to vector<1x8xf32>
    %327 = vector.broadcast %326 : vector<1x8xf32> to vector<16x8xf32>
    %328 = arith.addf %324, %327 : vector<16x8xf32>
    %cst_286 = arith.constant dense<0.000000e+00> : vector<16x16xf32>
    %329 = tpu.matmul %314, %321, %cst_286 {dimension_numbers = #tpu.dot_dimension_numbers<[1], [1], [0], [0], [0, 0, 1, 0], [], []>, precision = #tpu.contract_precision<fp32>} : vector<16x8xf32>, vector<16x8xf32>, vector<16x16xf32> -> vector<16x16xf32>
    %330 = arith.addf %329, %3 : vector<16x16xf32>
    %cst_287 = arith.constant dense<0xFF800000> : vector<16xf32>
    %331 = vector.multi_reduction <maximumf>, %330, %cst_287 [1] : vector<16x16xf32> to vector<16xf32>
    %332 = vector.shape_cast %331 : vector<16xf32> to vector<16x1xf32>
    %333 = vector.broadcast %332 : vector<16x1xf32> to vector<16x16xf32>
    %334 = arith.subf %330, %333 : vector<16x16xf32>
    %335 = math.exp %334 : vector<16x16xf32>
    %cst_288 = arith.constant dense<0.000000e+00> : vector<16xf32>
    %336 = vector.multi_reduction <add>, %335, %cst_288 [1] : vector<16x16xf32> to vector<16xf32>
    %337 = vector.shape_cast %336 : vector<16xf32> to vector<16x1xf32>
    %338 = tpu.reciprocal %337 : vector<16x1xf32> -> vector<16x1xf32>
    %339 = vector.broadcast %338 : vector<16x1xf32> to vector<16x16xf32>
    %340 = arith.mulf %335, %339 : vector<16x16xf32>
    %cst_289 = arith.constant dense<0.000000e+00> : vector<16x8xf32>
    %341 = tpu.matmul %340, %328, %cst_289 {dimension_numbers = #tpu.dot_dimension_numbers<[1], [0], [0], [1], [0, 0, 1, 1], [], []>, precision = #tpu.contract_precision<fp32>} : vector<16x16xf32>, vector<16x8xf32>, vector<16x8xf32> -> vector<16x8xf32>
    %c1_290 = arith.constant 1 : index
    %c2_291 = arith.constant 2 : index
    %c0_292 = arith.constant 0 : index
    %c0_293 = arith.constant 0 : index
    %342 = vector.load %arg10[%c1_290, %c2_291, %c0_292, %c0_293] : memref<2x4x8x32xf32, #tpu.memory_space<vmem>>, vector<1x1x8x32xf32>
    %343 = vector.shape_cast %342 : vector<1x1x8x32xf32> to vector<8x32xf32>
    %cst_294 = arith.constant dense<0.000000e+00> : vector<16x32xf32>
    %344 = tpu.matmul %341, %343, %cst_294 {dimension_numbers = #tpu.dot_dimension_numbers<[1], [0], [0], [1], [0, 0, 1, 1], [], []>, precision = #tpu.contract_precision<fp32>} : vector<16x8xf32>, vector<8x32xf32>, vector<16x32xf32> -> vector<16x32xf32>
    %345 = arith.addf %307, %344 : vector<16x32xf32>
    %c1_295 = arith.constant 1 : index
    %c3_296 = arith.constant 3 : index
    %c0_297 = arith.constant 0 : index
    %c0_298 = arith.constant 0 : index
    %346 = vector.load %arg4[%c1_295, %c3_296, %c0_297, %c0_298] : memref<2x4x32x8xf32, #tpu.memory_space<vmem>>, vector<1x1x32x8xf32>
    %347 = vector.shape_cast %346 : vector<1x1x32x8xf32> to vector<32x8xf32>
    %cst_299 = arith.constant dense<0.000000e+00> : vector<16x8xf32>
    %348 = tpu.matmul %230, %347, %cst_299 {dimension_numbers = #tpu.dot_dimension_numbers<[1], [0], [0], [1], [0, 0, 1, 1], [], []>, precision = #tpu.contract_precision<fp32>} : vector<16x32xf32>, vector<32x8xf32>, vector<16x8xf32> -> vector<16x8xf32>
    %c1_300 = arith.constant 1 : index
    %c3_301 = arith.constant 3 : index
    %c0_302 = arith.constant 0 : index
    %c0_303 = arith.constant 0 : index
    %349 = vector.load %arg5[%c1_300, %c3_301, %c0_302, %c0_303] : memref<2x4x1x8xf32, #tpu.memory_space<vmem>>, vector<1x1x1x8xf32>
    %350 = vector.shape_cast %349 : vector<1x1x1x8xf32> to vector<1x8xf32>
    %351 = vector.broadcast %350 : vector<1x8xf32> to vector<16x8xf32>
    %352 = arith.addf %348, %351 : vector<16x8xf32>
    %c1_304 = arith.constant 1 : index
    %c3_305 = arith.constant 3 : index
    %c0_306 = arith.constant 0 : index
    %c0_307 = arith.constant 0 : index
    %353 = vector.load %arg6[%c1_304, %c3_305, %c0_306, %c0_307] : memref<2x4x32x8xf32, #tpu.memory_space<vmem>>, vector<1x1x32x8xf32>
    %354 = vector.shape_cast %353 : vector<1x1x32x8xf32> to vector<32x8xf32>
    %cst_308 = arith.constant dense<0.000000e+00> : vector<16x8xf32>
    %355 = tpu.matmul %230, %354, %cst_308 {dimension_numbers = #tpu.dot_dimension_numbers<[1], [0], [0], [1], [0, 0, 1, 1], [], []>, precision = #tpu.contract_precision<fp32>} : vector<16x32xf32>, vector<32x8xf32>, vector<16x8xf32> -> vector<16x8xf32>
    %c1_309 = arith.constant 1 : index
    %c3_310 = arith.constant 3 : index
    %c0_311 = arith.constant 0 : index
    %c0_312 = arith.constant 0 : index
    %356 = vector.load %arg7[%c1_309, %c3_310, %c0_311, %c0_312] : memref<2x4x1x8xf32, #tpu.memory_space<vmem>>, vector<1x1x1x8xf32>
    %357 = vector.shape_cast %356 : vector<1x1x1x8xf32> to vector<1x8xf32>
    %358 = vector.broadcast %357 : vector<1x8xf32> to vector<16x8xf32>
    %359 = arith.addf %355, %358 : vector<16x8xf32>
    %c1_313 = arith.constant 1 : index
    %c3_314 = arith.constant 3 : index
    %c0_315 = arith.constant 0 : index
    %c0_316 = arith.constant 0 : index
    %360 = vector.load %arg8[%c1_313, %c3_314, %c0_315, %c0_316] : memref<2x4x32x8xf32, #tpu.memory_space<vmem>>, vector<1x1x32x8xf32>
    %361 = vector.shape_cast %360 : vector<1x1x32x8xf32> to vector<32x8xf32>
    %cst_317 = arith.constant dense<0.000000e+00> : vector<16x8xf32>
    %362 = tpu.matmul %230, %361, %cst_317 {dimension_numbers = #tpu.dot_dimension_numbers<[1], [0], [0], [1], [0, 0, 1, 1], [], []>, precision = #tpu.contract_precision<fp32>} : vector<16x32xf32>, vector<32x8xf32>, vector<16x8xf32> -> vector<16x8xf32>
    %c1_318 = arith.constant 1 : index
    %c3_319 = arith.constant 3 : index
    %c0_320 = arith.constant 0 : index
    %c0_321 = arith.constant 0 : index
    %363 = vector.load %arg9[%c1_318, %c3_319, %c0_320, %c0_321] : memref<2x4x1x8xf32, #tpu.memory_space<vmem>>, vector<1x1x1x8xf32>
    %364 = vector.shape_cast %363 : vector<1x1x1x8xf32> to vector<1x8xf32>
    %365 = vector.broadcast %364 : vector<1x8xf32> to vector<16x8xf32>
    %366 = arith.addf %362, %365 : vector<16x8xf32>
    %cst_322 = arith.constant dense<0.000000e+00> : vector<16x16xf32>
    %367 = tpu.matmul %352, %359, %cst_322 {dimension_numbers = #tpu.dot_dimension_numbers<[1], [1], [0], [0], [0, 0, 1, 0], [], []>, precision = #tpu.contract_precision<fp32>} : vector<16x8xf32>, vector<16x8xf32>, vector<16x16xf32> -> vector<16x16xf32>
    %368 = arith.addf %367, %3 : vector<16x16xf32>
    %cst_323 = arith.constant dense<0xFF800000> : vector<16xf32>
    %369 = vector.multi_reduction <maximumf>, %368, %cst_323 [1] : vector<16x16xf32> to vector<16xf32>
    %370 = vector.shape_cast %369 : vector<16xf32> to vector<16x1xf32>
    %371 = vector.broadcast %370 : vector<16x1xf32> to vector<16x16xf32>
    %372 = arith.subf %368, %371 : vector<16x16xf32>
    %373 = math.exp %372 : vector<16x16xf32>
    %cst_324 = arith.constant dense<0.000000e+00> : vector<16xf32>
    %374 = vector.multi_reduction <add>, %373, %cst_324 [1] : vector<16x16xf32> to vector<16xf32>
    %375 = vector.shape_cast %374 : vector<16xf32> to vector<16x1xf32>
    %376 = tpu.reciprocal %375 : vector<16x1xf32> -> vector<16x1xf32>
    %377 = vector.broadcast %376 : vector<16x1xf32> to vector<16x16xf32>
    %378 = arith.mulf %373, %377 : vector<16x16xf32>
    %cst_325 = arith.constant dense<0.000000e+00> : vector<16x8xf32>
    %379 = tpu.matmul %378, %366, %cst_325 {dimension_numbers = #tpu.dot_dimension_numbers<[1], [0], [0], [1], [0, 0, 1, 1], [], []>, precision = #tpu.contract_precision<fp32>} : vector<16x16xf32>, vector<16x8xf32>, vector<16x8xf32> -> vector<16x8xf32>
    %c1_326 = arith.constant 1 : index
    %c3_327 = arith.constant 3 : index
    %c0_328 = arith.constant 0 : index
    %c0_329 = arith.constant 0 : index
    %380 = vector.load %arg10[%c1_326, %c3_327, %c0_328, %c0_329] : memref<2x4x8x32xf32, #tpu.memory_space<vmem>>, vector<1x1x8x32xf32>
    %381 = vector.shape_cast %380 : vector<1x1x8x32xf32> to vector<8x32xf32>
    %cst_330 = arith.constant dense<0.000000e+00> : vector<16x32xf32>
    %382 = tpu.matmul %379, %381, %cst_330 {dimension_numbers = #tpu.dot_dimension_numbers<[1], [0], [0], [1], [0, 0, 1, 1], [], []>, precision = #tpu.contract_precision<fp32>} : vector<16x8xf32>, vector<8x32xf32>, vector<16x32xf32> -> vector<16x32xf32>
    %383 = arith.addf %345, %382 : vector<16x32xf32>
    %384 = arith.addf %230, %383 : vector<16x32xf32>
    %c1_331 = arith.constant 1 : index
    %c0_332 = arith.constant 0 : index
    %c0_333 = arith.constant 0 : index
    %385 = vector.load %arg11[%c1_331, %c0_332, %c0_333] : memref<2x1x32xf32, #tpu.memory_space<vmem>>, vector<1x1x32xf32>
    %386 = vector.shape_cast %385 : vector<1x1x32xf32> to vector<1x32xf32>
    %387 = vector.broadcast %386 : vector<1x32xf32> to vector<16x32xf32>
    %388 = arith.addf %384, %387 : vector<16x32xf32>
    %cst_334 = arith.constant dense<0.000000e+00> : vector<16xf32>
    %389 = vector.multi_reduction <add>, %388, %cst_334 [1] : vector<16x32xf32> to vector<16xf32>
    %390 = vector.shape_cast %389 : vector<16xf32> to vector<16x1xf32>
    %cst_335 = arith.constant 3.200000e+01 : f32
    %391 = vector.broadcast %cst_335 : f32 to vector<16x1xf32>
    %392 = arith.divf %390, %391 : vector<16x1xf32>
    %393 = vector.broadcast %392 : vector<16x1xf32> to vector<16x32xf32>
    %394 = arith.subf %388, %393 : vector<16x32xf32>
    %395 = arith.mulf %394, %394 : vector<16x32xf32>
    %cst_336 = arith.constant dense<0.000000e+00> : vector<16xf32>
    %396 = vector.multi_reduction <add>, %395, %cst_336 [1] : vector<16x32xf32> to vector<16xf32>
    %397 = vector.shape_cast %396 : vector<16xf32> to vector<16x1xf32>
    %cst_337 = arith.constant 3.200000e+01 : f32
    %398 = vector.broadcast %cst_337 : f32 to vector<16x1xf32>
    %399 = arith.divf %397, %398 : vector<16x1xf32>
    %400 = vector.broadcast %392 : vector<16x1xf32> to vector<16x32xf32>
    %401 = arith.subf %388, %400 : vector<16x32xf32>
    %cst_338 = arith.constant 9.99999997E-7 : f32
    %402 = vector.broadcast %cst_338 : f32 to vector<16x1xf32>
    %403 = arith.addf %399, %402 : vector<16x1xf32>
    %404 = math.rsqrt %403 : vector<16x1xf32>
    %405 = vector.broadcast %404 : vector<16x1xf32> to vector<16x32xf32>
    %406 = arith.mulf %401, %405 : vector<16x32xf32>
    %c1_339 = arith.constant 1 : index
    %c0_340 = arith.constant 0 : index
    %c0_341 = arith.constant 0 : index
    %407 = vector.load %arg12[%c1_339, %c0_340, %c0_341] : memref<2x1x32xf32, #tpu.memory_space<vmem>>, vector<1x1x32xf32>
    %408 = vector.shape_cast %407 : vector<1x1x32xf32> to vector<1x32xf32>
    %409 = vector.broadcast %408 : vector<1x32xf32> to vector<16x32xf32>
    %410 = arith.mulf %406, %409 : vector<16x32xf32>
    %c1_342 = arith.constant 1 : index
    %c0_343 = arith.constant 0 : index
    %c0_344 = arith.constant 0 : index
    %411 = vector.load %arg13[%c1_342, %c0_343, %c0_344] : memref<2x1x32xf32, #tpu.memory_space<vmem>>, vector<1x1x32xf32>
    %412 = vector.shape_cast %411 : vector<1x1x32xf32> to vector<1x32xf32>
    %413 = vector.broadcast %412 : vector<1x32xf32> to vector<16x32xf32>
    %414 = arith.addf %410, %413 : vector<16x32xf32>
    %c1_345 = arith.constant 1 : index
    %c0_346 = arith.constant 0 : index
    %c0_347 = arith.constant 0 : index
    %415 = vector.load %arg14[%c1_345, %c0_346, %c0_347] : memref<2x32x64xf32, #tpu.memory_space<vmem>>, vector<1x32x64xf32>
    %416 = vector.shape_cast %415 : vector<1x32x64xf32> to vector<32x64xf32>
    %cst_348 = arith.constant dense<0.000000e+00> : vector<16x64xf32>
    %417 = tpu.matmul %414, %416, %cst_348 {dimension_numbers = #tpu.dot_dimension_numbers<[1], [0], [0], [1], [0, 0, 1, 1], [], []>, precision = #tpu.contract_precision<fp32>} : vector<16x32xf32>, vector<32x64xf32>, vector<16x64xf32> -> vector<16x64xf32>
    %c1_349 = arith.constant 1 : index
    %c0_350 = arith.constant 0 : index
    %c0_351 = arith.constant 0 : index
    %418 = vector.load %arg15[%c1_349, %c0_350, %c0_351] : memref<2x1x64xf32, #tpu.memory_space<vmem>>, vector<1x1x64xf32>
    %419 = vector.shape_cast %418 : vector<1x1x64xf32> to vector<1x64xf32>
    %420 = vector.broadcast %419 : vector<1x64xf32> to vector<16x64xf32>
    %421 = arith.addf %417, %420 : vector<16x64xf32>
    %cst_352 = arith.constant 0.000000e+00 : f32
    %422 = vector.broadcast %cst_352 : f32 to vector<16x64xf32>
    %423 = arith.maximumf %421, %422 : vector<16x64xf32>
    %c1_353 = arith.constant 1 : index
    %c0_354 = arith.constant 0 : index
    %c0_355 = arith.constant 0 : index
    %424 = vector.load %arg16[%c1_353, %c0_354, %c0_355] : memref<2x64x32xf32, #tpu.memory_space<vmem>>, vector<1x64x32xf32>
    %425 = vector.shape_cast %424 : vector<1x64x32xf32> to vector<64x32xf32>
    %cst_356 = arith.constant dense<0.000000e+00> : vector<16x32xf32>
    %426 = tpu.matmul %423, %425, %cst_356 {dimension_numbers = #tpu.dot_dimension_numbers<[1], [0], [0], [1], [0, 0, 1, 1], [], []>, precision = #tpu.contract_precision<fp32>} : vector<16x64xf32>, vector<64x32xf32>, vector<16x32xf32> -> vector<16x32xf32>
    %c1_357 = arith.constant 1 : index
    %c0_358 = arith.constant 0 : index
    %c0_359 = arith.constant 0 : index
    %427 = vector.load %arg17[%c1_357, %c0_358, %c0_359] : memref<2x1x32xf32, #tpu.memory_space<vmem>>, vector<1x1x32xf32>
    %428 = vector.shape_cast %427 : vector<1x1x32xf32> to vector<1x32xf32>
    %429 = vector.broadcast %428 : vector<1x32xf32> to vector<16x32xf32>
    %430 = arith.addf %426, %429 : vector<16x32xf32>
    %431 = arith.addf %414, %430 : vector<16x32xf32>
    %cst_360 = arith.constant dense<0.000000e+00> : vector<16xf32>
    %432 = vector.multi_reduction <add>, %431, %cst_360 [1] : vector<16x32xf32> to vector<16xf32>
    %433 = vector.shape_cast %432 : vector<16xf32> to vector<16x1xf32>
    %cst_361 = arith.constant 3.200000e+01 : f32
    %434 = vector.broadcast %cst_361 : f32 to vector<16x1xf32>
    %435 = arith.divf %433, %434 : vector<16x1xf32>
    %436 = vector.broadcast %435 : vector<16x1xf32> to vector<16x32xf32>
    %437 = arith.subf %431, %436 : vector<16x32xf32>
    %438 = arith.mulf %437, %437 : vector<16x32xf32>
    %cst_362 = arith.constant dense<0.000000e+00> : vector<16xf32>
    %439 = vector.multi_reduction <add>, %438, %cst_362 [1] : vector<16x32xf32> to vector<16xf32>
    %440 = vector.shape_cast %439 : vector<16xf32> to vector<16x1xf32>
    %cst_363 = arith.constant 3.200000e+01 : f32
    %441 = vector.broadcast %cst_363 : f32 to vector<16x1xf32>
    %442 = arith.divf %440, %441 : vector<16x1xf32>
    %443 = vector.broadcast %435 : vector<16x1xf32> to vector<16x32xf32>
    %444 = arith.subf %431, %443 : vector<16x32xf32>
    %cst_364 = arith.constant 9.99999997E-7 : f32
    %445 = vector.broadcast %cst_364 : f32 to vector<16x1xf32>
    %446 = arith.addf %442, %445 : vector<16x1xf32>
    %447 = math.rsqrt %446 : vector<16x1xf32>
    %448 = vector.broadcast %447 : vector<16x1xf32> to vector<16x32xf32>
    %449 = arith.mulf %444, %448 : vector<16x32xf32>
    %c1_365 = arith.constant 1 : index
    %c0_366 = arith.constant 0 : index
    %c0_367 = arith.constant 0 : index
    %450 = vector.load %arg18[%c1_365, %c0_366, %c0_367] : memref<2x1x32xf32, #tpu.memory_space<vmem>>, vector<1x1x32xf32>
    %451 = vector.shape_cast %450 : vector<1x1x32xf32> to vector<1x32xf32>
    %452 = vector.broadcast %451 : vector<1x32xf32> to vector<16x32xf32>
    %453 = arith.mulf %449, %452 : vector<16x32xf32>
    %c1_368 = arith.constant 1 : index
    %c0_369 = arith.constant 0 : index
    %c0_370 = arith.constant 0 : index
    %454 = vector.load %arg19[%c1_368, %c0_369, %c0_370] : memref<2x1x32xf32, #tpu.memory_space<vmem>>, vector<1x1x32xf32>
    %455 = vector.shape_cast %454 : vector<1x1x32xf32> to vector<1x32xf32>
    %456 = vector.broadcast %455 : vector<1x32xf32> to vector<16x32xf32>
    %457 = arith.addf %453, %456 : vector<16x32xf32>
    %cst_371 = arith.constant 0.000000e+00 : f32
    %458 = vector.broadcast %cst_371 : f32 to vector<32x128xf32>
    %c0_372 = arith.constant 0 : index
    %c0_373 = arith.constant 0 : index
    %c0_374 = arith.constant 0 : index
    %459 = vector.load %arg20[%c0_372, %c0_373, %c0_374] : memref<4x32x128xf32, #tpu.memory_space<vmem>>, vector<1x32x128xf32>
    %460 = vector.shape_cast %459 : vector<1x32x128xf32> to vector<32x128xf32>
    %cst_375 = arith.constant dense<0.000000e+00> : vector<16x128xf32>
    %461 = tpu.matmul %457, %460, %cst_375 {dimension_numbers = #tpu.dot_dimension_numbers<[1], [0], [0], [1], [0, 0, 1, 1], [], []>, precision = #tpu.contract_precision<fp32>} : vector<16x32xf32>, vector<32x128xf32>, vector<16x128xf32> -> vector<16x128xf32>
    %c0_376 = arith.constant 0 : index
    %c0_377 = arith.constant 0 : index
    %c0_378 = arith.constant 0 : index
    %462 = vector.load %arg22[%c0_376, %c0_377, %c0_378] : memref<4x32x16xf32, #tpu.memory_space<vmem>>, vector<1x32x16xf32>
    %463 = vector.shape_cast %462 : vector<1x32x16xf32> to vector<32x16xf32>
    %cst_379 = arith.constant dense<0.000000e+00> : vector<32x128xf32>
    %464 = tpu.matmul %463, %461, %cst_379 {dimension_numbers = #tpu.dot_dimension_numbers<[1], [0], [0], [1], [0, 0, 1, 1], [], []>, precision = #tpu.contract_precision<fp32>} : vector<32x16xf32>, vector<16x128xf32>, vector<32x128xf32> -> vector<32x128xf32>
    %465 = arith.addf %458, %464 : vector<32x128xf32>
    %c1_380 = arith.constant 1 : index
    %c0_381 = arith.constant 0 : index
    %c0_382 = arith.constant 0 : index
    %466 = vector.load %arg20[%c1_380, %c0_381, %c0_382] : memref<4x32x128xf32, #tpu.memory_space<vmem>>, vector<1x32x128xf32>
    %467 = vector.shape_cast %466 : vector<1x32x128xf32> to vector<32x128xf32>
    %cst_383 = arith.constant dense<0.000000e+00> : vector<16x128xf32>
    %468 = tpu.matmul %457, %467, %cst_383 {dimension_numbers = #tpu.dot_dimension_numbers<[1], [0], [0], [1], [0, 0, 1, 1], [], []>, precision = #tpu.contract_precision<fp32>} : vector<16x32xf32>, vector<32x128xf32>, vector<16x128xf32> -> vector<16x128xf32>
    %c1_384 = arith.constant 1 : index
    %c0_385 = arith.constant 0 : index
    %c0_386 = arith.constant 0 : index
    %469 = vector.load %arg22[%c1_384, %c0_385, %c0_386] : memref<4x32x16xf32, #tpu.memory_space<vmem>>, vector<1x32x16xf32>
    %470 = vector.shape_cast %469 : vector<1x32x16xf32> to vector<32x16xf32>
    %cst_387 = arith.constant dense<0.000000e+00> : vector<32x128xf32>
    %471 = tpu.matmul %470, %468, %cst_387 {dimension_numbers = #tpu.dot_dimension_numbers<[1], [0], [0], [1], [0, 0, 1, 1], [], []>, precision = #tpu.contract_precision<fp32>} : vector<32x16xf32>, vector<16x128xf32>, vector<32x128xf32> -> vector<32x128xf32>
    %472 = arith.addf %465, %471 : vector<32x128xf32>
    %c2_388 = arith.constant 2 : index
    %c0_389 = arith.constant 0 : index
    %c0_390 = arith.constant 0 : index
    %473 = vector.load %arg20[%c2_388, %c0_389, %c0_390] : memref<4x32x128xf32, #tpu.memory_space<vmem>>, vector<1x32x128xf32>
    %474 = vector.shape_cast %473 : vector<1x32x128xf32> to vector<32x128xf32>
    %cst_391 = arith.constant dense<0.000000e+00> : vector<16x128xf32>
    %475 = tpu.matmul %457, %474, %cst_391 {dimension_numbers = #tpu.dot_dimension_numbers<[1], [0], [0], [1], [0, 0, 1, 1], [], []>, precision = #tpu.contract_precision<fp32>} : vector<16x32xf32>, vector<32x128xf32>, vector<16x128xf32> -> vector<16x128xf32>
    %c2_392 = arith.constant 2 : index
    %c0_393 = arith.constant 0 : index
    %c0_394 = arith.constant 0 : index
    %476 = vector.load %arg22[%c2_392, %c0_393, %c0_394] : memref<4x32x16xf32, #tpu.memory_space<vmem>>, vector<1x32x16xf32>
    %477 = vector.shape_cast %476 : vector<1x32x16xf32> to vector<32x16xf32>
    %cst_395 = arith.constant dense<0.000000e+00> : vector<32x128xf32>
    %478 = tpu.matmul %477, %475, %cst_395 {dimension_numbers = #tpu.dot_dimension_numbers<[1], [0], [0], [1], [0, 0, 1, 1], [], []>, precision = #tpu.contract_precision<fp32>} : vector<32x16xf32>, vector<16x128xf32>, vector<32x128xf32> -> vector<32x128xf32>
    %479 = arith.addf %472, %478 : vector<32x128xf32>
    %c3_396 = arith.constant 3 : index
    %c0_397 = arith.constant 0 : index
    %c0_398 = arith.constant 0 : index
    %480 = vector.load %arg20[%c3_396, %c0_397, %c0_398] : memref<4x32x128xf32, #tpu.memory_space<vmem>>, vector<1x32x128xf32>
    %481 = vector.shape_cast %480 : vector<1x32x128xf32> to vector<32x128xf32>
    %cst_399 = arith.constant dense<0.000000e+00> : vector<16x128xf32>
    %482 = tpu.matmul %457, %481, %cst_399 {dimension_numbers = #tpu.dot_dimension_numbers<[1], [0], [0], [1], [0, 0, 1, 1], [], []>, precision = #tpu.contract_precision<fp32>} : vector<16x32xf32>, vector<32x128xf32>, vector<16x128xf32> -> vector<16x128xf32>
    %c3_400 = arith.constant 3 : index
    %c0_401 = arith.constant 0 : index
    %c0_402 = arith.constant 0 : index
    %483 = vector.load %arg22[%c3_400, %c0_401, %c0_402] : memref<4x32x16xf32, #tpu.memory_space<vmem>>, vector<1x32x16xf32>
    %484 = vector.shape_cast %483 : vector<1x32x16xf32> to vector<32x16xf32>
    %cst_403 = arith.constant dense<0.000000e+00> : vector<32x128xf32>
    %485 = tpu.matmul %484, %482, %cst_403 {dimension_numbers = #tpu.dot_dimension_numbers<[1], [0], [0], [1], [0, 0, 1, 1], [], []>, precision = #tpu.contract_precision<fp32>} : vector<32x16xf32>, vector<16x128xf32>, vector<32x128xf32> -> vector<32x128xf32>
    %486 = arith.addf %479, %485 : vector<32x128xf32>
    %c0_404 = arith.constant 0 : index
    %c0_405 = arith.constant 0 : index
    %487 = vector.load %arg21[%c0_404, %c0_405] : memref<1x128xf32, #tpu.memory_space<vmem>>, vector<1x128xf32>
    %488 = vector.broadcast %487 : vector<1x128xf32> to vector<32x128xf32>
    %489 = arith.addf %486, %488 : vector<32x128xf32>
    %cst_406 = arith.constant dense<0xFF800000> : vector<32xf32>
    %490 = vector.multi_reduction <maximumf>, %489, %cst_406 [1] : vector<32x128xf32> to vector<32xf32>
    %491 = vector.shape_cast %490 : vector<32xf32> to vector<32x1xf32>
    %492 = vector.broadcast %491 : vector<32x1xf32> to vector<32x128xf32>
    %493 = arith.subf %489, %492 : vector<32x128xf32>
    %494 = math.exp %493 : vector<32x128xf32>
    %cst_407 = arith.constant dense<0.000000e+00> : vector<32xf32>
    %495 = vector.multi_reduction <add>, %494, %cst_407 [1] : vector<32x128xf32> to vector<32xf32>
    %496 = vector.shape_cast %495 : vector<32xf32> to vector<32x1xf32>
    %497 = tpu.reciprocal %496 : vector<32x1xf32> -> vector<32x1xf32>
    %498 = vector.broadcast %497 : vector<32x1xf32> to vector<32x128xf32>
    %499 = arith.mulf %494, %498 : vector<32x128xf32>
    %c0_408 = arith.constant 0 : index
    %c0_409 = arith.constant 0 : index
    %500 = vector.load %arg23[%c0_408, %c0_409] : memref<32x128xf32, #tpu.memory_space<vmem>>, vector<32x128xf32>
    tpu.vector_store %arg23[%c0_408, %c0_409], %499 {strides = array<i32>} : memref<32x128xf32, #tpu.memory_space<vmem>>, vector<32x128xf32>,
    return
  }
  func.func @transform_0(%arg0: i32) -> (i32, i32) {
    %c0_i32 = arith.constant 0 : i32
    %c0_i32_0 = arith.constant 0 : i32
    %c0_i32_1 = arith.constant 0 : i32
    return %c0_i32, %c0_i32_0 : i32, i32
  }
  func.func @transform_1(%arg0: i32) -> (i32, i32) {
    %c0_i32 = arith.constant 0 : i32
    %c0_i32_0 = arith.constant 0 : i32
    %c0_i32_1 = arith.constant 0 : i32
    return %c0_i32, %c0_i32_0 : i32, i32
  }
  func.func @transform_2(%arg0: i32) -> (i32, i32) {
    %c0_i32 = arith.constant 0 : i32
    %c0_i32_0 = arith.constant 0 : i32
    %c0_i32_1 = arith.constant 0 : i32
    return %c0_i32, %c0_i32_0 : i32, i32
  }
  func.func @transform_3(%arg0: i32) -> (i32, i32, i32, i32) {
    %c0_i32 = arith.constant 0 : i32
    %c0_i32_0 = arith.constant 0 : i32
    %c0_i32_1 = arith.constant 0 : i32
    %c0_i32_2 = arith.constant 0 : i32
    %c0_i32_3 = arith.constant 0 : i32
    return %c0_i32, %c0_i32_0, %c0_i32_1, %c0_i32_2 : i32, i32, i32, i32
  }
  func.func @transform_4(%arg0: i32) -> (i32, i32, i32, i32) {
    %c0_i32 = arith.constant 0 : i32
    %c0_i32_0 = arith.constant 0 : i32
    %c0_i32_1 = arith.constant 0 : i32
    %c0_i32_2 = arith.constant 0 : i32
    %c0_i32_3 = arith.constant 0 : i32
    return %c0_i32, %c0_i32_0, %c0_i32_1, %c0_i32_2 : i32, i32, i32, i32
  }
  func.func @transform_5(%arg0: i32) -> (i32, i32, i32, i32) {
    %c0_i32 = arith.constant 0 : i32
    %c0_i32_0 = arith.constant 0 : i32
    %c0_i32_1 = arith.constant 0 : i32
    %c0_i32_2 = arith.constant 0 : i32
    %c0_i32_3 = arith.constant 0 : i32
    return %c0_i32, %c0_i32_0, %c0_i32_1, %c0_i32_2 : i32, i32, i32, i32
  }
  func.func @transform_6(%arg0: i32) -> (i32, i32, i32, i32) {
    %c0_i32 = arith.constant 0 : i32
    %c0_i32_0 = arith.constant 0 : i32
    %c0_i32_1 = arith.constant 0 : i32
    %c0_i32_2 = arith.constant 0 : i32
    %c0_i32_3 = arith.constant 0 : i32
    return %c0_i32, %c0_i32_0, %c0_i32_1, %c0_i32_2 : i32, i32, i32, i32
  }
  func.func @transform_7(%arg0: i32) -> (i32, i32, i32, i32) {
    %c0_i32 = arith.constant 0 : i32
    %c0_i32_0 = arith.constant 0 : i32
    %c0_i32_1 = arith.constant 0 : i32
    %c0_i32_2 = arith.constant 0 : i32
    %c0_i32_3 = arith.constant 0 : i32
    return %c0_i32, %c0_i32_0, %c0_i32_1, %c0_i32_2 : i32, i32, i32, i32
  }
  func.func @transform_8(%arg0: i32) -> (i32, i32, i32, i32) {
    %c0_i32 = arith.constant 0 : i32
    %c0_i32_0 = arith.constant 0 : i32
    %c0_i32_1 = arith.constant 0 : i32
    %c0_i32_2 = arith.constant 0 : i32
    %c0_i32_3 = arith.constant 0 : i32
    return %c0_i32, %c0_i32_0, %c0_i32_1, %c0_i32_2 : i32, i32, i32, i32
  }
  func.func @transform_9(%arg0: i32) -> (i32, i32, i32, i32) {
    %c0_i32 = arith.constant 0 : i32
    %c0_i32_0 = arith.constant 0 : i32
    %c0_i32_1 = arith.constant 0 : i32
    %c0_i32_2 = arith.constant 0 : i32
    %c0_i32_3 = arith.constant 0 : i32
    return %c0_i32, %c0_i32_0, %c0_i32_1, %c0_i32_2 : i32, i32, i32, i32
  }
  func.func @transform_10(%arg0: i32) -> (i32, i32, i32) {
    %c0_i32 = arith.constant 0 : i32
    %c0_i32_0 = arith.constant 0 : i32
    %c0_i32_1 = arith.constant 0 : i32
    %c0_i32_2 = arith.constant 0 : i32
    return %c0_i32, %c0_i32_0, %c0_i32_1 : i32, i32, i32
  }
  func.func @transform_11(%arg0: i32) -> (i32, i32, i32) {
    %c0_i32 = arith.constant 0 : i32
    %c0_i32_0 = arith.constant 0 : i32
    %c0_i32_1 = arith.constant 0 : i32
    %c0_i32_2 = arith.constant 0 : i32
    return %c0_i32, %c0_i32_0, %c0_i32_1 : i32, i32, i32
  }
  func.func @transform_12(%arg0: i32) -> (i32, i32, i32) {
    %c0_i32 = arith.constant 0 : i32
    %c0_i32_0 = arith.constant 0 : i32
    %c0_i32_1 = arith.constant 0 : i32
    %c0_i32_2 = arith.constant 0 : i32
    return %c0_i32, %c0_i32_0, %c0_i32_1 : i32, i32, i32
  }
  func.func @transform_13(%arg0: i32) -> (i32, i32, i32) {
    %c0_i32 = arith.constant 0 : i32
    %c0_i32_0 = arith.constant 0 : i32
    %c0_i32_1 = arith.constant 0 : i32
    %c0_i32_2 = arith.constant 0 : i32
    return %c0_i32, %c0_i32_0, %c0_i32_1 : i32, i32, i32
  }
  func.func @transform_14(%arg0: i32) -> (i32, i32, i32) {
    %c0_i32 = arith.constant 0 : i32
    %c0_i32_0 = arith.constant 0 : i32
    %c0_i32_1 = arith.constant 0 : i32
    %c0_i32_2 = arith.constant 0 : i32
    return %c0_i32, %c0_i32_0, %c0_i32_1 : i32, i32, i32
  }
  func.func @transform_15(%arg0: i32) -> (i32, i32, i32) {
    %c0_i32 = arith.constant 0 : i32
    %c0_i32_0 = arith.constant 0 : i32
    %c0_i32_1 = arith.constant 0 : i32
    %c0_i32_2 = arith.constant 0 : i32
    return %c0_i32, %c0_i32_0, %c0_i32_1 : i32, i32, i32
  }
  func.func @transform_16(%arg0: i32) -> (i32, i32, i32) {
    %c0_i32 = arith.constant 0 : i32
    %c0_i32_0 = arith.constant 0 : i32
    %c0_i32_1 = arith.constant 0 : i32
    %c0_i32_2 = arith.constant 0 : i32
    return %c0_i32, %c0_i32_0, %c0_i32_1 : i32, i32, i32
  }
  func.func @transform_17(%arg0: i32) -> (i32, i32, i32) {
    %c0_i32 = arith.constant 0 : i32
    %c0_i32_0 = arith.constant 0 : i32
    %c0_i32_1 = arith.constant 0 : i32
    %c0_i32_2 = arith.constant 0 : i32
    return %c0_i32, %c0_i32_0, %c0_i32_1 : i32, i32, i32
  }
  func.func @transform_18(%arg0: i32) -> (i32, i32, i32) {
    %c0_i32 = arith.constant 0 : i32
    %c0_i32_0 = arith.constant 0 : i32
    %c0_i32_1 = arith.constant 0 : i32
    %c0_i32_2 = arith.constant 0 : i32
    return %c0_i32, %c0_i32_0, %c0_i32_1 : i32, i32, i32
  }
  func.func @transform_19(%arg0: i32) -> (i32, i32, i32) {
    %c0_i32 = arith.constant 0 : i32
    %c0_i32_0 = arith.constant 0 : i32
    %c0_i32_1 = arith.constant 0 : i32
    %c0_i32_2 = arith.constant 0 : i32
    return %c0_i32, %c0_i32_0, %c0_i32_1 : i32, i32, i32
  }
  func.func @transform_20(%arg0: i32) -> (i32, i32) {
    %c0_i32 = arith.constant 0 : i32
    %c0_i32_0 = arith.constant 0 : i32
    %c0_i32_1 = arith.constant 0 : i32
    return %c0_i32, %c0_i32_0 : i32, i32
  }
  func.func @transform_21(%arg0: i32) -> (i32, i32, i32) {
    %c0_i32 = arith.constant 0 : i32
    %c0_i32_0 = arith.constant 0 : i32
    %c0_i32_1 = arith.constant 0 : i32
    %c0_i32_2 = arith.constant 0 : i32
    return %c0_i32, %c0_i32_0, %c0_i32_1 : i32, i32, i32
  }
  func.func @transform_22(%arg0: i32) -> (i32, i32) {
    %c0_i32 = arith.constant 0 : i32
    %c0_i32_0 = arith.constant 0 : i32
    %c0_i32_1 = arith.constant 0 : i32
    return %c0_i32, %c0_i32_0 : i32, i32
  }
}

</mosaic_0001>

<bundles_post_ra>
// kernel: decoder_pallas.1
= control target key start
LH: loop header
LB: loop body
LE: loop exit
PB: predicated region body
PF: predicated region fallthrough
CT: control target
= control target key end

     0   :  { %s43195_s0 = inlined_call_operand.vmem [shape: f32[16,32], index: 0, kind: input, shape index: {}]   ;;  %s43196_s1 = inlined_call_operand.vmem [shape: f32[16,32], index: 1, kind: input, shape index: {}]   ;;  %s43197_s2 = inlined_call_operand.vmem [shape: f32[16,16], index: 2, kind: input, shape index: {}]   ;;  %s43198_s3 = inlined_call_operand.vmem [shape: f32[2,4,32,8], index: 3, kind: input, shape index: {}]   ;;  %s43199_s4 = inlined_call_operand.vmem [shape: f32[2,4,1,8], index: 4, kind: input, shape index: {}]   ;;  %s43200_s5 = inlined_call_operand.vmem [shape: f32[2,4,32,8], index: 5, kind: input, shape index: {}]   ;;  %s43201_s6 = inlined_call_operand.vmem [shape: f32[2,4,1,8], index: 6, kind: input, shape index: {}]   ;;  %s43202_s7 = inlined_call_operand.vmem [shape: f32[2,4,32,8], index: 7, kind: input, shape index: {}]   ;;  %s43203_s8 = inlined_call_operand.vmem [shape: f32[2,4,1,8], index: 8, kind: input, shape index: {}]   ;;  %s43204_s9 = inlined_call_operand.vmem [shape: f32[2,4,8,32], index: 9, kind: input, shape index: {}]   ;;  %s43205_s10 = inlined_call_operand.vmem [shape: f32[2,1,32], index: 10, kind: input, shape index: {}]   ;;  %s43206_s11 = inlined_call_operand.vmem [shape: f32[2,1,32], index: 11, kind: input, shape index: {}]   ;;  %s43207_s12 = inlined_call_operand.vmem [shape: f32[2,1,32], index: 12, kind: input, shape index: {}]   ;;  %s43208_s13 = inlined_call_operand.vmem [shape: f32[2,32,64], index: 13, kind: input, shape index: {}]   ;;  %s43209_s14 = inlined_call_operand.vmem [shape: f32[2,1,64], index: 14, kind: input, shape index: {}]   ;;  %s43210_s15 = inlined_call_operand.vmem [shape: f32[2,64,32], index: 15, kind: input, shape index: {}]   ;;  %s43211_s16 = inlined_call_operand.vmem [shape: f32[2,1,32], index: 16, kind: input, shape index: {}]   ;;  %s43212_s17 = inlined_call_operand.vmem [shape: f32[2,1,32], index: 17, kind: input, shape index: {}]   ;;  %s43213_s18 = inlined_call_operand.vmem [shape: f32[2,1,32], index: 18, kind: input, shape index: {}]   ;;  %s43214_s19 = inlined_call_operand.vmem [shape: f32[4,32,128], index: 19, kind: input, shape index: {}]   ;;  %s43215_s20 = inlined_call_operand.vmem [shape: f32[1,128], index: 20, kind: input, shape index: {}]   ;;  %s43216_s21 = inlined_call_operand.vmem [shape: f32[4,32,16], index: 21, kind: input, shape index: {}]   ;;  %s43217_s22 = inlined_call_operand.hbm [shape: f32[32,128], index: 22, kind: output, shape index: {}]  }
   0x1   :  { %43225 = sst [smem:[#allocation5_spill]] %s43195_s0 }
   0x2   :  { %43226 = sst [smem:[#allocation6_spill]] %s43196_s1 }
   0x3   :  { %43227 = sst [smem:[#allocation7_spill]] %s43197_s2 }
   0x4   :  { %43228 = sst [smem:[#allocation8_spill]] %s43198_s3 }
   0x5   :  { %43229 = sst [smem:[#allocation9_spill]] %s43199_s4 }
   0x6   :  { %43230 = sst [smem:[#allocation10_spill]] %s43200_s5 }
   0x7   :  { %43231 = sst [smem:[#allocation11_spill]] %s43201_s6 }
   0x8   :  { %s43232_s29 = sld [smem:[#allocation8_spill]]  ;;  %s43233_s1 = sld [smem:[#allocation10_spill]]  ;;  %vm91_vm0 = vcmask 261120  }
   0x9   :  { %s43234_s23 = sld [smem:[#allocation5_spill]]  ;;  %s43235_s6 = sld [smem:[#allocation6_spill]] }
   0xe   :  { %v80_v0 = vld [vmem:[%s43232_s29] sm:$0xff]  ;;  %v81_v1 = vld [vmem:[%s43232_s29 + $0x8] sm:$0xff]  ;;  %v82_v7 = vld [vmem:[%s43232_s29 + $0x10] sm:$0xff] }
   0xf   :  { %v626_v2 = vld [vmem:[%s43233_s1] sm:$0xff]  ;;  %v99_v3 = vand.u32 4294901760, %v80_v0  ;;  %v102_v4 = vand.u32 4294901760, %v81_v1  ;;  %v627_v5 = vld [vmem:[%s43233_s1 + $0x8] sm:$0xff]  ;;  %v83_v8 = vld [vmem:[%s43232_s29 + $0x18] sm:$0xff]  ;;  %v105_v10 = vand.u32 4294901760, %v82_v7 }
  0x10   :  { %v638_v6 = vand.u32 4294901760, %v626_v2  ;;  %v641_v9 = vand.u32 4294901760, %v627_v5  ;;  %v108_v11 = vand.u32 4294901760, %v83_v8  ;;  %v628_v12 = vld [vmem:[%s43233_s1 + $0x10] sm:$0xff]  ;;  %v629_v13 = vld [vmem:[%s43233_s1 + $0x18] sm:$0xff]  ;;  %v72_v14 = vld [vmem:[%s43234_s23] sm:$0xff] }
  0x11   :  { %v41096_v15 = vpack.c.bf16 %v102_v4, %v99_v3  ;;  %v644_v16 = vand.u32 4294901760, %v628_v12  ;;  %v647_v17 = vand.u32 4294901760, %v629_v13  ;;  %v74_v18 = vld [vmem:[%s43235_s6] sm:$0xff]  ;;  %v73_v19 = vld [vmem:[%s43234_s23 + $0x8] sm:$0xff]  ;;  %v41107_v21 = vsub.f32 %v80_v0, %v99_v3 }
  0x12   :  { %v75_v20 = vld [vmem:[%s43235_s6 + $0x8] sm:$0xff]  ;;  %v41109_v22 = vpack.c.bf16 %v641_v9, %v638_v6  ;;  %v41111_v23 = vpack.c.bf16 %v108_v11, %v105_v10  ;;  %v41113_v24 = vadd.f32 %v74_v18, %v72_v14 }
  0x13   :  { %v41115_v25 = vadd.f32 %v75_v20, %v73_v19 }
  0x14   :  { %27 = vsyncpa [#allocation3], 0  ;;  %37975 = vmatprep.subr.bf16.mxu0 %v41096_v15  ;;  %v41118_v26 = vpack.c.bf16 %v647_v17, %v644_v16  ;;  %v190_v27 = vand.u32 4294901760, %v41107_v21  ;;  %v41121_v28 = vsub.f32 %v81_v1, %v102_v4  ;;  %v41123_v29 = vsub.f32 %v626_v2, %v638_v6  ;;  %38023 = vmatprep.subr.bf16.mxu1 %v41109_v22  ;;  %s43236_s30 = sld [smem:[#allocation9_spill]]  ;;  %s43237_s23 = sld [smem:[#allocation11_spill]] }
  0x15   :  { %37977 = vmatpush3.bf16.msra.mxu0 %v41096_v15  ;;  %v93_v30 = vsel %vm91_vm0, %v41113_v24, 0  ;;  %v96_v31 = vsel %vm91_vm0, %v41115_v25, 0  ;;  %v41131_v32 = vsub.f32 %v627_v5, %v641_v9  ;;  %v41133_v33 = vsub.f32 %v82_v7, %v105_v10  ;;  %38025 = vmatpush3.bf16.msra.mxu1 %v41109_v22  ;;  %s43238_s0 = sld [smem:[#allocation7_spill]] }
  0x16   :  { %37979 = vmatprep.subr.bf16.mxu0 %v41111_v23  ;;  %v41137_v34 = vand.u32 4294901760, %v93_v30  ;;  %v41139_v35 = vand.u32 4294901760, %v96_v31  ;;  %v191_v36 = vsub.f32 %v41107_v21, %v190_v27  ;;  %v197_v37 = vand.u32 4294901760, %v41121_v28  ;;  %38027 = vmatprep.subr.bf16.mxu1 %v41118_v26 }
  0x17   :  { %v729_v38 = vand.u32 4294901760, %v41123_v29  ;;  %v736_v39 = vand.u32 4294901760, %v41131_v32  ;;  %v204_v40 = vand.u32 4294901760, %v41133_v33  ;;  %v41149_v41 = vsub.f32 %v83_v8, %v108_v11 }
  0x18   :  { %v41152_v42 = vsub.f32 %v93_v30, %v41137_v34  ;;  %v41155_v43 = vsub.f32 %v96_v31, %v41139_v35  ;;  %v192_v44 = vand.u32 4294901760, %v191_v36  ;;  %v198_v45 = vsub.f32 %v41121_v28, %v197_v37 }
  0x19   :  { %37981 = vmatpush3.bf16.msra.mxu0 %v41111_v23  ;;  %v730_v46 = vsub.f32 %v41123_v29, %v729_v38  ;;  %v737_v47 = vsub.f32 %v41131_v32, %v736_v39  ;;  %v205_v48 = vsub.f32 %v41133_v33, %v204_v40  ;;  %v211_v49 = vand.u32 4294901760, %v41149_v41  ;;  %38029 = vmatpush3.bf16.msra.mxu1 %v41118_v26 }
  0x1a   :  { %v41173_v50 = vand.u32 4294901760, %v41152_v42  ;;  %v41176_v51 = vand.u32 4294901760, %v41155_v43  ;;  %v199_v52 = vand.u32 4294901760, %v198_v45  ;;  %v41178_v53 = vsub.f32 %v628_v12, %v644_v16  ;;  %v32549_v20 = vld [vmem:[%s43237_s23] ss:$0 sm:$0xff] }
  0x1b   :  { %v731_v54 = vand.u32 4294901760, %v730_v46  ;;  %v738_v55 = vand.u32 4294901760, %v737_v47  ;;  %v206_v56 = vand.u32 4294901760, %v205_v48  ;;  %v212_v57 = vsub.f32 %v41149_v41, %v211_v49 }
  0x1c   :  { %v170_v58 = vsub.f32 %v41152_v42, %v41173_v50  ;;  %v180_v59 = vsub.f32 %v41155_v43, %v41176_v51  ;;  %v37982_v60 = vpack.c.bf16 %v199_v52, %v192_v44  ;;  %v743_v61 = vand.u32 4294901760, %v41178_v53 }
  0x1d   :  { %v38030_v62 = vpack.c.bf16 %v738_v55, %v731_v54  ;;  %v213_v63 = vand.u32 4294901760, %v212_v57  ;;  %v749_v0 = vsub.f32 %v629_v13, %v647_v17  ;;  %v37990_v9 = vpack.c.bf16 %v41121_v28, %v41107_v21 }
  0x1e   :  { %v41188_v1 = vand.u32 4294901760, %v170_v58  ;;  %v41190_v2 = vand.u32 4294901760, %v180_v59  ;;  %37983 = vmatprep.subr.bf16.mxu0 %v37982_v60  ;;  %v744_v3 = vsub.f32 %v41178_v53, %v743_v61  ;;  %v38038_v11 = vpack.c.bf16 %v41131_v32, %v41123_v29 }
  0x1f   :  { %38031 = vmatprep.subr.bf16.mxu1 %v38030_v62  ;;  %v37986_v4 = vpack.c.bf16 %v213_v63, %v206_v56  ;;  %v750_v5 = vand.u32 4294901760, %v749_v0  ;;  %v37994_v12 = vpack.c.bf16 %v41149_v41, %v41133_v33  ;;  %v38042_v13 = vpack.c.bf16 %v749_v0, %v41178_v53 }
  0x20   :  { %34622 = vmatprep.mubr.f32.mxu0 %v41188_v1  ;;  %34688 = vmatprep.mubr.f32.mxu1 %v41188_v1  ;;  %v745_v6 = vand.u32 4294901760, %v744_v3  ;;  %v38006_v14 = vpack.c.bf16 %v197_v37, %v190_v27  ;;  %v38054_v16 = vpack.c.bf16 %v736_v39, %v729_v38  ;;  %v38010_v17 = vpack.c.bf16 %v211_v49, %v204_v40  ;;  %v1166_v3 = vld [vmem:[%s43202_s7 + $0x8] sm:$0xff] }
  0x21   :  { %34623 = vmatmul.mubr.f32.vlgmr.msra.gmra.mrb[0].mxu0 %v41190_v2  ;;  %34689 = vmatmul.mubr.f32.vlgmr.msra.gmra.mrb[0].mxu1 %v41190_v2  ;;  %v751_v7 = vsub.f32 %v749_v0, %v750_v5  ;;  %v38058_v18 = vpack.c.bf16 %v750_v5, %v743_v61  ;;  %vm1704_vm1 = vcmask 64512   ;;  %v1165_v0 = vld [vmem:[%s43202_s7] sm:$0xff]  ;;  %vm2219_vm2 = vcmask 130048  }
  0x22   :  { %37985 = vmatpush3.bf16.msra.mxu0 %v37982_v60  ;;  %38033 = vmatpush3.bf16.msra.mxu1 %v38030_v62  ;;  %v1177_v5 = vand.u32 4294901760, %v1165_v0  ;;  %vm13360_vm3 = vcmask 523264  }
  0x23   :  { %37987 = vmatprep.subr.bf16.mxu0 %v37986_v4  ;;  %v752_v8 = vand.u32 4294901760, %v751_v7  ;;  %34633 = vmatprep.mubr.f32.mxu0 %v41137_v34  ;;  %v1168_v7 = vld [vmem:[%s43202_s7 + $0x18] sm:$0xff] }
  0x24   :  { %34699 = vmatprep.mubr.f32.mxu1 %v41137_v34 }
  0x25   :  { %v38034_v10 = vpack.c.bf16 %v752_v8, %v745_v6  ;;  %v1180_v6 = vand.u32 4294901760, %v1166_v3 }
  0x26   :  { %37989 = vmatpush3.bf16.msra.mxu0 %v37986_v4  ;;  %v1167_v4 = vld [vmem:[%s43202_s7 + $0x10] sm:$0xff] }
  0x27   :  { %38035 = vmatprep.subr.bf16.mxu1 %v38034_v10  ;;  %37991 = vmatprep.subr.bf16.mxu0 %v37990_v9  ;;  %v1183_v8 = vand.u32 4294901760, %v1167_v4 }
  0x28   :  { %38037 = vmatpush3.bf16.msra.mxu1 %v38034_v10  ;;  %v38070_v10 = vpack.c.bf16 %v1180_v6, %v1177_v5 }
  0x29   :  { %34634 = vmatmul.mubr.f32.vlgmr.msra.gmra.mrb[0].mxu0 %v41139_v35  ;;  %38039 = vmatprep.subr.bf16.mxu1 %v38038_v11 }
  0x2a   :  { %37993 = vmatpush3.bf16.msra.mxu0 %v37990_v9  ;;  %34644 = vmatprep.mubr.f32.mxu0 %v41152_v42  ;;  %v1186_v9 = vand.u32 4294901760, %v1168_v7 }
  0x2b   :  { %34700 = vmatmul.mubr.f32.vlgmr.msra.gmra.mrb[0].mxu1 %v41139_v35  ;;  %37995 = vmatprep.subr.bf16.mxu0 %v37994_v12 }
  0x2c   :  { %38041 = vmatpush3.bf16.msra.mxu1 %v38038_v11  ;;  %34710 = vmatprep.mubr.f32.mxu1 %v41152_v42  ;;  %v1267_v11 = vsub.f32 %v1165_v0, %v1177_v5 }
  0x2d   :  { %38043 = vmatprep.subr.bf16.mxu1 %v38042_v13 }
  0x2e   :  { %37997 = vmatpush3.bf16.msra.mxu0 %v37994_v12  ;;  %v1274_v12 = vsub.f32 %v1166_v3, %v1180_v6 }
  0x2f   :  { %37999 = vmatprep.subr.bf16.mxu0 %v41096_v15 }
  0x30   :  { %38045 = vmatpush3.bf16.msra.mxu1 %v38042_v13  ;;  %v1281_v13 = vsub.f32 %v1167_v4, %v1183_v8 }
  0x31   :  { %34645 = vmatmul.mubr.f32.vlgmr.msra.gmra.mrb[0].mxu0 %v41155_v43  ;;  %38047 = vmatprep.subr.bf16.mxu1 %v41109_v22 }
  0x32   :  { %38001 = vmatpush3.bf16.msra.mxu0 %v41096_v15  ;;  %34655 = vmatprep.mubr.f32.mxu0 %v41173_v50 }
  0x33   :  { %34711 = vmatmul.mubr.f32.vlgmr.msra.gmra.mrb[0].mxu1 %v41155_v43  ;;  %38003 = vmatprep.subr.bf16.mxu0 %v41111_v23 }
  0x34   :  { %38049 = vmatpush3.bf16.msra.mxu1 %v41109_v22  ;;  %34721 = vmatprep.mubr.f32.mxu1 %v41173_v50 }
  0x35   :  { %38051 = vmatprep.subr.bf16.mxu1 %v41118_v26 }
  0x36   :  { %38005 = vmatpush3.bf16.msra.mxu0 %v41111_v23 }
  0x37   :  { %38007 = vmatprep.subr.bf16.mxu0 %v38006_v14 }
  0x38   :  { %38053 = vmatpush3.bf16.msra.mxu1 %v41118_v26 }
  0x39   :  { %34656 = vmatmul.mubr.f32.vlgmr.msra.gmra.mrb[0].mxu0 %v41176_v51  ;;  %38055 = vmatprep.subr.bf16.mxu1 %v38054_v16 }
  0x3a   :  { %38009 = vmatpush3.bf16.msra.mxu0 %v38006_v14  ;;  %34666 = vmatprep.mubr.f32.mxu0 %v41137_v34  ;;  %v38074_v14 = vpack.c.bf16 %v1186_v9, %v1183_v8 }
  0x3b   :  { %34722 = vmatmul.mubr.f32.vlgmr.msra.gmra.mrb[0].mxu1 %v41176_v51  ;;  %38011 = vmatprep.subr.bf16.mxu0 %v38010_v17 }
  0x3c   :  { %38057 = vmatpush3.bf16.msra.mxu1 %v38054_v16  ;;  %34732 = vmatprep.mubr.f32.mxu1 %v41137_v34  ;;  %v1288_v16 = vsub.f32 %v1168_v7, %v1186_v9 }
  0x3d   :  { %38059 = vmatprep.subr.bf16.mxu1 %v38058_v18 }
  0x3e   :  { %38013 = vmatpush3.bf16.msra.mxu0 %v38010_v17  ;;  %v1268_v17 = vand.u32 4294901760, %v1267_v11 }
  0x3f   :  { %38015 = vmatprep.subr.bf16.mxu0 %v41096_v15 }
  0x40   :  { %38061 = vmatpush3.bf16.msra.mxu1 %v38058_v18  ;;  %v1275_v18 = vand.u32 4294901760, %v1274_v12 }
  0x41   :  { %34667 = vmatmul.mubr.f32.vlgmr.msra.gmra.mrb[0].mxu0 %v41139_v35  ;;  %38063 = vmatprep.subr.bf16.mxu1 %v41109_v22 }
  0x42   :  { %38017 = vmatpush3.bf16.msra.mxu0 %v41096_v15  ;;  %34677 = vmatprep.mubr.f32.mxu0 %v41137_v34  ;;  %v32548_v15 = vld [vmem:[%s43236_s30] ss:$0 sm:$0xff] }
  0x43   :  { %34733 = vmatmul.mubr.f32.vlgmr.msra.gmra.mrb[0].mxu1 %v41139_v35  ;;  %38019 = vmatprep.subr.bf16.mxu0 %v41111_v23 }
  0x44   :  { %38065 = vmatpush3.bf16.msra.mxu1 %v41109_v22  ;;  %34743 = vmatprep.mubr.f32.mxu1 %v41137_v34 }
  0x45   :  { %38067 = vmatprep.subr.bf16.mxu1 %v41118_v26 }
  0x46   :  { %38021 = vmatpush3.bf16.msra.mxu0 %v41111_v23 }
  0x47   :  { %38071 = vmatprep.subr.bf16.mxu0 %v38070_v10 }
  0x48   :  { %38069 = vmatpush3.bf16.msra.mxu1 %v41118_v26 }
  0x49   :  { %34678 = vmatmul.mubr.f32.vlgmr.msra.gmra.mrb[0].mxu0 %v41139_v35 }
  0x4a   :  { %34754 = vmatprep.mubr.f32.mxu0 %v41188_v1  ;;  %38073 = vmatpush3.bf16.msra.mxu0 %v38070_v10 }
  0x4b   :  { %34744 = vmatmul.mubr.f32.vlgmr.msra.gmra.mrb[0].mxu1 %v41139_v35  ;;  %38075 = vmatprep.subr.bf16.mxu0 %v38074_v14 }
  0x4e   :  { %38077 = vmatpush3.bf16.msra.mxu0 %v38074_v14 }
  0x51   :  { %34755 = vmatmul.mubr.f32.vlgmr.msra.gmra.mrb[2].mxu0 %v41190_v2 }
  0x52   :  { %34765 = vmatprep.mubr.f32.mxu0 %v41137_v34 }
 0x11c   :  { %v34679_v19 = vpop.f32.mrb[0].mxu0 }
 0x11d   :  { %v40086_v21 = vadd.f32 %v34679_v19, %v32548_v15  ;;  %v616_v22 = vpop.f32.mrb[1].mxu0  ;;  %v1289_v19 = vand.u32 4294901760, %v1288_v16 }
 0x11e   :  { %v34745_v23 = vpop.f32.mrb[0].mxu1  ;;  %v40087_v26 = vadd.f32 %v32548_v15, %v616_v22  ;;  %v1282_v15 = vand.u32 4294901760, %v1281_v13 }
 0x11f   :  { %v1709_v27 = vsel %vm1704_vm1, %v40086_v21, 0  ;;  %v40088_v28 = vadd.f32 %v34745_v23, %v32549_v20  ;;  %v1155_v29 = vpop.f32.mrb[1].mxu1  ;;  %v1276_v21 = vsub.f32 %v1274_v12, %v1275_v18  ;;  %v1290_v23 = vsub.f32 %v1288_v16, %v1289_v19 }
 0x120   :  { %v1794_v30 = vand.u32 4294901760, %v1709_v27  ;;  %v1706_v31 = vsel %vm1704_vm1, %v40087_v26, 0  ;;  %v40089_v32 = vadd.f32 %v32549_v20, %v1155_v29  ;;  %v1269_v20 = vsub.f32 %v1267_v11, %v1268_v17 }
 0x121   :  { %v1715_v33 = vsel %vm1704_vm1, %v40088_v28, 0  ;;  %v1784_v36 = vand.u32 4294901760, %v1706_v31  ;;  %v1283_v22 = vsub.f32 %v1281_v13, %v1282_v15  ;;  %v1291_v29 = vand.u32 4294901760, %v1290_v23  ;;  %v32554_v23 = vld [vmem:[%s43232_s29 + $0x38] sm:$0xff] }
 0x122   :  { %v1795_v37 = vsub.f32 %v1709_v27, %v1794_v30  ;;  %v1721_v38 = vand.u32 4294901760, %v1715_v33  ;;  %v1712_v39 = vsel %vm1704_vm1, %v40089_v32, 0  ;;  %v1270_v26 = vand.u32 4294901760, %v1269_v20 }
 0x123   :  { %v1785_v40 = vsub.f32 %v1706_v31, %v1784_v36  ;;  %v1718_v41 = vand.u32 4294901760, %v1712_v39  ;;  %v1277_v27 = vand.u32 4294901760, %v1276_v21  ;;  %v1284_v28 = vand.u32 4294901760, %v1283_v22  ;;  %v32553_v22 = vld [vmem:[%s43232_s29 + $0x30] sm:$0xff] }
 0x124   :  { %v1813_v44 = vsub.f32 %v1715_v33, %v1721_v38  ;;  %v1796_v45 = vand.u32 4294901760, %v1795_v37  ;;  %v38086_v32 = vpack.c.bf16 %v1274_v12, %v1267_v11  ;;  %v38090_v33 = vpack.c.bf16 %v1288_v16, %v1281_v13 }
 0x125   :  { %v38118_v46 = vpack.c.bf16 %v1721_v38, %v1718_v41  ;;  %v1806_v47 = vsub.f32 %v1712_v39, %v1718_v41  ;;  %v1786_v48 = vand.u32 4294901760, %v1785_v40  ;;  %v38082_v31 = vpack.c.bf16 %v1291_v29, %v1284_v28  ;;  %v41290_v38 = vld [vmem:[%s43238_s0] sm:$0xff] }
 0x126   :  { %v1814_v49 = vand.u32 4294901760, %v1813_v44  ;;  %v1797_v57 = vsub.f32 %v1795_v37, %v1796_v45  ;;  %v2771_v28 = vand.u32 4294901760, %v32553_v22  ;;  %v2774_v29 = vand.u32 4294901760, %v32554_v23 }
 0x127   :  { %v1807_v52 = vand.u32 4294901760, %v1806_v47  ;;  %38119 = vmatprep.subr.bf16.mxu1 %v38118_v46  ;;  %v1787_v53 = vsub.f32 %v1785_v40, %v1786_v48  ;;  %v38126_v54 = vpack.c.bf16 %v1813_v44, %v1806_v47 }
 0x128   :  { %38121 = vmatpush3.bf16.xpose.msra.mxu1 %v38118_v46  ;;  %v1815_v55 = vsub.f32 %v1813_v44, %v1814_v49  ;;  %v1798_v62 = vand.u32 4294901760, %v1797_v57 }
 0x129   :  { %v1788_v56 = vand.u32 4294901760, %v1787_v53  ;;  %v1808_v58 = vsub.f32 %v1806_v47, %v1807_v52  ;;  %v38134_v59 = vpack.c.bf16 %v1814_v49, %v1807_v52 }
 0x12a   :  { %v1816_v60 = vand.u32 4294901760, %v1815_v55 }
 0x12b   :  { %34816 = vmatprep.mubr.f32.mxu1 %v1788_v56  ;;  %v1809_v61 = vand.u32 4294901760, %v1808_v58 }
 0x12d   :  { %v38122_v63 = vpack.c.bf16 %v1816_v60, %v1809_v61 }
 0x12f   :  { %34817 = vmatmul.mubr.f32.vlgmr.msra.gmra.mrb[2].mxu1 %v1798_v62  ;;  %38123 = vmatprep.subr.bf16.mxu1 %v38122_v63 }
 0x130   :  { %38125 = vmatpush3.bf16.xpose.msra.mxu1 %v38122_v63  ;;  %34823 = vmatprep.mubr.f32.mxu1 %v1784_v36 }
 0x131   :  { %38127 = vmatprep.subr.bf16.mxu1 %v38126_v54 }
 0x137   :  { %34824 = vmatmul.mubr.f32.vlgmr.msra.gmra.mrb[2].mxu1 %v1794_v30 }
 0x138   :  { %38129 = vmatpush3.bf16.xpose.msra.mxu1 %v38126_v54  ;;  %34830 = vmatprep.mubr.f32.mxu1 %v1785_v40  ;;  %v41295_v40 = vld [vmem:[%s43238_s0 + $0x8] sm:$0xff] }
 0x139   :  { %38131 = vmatprep.subr.bf16.mxu1 %v38118_v46 }
 0x13f   :  { %34831 = vmatmul.mubr.f32.vlgmr.msra.gmra.mrb[2].mxu1 %v1795_v37  ;;  %v38106_v37 = vpack.c.bf16 %v1289_v19, %v1282_v15  ;;  %v32552_v15 = vld [vmem:[%s43232_s29 + $0x28] sm:$0xff] }
 0x140   :  { %38133 = vmatpush3.bf16.xpose.msra.mxu1 %v38118_v46  ;;  %34837 = vmatprep.mubr.f32.mxu1 %v1786_v48  ;;  %v32550_v48 = vld [vmem:[%s43203_s8] ss:$0 sm:$0xff]  ;;  %v2768_v20 = vand.u32 4294901760, %v32552_v15 }
 0x141   :  { %38135 = vmatprep.subr.bf16.mxu1 %v38134_v59 }
 0x147   :  { %34838 = vmatmul.mubr.f32.vlgmr.msra.gmra.mrb[2].mxu1 %v1796_v45 }
 0x148   :  { %38137 = vmatpush3.bf16.xpose.msra.mxu1 %v38134_v59  ;;  %34844 = vmatprep.mubr.f32.mxu1 %v1784_v36 }
 0x149   :  { %38139 = vmatprep.subr.bf16.mxu1 %v38118_v46 }
 0x14f   :  { %34845 = vmatmul.mubr.f32.vlgmr.msra.gmra.mrb[2].mxu1 %v1794_v30 }
 0x150   :  { %38141 = vmatpush3.bf16.xpose.msra.mxu1 %v38118_v46  ;;  %34851 = vmatprep.mubr.f32.mxu1 %v1784_v36  ;;  %v38102_v36 = vpack.c.bf16 %v1275_v18, %v1268_v17  ;;  %v32551_v18 = vld [vmem:[%s43232_s29 + $0x20] sm:$0xff] }
 0x151   :  { %v2765_v19 = vand.u32 4294901760, %v32551_v18 }
 0x153   :  { %v38166_v21 = vpack.c.bf16 %v2768_v20, %v2765_v19 }
 0x155   :  { %38167 = vmatprep.subr.bf16.mxu1 %v38166_v21 }
 0x157   :  { %34852 = vmatmul.mubr.f32.vlgmr.msra.gmra.mrb[2].mxu1 %v1794_v30  ;;  %v38078_v30 = vpack.c.bf16 %v1277_v27, %v1270_v26  ;;  %v2855_v26 = vsub.f32 %v32551_v18, %v2765_v19  ;;  %v2862_v27 = vsub.f32 %v32552_v15, %v2768_v20 }
 0x158   :  { %34904 = vmatprep.mubr.f32.mxu1 %v41188_v1  ;;  %38169 = vmatpush3.bf16.msra.mxu1 %v38166_v21 }
 0x159   :  { %38079 = vmatprep.subr.bf16.mxu0 %v38078_v30 }
 0x15a   :  { %38081 = vmatpush3.bf16.msra.mxu0 %v38078_v30  ;;  %v2856_v30 = vand.u32 4294901760, %v2855_v26 }
 0x15b   :  { %38083 = vmatprep.subr.bf16.mxu0 %v38082_v31 }
 0x15e   :  { %38085 = vmatpush3.bf16.msra.mxu0 %v38082_v31  ;;  %v2863_v31 = vand.u32 4294901760, %v2862_v27 }
 0x15f   :  { %38087 = vmatprep.subr.bf16.mxu0 %v38086_v32 }
 0x161   :  { %34766 = vmatmul.mubr.f32.vlgmr.msra.gmra.mrb[2].mxu0 %v41139_v35 }
 0x162   :  { %38089 = vmatpush3.bf16.msra.mxu0 %v38086_v32  ;;  %34776 = vmatprep.mubr.f32.mxu0 %v41152_v42  ;;  %v38170_v32 = vpack.c.bf16 %v2774_v29, %v2771_v28 }
 0x163   :  { %38091 = vmatprep.subr.bf16.mxu0 %v38090_v33 }
 0x164   :  { %38171 = vmatprep.subr.bf16.mxu1 %v38170_v32 }
 0x165   :  { %38173 = vmatpush3.bf16.msra.mxu1 %v38170_v32 }
 0x166   :  { %38093 = vmatpush3.bf16.msra.mxu0 %v38090_v33  ;;  %v2857_v33 = vsub.f32 %v2855_v26, %v2856_v30 }
 0x167   :  { %38095 = vmatprep.subr.bf16.mxu0 %v38070_v10 }
 0x168   :  { %34905 = vmatmul.mubr.f32.vlgmr.msra.gmra.mrb[4].mxu1 %v41190_v2 }
 0x169   :  { %34777 = vmatmul.mubr.f32.vlgmr.msra.gmra.mrb[2].mxu0 %v41155_v43  ;;  %34915 = vmatprep.mubr.f32.mxu1 %v41137_v34 }
 0x16a   :  { %38097 = vmatpush3.bf16.msra.mxu0 %v38070_v10  ;;  %34787 = vmatprep.mubr.f32.mxu0 %v41173_v50 }
 0x16b   :  { %38099 = vmatprep.subr.bf16.mxu0 %v38074_v14 }
 0x16e   :  { %38101 = vmatpush3.bf16.msra.mxu0 %v38074_v14 }
 0x16f   :  { %38103 = vmatprep.subr.bf16.mxu0 %v38102_v36 }
 0x171   :  { %34788 = vmatmul.mubr.f32.vlgmr.msra.gmra.mrb[2].mxu0 %v41176_v51 }
 0x172   :  { %38105 = vmatpush3.bf16.msra.mxu0 %v38102_v36  ;;  %34798 = vmatprep.mubr.f32.mxu0 %v41137_v34  ;;  %v2864_v36 = vsub.f32 %v2862_v27, %v2863_v31 }
 0x173   :  { %38107 = vmatprep.subr.bf16.mxu0 %v38106_v37 }
 0x176   :  { %38109 = vmatpush3.bf16.msra.mxu0 %v38106_v37  ;;  %v2869_v37 = vsub.f32 %v32553_v22, %v2771_v28  ;;  %v32560_v22 = vld [vmem:[%s43233_s1 + $0x38] sm:$0xff] }
 0x177   :  { %38111 = vmatprep.subr.bf16.mxu0 %v38070_v10 }
 0x179   :  { %34799 = vmatmul.mubr.f32.vlgmr.msra.gmra.mrb[2].mxu0 %v41139_v35 }
 0x17a   :  { %38113 = vmatpush3.bf16.msra.mxu0 %v38070_v10  ;;  %34809 = vmatprep.mubr.f32.mxu0 %v41137_v34 }
 0x17b   :  { %38115 = vmatprep.subr.bf16.mxu0 %v38074_v14 }
 0x17e   :  { %38117 = vmatpush3.bf16.msra.mxu0 %v38074_v14 }
 0x181   :  { %34810 = vmatmul.mubr.f32.vlgmr.msra.gmra.mrb[2].mxu0 %v41139_v35 }
 0x22a   :  { %v34853_v39 = vpop.f32.mrb[2].mxu1 }
 0x22b   :  { %v2209_v41 = vpop.f32.mrb[3].mxu1  ;;  %v40092_v45 = vadd.f32 %v34853_v39, %v41295_v40  ;;  %v2876_v39 = vsub.f32 %v32554_v23, %v2774_v29 }
 0x22c   :  { %v40093_v44 = vadd.f32 %v2209_v41, %v41290_v38  ;;  %v2858_v41 = vand.u32 4294901760, %v2857_v33 }
 0x22d   :  { %v2223_v47 = vsel %vm2219_vm2, %v40092_v45, -inf }
 0x22e   :  { %v2220_v46 = vsel %vm2219_vm2, %v40093_v44, -inf }
 0x22f   :  { %2221 = vmax.xlane.f32.xlu0 %v2220_v46  ;;  %v2877_v46 = vand.u32 4294901760, %v2876_v39 }
 0x233   :  { %2224 = vmax.xlane.f32.xlu0 %v2223_v47 }
 0x254   :  { %v34811_v49 = vpop.f32.mrb[2].mxu0 }
 0x255   :  { %v40090_v53 = vadd.f32 %v34811_v49, %v32550_v48  ;;  %v1694_v54 = vpop.f32.mrb[3].mxu0  ;;  %v2878_v49 = vsub.f32 %v2876_v39, %v2877_v46 }
 0x256   :  { %v40091_v56 = vadd.f32 %v32550_v48, %v1694_v54 }
 0x257   :  { %v2252_v57 = vand.u32 4294901760, %v40090_v53 }
 0x258   :  { %v2249_v59 = vand.u32 4294901760, %v40091_v56 }
 0x259   :  { %v2344_v61 = vsub.f32 %v40090_v53, %v2252_v57  ;;  %v2879_v53 = vand.u32 4294901760, %v2878_v49 }
 0x25a   :  { %v41304_v63 = vpack.c.bf16 %v2252_v57, %v2249_v59  ;;  %v2337_v0 = vsub.f32 %v40091_v56, %v2249_v59  ;;  %v38186_v56 = vpack.c.bf16 %v2876_v39, %v2869_v37  ;;  %v38198_v57 = vpack.c.bf16 %v2863_v31, %v2856_v30 }
 0x25b   :  { %v2345_v3 = vand.u32 4294901760, %v2344_v61 }
 0x25c   :  { %v2338_v5 = vand.u32 4294901760, %v2337_v0  ;;  %38143 = vmatprep.subr.bf16.mxu0 %v41304_v63  ;;  %v41310_v11 = vpack.c.bf16 %v2344_v61, %v2337_v0 }
 0x25d   :  { %38145 = vmatpush3.bf16.msra.mxu0 %v41304_v63  ;;  %v2346_v6 = vsub.f32 %v2344_v61, %v2345_v3 }
 0x25e   :  { %v2339_v7 = vsub.f32 %v2337_v0, %v2338_v5  ;;  %v41315_v13 = vpack.c.bf16 %v2345_v3, %v2338_v5 }
 0x25f   :  { %v2347_v8 = vand.u32 4294901760, %v2346_v6 }
 0x260   :  { %v2340_v9 = vand.u32 4294901760, %v2339_v7 }
 0x262   :  { %v41308_v10 = vpack.c.bf16 %v2347_v8, %v2340_v9 }
 0x264   :  { %38147 = vmatprep.subr.bf16.mxu0 %v41308_v10 }
 0x2bc   :  { %v2222_v52 = vpop.xlane.xlu0 %2221 }
 0x2bd   :  { %v2226_v55 = vsub.f32 %v40093_v44, %v2222_v52  ;;  %v2865_v44 = vand.u32 4294901760, %v2864_v36 }
 0x2bf   :  { %v2228_v58 = vmul.f32 1.442695, %v2226_v55  ;;  %v38174_v47 = vpack.c.bf16 %v2865_v44, %v2858_v41  ;;  %v38182_v55 = vpack.c.bf16 %v2862_v27, %v2855_v26  ;;  %v3315_v26 = vand.u32 4294901760, %v32560_v22 }
 0x2c0   :  { %v2225_v60 = vpop.xlane.xlu0 %2224 }
 0x2c1   :  { %40825 = vpow2.f32 %v2228_v58  ;;  %v2227_v62 = vsub.f32 %v40092_v45, %v2225_v60  ;;  %v2870_v45 = vand.u32 4294901760, %v2869_v37  ;;  %38175 = vmatprep.subr.bf16.mxu1 %v38174_v47  ;;  %v3417_v33 = vsub.f32 %v32560_v22, %v3315_v26 }
 0x2c2   :  { %38177 = vmatpush3.bf16.msra.mxu1 %v38174_v47 }
 0x2c3   :  { %v2230_v4 = vmul.f32 1.442695, %v2227_v62  ;;  %v2871_v48 = vsub.f32 %v2869_v37, %v2870_v45  ;;  %v38202_v58 = vpack.c.bf16 %v2877_v46, %v2870_v45  ;;  %v3418_v39 = vand.u32 4294901760, %v3417_v33 }
 0x2c5   :  { %40827 = vpow2.f32 %v2230_v4  ;;  %v2872_v52 = vand.u32 4294901760, %v2871_v48  ;;  %v3419_v47 = vsub.f32 %v3417_v33, %v3418_v39 }
 0x2c7   :  { %v38178_v54 = vpack.c.bf16 %v2879_v53, %v2872_v52  ;;  %v3420_v52 = vand.u32 4294901760, %v3419_v47 }
 0x2c9   :  { %38179 = vmatprep.subr.bf16.mxu1 %v38178_v54 }
 0x2ca   :  { %38181 = vmatpush3.bf16.msra.mxu1 %v38178_v54 }
 0x2cb   :  { %v41312_v12 = vpop.eup %40825  ;;  %38183 = vmatprep.subr.bf16.mxu1 %v38182_v55 }
 0x2cc   :  { %v2232_v14 = vsel %vm2219_vm2, %v41312_v12, 0.0 }
 0x2cd   :  { %2233 = vadd.xlane.f32.xlu1 %v2232_v14  ;;  %34916 = vmatmul.mubr.f32.vlgmr.msra.gmra.mrb[4].mxu1 %v41139_v35 }
 0x2ce   :  { %38185 = vmatpush3.bf16.msra.mxu1 %v38182_v55  ;;  %34926 = vmatprep.mubr.f32.mxu1 %v41152_v42 }
 0x2cf   :  { %v41319_v16 = vpop.eup %40827  ;;  %38187 = vmatprep.subr.bf16.mxu1 %v38186_v56 }
 0x2d0   :  { %v2235_v17 = vsel %vm2219_vm2, %v41319_v16, 0.0 }
 0x2d1   :  { %2236 = vadd.xlane.f32.xlu1 %v2235_v17 }
 0x2d2   :  { %38189 = vmatpush3.bf16.msra.mxu1 %v38186_v56 }
 0x2d3   :  { %38191 = vmatprep.subr.bf16.mxu1 %v38166_v21 }
 0x2d5   :  { %34927 = vmatmul.mubr.f32.vlgmr.msra.gmra.mrb[4].mxu1 %v41155_v43 }
 0x2d6   :  { %38193 = vmatpush3.bf16.msra.mxu1 %v38166_v21  ;;  %34937 = vmatprep.mubr.f32.mxu1 %v41173_v50 }
 0x2d7   :  { %38195 = vmatprep.subr.bf16.mxu1 %v38170_v32 }
 0x2da   :  { %38197 = vmatpush3.bf16.msra.mxu1 %v38170_v32 }
 0x2db   :  { %38199 = vmatprep.subr.bf16.mxu1 %v38198_v57 }
 0x2dd   :  { %34938 = vmatmul.mubr.f32.vlgmr.msra.gmra.mrb[4].mxu1 %v41176_v51 }
 0x2de   :  { %38201 = vmatpush3.bf16.msra.mxu1 %v38198_v57  ;;  %34948 = vmatprep.mubr.f32.mxu1 %v41137_v34 }
 0x2df   :  { %38203 = vmatprep.subr.bf16.mxu1 %v38202_v58 }
 0x2e2   :  { %38205 = vmatpush3.bf16.msra.mxu1 %v38202_v58  ;;  %v32556_v58 = vld [vmem:[%s43236_s30 + $0x1] ss:$0 sm:$0xff] }
 0x2e3   :  { %38207 = vmatprep.subr.bf16.mxu1 %v38166_v21 }
 0x2e5   :  { %34949 = vmatmul.mubr.f32.vlgmr.msra.gmra.mrb[4].mxu1 %v41139_v35 }
 0x2e6   :  { %38209 = vmatpush3.bf16.msra.mxu1 %v38166_v21  ;;  %34959 = vmatprep.mubr.f32.mxu1 %v41137_v34 }
 0x2e7   :  { %38211 = vmatprep.subr.bf16.mxu1 %v38170_v32 }
 0x2ea   :  { %38213 = vmatpush3.bf16.msra.mxu1 %v38170_v32 }
 0x2ed   :  { %34960 = vmatmul.mubr.f32.vlgmr.msra.gmra.mrb[4].mxu1 %v41139_v35 }
 0x2ee   :  { %35036 = vmatprep.mubr.f32.mxu1 %v41188_v1 }
 0x35a   :  { %v2234_v59 = vpop.xlane.xlu1 %2233 }
 0x35b   :  { %40829 = vrcp.f32 %v2234_v59 }
 0x35e   :  { %v2237_v60 = vpop.xlane.xlu1 %2236 }
 0x35f   :  { %40831 = vrcp.f32 %v2237_v60 }
 0x365   :  { %v40830_v61 = vpop.eup %40829 }
 0x366   :  { %v2240_v62 = vmul.f32 %v40830_v61, %v41312_v12  ;;  %v32557_v12 = vld [vmem:[%s43233_s1 + $0x20] sm:$0xff] }
 0x368   :  { %v2243_v0 = vsel %vm2219_vm2, %v2240_v62, 0 }
 0x369   :  { %v40832_v3 = vpop.eup %40831  ;;  %v2315_v4 = vand.u32 4294901760, %v2243_v0 }
 0x36a   :  { %v2241_v5 = vmul.f32 %v40832_v3, %v41319_v16  ;;  %v3306_v16 = vand.u32 4294901760, %v32557_v12 }
 0x36b   :  { %v2316_v6 = vsub.f32 %v2243_v0, %v2315_v4 }
 0x36c   :  { %v2246_v7 = vsel %vm2219_vm2, %v2241_v5, 0  ;;  %v3396_v27 = vsub.f32 %v32557_v12, %v3306_v16 }
 0x36d   :  { %v2317_v8 = vand.u32 4294901760, %v2316_v6  ;;  %v2325_v9 = vand.u32 4294901760, %v2246_v7 }
 0x36e   :  { %v3397_v30 = vand.u32 4294901760, %v3396_v27 }
 0x36f   :  { %v2318_v14 = vsub.f32 %v2316_v6, %v2317_v8  ;;  %v2326_v17 = vsub.f32 %v2246_v7, %v2325_v9 }
 0x370   :  { %v3398_v36 = vsub.f32 %v3396_v27, %v3397_v30 }
 0x371   :  { %v2319_v18 = vand.u32 4294901760, %v2318_v14  ;;  %v2327_v15 = vand.u32 4294901760, %v2326_v17  ;;  %v32562_v14 = vld [vmem:[%s43237_s23 + $0x1] ss:$0 sm:$0xff] }
 0x372   :  { %v3399_v44 = vand.u32 4294901760, %v3398_v36 }
 0x373   :  { %34858 = vmatprep.mubr.f32.mxu0 %v2319_v18  ;;  %v2328_v19 = vsub.f32 %v2326_v17, %v2327_v15 }
 0x375   :  { %v2329_v20 = vand.u32 4294901760, %v2328_v19 }
 0x377   :  { %34859 = vmatmul.mubr.f32.vlgmr.msra.gmra.mrb[4].mxu0 %v2329_v20 }
 0x378   :  { %38149 = vmatpush3.bf16.msra.mxu0 %v41308_v10  ;;  %34865 = vmatprep.mubr.f32.mxu0 %v2315_v4  ;;  %v32558_v10 = vld [vmem:[%s43233_s1 + $0x28] sm:$0xff] }
 0x379   :  { %38151 = vmatprep.subr.bf16.mxu0 %v41310_v11  ;;  %v3309_v21 = vand.u32 4294901760, %v32558_v10 }
 0x37b   :  { %v3403_v28 = vsub.f32 %v32558_v10, %v3309_v21  ;;  %v38214_v29 = vpack.c.bf16 %v3309_v21, %v3306_v16 }
 0x37d   :  { %v3404_v31 = vand.u32 4294901760, %v3403_v28  ;;  %v38230_v53 = vpack.c.bf16 %v3403_v28, %v3396_v27 }
 0x37f   :  { %34866 = vmatmul.mubr.f32.vlgmr.msra.gmra.mrb[4].mxu0 %v2325_v9  ;;  %v3405_v37 = vsub.f32 %v3403_v28, %v3404_v31  ;;  %v38246_v55 = vpack.c.bf16 %v3404_v31, %v3397_v30 }
 0x380   :  { %38153 = vmatpush3.bf16.msra.mxu0 %v41310_v11  ;;  %34872 = vmatprep.mubr.f32.mxu0 %v2316_v6  ;;  %v32559_v11 = vld [vmem:[%s43233_s1 + $0x30] sm:$0xff] }
 0x381   :  { %38155 = vmatprep.subr.bf16.mxu0 %v41304_v63  ;;  %v3312_v23 = vand.u32 4294901760, %v32559_v11  ;;  %v3406_v45 = vand.u32 4294901760, %v3405_v37 }
 0x383   :  { %v3410_v32 = vsub.f32 %v32559_v11, %v3312_v23  ;;  %v38218_v41 = vpack.c.bf16 %v3315_v26, %v3312_v23  ;;  %v38222_v48 = vpack.c.bf16 %v3406_v45, %v3399_v44  ;;  %v32563_v44 = vld [vmem:[%s43202_s7 + $0x20] sm:$0xff]  ;;  %v32564_v45 = vld [vmem:[%s43202_s7 + $0x28] sm:$0xff] }
 0x384   :  { %v3847_v47 = vand.u32 4294901760, %v32563_v44 }
 0x385   :  { %v38234_v54 = vpack.c.bf16 %v3417_v33, %v3410_v32 }
 0x387   :  { %34873 = vmatmul.mubr.f32.vlgmr.msra.gmra.mrb[4].mxu0 %v2326_v17 }
 0x388   :  { %38157 = vmatpush3.bf16.msra.mxu0 %v41304_v63  ;;  %34879 = vmatprep.mubr.f32.mxu0 %v2317_v8 }
 0x389   :  { %38159 = vmatprep.subr.bf16.mxu0 %v41315_v13 }
 0x38f   :  { %34880 = vmatmul.mubr.f32.vlgmr.msra.gmra.mrb[4].mxu0 %v2327_v15 }
 0x390   :  { %38161 = vmatpush3.bf16.msra.mxu0 %v41315_v13  ;;  %34886 = vmatprep.mubr.f32.mxu0 %v2315_v4  ;;  %v3411_v13 = vand.u32 4294901760, %v3410_v32 }
 0x391   :  { %38163 = vmatprep.subr.bf16.mxu0 %v41304_v63 }
 0x392   :  { %v3412_v46 = vsub.f32 %v3410_v32, %v3411_v13  ;;  %v38250_v56 = vpack.c.bf16 %v3418_v39, %v3411_v13 }
 0x394   :  { %v3413_v49 = vand.u32 4294901760, %v3412_v46  ;;  %v32565_v46 = vld [vmem:[%s43202_s7 + $0x30] sm:$0xff] }
 0x397   :  { %34887 = vmatmul.mubr.f32.vlgmr.msra.gmra.mrb[4].mxu0 %v2325_v9 }
 0x398   :  { %38165 = vmatpush3.bf16.msra.mxu0 %v41304_v63  ;;  %34893 = vmatprep.mubr.f32.mxu0 %v2315_v4  ;;  %v38226_v63 = vpack.c.bf16 %v3420_v52, %v3413_v49  ;;  %v32566_v49 = vld [vmem:[%s43202_s7 + $0x38] sm:$0xff]  ;;  %v3853_v52 = vand.u32 4294901760, %v32565_v46 }
 0x399   :  { %38215 = vmatprep.subr.bf16.mxu0 %v38214_v29 }
 0x39f   :  { %34894 = vmatmul.mubr.f32.vlgmr.msra.gmra.mrb[4].mxu0 %v2325_v9 }
 0x3a0   :  { %38217 = vmatpush3.bf16.msra.mxu0 %v38214_v29  ;;  %34970 = vmatprep.mubr.f32.mxu0 %v41188_v1 }
 0x3a1   :  { %38219 = vmatprep.subr.bf16.mxu0 %v38218_v41 }
 0x3a4   :  { %38221 = vmatpush3.bf16.msra.mxu0 %v38218_v41 }
 0x3a5   :  { %38223 = vmatprep.subr.bf16.mxu0 %v38222_v48 }
 0x3a7   :  { %34971 = vmatmul.mubr.f32.vlgmr.msra.gmra.mrb[6].mxu0 %v41190_v2 }
 0x3a8   :  { %38225 = vmatpush3.bf16.msra.mxu0 %v38222_v48  ;;  %34981 = vmatprep.mubr.f32.mxu0 %v41137_v34  ;;  %v3850_v48 = vand.u32 4294901760, %v32564_v45 }
 0x3a9   :  { %38227 = vmatprep.subr.bf16.mxu0 %v38226_v63 }
 0x3ac   :  { %38229 = vmatpush3.bf16.msra.mxu0 %v38226_v63  ;;  %v3856_v63 = vand.u32 4294901760, %v32566_v49 }
 0x3ad   :  { %38231 = vmatprep.subr.bf16.mxu0 %v38230_v53 }
 0x3af   :  { %34982 = vmatmul.mubr.f32.vlgmr.msra.gmra.mrb[6].mxu0 %v41139_v35 }
 0x3b0   :  { %38233 = vmatpush3.bf16.msra.mxu0 %v38230_v53  ;;  %34992 = vmatprep.mubr.f32.mxu0 %v41152_v42  ;;  %v38262_v53 = vpack.c.bf16 %v3850_v48, %v3847_v47 }
 0x3b1   :  { %38235 = vmatprep.subr.bf16.mxu0 %v38234_v54 }
 0x3b2   :  { %38263 = vmatprep.subr.bf16.mxu1 %v38262_v53 }
 0x3b3   :  { %38265 = vmatpush3.bf16.msra.mxu1 %v38262_v53 }
 0x3b4   :  { %38237 = vmatpush3.bf16.msra.mxu0 %v38234_v54  ;;  %v3937_v54 = vsub.f32 %v32563_v44, %v3847_v47 }
 0x3b5   :  { %38239 = vmatprep.subr.bf16.mxu0 %v38214_v29 }
 0x3b7   :  { %34993 = vmatmul.mubr.f32.vlgmr.msra.gmra.mrb[6].mxu0 %v41155_v43 }
 0x3b8   :  { %38241 = vmatpush3.bf16.msra.mxu0 %v38214_v29  ;;  %35003 = vmatprep.mubr.f32.mxu0 %v41173_v50 }
 0x3b9   :  { %38243 = vmatprep.subr.bf16.mxu0 %v38218_v41 }
 0x3bc   :  { %38245 = vmatpush3.bf16.msra.mxu0 %v38218_v41 }
 0x3bd   :  { %38247 = vmatprep.subr.bf16.mxu0 %v38246_v55 }
 0x3bf   :  { %35004 = vmatmul.mubr.f32.vlgmr.msra.gmra.mrb[6].mxu0 %v41176_v51 }
 0x3c0   :  { %38249 = vmatpush3.bf16.msra.mxu0 %v38246_v55  ;;  %35014 = vmatprep.mubr.f32.mxu0 %v41137_v34  ;;  %v34961_v57 = vpop.f32.mrb[4].mxu1  ;;  %v3944_v55 = vsub.f32 %v32564_v45, %v3850_v48 }
 0x3c1   :  { %38251 = vmatprep.subr.bf16.mxu0 %v38250_v56  ;;  %v3282_v59 = vpop.f32.mrb[5].mxu1  ;;  %v40094_v60 = vadd.f32 %v34961_v57, %v32556_v58  ;;  %v38266_v57 = vpack.c.bf16 %v3856_v63, %v3853_v52 }
 0x3c2   :  { %v40095_v61 = vadd.f32 %v32556_v58, %v3282_v59  ;;  %v3958_v58 = vsub.f32 %v32566_v49, %v3856_v63  ;;  %v3938_v59 = vand.u32 4294901760, %v3937_v54 }
 0x3c3   :  { %v4378_v9 = vsel %vm1704_vm1, %v40094_v60, 0  ;;  %v3945_v60 = vand.u32 4294901760, %v3944_v55  ;;  %38267 = vmatprep.subr.bf16.mxu1 %v38266_v57 }
 0x3c4   :  { %38253 = vmatpush3.bf16.msra.mxu0 %v38250_v56  ;;  %v4375_v62 = vsel %vm1704_vm1, %v40095_v61, 0  ;;  %v4463_v17 = vand.u32 4294901760, %v4378_v9  ;;  %v3951_v56 = vsub.f32 %v32565_v46, %v3853_v52  ;;  %38269 = vmatpush3.bf16.msra.mxu1 %v38266_v57 }
 0x3c5   :  { %38255 = vmatprep.subr.bf16.mxu0 %v38214_v29  ;;  %v4453_v0 = vand.u32 4294901760, %v4375_v62 }
 0x3c6   :  { %v4464_v12 = vsub.f32 %v4378_v9, %v4463_v17  ;;  %v3952_v61 = vand.u32 4294901760, %v3951_v56 }
 0x3c7   :  { %35015 = vmatmul.mubr.f32.vlgmr.msra.gmra.mrb[6].mxu0 %v41139_v35  ;;  %v4454_v3 = vsub.f32 %v4375_v62, %v4453_v0  ;;  %v3959_v62 = vand.u32 4294901760, %v3958_v58  ;;  %35037 = vmatmul.mubr.f32.vlgmr.msra.gmra.mrb[6].mxu1 %v41190_v2 }
 0x3c8   :  { %38257 = vmatpush3.bf16.msra.mxu0 %v38214_v29  ;;  %35025 = vmatprep.mubr.f32.mxu0 %v41137_v34  ;;  %v4465_v23 = vand.u32 4294901760, %v4464_v12 }
 0x3c9   :  { %38259 = vmatprep.subr.bf16.mxu0 %v38218_v41  ;;  %v4455_v4 = vand.u32 4294901760, %v4454_v3  ;;  %35047 = vmatprep.mubr.f32.mxu1 %v41137_v34 }
 0x3ca   :  { %v4466_v32 = vsub.f32 %v4464_v12, %v4465_v23 }
 0x3cb   :  { %v4456_v5 = vsub.f32 %v4454_v3, %v4455_v4 }
 0x3cc   :  { %38261 = vmatpush3.bf16.msra.mxu0 %v38218_v41  ;;  %v4467_v39 = vand.u32 4294901760, %v4466_v32 }
 0x3cd   :  { %v4457_v6 = vand.u32 4294901760, %v4456_v5  ;;  %v3960_v5 = vsub.f32 %v3958_v58, %v3959_v62 }
 0x3cf   :  { %35026 = vmatmul.mubr.f32.vlgmr.msra.gmra.mrb[6].mxu0 %v41139_v35 }
 0x3d0   :  { %35098 = vmatprep.mubr.f32.mxu0 %v4457_v6 }
 0x472   :  { %v41388_v7 = vpop.f32.mrb[4].mxu0 }
 0x473   :  { %v41390_v8 = vpop.f32.mrb[5].mxu0 }
 0x4a2   :  { %v35027_v18 = vpop.f32.mrb[6].mxu0 }
 0x4a3   :  { %v40096_v15 = vadd.f32 %v35027_v18, %v32562_v14  ;;  %v3823_v19 = vpop.f32.mrb[7].mxu0 }
 0x4a4   :  { %v40097_v20 = vadd.f32 %v32562_v14, %v3823_v19  ;;  %v38278_v19 = vpack.c.bf16 %v3944_v55, %v3937_v54 }
 0x4a5   :  { %v4384_v10 = vsel %vm1704_vm1, %v40096_v15, 0 }
 0x4a6   :  { %v4390_v16 = vand.u32 4294901760, %v4384_v10  ;;  %v4381_v21 = vsel %vm1704_vm1, %v40097_v20, 0  ;;  %v38282_v20 = vpack.c.bf16 %v3958_v58, %v3951_v56 }
 0x4a7   :  { %v4387_v11 = vand.u32 4294901760, %v4381_v21 }
 0x4a8   :  { %v4482_v22 = vsub.f32 %v4384_v10, %v4390_v16  ;;  %v38298_v10 = vpack.c.bf16 %v3959_v62, %v3952_v61 }
 0x4a9   :  { %v38310_v26 = vpack.c.bf16 %v4390_v16, %v4387_v11  ;;  %v4475_v27 = vsub.f32 %v4381_v21, %v4387_v11 }
 0x4aa   :  { %v4483_v28 = vand.u32 4294901760, %v4482_v22 }
 0x4ab   :  { %v4476_v29 = vand.u32 4294901760, %v4475_v27  ;;  %38311 = vmatprep.subr.bf16.mxu0 %v38310_v26  ;;  %v38318_v30 = vpack.c.bf16 %v4482_v22, %v4475_v27 }
 0x4ac   :  { %38313 = vmatpush3.bf16.xpose.msra.mxu0 %v38310_v26  ;;  %v4484_v31 = vsub.f32 %v4482_v22, %v4483_v28 }
 0x4ad   :  { %v4477_v33 = vsub.f32 %v4475_v27, %v4476_v29  ;;  %v38326_v36 = vpack.c.bf16 %v4483_v28, %v4476_v29  ;;  %v32568_v27 = vld [vmem:[%s43203_s8 + $0x1] ss:$0 sm:$0xff] }
 0x4ae   :  { %v4485_v37 = vand.u32 4294901760, %v4484_v31 }
 0x4af   :  { %v4478_v13 = vand.u32 4294901760, %v4477_v33 }
 0x4b1   :  { %v38314_v41 = vpack.c.bf16 %v4485_v37, %v4478_v13 }
 0x4b3   :  { %35099 = vmatmul.mubr.f32.vlgmr.msra.gmra.mrb[8].mxu0 %v4467_v39  ;;  %38315 = vmatprep.subr.bf16.mxu0 %v38314_v41 }
 0x4b4   :  { %38317 = vmatpush3.bf16.xpose.msra.mxu0 %v38314_v41  ;;  %35105 = vmatprep.mubr.f32.mxu0 %v4453_v0 }
 0x4b5   :  { %38319 = vmatprep.subr.bf16.mxu0 %v38318_v30 }
 0x4bb   :  { %35106 = vmatmul.mubr.f32.vlgmr.msra.gmra.mrb[8].mxu0 %v4463_v17 }
 0x4bc   :  { %38321 = vmatpush3.bf16.xpose.msra.mxu0 %v38318_v30  ;;  %35112 = vmatprep.mubr.f32.mxu0 %v4454_v3  ;;  %v3946_v3 = vsub.f32 %v3944_v55, %v3945_v60 }
 0x4bd   :  { %38323 = vmatprep.subr.bf16.mxu0 %v38310_v26 }
 0x4be   :  { %v3947_v9 = vand.u32 4294901760, %v3946_v3 }
 0x4c3   :  { %35113 = vmatmul.mubr.f32.vlgmr.msra.gmra.mrb[8].mxu0 %v4464_v12  ;;  %v38294_v12 = vpack.c.bf16 %v3945_v60, %v3938_v59 }
 0x4c4   :  { %38325 = vmatpush3.bf16.xpose.msra.mxu0 %v38310_v26  ;;  %35119 = vmatprep.mubr.f32.mxu0 %v4455_v4  ;;  %v3953_v4 = vsub.f32 %v3951_v56, %v3952_v61 }
 0x4c5   :  { %38327 = vmatprep.subr.bf16.mxu0 %v38326_v36 }
 0x4c6   :  { %v3954_v14 = vand.u32 4294901760, %v3953_v4 }
 0x4cb   :  { %35120 = vmatmul.mubr.f32.vlgmr.msra.gmra.mrb[8].mxu0 %v4465_v23 }
 0x4cc   :  { %38329 = vmatpush3.bf16.xpose.msra.mxu0 %v38326_v36  ;;  %35126 = vmatprep.mubr.f32.mxu0 %v4453_v0 }
 0x4cd   :  { %38331 = vmatprep.subr.bf16.mxu0 %v38310_v26 }
 0x4d3   :  { %35127 = vmatmul.mubr.f32.vlgmr.msra.gmra.mrb[8].mxu0 %v4463_v17 }
 0x4d4   :  { %38333 = vmatpush3.bf16.xpose.msra.mxu0 %v38310_v26  ;;  %35133 = vmatprep.mubr.f32.mxu0 %v4453_v0  ;;  %v3939_v0 = vsub.f32 %v3937_v54, %v3938_v59 }
 0x4d6   :  { %v3940_v6 = vand.u32 4294901760, %v3939_v0 }
 0x4d8   :  { %v38270_v18 = vpack.c.bf16 %v3947_v9, %v3940_v6 }
 0x4da   :  { %38271 = vmatprep.subr.bf16.mxu1 %v38270_v18 }
 0x4db   :  { %35134 = vmatmul.mubr.f32.vlgmr.msra.gmra.mrb[8].mxu0 %v4463_v17  ;;  %v3961_v17 = vand.u32 4294901760, %v3960_v5  ;;  %38273 = vmatpush3.bf16.msra.mxu1 %v38270_v18 }
 0x4dd   :  { %v38274_v15 = vpack.c.bf16 %v3961_v17, %v3954_v14 }
 0x4df   :  { %38275 = vmatprep.subr.bf16.mxu1 %v38274_v15 }
 0x4e0   :  { %38277 = vmatpush3.bf16.msra.mxu1 %v38274_v15 }
 0x4e1   :  { %38279 = vmatprep.subr.bf16.mxu1 %v38278_v19 }
 0x4e3   :  { %35048 = vmatmul.mubr.f32.vlgmr.msra.gmra.mrb[6].mxu1 %v41139_v35 }
 0x4e4   :  { %38281 = vmatpush3.bf16.msra.mxu1 %v38278_v19  ;;  %35058 = vmatprep.mubr.f32.mxu1 %v41152_v42 }
 0x4e5   :  { %38283 = vmatprep.subr.bf16.mxu1 %v38282_v20 }
 0x4e8   :  { %38285 = vmatpush3.bf16.msra.mxu1 %v38282_v20 }
 0x4e9   :  { %38287 = vmatprep.subr.bf16.mxu1 %v38262_v53 }
 0x4eb   :  { %35059 = vmatmul.mubr.f32.vlgmr.msra.gmra.mrb[6].mxu1 %v41155_v43 }
 0x4ec   :  { %38289 = vmatpush3.bf16.msra.mxu1 %v38262_v53  ;;  %35069 = vmatprep.mubr.f32.mxu1 %v41173_v50 }
 0x4ed   :  { %38291 = vmatprep.subr.bf16.mxu1 %v38266_v57 }
 0x4f0   :  { %38293 = vmatpush3.bf16.msra.mxu1 %v38266_v57 }
 0x4f1   :  { %38295 = vmatprep.subr.bf16.mxu1 %v38294_v12 }
 0x4f3   :  { %35070 = vmatmul.mubr.f32.vlgmr.msra.gmra.mrb[6].mxu1 %v41176_v51 }
 0x4f4   :  { %38297 = vmatpush3.bf16.msra.mxu1 %v38294_v12  ;;  %35080 = vmatprep.mubr.f32.mxu1 %v41137_v34 }
 0x4f5   :  { %38299 = vmatprep.subr.bf16.mxu1 %v38298_v10 }
 0x4f8   :  { %38301 = vmatpush3.bf16.msra.mxu1 %v38298_v10 }
 0x4f9   :  { %38303 = vmatprep.subr.bf16.mxu1 %v38262_v53 }
 0x4fb   :  { %35081 = vmatmul.mubr.f32.vlgmr.msra.gmra.mrb[6].mxu1 %v41139_v35 }
 0x4fc   :  { %38305 = vmatpush3.bf16.msra.mxu1 %v38262_v53  ;;  %35091 = vmatprep.mubr.f32.mxu1 %v41137_v34 }
 0x4fd   :  { %38307 = vmatprep.subr.bf16.mxu1 %v38266_v57 }
 0x500   :  { %38309 = vmatpush3.bf16.msra.mxu1 %v38266_v57 }
 0x503   :  { %35092 = vmatmul.mubr.f32.vlgmr.msra.gmra.mrb[6].mxu1 %v41139_v35 }
 0x5ae   :  { %v35135_v16 = vpop.f32.mrb[8].mxu0 }
 0x5af   :  { %v40100_v21 = vadd.f32 %v35135_v16, %v41295_v40  ;;  %v4878_v11 = vpop.f32.mrb[9].mxu0 }
 0x5b0   :  { %v40101_v22 = vadd.f32 %v4878_v11, %v41290_v38 }
 0x5b1   :  { %v4891_v23 = vsel %vm2219_vm2, %v40100_v21, -inf }
 0x5b2   :  { %4892 = vmax.xlane.f32.xlu1 %v4891_v23  ;;  %v4888_v26 = vsel %vm2219_vm2, %v40101_v22, -inf }
 0x5b3   :  { %4889 = vmax.xlane.f32.xlu0 %v4888_v26 }
 0x5d6   :  { %v35093_v28 = vpop.f32.mrb[6].mxu1 }
 0x5d7   :  { %v40098_v29 = vadd.f32 %v35093_v28, %v32568_v27  ;;  %v4364_v30 = vpop.f32.mrb[7].mxu1  ;;  %v32570_v28 = vld [vmem:[%s43232_s29 + $0x40] sm:$0xff] }
 0x5d8   :  { %v40099_v31 = vadd.f32 %v32568_v27, %v4364_v30  ;;  %v6424_v30 = vand.u32 4294901760, %v32570_v28 }
 0x5d9   :  { %v4920_v32 = vand.u32 4294901760, %v40098_v29 }
 0x5da   :  { %v4917_v40 = vand.u32 4294901760, %v40099_v31 }
 0x5db   :  { %v5012_v38 = vsub.f32 %v40098_v29, %v4920_v32  ;;  %v32571_v29 = vld [vmem:[%s43232_s29 + $0x48] sm:$0xff] }
 0x5dc   :  { %v38334_v39 = vpack.c.bf16 %v4920_v32, %v4917_v40  ;;  %v5005_v41 = vsub.f32 %v40099_v31, %v4917_v40  ;;  %v6427_v31 = vand.u32 4294901760, %v32571_v29  ;;  %v32572_v32 = vld [vmem:[%s43232_s29 + $0x50] sm:$0xff] }
 0x5dd   :  { %v5013_v45 = vand.u32 4294901760, %v5012_v38 }
 0x5de   :  { %v5006_v47 = vand.u32 4294901760, %v5005_v41  ;;  %38335 = vmatprep.subr.bf16.mxu1 %v38334_v39  ;;  %v38342_v54 = vpack.c.bf16 %v5012_v38, %v5005_v41  ;;  %v38358_v40 = vpack.c.bf16 %v6427_v31, %v6424_v30 }
 0x5df   :  { %38337 = vmatpush3.bf16.msra.mxu1 %v38334_v39  ;;  %v5014_v48 = vsub.f32 %v5012_v38, %v5013_v45  ;;  %v6514_v38 = vsub.f32 %v32570_v28, %v6424_v30 }
 0x5e0   :  { %v5007_v49 = vsub.f32 %v5005_v41, %v5006_v47  ;;  %v38350_v55 = vpack.c.bf16 %v5013_v45, %v5006_v47 }
 0x5e1   :  { %v5015_v52 = vand.u32 4294901760, %v5014_v48  ;;  %v6515_v41 = vand.u32 4294901760, %v6514_v38 }
 0x5e2   :  { %v5008_v63 = vand.u32 4294901760, %v5007_v49 }
 0x5e3   :  { %v6516_v47 = vsub.f32 %v6514_v38, %v6515_v41 }
 0x5e4   :  { %v38338_v53 = vpack.c.bf16 %v5015_v52, %v5008_v63 }
 0x5e5   :  { %v6517_v63 = vand.u32 4294901760, %v6516_v47 }
 0x5e6   :  { %38339 = vmatprep.subr.bf16.mxu1 %v38338_v53 }
 0x63f   :  { %v4893_v33 = vpop.xlane.xlu1 %4892 }
 0x640   :  { %v4895_v36 = vsub.f32 %v40100_v21, %v4893_v33  ;;  %v4890_v37 = vpop.xlane.xlu0 %4889  ;;  %v32569_v21 = vld [vmem:[%s43204_s9 + $0x8] sm:$0xff]  ;;  %v32573_v33 = vld [vmem:[%s43232_s29 + $0x58] sm:$0xff] }
 0x641   :  { %v4894_v13 = vsub.f32 %v40101_v22, %v4890_v37  ;;  %v41436_v11 = vand.u32 4294901760, %v32569_v21  ;;  %v6433_v37 = vand.u32 4294901760, %v32573_v33 }
 0x642   :  { %v4898_v44 = vmul.f32 1.442695, %v4895_v36  ;;  %v6430_v36 = vand.u32 4294901760, %v32572_v32 }
 0x643   :  { %v4896_v46 = vmul.f32 1.442695, %v4894_v13  ;;  %35178 = vmatprep.subr.mxu0 %v41436_v11  ;;  %v41440_v22 = vsub.f32 %v32569_v21, %v41436_v11  ;;  %v6521_v13 = vsub.f32 %v32571_v29, %v6427_v31  ;;  %v2750_v21 = vld [vmem:[%s43204_s9] sm:$0xff]  ;;  %v5919_v29 = vsel %vm1704_vm1, %v41388_v7, 0 }
 0x644   :  { %40833 = vpow2.f32 %v4898_v44  ;;  %35179 = vmatpush3.msra.mxu0 %v41436_v11  ;;  %v6528_v45 = vsub.f32 %v32572_v32, %v6430_v36  ;;  %v41492_v31 = vand.u32 4294901760, %v5919_v29 }
 0x645   :  { %40835 = vpow2.f32 %v4896_v46  ;;  %v41444_v23 = vand.u32 4294901760, %v41440_v22  ;;  %v6522_v44 = vand.u32 4294901760, %v6521_v13  ;;  %v6535_v46 = vsub.f32 %v32573_v33, %v6433_v37 }
 0x646   :  { %v6529_v49 = vand.u32 4294901760, %v6528_v45 }
 0x647   :  { %v5516_v26 = vsub.f32 %v41440_v22, %v41444_v23  ;;  %v6523_v48 = vsub.f32 %v6521_v13, %v6522_v44  ;;  %v6536_v52 = vand.u32 4294901760, %v6535_v46 }
 0x649   :  { %v41448_v27 = vand.u32 4294901760, %v5516_v26  ;;  %v5916_v26 = vsel %vm1704_vm1, %v41390_v8, 0  ;;  %v5998_v8 = vsub.f32 %v5919_v29, %v41492_v31 }
 0x64a   :  { %v5987_v28 = vand.u32 4294901760, %v5916_v26 }
 0x64b   :  { %35183 = vmatprep.subr.mxu0 %v41448_v27 }
 0x64c   :  { %v5988_v30 = vsub.f32 %v5916_v26, %v5987_v28 }
 0x64e   :  { %v40834_v56 = vpop.eup %40833  ;;  %v5989_v33 = vand.u32 4294901760, %v5988_v30 }
 0x64f   :  { %v40836_v57 = vpop.eup %40835  ;;  %v4903_v58 = vsel %vm2219_vm2, %v40834_v56, 0.0 }
 0x650   :  { %4904 = vadd.xlane.f32.xlu1 %v4903_v58  ;;  %v4900_v59 = vsel %vm2219_vm2, %v40836_v57, 0.0 }
 0x651   :  { %4901 = vadd.xlane.f32.xlu0 %v4900_v59 }
 0x6dd   :  { %v4905_v60 = vpop.xlane.xlu1 %4904 }
 0x6de   :  { %40837 = vrcp.f32 %v4905_v60  ;;  %v4902_v61 = vpop.xlane.xlu0 %4901  ;;  %v38374_v60 = vpack.c.bf16 %v6521_v13, %v6514_v38 }
 0x6df   :  { %40839 = vrcp.f32 %v4902_v61  ;;  %v38378_v61 = vpack.c.bf16 %v6535_v46, %v6528_v45 }
 0x6e8   :  { %v40838_v62 = vpop.eup %40837 }
 0x6e9   :  { %v40840_v0 = vpop.eup %40839  ;;  %v4909_v3 = vmul.f32 %v40838_v62, %v40834_v56  ;;  %v38390_v62 = vpack.c.bf16 %v6522_v44, %v6515_v41 }
 0x6ea   :  { %v4908_v4 = vmul.f32 %v40840_v0, %v40836_v57  ;;  %v38394_v0 = vpack.c.bf16 %v6536_v52, %v6529_v49 }
 0x6eb   :  { %v4914_v5 = vsel %vm2219_vm2, %v4909_v3, 0 }
 0x6ec   :  { %v4911_v6 = vsel %vm2219_vm2, %v4908_v4, 0  ;;  %v4993_v9 = vand.u32 4294901760, %v4914_v5 }
 0x6ed   :  { %v4983_v14 = vand.u32 4294901760, %v4911_v6 }
 0x6ee   :  { %v4994_v17 = vsub.f32 %v4914_v5, %v4993_v9 }
 0x6ef   :  { %v4984_v18 = vsub.f32 %v4911_v6, %v4983_v14 }
 0x6f0   :  { %v4995_v15 = vand.u32 4294901760, %v4994_v17 }
 0x6f1   :  { %v4985_v19 = vand.u32 4294901760, %v4984_v18 }
 0x6f2   :  { %v4996_v20 = vsub.f32 %v4994_v17, %v4995_v15 }
 0x6f3   :  { %v4986_v12 = vsub.f32 %v4984_v18, %v4985_v19 }
 0x6f4   :  { %v4997_v16 = vand.u32 4294901760, %v4996_v20 }
 0x6f5   :  { %v4987_v10 = vand.u32 4294901760, %v4986_v12 }
 0x6f7   :  { %35140 = vmatprep.mubr.f32.mxu1 %v4987_v10 }
 0x6f8   :  { %35141 = vmatmul.mubr.f32.vlgmr.msra.gmra.mrb[8].mxu1 %v4997_v16 }
 0x6f9   :  { %38341 = vmatpush3.bf16.msra.mxu1 %v38338_v53  ;;  %35147 = vmatprep.mubr.f32.mxu1 %v4983_v14  ;;  %v6524_v53 = vand.u32 4294901760, %v6523_v48 }
 0x6fa   :  { %38343 = vmatprep.subr.bf16.mxu1 %v38342_v54 }
 0x6fb   :  { %v38366_v56 = vpack.c.bf16 %v6524_v53, %v6517_v63 }
 0x700   :  { %35148 = vmatmul.mubr.f32.vlgmr.msra.gmra.mrb[8].mxu1 %v4993_v9 }
 0x701   :  { %38345 = vmatpush3.bf16.msra.mxu1 %v38342_v54  ;;  %35154 = vmatprep.mubr.f32.mxu1 %v4984_v18  ;;  %v6530_v54 = vsub.f32 %v6528_v45, %v6529_v49  ;;  %v32578_v45 = vld [vmem:[%s43233_s1 + $0x50] sm:$0xff] }
 0x702   :  { %38347 = vmatprep.subr.bf16.mxu1 %v38334_v39  ;;  %v6971_v47 = vand.u32 4294901760, %v32578_v45 }
 0x703   :  { %v6531_v57 = vand.u32 4294901760, %v6530_v54 }
 0x708   :  { %35155 = vmatmul.mubr.f32.vlgmr.msra.gmra.mrb[8].mxu1 %v4994_v17 }
 0x709   :  { %38349 = vmatpush3.bf16.msra.mxu1 %v38334_v39  ;;  %35161 = vmatprep.mubr.f32.mxu1 %v4985_v19 }
 0x70a   :  { %38351 = vmatprep.subr.bf16.mxu1 %v38350_v55 }
 0x710   :  { %35162 = vmatmul.mubr.f32.vlgmr.msra.gmra.mrb[8].mxu1 %v4995_v15 }
 0x711   :  { %38353 = vmatpush3.bf16.msra.mxu1 %v38350_v55  ;;  %35168 = vmatprep.mubr.f32.mxu1 %v4983_v14  ;;  %v6537_v55 = vsub.f32 %v6535_v46, %v6536_v52  ;;  %v32579_v46 = vld [vmem:[%s43233_s1 + $0x58] sm:$0xff] }
 0x712   :  { %38355 = vmatprep.subr.bf16.mxu1 %v38334_v39  ;;  %v6974_v48 = vand.u32 4294901760, %v32579_v46 }
 0x713   :  { %v6538_v58 = vand.u32 4294901760, %v6537_v55  ;;  %v7069_v55 = vsub.f32 %v32578_v45, %v6971_v47 }
 0x715   :  { %v38370_v59 = vpack.c.bf16 %v6538_v58, %v6531_v57 }
 0x718   :  { %35169 = vmatmul.mubr.f32.vlgmr.msra.gmra.mrb[8].mxu1 %v4993_v9 }
 0x719   :  { %38357 = vmatpush3.bf16.msra.mxu1 %v38334_v39  ;;  %35175 = vmatprep.mubr.f32.mxu1 %v4983_v14  ;;  %v38362_v39 = vpack.c.bf16 %v6433_v37, %v6430_v36  ;;  %v5999_v36 = vand.u32 4294901760, %v5998_v8 }
 0x71a   :  { %38359 = vmatprep.subr.bf16.mxu1 %v38358_v40 }
 0x71b   :  { %v6000_v7 = vsub.f32 %v5998_v8, %v5999_v36 }
 0x71d   :  { %v6001_v13 = vand.u32 4294901760, %v6000_v7 }
 0x720   :  { %35176 = vmatmul.mubr.f32.vlgmr.msra.gmra.mrb[8].mxu1 %v4993_v9 }
 0x721   :  { %35246 = vmatprep.mubr.f32.mxu1 %v41188_v1  ;;  %38361 = vmatpush3.bf16.msra.mxu1 %v38358_v40 }
 0x722   :  { %38363 = vmatprep.subr.bf16.mxu1 %v38362_v39 }
 0x725   :  { %38365 = vmatpush3.bf16.msra.mxu1 %v38362_v39 }
 0x726   :  { %38367 = vmatprep.subr.bf16.mxu1 %v38366_v56 }
 0x728   :  { %35247 = vmatmul.mubr.f32.vlgmr.msra.gmra.mrb[10].mxu1 %v41190_v2 }
 0x729   :  { %35257 = vmatprep.mubr.f32.mxu1 %v41137_v34  ;;  %38369 = vmatpush3.bf16.msra.mxu1 %v38366_v56  ;;  %v7076_v56 = vsub.f32 %v32579_v46, %v6974_v48 }
 0x72a   :  { %38371 = vmatprep.subr.bf16.mxu1 %v38370_v59 }
 0x72d   :  { %38373 = vmatpush3.bf16.msra.mxu1 %v38370_v59  ;;  %v7070_v59 = vand.u32 4294901760, %v7069_v55 }
 0x72e   :  { %38375 = vmatprep.subr.bf16.mxu1 %v38374_v60 }
 0x730   :  { %35258 = vmatmul.mubr.f32.vlgmr.msra.gmra.mrb[10].mxu1 %v41139_v35 }
 0x731   :  { %38377 = vmatpush3.bf16.msra.mxu1 %v38374_v60  ;;  %35268 = vmatprep.mubr.f32.mxu1 %v41152_v42  ;;  %v7077_v60 = vand.u32 4294901760, %v7076_v56 }
 0x732   :  { %38379 = vmatprep.subr.bf16.mxu1 %v38378_v61 }
 0x735   :  { %38381 = vmatpush3.bf16.msra.mxu1 %v38378_v61  ;;  %v38410_v61 = vpack.c.bf16 %v6974_v48, %v6971_v47 }
 0x736   :  { %38383 = vmatprep.subr.bf16.mxu1 %v38358_v40 }
 0x738   :  { %35269 = vmatmul.mubr.f32.vlgmr.msra.gmra.mrb[10].mxu1 %v41155_v43 }
 0x739   :  { %38385 = vmatpush3.bf16.msra.mxu1 %v38358_v40  ;;  %35279 = vmatprep.mubr.f32.mxu1 %v41173_v50 }
 0x73a   :  { %38387 = vmatprep.subr.bf16.mxu1 %v38362_v39 }
 0x73d   :  { %38389 = vmatpush3.bf16.msra.mxu1 %v38362_v39 }
 0x73e   :  { %38391 = vmatprep.subr.bf16.mxu1 %v38390_v62 }
 0x740   :  { %35280 = vmatmul.mubr.f32.vlgmr.msra.gmra.mrb[10].mxu1 %v41176_v51 }
 0x741   :  { %38393 = vmatpush3.bf16.msra.mxu1 %v38390_v62  ;;  %35290 = vmatprep.mubr.f32.mxu1 %v41137_v34 }
 0x742   :  { %38395 = vmatprep.subr.bf16.mxu1 %v38394_v0 }
 0x745   :  { %38397 = vmatpush3.bf16.msra.mxu1 %v38394_v0 }
 0x746   :  { %38399 = vmatprep.subr.bf16.mxu1 %v38358_v40 }
 0x748   :  { %35291 = vmatmul.mubr.f32.vlgmr.msra.gmra.mrb[10].mxu1 %v41139_v35 }
 0x749   :  { %38401 = vmatpush3.bf16.msra.mxu1 %v38358_v40  ;;  %35301 = vmatprep.mubr.f32.mxu1 %v41137_v34 }
 0x74a   :  { %38403 = vmatprep.subr.bf16.mxu1 %v38362_v39 }
 0x74d   :  { %38405 = vmatpush3.bf16.msra.mxu1 %v38362_v39  ;;  %v32577_v39 = vld [vmem:[%s43233_s1 + $0x48] sm:$0xff] }
 0x74e   :  { %v6968_v44 = vand.u32 4294901760, %v32577_v39 }
 0x750   :  { %35302 = vmatmul.mubr.f32.vlgmr.msra.gmra.mrb[10].mxu1 %v41139_v35  ;;  %v7062_v52 = vsub.f32 %v32577_v39, %v6968_v44 }
 0x751   :  { %35378 = vmatprep.mubr.f32.mxu1 %v41188_v1 }
 0x752   :  { %v7063_v54 = vand.u32 4294901760, %v7062_v52 }
 0x754   :  { %v7064_v58 = vsub.f32 %v7062_v52, %v7063_v54 }
 0x756   :  { %v7065_v0 = vand.u32 4294901760, %v7064_v58  ;;  %v32582_v58 = vld [vmem:[%s43202_s7 + $0x40] sm:$0xff] }
 0x7f3   :  { %v35177_v3 = vpop.f32.mrb[8].mxu1 }
 0x7f4   :  { %v5424_v4 = vsel %vm1704_vm1, %v35177_v3, 0  ;;  %v5408_v5 = vpop.f32.mrb[9].mxu1  ;;  %v7071_v3 = vsub.f32 %v7069_v55, %v7070_v59 }
 0x7f5   :  { %v5502_v6 = vand.u32 4294901760, %v5424_v4  ;;  %v5421_v9 = vsel %vm1704_vm1, %v5408_v5, 0 }
 0x7f6   :  { %v5492_v14 = vand.u32 4294901760, %v5421_v9 }
 0x7f7   :  { %v5503_v17 = vsub.f32 %v5424_v4, %v5502_v6  ;;  %v7078_v4 = vsub.f32 %v7076_v56, %v7077_v60 }
 0x7f8   :  { %v5493_v18 = vsub.f32 %v5421_v9, %v5492_v14 }
 0x7f9   :  { %v5504_v15 = vand.u32 4294901760, %v5503_v17  ;;  %v7079_v9 = vand.u32 4294901760, %v7078_v4 }
 0x7fa   :  { %v5494_v19 = vand.u32 4294901760, %v5493_v18 }
 0x7fb   :  { %v5505_v20 = vsub.f32 %v5503_v17, %v5504_v15 }
 0x7fc   :  { %v5495_v12 = vsub.f32 %v5493_v18, %v5494_v19 }
 0x7fd   :  { %v5506_v16 = vand.u32 4294901760, %v5505_v20  ;;  %v32575_v20 = vld [vmem:[%s43236_s30 + $0x2] ss:$0 sm:$0xff] }
 0x7fe   :  { %v5496_v10 = vand.u32 4294901760, %v5495_v12 }
 0x800   :  { %35180 = vmatprep.mubr.f32.mxu0 %v5496_v10 }
 0x801   :  { %35181 = vmatmul.mubr.f32.vlgmr.msra.gmra.mrb[10].mxu0 %v5506_v16 }
 0x802   :  { %35185 = vmatprep.mubr.f32.mxu0 %v5492_v14  ;;  %35184 = vmatpush3.msra.mxu0 %v41448_v27  ;;  %v5922_v27 = vand.u32 4294901760, %v2750_v21 }
 0x803   :  { %35188 = vmatprep.subr.mxu0 %v41440_v22 }
 0x809   :  { %35186 = vmatmul.mubr.f32.vlgmr.msra.gmra.mrb[10].mxu0 %v5502_v6 }
 0x80a   :  { %35190 = vmatprep.mubr.f32.mxu0 %v5493_v18  ;;  %35189 = vmatpush3.msra.mxu0 %v41440_v22  ;;  %v6009_v22 = vsub.f32 %v2750_v21, %v5922_v27  ;;  %v38426_v18 = vpack.c.bf16 %v7076_v56, %v7069_v55 }
 0x80b   :  { %35193 = vmatprep.subr.mxu0 %v41436_v11 }
 0x80c   :  { %v6010_v32 = vand.u32 4294901760, %v6009_v22 }
 0x80e   :  { %v6011_v40 = vsub.f32 %v6009_v22, %v6010_v32 }
 0x810   :  { %v6012_v37 = vand.u32 4294901760, %v6011_v40 }
 0x811   :  { %35191 = vmatmul.mubr.f32.vlgmr.msra.gmra.mrb[10].mxu0 %v5503_v17 }
 0x812   :  { %35195 = vmatprep.mubr.f32.mxu0 %v5494_v19  ;;  %35194 = vmatpush3.msra.mxu0 %v41436_v11  ;;  %v38442_v19 = vpack.c.bf16 %v7077_v60, %v7070_v59  ;;  %v32583_v59 = vld [vmem:[%s43202_s7 + $0x48] sm:$0xff]  ;;  %v32584_v60 = vld [vmem:[%s43202_s7 + $0x50] sm:$0xff] }
 0x813   :  { %35198 = vmatprep.subr.mxu0 %v41444_v23 }
 0x819   :  { %35196 = vmatmul.mubr.f32.vlgmr.msra.gmra.mrb[10].mxu0 %v5504_v15 }
 0x81a   :  { %35200 = vmatprep.mubr.f32.mxu0 %v5492_v14  ;;  %35199 = vmatpush3.msra.mxu0 %v41444_v23  ;;  %v5990_v23 = vsub.f32 %v5988_v30, %v5989_v33 }
 0x81b   :  { %35203 = vmatprep.subr.mxu0 %v41436_v11 }
 0x81c   :  { %v5991_v38 = vand.u32 4294901760, %v5990_v23 }
 0x821   :  { %35201 = vmatmul.mubr.f32.vlgmr.msra.gmra.mrb[10].mxu0 %v5502_v6 }
 0x822   :  { %35205 = vmatprep.mubr.f32.mxu0 %v5492_v14  ;;  %35204 = vmatpush3.msra.mxu0 %v41436_v11  ;;  %v32576_v11 = vld [vmem:[%s43233_s1 + $0x40] sm:$0xff] }
 0x823   :  { %35208 = vmatprep.subr.mxu0 %v5922_v27  ;;  %v6965_v41 = vand.u32 4294901760, %v32576_v11  ;;  %v35303_v12 = vpop.f32.mrb[10].mxu1 }
 0x824   :  { %v40102_v10 = vadd.f32 %v35303_v12, %v32575_v20  ;;  %v6941_v16 = vpop.f32.mrb[11].mxu1 }
 0x825   :  { %v7055_v49 = vsub.f32 %v32576_v11, %v6965_v41  ;;  %v38406_v63 = vpack.c.bf16 %v6968_v44, %v6965_v41  ;;  %v40103_v21 = vadd.f32 %v32575_v20, %v6941_v16 }
 0x827   :  { %v7056_v53 = vand.u32 4294901760, %v7055_v49  ;;  %v38422_v17 = vpack.c.bf16 %v7062_v52, %v7055_v49  ;;  %v8034_v26 = vsel %vm1704_vm1, %v40103_v21, 0 }
 0x829   :  { %35206 = vmatmul.mubr.f32.vlgmr.msra.gmra.mrb[10].mxu0 %v5502_v6  ;;  %v7057_v57 = vsub.f32 %v7055_v49, %v7056_v53  ;;  %v7072_v6 = vand.u32 4294901760, %v7071_v3  ;;  %v38438_v15 = vpack.c.bf16 %v7063_v54, %v7056_v53  ;;  %v7512_v3 = vand.u32 4294901760, %v32584_v60 }
 0x82a   :  { %35210 = vmatprep.mubr.f32.mxu0 %v5991_v38  ;;  %35209 = vmatpush3.msra.mxu0 %v5922_v27 }
 0x82b   :  { %35213 = vmatprep.subr.mxu0 %v6012_v37  ;;  %v7058_v62 = vand.u32 4294901760, %v7057_v57  ;;  %v38418_v14 = vpack.c.bf16 %v7079_v9, %v7072_v6 }
 0x82d   :  { %v38414_v5 = vpack.c.bf16 %v7065_v0, %v7058_v62  ;;  %v7509_v62 = vand.u32 4294901760, %v32583_v59  ;;  %v32585_v0 = vld [vmem:[%s43202_s7 + $0x58] sm:$0xff] }
 0x82e   :  { %v7515_v4 = vand.u32 4294901760, %v32585_v0 }
 0x82f   :  { %v7603_v9 = vsub.f32 %v32583_v59, %v7509_v62 }
 0x831   :  { %35211 = vmatmul.mubr.f32.vlgmr.msra.gmra.mrb[10].mxu0 %v6001_v13 }
 0x832   :  { %35215 = vmatprep.mubr.f32.mxu0 %v5987_v28  ;;  %35214 = vmatpush3.msra.mxu0 %v6012_v37 }
 0x833   :  { %35218 = vmatprep.subr.mxu0 %v6009_v22 }
 0x839   :  { %35216 = vmatmul.mubr.f32.vlgmr.msra.gmra.mrb[10].mxu0 %v41492_v31 }
 0x83a   :  { %35220 = vmatprep.mubr.f32.mxu0 %v5988_v30  ;;  %35219 = vmatpush3.msra.mxu0 %v6009_v22 }
 0x83b   :  { %35223 = vmatprep.subr.mxu0 %v5922_v27 }
 0x841   :  { %35221 = vmatmul.mubr.f32.vlgmr.msra.gmra.mrb[10].mxu0 %v5998_v8 }
 0x842   :  { %35225 = vmatprep.mubr.f32.mxu0 %v5989_v33  ;;  %35224 = vmatpush3.msra.mxu0 %v5922_v27 }
 0x843   :  { %35228 = vmatprep.subr.mxu0 %v6010_v32 }
 0x849   :  { %35226 = vmatmul.mubr.f32.vlgmr.msra.gmra.mrb[10].mxu0 %v5999_v36 }
 0x84a   :  { %35230 = vmatprep.mubr.f32.mxu0 %v5987_v28  ;;  %35229 = vmatpush3.msra.mxu0 %v6010_v32  ;;  %v32581_v32 = vld [vmem:[%s43237_s23 + $0x2] ss:$0 sm:$0xff] }
 0x84b   :  { %35233 = vmatprep.subr.mxu0 %v5922_v27 }
 0x851   :  { %35231 = vmatmul.mubr.f32.vlgmr.msra.gmra.mrb[10].mxu0 %v41492_v31 }
 0x852   :  { %35235 = vmatprep.mubr.f32.mxu0 %v5987_v28  ;;  %35234 = vmatpush3.msra.mxu0 %v5922_v27  ;;  %v8112_v27 = vand.u32 4294901760, %v8034_v26 }
 0x853   :  { %38407 = vmatprep.subr.bf16.mxu0 %v38406_v63 }
 0x854   :  { %v8113_v28 = vsub.f32 %v8034_v26, %v8112_v27 }
 0x856   :  { %v8114_v22 = vand.u32 4294901760, %v8113_v28 }
 0x858   :  { %v8115_v29 = vsub.f32 %v8113_v28, %v8114_v22 }
 0x859   :  { %35236 = vmatmul.mubr.f32.vlgmr.msra.gmra.mrb[10].mxu0 %v41492_v31  ;;  %v8037_v31 = vsel %vm1704_vm1, %v40102_v10, 0 }
 0x85a   :  { %38409 = vmatpush3.bf16.msra.mxu0 %v38406_v63  ;;  %35312 = vmatprep.mubr.f32.mxu0 %v41188_v1  ;;  %v8116_v30 = vand.u32 4294901760, %v8115_v29  ;;  %v8122_v33 = vand.u32 4294901760, %v8037_v31 }
 0x85b   :  { %38411 = vmatprep.subr.bf16.mxu0 %v38410_v61 }
 0x85c   :  { %v8123_v37 = vsub.f32 %v8037_v31, %v8122_v33 }
 0x85e   :  { %38413 = vmatpush3.bf16.msra.mxu0 %v38410_v61  ;;  %v8124_v41 = vand.u32 4294901760, %v8123_v37 }
 0x85f   :  { %38415 = vmatprep.subr.bf16.mxu0 %v38414_v5 }
 0x860   :  { %v8125_v52 = vsub.f32 %v8123_v37, %v8124_v41 }
 0x861   :  { %35313 = vmatmul.mubr.f32.vlgmr.msra.gmra.mrb[12].mxu0 %v41190_v2 }
 0x862   :  { %38417 = vmatpush3.bf16.msra.mxu0 %v38414_v5  ;;  %35323 = vmatprep.mubr.f32.mxu0 %v41137_v34  ;;  %v8126_v56 = vand.u32 4294901760, %v8125_v52 }
 0x863   :  { %38419 = vmatprep.subr.bf16.mxu0 %v38418_v14 }
 0x866   :  { %38421 = vmatpush3.bf16.msra.mxu0 %v38418_v14  ;;  %v7610_v14 = vsub.f32 %v32584_v60, %v7512_v3 }
 0x867   :  { %38423 = vmatprep.subr.bf16.mxu0 %v38422_v17 }
 0x868   :  { %v7611_v20 = vand.u32 4294901760, %v7610_v14 }
 0x869   :  { %35324 = vmatmul.mubr.f32.vlgmr.msra.gmra.mrb[12].mxu0 %v41139_v35 }
 0x86a   :  { %38425 = vmatpush3.bf16.msra.mxu0 %v38422_v17  ;;  %35334 = vmatprep.mubr.f32.mxu0 %v41152_v42  ;;  %v38458_v17 = vpack.c.bf16 %v7515_v4, %v7512_v3  ;;  %v7612_v21 = vsub.f32 %v7610_v14, %v7611_v20 }
 0x86b   :  { %38427 = vmatprep.subr.bf16.mxu0 %v38426_v18 }
 0x86e   :  { %38429 = vmatpush3.bf16.msra.mxu0 %v38426_v18  ;;  %v7617_v18 = vsub.f32 %v32585_v0, %v7515_v4 }
 0x86f   :  { %38431 = vmatprep.subr.bf16.mxu0 %v38406_v63 }
 0x870   :  { %v7618_v12 = vand.u32 4294901760, %v7617_v18 }
 0x871   :  { %35335 = vmatmul.mubr.f32.vlgmr.msra.gmra.mrb[12].mxu0 %v41155_v43 }
 0x872   :  { %38433 = vmatpush3.bf16.msra.mxu0 %v38406_v63  ;;  %35345 = vmatprep.mubr.f32.mxu0 %v41173_v50  ;;  %v7619_v26 = vsub.f32 %v7617_v18, %v7618_v12 }
 0x873   :  { %38435 = vmatprep.subr.bf16.mxu0 %v38410_v61 }
 0x874   :  { %v7620_v29 = vand.u32 4294901760, %v7619_v26 }
 0x876   :  { %38437 = vmatpush3.bf16.msra.mxu0 %v38410_v61 }
 0x877   :  { %38439 = vmatprep.subr.bf16.mxu0 %v38438_v15 }
 0x879   :  { %35346 = vmatmul.mubr.f32.vlgmr.msra.gmra.mrb[12].mxu0 %v41176_v51 }
 0x87a   :  { %38441 = vmatpush3.bf16.msra.mxu0 %v38438_v15  ;;  %35356 = vmatprep.mubr.f32.mxu0 %v41137_v34 }
 0x87b   :  { %38443 = vmatprep.subr.bf16.mxu0 %v38442_v19 }
 0x87e   :  { %38445 = vmatpush3.bf16.msra.mxu0 %v38442_v19  ;;  %v7604_v19 = vand.u32 4294901760, %v7603_v9 }
 0x87f   :  { %38447 = vmatprep.subr.bf16.mxu0 %v38406_v63 }
 0x880   :  { %v7605_v16 = vsub.f32 %v7603_v9, %v7604_v19 }
 0x881   :  { %35357 = vmatmul.mubr.f32.vlgmr.msra.gmra.mrb[12].mxu0 %v41139_v35 }
 0x882   :  { %38449 = vmatpush3.bf16.msra.mxu0 %v38406_v63  ;;  %35367 = vmatprep.mubr.f32.mxu0 %v41137_v34 }
 0x883   :  { %38451 = vmatprep.subr.bf16.mxu0 %v38410_v61 }
 0x886   :  { %38453 = vmatpush3.bf16.msra.mxu0 %v38410_v61  ;;  %v7506_v61 = vand.u32 4294901760, %v32582_v58 }
 0x888   :  { %v38454_v5 = vpack.c.bf16 %v7509_v62, %v7506_v61  ;;  %v7596_v6 = vsub.f32 %v32582_v58, %v7506_v61 }
 0x889   :  { %35368 = vmatmul.mubr.f32.vlgmr.msra.gmra.mrb[12].mxu0 %v41139_v35 }
 0x88a   :  { %35440 = vmatprep.mubr.f32.mxu0 %v8116_v30  ;;  %38455 = vmatprep.subr.bf16.mxu1 %v38454_v5  ;;  %v7597_v15 = vand.u32 4294901760, %v7596_v6 }
 0x88b   :  { %38457 = vmatpush3.bf16.msra.mxu1 %v38454_v5 }
 0x88c   :  { %38459 = vmatprep.subr.bf16.mxu1 %v38458_v17  ;;  %v7598_v10 = vsub.f32 %v7596_v6, %v7597_v15 }
 0x88f   :  { %38461 = vmatpush3.bf16.msra.mxu1 %v38458_v17 }
 0x892   :  { %35379 = vmatmul.mubr.f32.vlgmr.msra.gmra.mrb[12].mxu1 %v41190_v2 }
 0x893   :  { %35389 = vmatprep.mubr.f32.mxu1 %v41137_v34 }
 0x95c   :  { %v35369_v8 = vpop.f32.mrb[12].mxu0 }
 0x95d   :  { %v40104_v40 = vadd.f32 %v35369_v8, %v32581_v32  ;;  %v7482_v23 = vpop.f32.mrb[13].mxu0  ;;  %v38486_v8 = vpack.c.bf16 %v7604_v19, %v7597_v15 }
 0x95e   :  { %v40105_v36 = vadd.f32 %v32581_v32, %v7482_v23  ;;  %v38470_v32 = vpack.c.bf16 %v7603_v9, %v7596_v6 }
 0x95f   :  { %v8043_v38 = vsel %vm1704_vm1, %v40104_v40, 0  ;;  %v38490_v40 = vpack.c.bf16 %v7618_v12, %v7611_v20 }
 0x960   :  { %v8049_v7 = vand.u32 4294901760, %v8043_v38  ;;  %v8040_v13 = vsel %vm1704_vm1, %v40105_v36, 0  ;;  %v41559_v36 = vld [vmem:[%s43238_s0 + $0x8] sm:$0xff] }
 0x961   :  { %v8046_v11 = vand.u32 4294901760, %v8040_v13 }
 0x962   :  { %v8141_v39 = vsub.f32 %v8043_v38, %v8049_v7 }
 0x963   :  { %v38502_v44 = vpack.c.bf16 %v8049_v7, %v8046_v11  ;;  %v8134_v45 = vsub.f32 %v8040_v13, %v8046_v11  ;;  %v41565_v7 = vld [vmem:[%s43238_s0] sm:$0xff] }
 0x964   :  { %v8142_v46 = vand.u32 4294901760, %v8141_v39 }
 0x965   :  { %v8135_v47 = vand.u32 4294901760, %v8134_v45  ;;  %38503 = vmatprep.subr.bf16.mxu0 %v38502_v44  ;;  %v38510_v48 = vpack.c.bf16 %v8141_v39, %v8134_v45 }
 0x966   :  { %38505 = vmatpush3.bf16.xpose.msra.mxu0 %v38502_v44  ;;  %v8143_v49 = vsub.f32 %v8141_v39, %v8142_v46 }
 0x967   :  { %v8136_v63 = vsub.f32 %v8134_v45, %v8135_v47  ;;  %v38518_v53 = vpack.c.bf16 %v8142_v46, %v8135_v47 }
 0x968   :  { %v8144_v54 = vand.u32 4294901760, %v8143_v49 }
 0x969   :  { %v8137_v55 = vand.u32 4294901760, %v8136_v63 }
 0x96b   :  { %v38506_v57 = vpack.c.bf16 %v8144_v54, %v8137_v55 }
 0x96d   :  { %35441 = vmatmul.mubr.f32.vlgmr.msra.gmra.mrb[14].mxu0 %v8126_v56  ;;  %38507 = vmatprep.subr.bf16.mxu0 %v38506_v57 }
 0x96e   :  { %38509 = vmatpush3.bf16.xpose.msra.mxu0 %v38506_v57  ;;  %35447 = vmatprep.mubr.f32.mxu0 %v8112_v27 }
 0x96f   :  { %38511 = vmatprep.subr.bf16.mxu0 %v38510_v48 }
 0x975   :  { %35448 = vmatmul.mubr.f32.vlgmr.msra.gmra.mrb[14].mxu0 %v8122_v33 }
 0x976   :  { %38513 = vmatpush3.bf16.xpose.msra.mxu0 %v38510_v48  ;;  %35454 = vmatprep.mubr.f32.mxu0 %v8113_v28  ;;  %v7606_v28 = vand.u32 4294901760, %v7605_v16 }
 0x977   :  { %38515 = vmatprep.subr.bf16.mxu0 %v38502_v44 }
 0x97d   :  { %35455 = vmatmul.mubr.f32.vlgmr.msra.gmra.mrb[14].mxu0 %v8123_v37 }
 0x97e   :  { %38517 = vmatpush3.bf16.xpose.msra.mxu0 %v38502_v44  ;;  %35461 = vmatprep.mubr.f32.mxu0 %v8114_v22  ;;  %v7613_v22 = vand.u32 4294901760, %v7612_v21 }
 0x97f   :  { %38519 = vmatprep.subr.bf16.mxu0 %v38518_v53 }
 0x980   :  { %v38466_v31 = vpack.c.bf16 %v7620_v29, %v7613_v22 }
 0x985   :  { %35462 = vmatmul.mubr.f32.vlgmr.msra.gmra.mrb[14].mxu0 %v8124_v41  ;;  %v32587_v41 = vld [vmem:[%s43203_s8 + $0x2] ss:$0 sm:$0xff] }
 0x986   :  { %38521 = vmatpush3.bf16.xpose.msra.mxu0 %v38518_v53  ;;  %35468 = vmatprep.mubr.f32.mxu0 %v8112_v27 }
 0x987   :  { %38523 = vmatprep.subr.bf16.mxu0 %v38502_v44 }
 0x98d   :  { %35469 = vmatmul.mubr.f32.vlgmr.msra.gmra.mrb[14].mxu0 %v8122_v33 }
 0x98e   :  { %38525 = vmatpush3.bf16.xpose.msra.mxu0 %v38502_v44  ;;  %35475 = vmatprep.mubr.f32.mxu0 %v8112_v27  ;;  %v7599_v27 = vand.u32 4294901760, %v7598_v10 }
 0x990   :  { %v38462_v30 = vpack.c.bf16 %v7606_v28, %v7599_v27 }
 0x992   :  { %38463 = vmatprep.subr.bf16.mxu1 %v38462_v30 }
 0x993   :  { %38465 = vmatpush3.bf16.msra.mxu1 %v38462_v30 }
 0x994   :  { %38467 = vmatprep.subr.bf16.mxu1 %v38466_v31 }
 0x995   :  { %35476 = vmatmul.mubr.f32.vlgmr.msra.gmra.mrb[14].mxu0 %v8122_v33  ;;  %v38474_v33 = vpack.c.bf16 %v7617_v18, %v7610_v14 }
 0x997   :  { %38469 = vmatpush3.bf16.msra.mxu1 %v38466_v31 }
 0x998   :  { %38471 = vmatprep.subr.bf16.mxu1 %v38470_v32 }
 0x99a   :  { %35390 = vmatmul.mubr.f32.vlgmr.msra.gmra.mrb[12].mxu1 %v41139_v35 }
 0x99b   :  { %38473 = vmatpush3.bf16.msra.mxu1 %v38470_v32  ;;  %35400 = vmatprep.mubr.f32.mxu1 %v41152_v42 }
 0x99c   :  { %38475 = vmatprep.subr.bf16.mxu1 %v38474_v33 }
 0x99f   :  { %38477 = vmatpush3.bf16.msra.mxu1 %v38474_v33 }
 0x9a0   :  { %38479 = vmatprep.subr.bf16.mxu1 %v38454_v5 }
 0x9a2   :  { %35401 = vmatmul.mubr.f32.vlgmr.msra.gmra.mrb[12].mxu1 %v41155_v43 }
 0x9a3   :  { %38481 = vmatpush3.bf16.msra.mxu1 %v38454_v5  ;;  %35411 = vmatprep.mubr.f32.mxu1 %v41173_v50 }
 0x9a4   :  { %38483 = vmatprep.subr.bf16.mxu1 %v38458_v17 }
 0x9a7   :  { %38485 = vmatpush3.bf16.msra.mxu1 %v38458_v17 }
 0x9a8   :  { %38487 = vmatprep.subr.bf16.mxu1 %v38486_v8 }
 0x9aa   :  { %35412 = vmatmul.mubr.f32.vlgmr.msra.gmra.mrb[12].mxu1 %v41176_v51 }
 0x9ab   :  { %38489 = vmatpush3.bf16.msra.mxu1 %v38486_v8  ;;  %35422 = vmatprep.mubr.f32.mxu1 %v41137_v34 }
 0x9ac   :  { %38491 = vmatprep.subr.bf16.mxu1 %v38490_v40 }
 0x9af   :  { %38493 = vmatpush3.bf16.msra.mxu1 %v38490_v40 }
 0x9b0   :  { %38495 = vmatprep.subr.bf16.mxu1 %v38454_v5 }
 0x9b2   :  { %35423 = vmatmul.mubr.f32.vlgmr.msra.gmra.mrb[12].mxu1 %v41139_v35 }
 0x9b3   :  { %38497 = vmatpush3.bf16.msra.mxu1 %v38454_v5  ;;  %35433 = vmatprep.mubr.f32.mxu1 %v41137_v34 }
 0x9b4   :  { %38499 = vmatprep.subr.bf16.mxu1 %v38458_v17 }
 0x9b7   :  { %38501 = vmatpush3.bf16.msra.mxu1 %v38458_v17 }
 0x9ba   :  { %35434 = vmatmul.mubr.f32.vlgmr.msra.gmra.mrb[12].mxu1 %v41139_v35 }
 0xa68   :  { %v35477_v23 = vpop.f32.mrb[14].mxu0 }
 0xa69   :  { %v40108_v37 = vadd.f32 %v41559_v36, %v35477_v23  ;;  %v8537_v38 = vpop.f32.mrb[15].mxu0 }
 0xa6a   :  { %v40109_v13 = vadd.f32 %v41565_v7, %v8537_v38  ;;  %v32590_v38 = vld [vmem:[%s43232_s29 + $0x68] sm:$0xff] }
 0xa6b   :  { %v8550_v11 = vsel %vm2219_vm2, %v40108_v37, -inf }
 0xa6c   :  { %8551 = vmax.xlane.f32.xlu1 %v8550_v11  ;;  %v8547_v39 = vsel %vm2219_vm2, %v40109_v13, -inf  ;;  %v9593_v11 = vand.u32 4294901760, %v32590_v38 }
 0xa6d   :  { %8548 = vmax.xlane.f32.xlu0 %v8547_v39 }
 0xa8d   :  { %v35435_v44 = vpop.f32.mrb[12].mxu1 }
 0xa8e   :  { %v40106_v45 = vadd.f32 %v35435_v44, %v32587_v41  ;;  %v8023_v46 = vpop.f32.mrb[13].mxu1  ;;  %v9687_v44 = vsub.f32 %v32590_v38, %v9593_v11  ;;  %v32596_v38 = vld [vmem:[%s43233_s1 + $0x68] sm:$0xff] }
 0xa8f   :  { %v40107_v47 = vadd.f32 %v32587_v41, %v8023_v46  ;;  %v32592_v46 = vld [vmem:[%s43232_s29 + $0x78] sm:$0xff] }
 0xa90   :  { %v8579_v48 = vand.u32 4294901760, %v40106_v45 }
 0xa91   :  { %v8576_v52 = vand.u32 4294901760, %v40107_v47 }
 0xa92   :  { %v8671_v54 = vsub.f32 %v40106_v45, %v8579_v48  ;;  %v32591_v45 = vld [vmem:[%s43232_s29 + $0x70] sm:$0xff] }
 0xa93   :  { %v38526_v56 = vpack.c.bf16 %v8579_v48, %v8576_v52  ;;  %v8664_v57 = vsub.f32 %v40107_v47, %v8576_v52  ;;  %v32588_v47 = vld [vmem:[%s43204_s9 + $0x10] sm:$0xff]  ;;  %v9596_v48 = vand.u32 4294901760, %v32591_v45 }
 0xa94   :  { %v8672_v59 = vand.u32 4294901760, %v8671_v54 }
 0xa95   :  { %v8665_v61 = vand.u32 4294901760, %v8664_v57  ;;  %38527 = vmatprep.subr.bf16.mxu1 %v38526_v56  ;;  %v38534_v6 = vpack.c.bf16 %v8671_v54, %v8664_v57 }
 0xa96   :  { %38529 = vmatpush3.bf16.msra.mxu1 %v38526_v56  ;;  %v8673_v62 = vsub.f32 %v8671_v54, %v8672_v59 }
 0xa97   :  { %v8666_v0 = vsub.f32 %v8664_v57, %v8665_v61  ;;  %v38542_v9 = vpack.c.bf16 %v8672_v59, %v8665_v61  ;;  %v9694_v57 = vsub.f32 %v32591_v45, %v9596_v48 }
 0xa98   :  { %v8674_v3 = vand.u32 4294901760, %v8673_v62 }
 0xa99   :  { %v8667_v4 = vand.u32 4294901760, %v8666_v0  ;;  %v9695_v62 = vand.u32 4294901760, %v9694_v57 }
 0xa9b   :  { %v38530_v5 = vpack.c.bf16 %v8674_v3, %v8667_v4 }
 0xa9d   :  { %38531 = vmatprep.subr.bf16.mxu1 %v38530_v5 }
 0xaf9   :  { %v8552_v49 = vpop.xlane.xlu1 %8551 }
 0xafa   :  { %v8554_v63 = vsub.f32 %v40108_v37, %v8552_v49  ;;  %v8549_v53 = vpop.xlane.xlu0 %8548  ;;  %v32589_v37 = vld [vmem:[%s43232_s29 + $0x60] sm:$0xff]  ;;  %v9599_v49 = vand.u32 4294901760, %v32592_v46 }
 0xafb   :  { %v8553_v55 = vsub.f32 %v40109_v13, %v8549_v53  ;;  %v9590_v13 = vand.u32 4294901760, %v32589_v37  ;;  %v41597_v53 = vand.u32 4294901760, %v32588_v47 }
 0xafc   :  { %v8557_v58 = vmul.f32 1.442695, %v8554_v63  ;;  %v9688_v63 = vand.u32 4294901760, %v9687_v44  ;;  %v38554_v54 = vpack.c.bf16 %v9599_v49, %v9596_v48  ;;  %v9701_v59 = vsub.f32 %v32592_v46, %v9599_v49 }
 0xafd   :  { %v8555_v60 = vmul.f32 1.442695, %v8553_v55  ;;  %v41584_v39 = vpack.c.bf16 %v9593_v11, %v9590_v13  ;;  %v9680_v41 = vsub.f32 %v32589_v37, %v9590_v13  ;;  %35520 = vmatprep.subr.mxu0 %v41597_v53  ;;  %v32595_v37 = vld [vmem:[%s43233_s1 + $0x60] sm:$0xff]  ;;  %v10134_v11 = vand.u32 4294901760, %v32596_v38 }
 0xafe   :  { %40841 = vpow2.f32 %v8557_v58  ;;  %v41601_v58 = vsub.f32 %v32588_v47, %v41597_v53  ;;  %35521 = vmatpush3.msra.mxu0 %v41597_v53  ;;  %v9702_v3 = vand.u32 4294901760, %v9701_v59  ;;  %v10131_v13 = vand.u32 4294901760, %v32595_v37 }
 0xaff   :  { %40843 = vpow2.f32 %v8555_v60  ;;  %v9681_v52 = vand.u32 4294901760, %v9680_v41  ;;  %v10228_v47 = vsub.f32 %v32596_v38, %v10134_v11 }
 0xb00   :  { %v41605_v0 = vand.u32 4294901760, %v41601_v58  ;;  %v10221_v46 = vsub.f32 %v32595_v37, %v10131_v13  ;;  %v38598_v48 = vpack.c.bf16 %v10134_v11, %v10131_v13 }
 0xb01   :  { %v9682_v55 = vsub.f32 %v9680_v41, %v9681_v52 }
 0xb02   :  { %v10222_v49 = vand.u32 4294901760, %v10221_v46 }
 0xb03   :  { %v9683_v60 = vand.u32 4294901760, %v9682_v55 }
 0xb04   :  { %v10223_v55 = vsub.f32 %v10221_v46, %v10222_v49 }
 0xb08   :  { %v40842_v14 = vpop.eup %40841 }
 0xb09   :  { %v40844_v17 = vpop.eup %40843  ;;  %v8562_v18 = vsel %vm2219_vm2, %v40842_v14, 0.0 }
 0xb0a   :  { %8563 = vadd.xlane.f32.xlu1 %v8562_v18  ;;  %v8559_v15 = vsel %vm2219_vm2, %v40844_v17, 0.0 }
 0xb0b   :  { %8560 = vadd.xlane.f32.xlu0 %v8559_v15 }
 0xb97   :  { %v8564_v19 = vpop.xlane.xlu1 %8563 }
 0xb98   :  { %40845 = vrcp.f32 %v8564_v19  ;;  %v8561_v20 = vpop.xlane.xlu0 %8560  ;;  %v38566_v19 = vpack.c.bf16 %v9687_v44, %v9680_v41  ;;  %v32598_v41 = vld [vmem:[%s43233_s1 + $0x78] sm:$0xff] }
 0xb99   :  { %40847 = vrcp.f32 %v8561_v20  ;;  %v38570_v20 = vpack.c.bf16 %v9701_v59, %v9694_v57  ;;  %v10140_v45 = vand.u32 4294901760, %v32598_v41 }
 0xba2   :  { %v40846_v12 = vpop.eup %40845 }
 0xba3   :  { %v40848_v10 = vpop.eup %40847  ;;  %v8568_v16 = vmul.f32 %v40846_v12, %v40842_v14  ;;  %v38582_v12 = vpack.c.bf16 %v9688_v63, %v9681_v52  ;;  %v10229_v52 = vand.u32 4294901760, %v10228_v47 }
 0xba4   :  { %v8567_v21 = vmul.f32 %v40848_v10, %v40844_v17  ;;  %v38586_v10 = vpack.c.bf16 %v9702_v3, %v9695_v62 }
 0xba5   :  { %v8573_v26 = vsel %vm2219_vm2, %v8568_v16, 0 }
 0xba6   :  { %v8570_v27 = vsel %vm2219_vm2, %v8567_v21, 0  ;;  %v8652_v28 = vand.u32 4294901760, %v8573_v26 }
 0xba7   :  { %v8642_v22 = vand.u32 4294901760, %v8570_v27 }
 0xba8   :  { %v8653_v29 = vsub.f32 %v8573_v26, %v8652_v28 }
 0xba9   :  { %v8643_v30 = vsub.f32 %v8570_v27, %v8642_v22 }
 0xbaa   :  { %v8654_v31 = vand.u32 4294901760, %v8653_v29 }
 0xbab   :  { %v8644_v32 = vand.u32 4294901760, %v8643_v30 }
 0xbac   :  { %v8655_v33 = vsub.f32 %v8653_v29, %v8654_v31 }
 0xbad   :  { %v8645_v8 = vsub.f32 %v8643_v30, %v8644_v32 }
 0xbae   :  { %v8656_v23 = vand.u32 4294901760, %v8655_v33 }
 0xbaf   :  { %v8646_v40 = vand.u32 4294901760, %v8645_v8 }
 0xbb1   :  { %35482 = vmatprep.mubr.f32.mxu1 %v8646_v40 }
 0xbb2   :  { %35483 = vmatmul.mubr.f32.vlgmr.msra.gmra.mrb[14].mxu1 %v8656_v23 }
 0xbb3   :  { %38533 = vmatpush3.bf16.msra.mxu1 %v38530_v5  ;;  %35489 = vmatprep.mubr.f32.mxu1 %v8642_v22  ;;  %v9696_v5 = vsub.f32 %v9694_v57, %v9695_v62 }
 0xbb4   :  { %38535 = vmatprep.subr.bf16.mxu1 %v38534_v6 }
 0xbb5   :  { %v9697_v14 = vand.u32 4294901760, %v9696_v5 }
 0xbba   :  { %35490 = vmatmul.mubr.f32.vlgmr.msra.gmra.mrb[14].mxu1 %v8652_v28 }
 0xbbb   :  { %38537 = vmatpush3.bf16.msra.mxu1 %v38534_v6  ;;  %35496 = vmatprep.mubr.f32.mxu1 %v8643_v30  ;;  %v9175_v6 = vsub.f32 %v41601_v58, %v41605_v0 }
 0xbbc   :  { %38539 = vmatprep.subr.bf16.mxu1 %v38526_v56 }
 0xbbd   :  { %v9176_v17 = vand.u32 4294901760, %v9175_v6  ;;  %v38614_v6 = vpack.c.bf16 %v10228_v47, %v10221_v46 }
 0xbbf   :  { %35525 = vmatprep.subr.mxu0 %v9176_v17 }
 0xbc2   :  { %35497 = vmatmul.mubr.f32.vlgmr.msra.gmra.mrb[14].mxu1 %v8653_v29 }
 0xbc3   :  { %38541 = vmatpush3.bf16.msra.mxu1 %v38526_v56  ;;  %35503 = vmatprep.mubr.f32.mxu1 %v8644_v32 }
 0xbc4   :  { %38543 = vmatprep.subr.bf16.mxu1 %v38542_v9 }
 0xbca   :  { %35504 = vmatmul.mubr.f32.vlgmr.msra.gmra.mrb[14].mxu1 %v8654_v31 }
 0xbcb   :  { %38545 = vmatpush3.bf16.msra.mxu1 %v38542_v9  ;;  %35510 = vmatprep.mubr.f32.mxu1 %v8642_v22  ;;  %v9703_v9 = vsub.f32 %v9701_v59, %v9702_v3 }
 0xbcc   :  { %38547 = vmatprep.subr.bf16.mxu1 %v38526_v56 }
 0xbcd   :  { %v9704_v18 = vand.u32 4294901760, %v9703_v9 }
 0xbcf   :  { %v38562_v15 = vpack.c.bf16 %v9704_v18, %v9697_v14 }
 0xbd2   :  { %35511 = vmatmul.mubr.f32.vlgmr.msra.gmra.mrb[14].mxu1 %v8652_v28 }
 0xbd3   :  { %38549 = vmatpush3.bf16.msra.mxu1 %v38526_v56  ;;  %35517 = vmatprep.mubr.f32.mxu1 %v8642_v22  ;;  %v9689_v56 = vsub.f32 %v9687_v44, %v9688_v63 }
 0xbd4   :  { %38551 = vmatprep.subr.bf16.mxu1 %v41584_v39 }
 0xbd5   :  { %v9690_v61 = vand.u32 4294901760, %v9689_v56  ;;  %v10230_v56 = vsub.f32 %v10228_v47, %v10229_v52 }
 0xbd7   :  { %v38558_v4 = vpack.c.bf16 %v9690_v61, %v9683_v60  ;;  %v10224_v60 = vand.u32 4294901760, %v10223_v55  ;;  %v10231_v61 = vand.u32 4294901760, %v10230_v56 }
 0xbd9   :  { %v38606_v3 = vpack.c.bf16 %v10231_v61, %v10224_v60 }
 0xbda   :  { %35518 = vmatmul.mubr.f32.vlgmr.msra.gmra.mrb[14].mxu1 %v8652_v28 }
 0xbdb   :  { %35558 = vmatprep.mubr.f32.mxu1 %v41188_v1  ;;  %38553 = vmatpush3.bf16.msra.mxu1 %v41584_v39 }
 0xbdc   :  { %38555 = vmatprep.subr.bf16.mxu1 %v38554_v54 }
 0xbdf   :  { %38557 = vmatpush3.bf16.msra.mxu1 %v38554_v54 }
 0xbe0   :  { %38559 = vmatprep.subr.bf16.mxu1 %v38558_v4 }
 0xbe2   :  { %35559 = vmatmul.mubr.f32.vlgmr.msra.gmra.mrb[16].mxu1 %v41190_v2 }
 0xbe3   :  { %38561 = vmatpush3.bf16.msra.mxu1 %v38558_v4  ;;  %35569 = vmatprep.mubr.f32.mxu1 %v41137_v34 }
 0xbe4   :  { %38563 = vmatprep.subr.bf16.mxu1 %v38562_v15 }
 0xbe7   :  { %38565 = vmatpush3.bf16.msra.mxu1 %v38562_v15 }
 0xbe8   :  { %38567 = vmatprep.subr.bf16.mxu1 %v38566_v19 }
 0xbea   :  { %35570 = vmatmul.mubr.f32.vlgmr.msra.gmra.mrb[16].mxu1 %v41139_v35 }
 0xbeb   :  { %38569 = vmatpush3.bf16.msra.mxu1 %v38566_v19  ;;  %35580 = vmatprep.mubr.f32.mxu1 %v41152_v42 }
 0xbec   :  { %38571 = vmatprep.subr.bf16.mxu1 %v38570_v20 }
 0xbef   :  { %38573 = vmatpush3.bf16.msra.mxu1 %v38570_v20 }
 0xbf0   :  { %38575 = vmatprep.subr.bf16.mxu1 %v41584_v39 }
 0xbf2   :  { %35581 = vmatmul.mubr.f32.vlgmr.msra.gmra.mrb[16].mxu1 %v41155_v43 }
 0xbf3   :  { %38577 = vmatpush3.bf16.msra.mxu1 %v41584_v39  ;;  %35591 = vmatprep.mubr.f32.mxu1 %v41173_v50 }
 0xbf4   :  { %38579 = vmatprep.subr.bf16.mxu1 %v38554_v54 }
 0xbf7   :  { %38581 = vmatpush3.bf16.msra.mxu1 %v38554_v54 }
 0xbf8   :  { %38583 = vmatprep.subr.bf16.mxu1 %v38582_v12 }
 0xbfa   :  { %35592 = vmatmul.mubr.f32.vlgmr.msra.gmra.mrb[16].mxu1 %v41176_v51 }
 0xbfb   :  { %38585 = vmatpush3.bf16.msra.mxu1 %v38582_v12  ;;  %35602 = vmatprep.mubr.f32.mxu1 %v41137_v34 }
 0xbfc   :  { %38587 = vmatprep.subr.bf16.mxu1 %v38586_v10 }
 0xbff   :  { %38589 = vmatpush3.bf16.msra.mxu1 %v38586_v10 }
 0xc00   :  { %38591 = vmatprep.subr.bf16.mxu1 %v41584_v39 }
 0xc02   :  { %35603 = vmatmul.mubr.f32.vlgmr.msra.gmra.mrb[16].mxu1 %v41139_v35 }
 0xc03   :  { %38593 = vmatpush3.bf16.msra.mxu1 %v41584_v39  ;;  %35613 = vmatprep.mubr.f32.mxu1 %v41137_v34  ;;  %v32597_v39 = vld [vmem:[%s43233_s1 + $0x70] sm:$0xff] }
 0xc04   :  { %38595 = vmatprep.subr.bf16.mxu1 %v38554_v54  ;;  %v10137_v44 = vand.u32 4294901760, %v32597_v39 }
 0xc06   :  { %v10235_v63 = vsub.f32 %v32597_v39, %v10137_v44  ;;  %v38602_v59 = vpack.c.bf16 %v10140_v45, %v10137_v44 }
 0xc07   :  { %38597 = vmatpush3.bf16.msra.mxu1 %v38554_v54  ;;  %v10242_v54 = vsub.f32 %v32598_v41, %v10140_v45 }
 0xc08   :  { %v10236_v57 = vand.u32 4294901760, %v10235_v63 }
 0xc09   :  { %v38618_v9 = vpack.c.bf16 %v10242_v54, %v10235_v63 }
 0xc0a   :  { %35614 = vmatmul.mubr.f32.vlgmr.msra.gmra.mrb[16].mxu1 %v41139_v35  ;;  %v10237_v62 = vsub.f32 %v10235_v63, %v10236_v57 }
 0xc0b   :  { %35690 = vmatprep.mubr.f32.mxu1 %v41188_v1 }
 0xc0c   :  { %v10238_v4 = vand.u32 4294901760, %v10237_v62  ;;  %v32604_v62 = vld [vmem:[%s43202_s7 + $0x78] sm:$0xff] }
 0xcad   :  { %v35519_v16 = vpop.f32.mrb[14].mxu1 }
 0xcae   :  { %v9083_v21 = vsel %vm1704_vm1, %v35519_v16, 0  ;;  %v9067_v26 = vpop.f32.mrb[15].mxu1 }
 0xcaf   :  { %v9161_v27 = vand.u32 4294901760, %v9083_v21  ;;  %v9080_v28 = vsel %vm1704_vm1, %v9067_v26, 0 }
 0xcb0   :  { %v9151_v22 = vand.u32 4294901760, %v9080_v28 }
 0xcb1   :  { %v9162_v29 = vsub.f32 %v9083_v21, %v9161_v27 }
 0xcb2   :  { %v9152_v30 = vsub.f32 %v9080_v28, %v9151_v22 }
 0xcb3   :  { %v9163_v31 = vand.u32 4294901760, %v9162_v29 }
 0xcb4   :  { %v9153_v32 = vand.u32 4294901760, %v9152_v30 }
 0xcb5   :  { %v9164_v33 = vsub.f32 %v9162_v29, %v9163_v31 }
 0xcb6   :  { %v9154_v8 = vsub.f32 %v9152_v30, %v9153_v32 }
 0xcb7   :  { %v9165_v23 = vand.u32 4294901760, %v9164_v33 }
 0xcb8   :  { %v9155_v40 = vand.u32 4294901760, %v9154_v8 }
 0xcba   :  { %35522 = vmatprep.mubr.f32.mxu0 %v9155_v40 }
 0xcbb   :  { %35523 = vmatmul.mubr.f32.vlgmr.msra.gmra.mrb[10].mxu0 %v9165_v23 }
 0xcbc   :  { %35527 = vmatprep.mubr.f32.mxu0 %v9151_v22  ;;  %35526 = vmatpush3.msra.mxu0 %v9176_v17  ;;  %v32594_v17 = vld [vmem:[%s43236_s30 + $0x3] ss:$0 sm:$0xff] }
 0xcbd   :  { %35530 = vmatprep.subr.mxu0 %v41601_v58 }
 0xcc3   :  { %35528 = vmatmul.mubr.f32.vlgmr.msra.gmra.mrb[10].mxu0 %v9161_v27 }
 0xcc4   :  { %35532 = vmatprep.mubr.f32.mxu0 %v9152_v30  ;;  %35531 = vmatpush3.msra.mxu0 %v41601_v58  ;;  %v10243_v58 = vand.u32 4294901760, %v10242_v54 }
 0xcc5   :  { %35535 = vmatprep.subr.mxu0 %v41597_v53 }
 0xcc6   :  { %v38634_v14 = vpack.c.bf16 %v10243_v58, %v10236_v57  ;;  %v32601_v57 = vld [vmem:[%s43202_s7 + $0x60] sm:$0xff] }
 0xcc7   :  { %v10672_v60 = vand.u32 4294901760, %v32601_v57 }
 0xccb   :  { %35533 = vmatmul.mubr.f32.vlgmr.msra.gmra.mrb[10].mxu0 %v9162_v29 }
 0xccc   :  { %35537 = vmatprep.mubr.f32.mxu0 %v9153_v32  ;;  %35536 = vmatpush3.msra.mxu0 %v41597_v53 }
 0xccd   :  { %35540 = vmatprep.subr.mxu0 %v41605_v0 }
 0xcd3   :  { %35538 = vmatmul.mubr.f32.vlgmr.msra.gmra.mrb[10].mxu0 %v9163_v31 }
 0xcd4   :  { %35542 = vmatprep.mubr.f32.mxu0 %v9151_v22  ;;  %35541 = vmatpush3.msra.mxu0 %v41605_v0  ;;  %v10244_v0 = vsub.f32 %v10242_v54, %v10243_v58  ;;  %v32602_v58 = vld [vmem:[%s43202_s7 + $0x68] sm:$0xff] }
 0xcd5   :  { %35545 = vmatprep.subr.mxu0 %v41597_v53  ;;  %v10675_v61 = vand.u32 4294901760, %v32602_v58 }
 0xcd6   :  { %v10245_v5 = vand.u32 4294901760, %v10244_v0 }
 0xcdb   :  { %35543 = vmatmul.mubr.f32.vlgmr.msra.gmra.mrb[10].mxu0 %v9161_v27 }
 0xcdc   :  { %35547 = vmatprep.mubr.f32.mxu0 %v9151_v22  ;;  %35546 = vmatpush3.msra.mxu0 %v41597_v53  ;;  %v38610_v53 = vpack.c.bf16 %v10245_v5, %v10238_v4  ;;  %v32600_v22 = vld [vmem:[%s43237_s23 + $0x3] ss:$0 sm:$0xff]  ;;  %v38646_v4 = vpack.c.bf16 %v10675_v61, %v10672_v60  ;;  %v10762_v5 = vsub.f32 %v32601_v57, %v10672_v60 }
 0xcdd   :  { %38599 = vmatprep.subr.bf16.mxu0 %v38598_v48  ;;  %v35615_v18 = vpop.f32.mrb[16].mxu1 }
 0xcde   :  { %v40110_v15 = vadd.f32 %v35615_v18, %v32594_v17  ;;  %v10107_v19 = vpop.f32.mrb[17].mxu1  ;;  %38647 = vmatprep.subr.bf16.mxu1 %v38646_v4 }
 0xcdf   :  { %v40111_v20 = vadd.f32 %v32594_v17, %v10107_v19  ;;  %38649 = vmatpush3.bf16.msra.mxu1 %v38646_v4 }
 0xce0   :  { %v11203_v28 = vsel %vm1704_vm1, %v40110_v15, 0 }
 0xce1   :  { %v11200_v12 = vsel %vm1704_vm1, %v40111_v20, 0  ;;  %v11288_v29 = vand.u32 4294901760, %v11203_v28 }
 0xce2   :  { %v11278_v10 = vand.u32 4294901760, %v11200_v12 }
 0xce3   :  { %35548 = vmatmul.mubr.f32.vlgmr.msra.gmra.mrb[10].mxu0 %v9161_v27  ;;  %v11289_v8 = vsub.f32 %v11203_v28, %v11288_v29 }
 0xce4   :  { %38601 = vmatpush3.bf16.msra.mxu0 %v38598_v48  ;;  %35624 = vmatprep.mubr.f32.mxu0 %v41188_v1  ;;  %v38630_v1 = vpack.c.bf16 %v10229_v52, %v10222_v49  ;;  %v11279_v16 = vsub.f32 %v11200_v12, %v11278_v10 }
 0xce5   :  { %38603 = vmatprep.subr.bf16.mxu0 %v38602_v59  ;;  %v11290_v11 = vand.u32 4294901760, %v11289_v8 }
 0xce6   :  { %v11280_v21 = vand.u32 4294901760, %v11279_v16 }
 0xce8   :  { %38605 = vmatpush3.bf16.msra.mxu0 %v38602_v59  ;;  %v11281_v26 = vsub.f32 %v11279_v16, %v11280_v21 }
 0xce9   :  { %38607 = vmatprep.subr.bf16.mxu0 %v38606_v3 }
 0xcea   :  { %v11282_v27 = vand.u32 4294901760, %v11281_v26 }
 0xceb   :  { %35625 = vmatmul.mubr.f32.vlgmr.msra.gmra.mrb[16].mxu0 %v41190_v2 }
 0xcec   :  { %38609 = vmatpush3.bf16.msra.mxu0 %v38606_v3  ;;  %35635 = vmatprep.mubr.f32.mxu0 %v41137_v34  ;;  %v10681_v3 = vand.u32 4294901760, %v32604_v62 }
 0xced   :  { %38611 = vmatprep.subr.bf16.mxu0 %v38610_v53 }
 0xcf0   :  { %38613 = vmatpush3.bf16.msra.mxu0 %v38610_v53  ;;  %v10769_v53 = vsub.f32 %v32602_v58, %v10675_v61 }
 0xcf1   :  { %38615 = vmatprep.subr.bf16.mxu0 %v38614_v6 }
 0xcf2   :  { %v10770_v17 = vand.u32 4294901760, %v10769_v53 }
 0xcf3   :  { %35636 = vmatmul.mubr.f32.vlgmr.msra.gmra.mrb[16].mxu0 %v41139_v35 }
 0xcf4   :  { %38617 = vmatpush3.bf16.msra.mxu0 %v38614_v6  ;;  %35646 = vmatprep.mubr.f32.mxu0 %v41152_v42  ;;  %v10771_v20 = vsub.f32 %v10769_v53, %v10770_v17 }
 0xcf5   :  { %38619 = vmatprep.subr.bf16.mxu0 %v38618_v9 }
 0xcf8   :  { %38621 = vmatpush3.bf16.msra.mxu0 %v38618_v9 }
 0xcf9   :  { %38623 = vmatprep.subr.bf16.mxu0 %v38598_v48 }
 0xcfb   :  { %35647 = vmatmul.mubr.f32.vlgmr.msra.gmra.mrb[16].mxu0 %v41155_v43 }
 0xcfc   :  { %38625 = vmatpush3.bf16.msra.mxu0 %v38598_v48  ;;  %35657 = vmatprep.mubr.f32.mxu0 %v41173_v50 }
 0xcfd   :  { %38627 = vmatprep.subr.bf16.mxu0 %v38602_v59 }
 0xd00   :  { %38629 = vmatpush3.bf16.msra.mxu0 %v38602_v59 }
 0xd01   :  { %38631 = vmatprep.subr.bf16.mxu0 %v38630_v1 }
 0xd03   :  { %35658 = vmatmul.mubr.f32.vlgmr.msra.gmra.mrb[16].mxu0 %v41176_v51 }
 0xd04   :  { %38633 = vmatpush3.bf16.msra.mxu0 %v38630_v1  ;;  %35668 = vmatprep.mubr.f32.mxu0 %v41137_v34  ;;  %v10783_v1 = vsub.f32 %v32604_v62, %v10681_v3 }
 0xd05   :  { %38635 = vmatprep.subr.bf16.mxu0 %v38634_v14 }
 0xd06   :  { %v10784_v15 = vand.u32 4294901760, %v10783_v1 }
 0xd08   :  { %38637 = vmatpush3.bf16.msra.mxu0 %v38634_v14  ;;  %v10763_v14 = vand.u32 4294901760, %v10762_v5 }
 0xd09   :  { %38639 = vmatprep.subr.bf16.mxu0 %v38598_v48 }
 0xd0a   :  { %v10764_v19 = vsub.f32 %v10762_v5, %v10763_v14 }
 0xd0b   :  { %35669 = vmatmul.mubr.f32.vlgmr.msra.gmra.mrb[16].mxu0 %v41139_v35 }
 0xd0c   :  { %38641 = vmatpush3.bf16.msra.mxu0 %v38598_v48  ;;  %35679 = vmatprep.mubr.f32.mxu0 %v41137_v34  ;;  %v11291_v48 = vsub.f32 %v11289_v8, %v11290_v11 }
 0xd0d   :  { %38643 = vmatprep.subr.bf16.mxu0 %v38602_v59 }
 0xd0e   :  { %v11292_v55 = vand.u32 4294901760, %v11291_v48 }
 0xd10   :  { %38645 = vmatpush3.bf16.msra.mxu0 %v38602_v59  ;;  %v32603_v59 = vld [vmem:[%s43202_s7 + $0x70] sm:$0xff] }
 0xd11   :  { %v10678_v0 = vand.u32 4294901760, %v32603_v59 }
 0xd13   :  { %35680 = vmatmul.mubr.f32.vlgmr.msra.gmra.mrb[16].mxu0 %v41139_v35  ;;  %v10776_v6 = vsub.f32 %v32603_v59, %v10678_v0  ;;  %v38650_v9 = vpack.c.bf16 %v10681_v3, %v10678_v0 }
 0xd14   :  { %35752 = vmatprep.mubr.f32.mxu0 %v11282_v27 }
 0xd15   :  { %v10777_v18 = vand.u32 4294901760, %v10776_v6  ;;  %38651 = vmatprep.subr.bf16.mxu1 %v38650_v9 }
 0xd16   :  { %38653 = vmatpush3.bf16.msra.mxu1 %v38650_v9 }
 0xd17   :  { %v10778_v12 = vsub.f32 %v10776_v6, %v10777_v18 }
 0xd19   :  { %v10779_v26 = vand.u32 4294901760, %v10778_v12  ;;  %35691 = vmatmul.mubr.f32.vlgmr.msra.gmra.mrb[18].mxu1 %v41190_v2  ;;  %v38678_v2 = vpack.c.bf16 %v10770_v17, %v10763_v14 }
 0xd1a   :  { %35701 = vmatprep.mubr.f32.mxu1 %v41137_v34 }
 0xde6   :  { %v35681_v30 = vpop.f32.mrb[16].mxu0 }
 0xde7   :  { %v40112_v31 = vadd.f32 %v35681_v30, %v32600_v22  ;;  %v10648_v32 = vpop.f32.mrb[17].mxu0  ;;  %v38666_v30 = vpack.c.bf16 %v10783_v1, %v10776_v6 }
 0xde8   :  { %v40113_v33 = vadd.f32 %v32600_v22, %v10648_v32 }
 0xde9   :  { %v11209_v40 = vsel %vm1704_vm1, %v40112_v31, 0  ;;  %v38682_v31 = vpack.c.bf16 %v10784_v15, %v10777_v18 }
 0xdea   :  { %v11215_v23 = vand.u32 4294901760, %v11209_v40  ;;  %v11206_v37 = vsel %vm1704_vm1, %v40113_v33, 0 }
 0xdeb   :  { %v11212_v38 = vand.u32 4294901760, %v11206_v37 }
 0xdec   :  { %v11307_v13 = vsub.f32 %v11209_v40, %v11215_v23 }
 0xded   :  { %v38694_v39 = vpack.c.bf16 %v11215_v23, %v11212_v38  ;;  %v11300_v41 = vsub.f32 %v11206_v37, %v11212_v38 }
 0xdee   :  { %v11308_v44 = vand.u32 4294901760, %v11307_v13 }
 0xdef   :  { %v11301_v45 = vand.u32 4294901760, %v11300_v41  ;;  %38695 = vmatprep.subr.bf16.mxu0 %v38694_v39  ;;  %v38702_v46 = vpack.c.bf16 %v11307_v13, %v11300_v41 }
 0xdf0   :  { %38697 = vmatpush3.bf16.xpose.msra.mxu0 %v38694_v39  ;;  %v11309_v47 = vsub.f32 %v11307_v13, %v11308_v44 }
 0xdf1   :  { %v11302_v49 = vsub.f32 %v11300_v41, %v11301_v45  ;;  %v38710_v52 = vpack.c.bf16 %v11308_v44, %v11301_v45 }
 0xdf2   :  { %v11310_v63 = vand.u32 4294901760, %v11309_v47 }
 0xdf3   :  { %v11303_v54 = vand.u32 4294901760, %v11302_v49 }
 0xdf5   :  { %v38698_v56 = vpack.c.bf16 %v11310_v63, %v11303_v54 }
 0xdf7   :  { %35753 = vmatmul.mubr.f32.vlgmr.msra.gmra.mrb[18].mxu0 %v11292_v55  ;;  %38699 = vmatprep.subr.bf16.mxu0 %v38698_v56 }
 0xdf8   :  { %38701 = vmatpush3.bf16.xpose.msra.mxu0 %v38698_v56  ;;  %35759 = vmatprep.mubr.f32.mxu0 %v11278_v10 }
 0xdf9   :  { %38703 = vmatprep.subr.bf16.mxu0 %v38702_v46 }
 0xdff   :  { %35760 = vmatmul.mubr.f32.vlgmr.msra.gmra.mrb[18].mxu0 %v11288_v29 }
 0xe00   :  { %38705 = vmatpush3.bf16.xpose.msra.mxu0 %v38702_v46  ;;  %35766 = vmatprep.mubr.f32.mxu0 %v11279_v16  ;;  %v10765_v16 = vand.u32 4294901760, %v10764_v19 }
 0xe01   :  { %38707 = vmatprep.subr.bf16.mxu0 %v38694_v39 }
 0xe07   :  { %35767 = vmatmul.mubr.f32.vlgmr.msra.gmra.mrb[18].mxu0 %v11289_v8 }
 0xe08   :  { %38709 = vmatpush3.bf16.xpose.msra.mxu0 %v38694_v39  ;;  %35773 = vmatprep.mubr.f32.mxu0 %v11280_v21  ;;  %v10772_v21 = vand.u32 4294901760, %v10771_v20 }
 0xe09   :  { %38711 = vmatprep.subr.bf16.mxu0 %v38710_v52 }
 0xe0a   :  { %v38654_v28 = vpack.c.bf16 %v10772_v21, %v10765_v16  ;;  %v32607_v21 = vld [vmem:[%s43204_s9 + $0x18] sm:$0xff] }
 0xe0c   :  { %38655 = vmatprep.subr.bf16.mxu1 %v38654_v28 }
 0xe0d   :  { %38657 = vmatpush3.bf16.msra.mxu1 %v38654_v28 }
 0xe0f   :  { %35774 = vmatmul.mubr.f32.vlgmr.msra.gmra.mrb[18].mxu0 %v11290_v11 }
 0xe10   :  { %38713 = vmatpush3.bf16.xpose.msra.mxu0 %v38710_v52  ;;  %35780 = vmatprep.mubr.f32.mxu0 %v11278_v10 }
 0xe11   :  { %38715 = vmatprep.subr.bf16.mxu0 %v38694_v39 }
 0xe17   :  { %35781 = vmatmul.mubr.f32.vlgmr.msra.gmra.mrb[18].mxu0 %v11288_v29 }
 0xe18   :  { %38717 = vmatpush3.bf16.xpose.msra.mxu0 %v38694_v39  ;;  %35787 = vmatprep.mubr.f32.mxu0 %v11278_v10  ;;  %v10785_v10 = vsub.f32 %v10783_v1, %v10784_v15 }
 0xe1a   :  { %v10786_v27 = vand.u32 4294901760, %v10785_v10 }
 0xe1c   :  { %v38658_v22 = vpack.c.bf16 %v10786_v27, %v10779_v26  ;;  %v12252_v26 = vand.u32 4294901760, %v32607_v21 }
 0xe1e   :  { %38659 = vmatprep.subr.bf16.mxu1 %v38658_v22  ;;  %35832 = vmatprep.subr.mxu0 %v12252_v26  ;;  %v12339_v27 = vsub.f32 %v32607_v21, %v12252_v26 }
 0xe1f   :  { %35788 = vmatmul.mubr.f32.vlgmr.msra.gmra.mrb[18].mxu0 %v11288_v29  ;;  %v38662_v29 = vpack.c.bf16 %v10769_v53, %v10762_v5  ;;  %38661 = vmatpush3.bf16.msra.mxu1 %v38658_v22 }
 0xe20   :  { %35833 = vmatpush3.msra.mxu0 %v12252_v26  ;;  %v12340_v28 = vand.u32 4294901760, %v12339_v27 }
 0xe21   :  { %38663 = vmatprep.subr.bf16.mxu1 %v38662_v29 }
 0xe22   :  { %35702 = vmatmul.mubr.f32.vlgmr.msra.gmra.mrb[18].mxu1 %v41139_v35  ;;  %v12341_v22 = vsub.f32 %v12339_v27, %v12340_v28 }
 0xe23   :  { %38665 = vmatpush3.bf16.msra.mxu1 %v38662_v29  ;;  %35712 = vmatprep.mubr.f32.mxu1 %v41152_v42 }
 0xe24   :  { %38667 = vmatprep.subr.bf16.mxu1 %v38666_v30  ;;  %v12342_v29 = vand.u32 4294901760, %v12341_v22 }
 0xe26   :  { %35837 = vmatprep.subr.mxu0 %v12342_v29 }
 0xe27   :  { %38669 = vmatpush3.bf16.msra.mxu1 %v38666_v30 }
 0xe28   :  { %38671 = vmatprep.subr.bf16.mxu1 %v38646_v4 }
 0xe2a   :  { %35713 = vmatmul.mubr.f32.vlgmr.msra.gmra.mrb[18].mxu1 %v41155_v43 }
 0xe2b   :  { %38673 = vmatpush3.bf16.msra.mxu1 %v38646_v4  ;;  %35723 = vmatprep.mubr.f32.mxu1 %v41173_v50 }
 0xe2c   :  { %38675 = vmatprep.subr.bf16.mxu1 %v38650_v9 }
 0xe2f   :  { %38677 = vmatpush3.bf16.msra.mxu1 %v38650_v9 }
 0xe30   :  { %38679 = vmatprep.subr.bf16.mxu1 %v38678_v2 }
 0xe32   :  { %35724 = vmatmul.mubr.f32.vlgmr.msra.gmra.mrb[18].mxu1 %v41176_v51 }
 0xe33   :  { %38681 = vmatpush3.bf16.msra.mxu1 %v38678_v2  ;;  %35734 = vmatprep.mubr.f32.mxu1 %v41137_v34 }
 0xe34   :  { %38683 = vmatprep.subr.bf16.mxu1 %v38682_v31 }
 0xe37   :  { %38685 = vmatpush3.bf16.msra.mxu1 %v38682_v31 }
 0xe38   :  { %38687 = vmatprep.subr.bf16.mxu1 %v38646_v4 }
 0xe3a   :  { %35735 = vmatmul.mubr.f32.vlgmr.msra.gmra.mrb[18].mxu1 %v41139_v35 }
 0xe3b   :  { %38689 = vmatpush3.bf16.msra.mxu1 %v38646_v4  ;;  %35745 = vmatprep.mubr.f32.mxu1 %v41137_v34  ;;  %v32606_v34 = vld [vmem:[%s43203_s8 + $0x3] ss:$0 sm:$0xff] }
 0xe3c   :  { %38691 = vmatprep.subr.bf16.mxu1 %v38650_v9 }
 0xe3f   :  { %38693 = vmatpush3.bf16.msra.mxu1 %v38650_v9 }
 0xe42   :  { %35746 = vmatmul.mubr.f32.vlgmr.msra.gmra.mrb[18].mxu1 %v41139_v35 }
 0xef2   :  { %v35789_v42 = vpop.f32.mrb[18].mxu0 }
 0xef3   :  { %v40116_v43 = vadd.f32 %v41559_v36, %v35789_v42  ;;  %v11703_v50 = vpop.f32.mrb[19].mxu0 }
 0xef4   :  { %v40117_v51 = vadd.f32 %v41565_v7, %v11703_v50 }
 0xef5   :  { %v11716_v32 = vsel %vm2219_vm2, %v40116_v43, -inf }
 0xef6   :  { %11717 = vmax.xlane.f32.xlu1 %v11716_v32  ;;  %v11713_v33 = vsel %vm2219_vm2, %v40117_v51, -inf }
 0xef7   :  { %11714 = vmax.xlane.f32.xlu0 %v11713_v33 }
 0xf15   :  { %v35747_v8 = vpop.f32.mrb[18].mxu1 }
 0xf16   :  { %v40114_v40 = vadd.f32 %v35747_v8, %v32606_v34  ;;  %v11189_v23 = vpop.f32.mrb[19].mxu1 }
 0xf17   :  { %v40115_v35 = vadd.f32 %v32606_v34, %v11189_v23 }
 0xf18   :  { %v11745_v37 = vand.u32 4294901760, %v40114_v40 }
 0xf19   :  { %v11742_v36 = vand.u32 4294901760, %v40115_v35 }
 0xf1a   :  { %v11837_v7 = vsub.f32 %v40114_v40, %v11745_v37 }
 0xf1b   :  { %v38718_v41 = vpack.c.bf16 %v11745_v37, %v11742_v36  ;;  %v11830_v44 = vsub.f32 %v40115_v35, %v11742_v36 }
 0xf1c   :  { %v11838_v46 = vand.u32 4294901760, %v11837_v7 }
 0xf1d   :  { %v11831_v48 = vand.u32 4294901760, %v11830_v44  ;;  %38719 = vmatprep.subr.bf16.mxu1 %v38718_v41  ;;  %v38726_v56 = vpack.c.bf16 %v11837_v7, %v11830_v44 }
 0xf1e   :  { %38721 = vmatpush3.bf16.msra.mxu1 %v38718_v41  ;;  %v11839_v49 = vsub.f32 %v11837_v7, %v11838_v46 }
 0xf1f   :  { %v11832_v52 = vsub.f32 %v11830_v44, %v11831_v48  ;;  %v38734_v57 = vpack.c.bf16 %v11838_v46, %v11831_v48 }
 0xf20   :  { %v11840_v63 = vand.u32 4294901760, %v11839_v49 }
 0xf21   :  { %v11833_v54 = vand.u32 4294901760, %v11832_v52 }
 0xf23   :  { %v38722_v55 = vpack.c.bf16 %v11840_v63, %v11833_v54 }
 0xf25   :  { %38723 = vmatprep.subr.bf16.mxu1 %v38722_v55 }
 0xf83   :  { %v11718_v38 = vpop.xlane.xlu1 %11717 }
 0xf84   :  { %v11720_v13 = vsub.f32 %v40116_v43, %v11718_v38  ;;  %v11715_v11 = vpop.xlane.xlu0 %11714  ;;  %v32608_v38 = vld [vmem:[%s43205_s10] ss:$0 sm:$0xff] }
 0xf85   :  { %v11719_v39 = vsub.f32 %v40117_v51, %v11715_v11 }
 0xf86   :  { %v11723_v45 = vmul.f32 1.442695, %v11720_v13 }
 0xf87   :  { %v11721_v47 = vmul.f32 1.442695, %v11719_v39 }
 0xf88   :  { %40849 = vpow2.f32 %v11723_v45 }
 0xf89   :  { %40851 = vpow2.f32 %v11721_v47 }
 0xf92   :  { %v40850_v58 = vpop.eup %40849 }
 0xf93   :  { %v40852_v59 = vpop.eup %40851  ;;  %v11728_v60 = vsel %vm2219_vm2, %v40850_v58, 0.0 }
 0xf94   :  { %11729 = vadd.xlane.f32.xlu1 %v11728_v60  ;;  %v11725_v61 = vsel %vm2219_vm2, %v40852_v59, 0.0  ;;  %v12801_v60 = vld [vmem:[%s43208_s13 + $0x18] sm:$0xff] }
 0xf95   :  { %11726 = vadd.xlane.f32.xlu0 %v11725_v61 }
0x1021   :  { %v11730_v62 = vpop.xlane.xlu1 %11729 }
0x1022   :  { %40853 = vrcp.f32 %v11730_v62  ;;  %v11727_v0 = vpop.xlane.xlu0 %11726  ;;  %v12825_v62 = vand.u32 4294901760, %v12801_v60 }
0x1023   :  { %40855 = vrcp.f32 %v11727_v0 }
0x102c   :  { %v40854_v3 = vpop.eup %40853 }
0x102d   :  { %v40856_v4 = vpop.eup %40855  ;;  %v11734_v5 = vmul.f32 %v40854_v3, %v40850_v58 }
0x102e   :  { %v11733_v53 = vmul.f32 %v40856_v4, %v40852_v59 }
0x102f   :  { %v11739_v6 = vsel %vm2219_vm2, %v11734_v5, 0 }
0x1030   :  { %v11736_v9 = vsel %vm2219_vm2, %v11733_v53, 0  ;;  %v11818_v1 = vand.u32 4294901760, %v11739_v6 }
0x1031   :  { %v11808_v14 = vand.u32 4294901760, %v11736_v9 }
0x1032   :  { %v11819_v17 = vsub.f32 %v11739_v6, %v11818_v1 }
0x1033   :  { %v11809_v18 = vsub.f32 %v11736_v9, %v11808_v14 }
0x1034   :  { %v11820_v15 = vand.u32 4294901760, %v11819_v17 }
0x1035   :  { %v11810_v19 = vand.u32 4294901760, %v11809_v18 }
0x1036   :  { %v11821_v20 = vsub.f32 %v11819_v17, %v11820_v15 }
0x1037   :  { %v11811_v12 = vsub.f32 %v11809_v18, %v11810_v19 }
0x1038   :  { %v11822_v16 = vand.u32 4294901760, %v11821_v20 }
0x1039   :  { %v11812_v10 = vand.u32 4294901760, %v11811_v12 }
0x103b   :  { %35794 = vmatprep.mubr.f32.mxu1 %v11812_v10 }
0x103c   :  { %35795 = vmatmul.mubr.f32.vlgmr.msra.gmra.mrb[20].mxu1 %v11822_v16 }
0x103d   :  { %38725 = vmatpush3.bf16.msra.mxu1 %v38722_v55  ;;  %35801 = vmatprep.mubr.f32.mxu1 %v11808_v14  ;;  %v12798_v55 = vld [vmem:[%s43208_s13] sm:$0xff] }
0x103e   :  { %38727 = vmatprep.subr.bf16.mxu1 %v38726_v56  ;;  %v12816_v58 = vand.u32 4294901760, %v12798_v55 }
0x1040   :  { %v12906_v4 = vsub.f32 %v12798_v55, %v12816_v58 }
0x1042   :  { %v12907_v53 = vand.u32 4294901760, %v12906_v4 }
0x1044   :  { %35802 = vmatmul.mubr.f32.vlgmr.msra.gmra.mrb[20].mxu1 %v11818_v1  ;;  %v12908_v9 = vsub.f32 %v12906_v4, %v12907_v53 }
0x1045   :  { %38729 = vmatpush3.bf16.msra.mxu1 %v38726_v56  ;;  %35808 = vmatprep.mubr.f32.mxu1 %v11809_v18  ;;  %v12799_v56 = vld [vmem:[%s43208_s13 + $0x8] sm:$0xff] }
0x1046   :  { %38731 = vmatprep.subr.bf16.mxu1 %v38718_v41  ;;  %v12819_v59 = vand.u32 4294901760, %v12799_v56  ;;  %v12909_v18 = vand.u32 4294901760, %v12908_v9 }
0x1048   :  { %v41737_v0 = vpack.c.bf16 %v12819_v59, %v12816_v58  ;;  %v12913_v5 = vsub.f32 %v12799_v56, %v12819_v59  ;;  %v13347_v56 = vld [vmem:[%s43210_s15 + $0x10] sm:$0xff] }
0x1049   :  { %v13374_v58 = vand.u32 4294901760, %v13347_v56 }
0x104a   :  { %v12914_v6 = vand.u32 4294901760, %v12913_v5 }
0x104c   :  { %35809 = vmatmul.mubr.f32.vlgmr.msra.gmra.mrb[20].mxu1 %v11819_v17  ;;  %v12927_v17 = vsub.f32 %v12801_v60, %v12825_v62 }
0x104d   :  { %38733 = vmatpush3.bf16.msra.mxu1 %v38718_v41  ;;  %35815 = vmatprep.mubr.f32.mxu1 %v11810_v19 }
0x104e   :  { %38735 = vmatprep.subr.bf16.mxu1 %v38734_v57  ;;  %v12928_v20 = vand.u32 4294901760, %v12927_v17 }
0x1050   :  { %v12929_v16 = vsub.f32 %v12927_v17, %v12928_v20 }
0x1054   :  { %35816 = vmatmul.mubr.f32.vlgmr.msra.gmra.mrb[20].mxu1 %v11820_v15 }
0x1055   :  { %38737 = vmatpush3.bf16.msra.mxu1 %v38734_v57  ;;  %35822 = vmatprep.mubr.f32.mxu1 %v11808_v14  ;;  %v12800_v57 = vld [vmem:[%s43208_s13 + $0x10] sm:$0xff] }
0x1056   :  { %38739 = vmatprep.subr.bf16.mxu1 %v38718_v41  ;;  %v12822_v61 = vand.u32 4294901760, %v12800_v57 }
0x1058   :  { %v41739_v3 = vpack.c.bf16 %v12825_v62, %v12822_v61  ;;  %v13350_v62 = vld [vmem:[%s43210_s15 + $0x28] sm:$0xff] }
0x105c   :  { %35823 = vmatmul.mubr.f32.vlgmr.msra.gmra.mrb[20].mxu1 %v11818_v1 }
0x105d   :  { %38741 = vmatpush3.bf16.msra.mxu1 %v38718_v41  ;;  %35829 = vmatprep.mubr.f32.mxu1 %v11808_v14  ;;  %v12920_v14 = vsub.f32 %v12800_v57, %v12822_v61  ;;  %v13348_v57 = vld [vmem:[%s43210_s15 + $0x18] sm:$0xff]  ;;  %v13349_v61 = vld [vmem:[%s43210_s15 + $0x20] sm:$0xff] }
0x105e   :  { %38743 = vmatprep.subr.bf16.mxu1 %v41737_v0  ;;  %v13377_v59 = vand.u32 4294901760, %v13348_v57 }
0x105f   :  { %v12921_v19 = vand.u32 4294901760, %v12920_v14  ;;  %v38762_v22 = vpack.c.bf16 %v12927_v17, %v12920_v14 }
0x1060   :  { %v41797_v60 = vpack.c.bf16 %v13377_v59, %v13374_v58 }
0x1061   :  { %v12922_v10 = vsub.f32 %v12920_v14, %v12921_v19 }
0x1063   :  { %v12923_v21 = vand.u32 4294901760, %v12922_v10  ;;  %v13476_v10 = vsub.f32 %v13347_v56, %v13374_v58 }
0x1064   :  { %35830 = vmatmul.mubr.f32.vlgmr.msra.gmra.mrb[20].mxu1 %v11818_v1  ;;  %v12915_v1 = vsub.f32 %v12913_v5, %v12914_v6 }
0x1065   :  { %38745 = vmatpush3.bf16.msra.mxu1 %v41737_v0 }
0x1066   :  { %38747 = vmatprep.subr.bf16.mxu1 %v41739_v3  ;;  %v12916_v15 = vand.u32 4294901760, %v12915_v1 }
0x1068   :  { %v38750_v12 = vpack.c.bf16 %v12916_v15, %v12909_v18 }
0x1069   :  { %38749 = vmatpush3.bf16.msra.mxu1 %v41739_v3 }
0x106a   :  { %38751 = vmatprep.subr.bf16.mxu1 %v38750_v12 }
0x1137   :  { %v35831_v30 = vpop.f32.mrb[20].mxu1 }
0x1138   :  { %v12249_v2 = vsel %vm1704_vm1, %v35831_v30, 0  ;;  %v12233_v31 = vpop.f32.mrb[21].mxu1  ;;  %v38778_v30 = vpack.c.bf16 %v12928_v20, %v12921_v19 }
0x1139   :  { %v12327_v42 = vand.u32 4294901760, %v12249_v2  ;;  %v12246_v43 = vsel %vm1704_vm1, %v12233_v31, 0  ;;  %v41753_v31 = vld [vmem:[%s43210_s15 + $0x8] sm:$0xff] }
0x113a   :  { %v12317_v50 = vand.u32 4294901760, %v12246_v43 }
0x113b   :  { %v12328_v51 = vsub.f32 %v12249_v2, %v12327_v42  ;;  %v41748_v2 = vld [vmem:[%s43210_s15] sm:$0xff] }
0x113c   :  { %v12318_v32 = vsub.f32 %v12246_v43, %v12317_v50  ;;  %v13371_v43 = vand.u32 4294901760, %v41753_v31 }
0x113d   :  { %v12329_v33 = vand.u32 4294901760, %v12328_v51 }
0x113e   :  { %v12319_v34 = vand.u32 4294901760, %v12318_v32  ;;  %v13469_v17 = vsub.f32 %v41753_v31, %v13371_v43 }
0x113f   :  { %v12330_v8 = vsub.f32 %v12328_v51, %v12329_v33 }
0x1140   :  { %v12320_v40 = vsub.f32 %v12318_v32, %v12319_v34  ;;  %v13470_v15 = vand.u32 4294901760, %v13469_v17 }
0x1141   :  { %v12331_v35 = vand.u32 4294901760, %v12330_v8 }
0x1142   :  { %v12321_v23 = vand.u32 4294901760, %v12320_v40 }
0x1144   :  { %35834 = vmatprep.mubr.f32.mxu0 %v12321_v23 }
0x1145   :  { %35835 = vmatmul.mubr.f32.vlgmr.msra.gmra.mrb[10].mxu0 %v12331_v35  ;;  %v32609_v35 = vld [vmem:[%s43206_s11] ss:$0 sm:$0xff] }
0x1146   :  { %35839 = vmatprep.mubr.f32.mxu0 %v12317_v50  ;;  %35838 = vmatpush3.msra.mxu0 %v12342_v29  ;;  %v38774_v29 = vpack.c.bf16 %v12914_v6, %v12907_v53  ;;  %v13352_v53 = vld [vmem:[%s43210_s15 + $0x38] sm:$0xff] }
0x1147   :  { %35842 = vmatprep.subr.mxu0 %v12339_v27  ;;  %v13389_v9 = vand.u32 4294901760, %v13352_v53 }
0x114d   :  { %35840 = vmatmul.mubr.f32.vlgmr.msra.gmra.mrb[10].mxu0 %v12327_v42 }
0x114e   :  { %35844 = vmatprep.mubr.f32.mxu0 %v12318_v32  ;;  %35843 = vmatpush3.msra.mxu0 %v12339_v27 }
0x114f   :  { %35847 = vmatprep.subr.mxu0 %v12252_v26 }
0x1155   :  { %35845 = vmatmul.mubr.f32.vlgmr.msra.gmra.mrb[10].mxu0 %v12328_v51 }
0x1156   :  { %35849 = vmatprep.mubr.f32.mxu0 %v12319_v34  ;;  %35848 = vmatpush3.msra.mxu0 %v12252_v26 }
0x1157   :  { %35852 = vmatprep.subr.mxu0 %v12340_v28 }
0x115d   :  { %35850 = vmatmul.mubr.f32.vlgmr.msra.gmra.mrb[10].mxu0 %v12329_v33 }
0x115e   :  { %35854 = vmatprep.mubr.f32.mxu0 %v12317_v50  ;;  %35853 = vmatpush3.msra.mxu0 %v12340_v28  ;;  %v38758_v28 = vpack.c.bf16 %v12913_v5, %v12906_v4  ;;  %v13351_v5 = vld [vmem:[%s43210_s15 + $0x30] sm:$0xff] }
0x115f   :  { %35857 = vmatprep.subr.mxu0 %v12252_v26  ;;  %v13386_v6 = vand.u32 4294901760, %v13351_v5 }
0x1161   :  { %v41821_v1 = vpack.c.bf16 %v13389_v9, %v13386_v6 }
0x1165   :  { %35855 = vmatmul.mubr.f32.vlgmr.msra.gmra.mrb[10].mxu0 %v12327_v42 }
0x1166   :  { %35859 = vmatprep.mubr.f32.mxu0 %v12317_v50  ;;  %35858 = vmatpush3.msra.mxu0 %v12252_v26  ;;  %v12930_v26 = vand.u32 4294901760, %v12929_v16  ;;  %v13483_v16 = vsub.f32 %v13348_v57, %v13377_v59 }
0x1168   :  { %v38754_v27 = vpack.c.bf16 %v12930_v26, %v12923_v21 }
0x116d   :  { %35860 = vmatmul.mubr.f32.vlgmr.msra.gmra.mrb[10].mxu0 %v12327_v42  ;;  %v13368_v42 = vand.u32 4294901760, %v41748_v2 }
0x116f   :  { %v41761_v50 = vpack.c.bf16 %v13371_v43, %v13368_v42  ;;  %v13462_v14 = vsub.f32 %v41748_v2, %v13368_v42 }
0x1171   :  { %38839 = vmatprep.subr.bf16.mxu0 %v41761_v50  ;;  %v13463_v18 = vand.u32 4294901760, %v13462_v14 }
0x1172   :  { %38841 = vmatpush3.bf16.msra.mxu0 %v41761_v50 }
0x1173   :  { %38843 = vmatprep.subr.bf16.mxu0 %v41797_v60  ;;  %v38854_v19 = vpack.c.bf16 %v13470_v15, %v13463_v18  ;;  %v13464_v20 = vsub.f32 %v13462_v14, %v13463_v18 }
0x1175   :  { %v13465_v21 = vand.u32 4294901760, %v13464_v20 }
0x1176   :  { %38845 = vmatpush3.bf16.msra.mxu0 %v41797_v60 }
0x1240   :  { %v35861_v37 = vpop.f32.mrb[10].mxu0 }
0x1241   :  { %v12743_v36 = vadd.f32 %v35861_v37, %v41115_v25  ;;  %v12730_v13 = vpop.f32.mrb[11].mxu0 }
0x1242   :  { %v12742_v11 = vadd.f32 %v12730_v13, %v41113_v24  ;;  %v32610_v13 = vld [vmem:[%s43207_s12] ss:$0 sm:$0xff] }
0x1243   :  { %v12752_v7 = vadd.f32 %v32608_v38, %v12743_v36 }
0x1244   :  { %v12751_v39 = vadd.f32 %v32608_v38, %v12742_v11 }
0x1245   :  { %v12756_v41 = vsel %vm91_vm0, %v12752_v7, 0.0 }
0x1246   :  { %12757 = vadd.xlane.f32.xlu1 %v12756_v41  ;;  %v12753_v44 = vsel %vm91_vm0, %v12751_v39, 0.0 }
0x1247   :  { %12754 = vadd.xlane.f32.xlu0 %v12753_v44 }
0x12d3   :  { %v12758_v45 = vpop.xlane.xlu1 %12757 }
0x12d4   :  { %v12761_v46 = vmul.f32 0.03125, %v12758_v45  ;;  %v12755_v47 = vpop.xlane.xlu0 %12754 }
0x12d5   :  { %v12760_v48 = vmul.f32 0.03125, %v12755_v47 }
0x12d6   :  { %v41715_v49 = vsub.f32 %v12752_v7, %v12761_v46 }
0x12d7   :  { %v41717_v52 = vsub.f32 %v12751_v39, %v12760_v48 }
0x12d8   :  { %v12765_v25 = vmul.f32 %v41715_v49, %v41715_v49 }
0x12d9   :  { %v12764_v24 = vmul.f32 %v41717_v52, %v41717_v52 }
0x12da   :  { %v12769_v63 = vsel %vm91_vm0, %v12765_v25, 0.0 }
0x12db   :  { %12770 = vadd.xlane.f32.xlu1 %v12769_v63  ;;  %v12766_v54 = vsel %vm91_vm0, %v12764_v24, 0.0 }
0x12dc   :  { %12767 = vadd.xlane.f32.xlu0 %v12766_v54 }
0x1368   :  { %v12771_v51 = vpop.xlane.xlu1 %12770 }
0x1369   :  { %v12773_v32 = vmul.f32 0.03125, %v12771_v51  ;;  %v12768_v33 = vpop.xlane.xlu0 %12767 }
0x136a   :  { %v12772_v34 = vmul.f32 0.03125, %v12768_v33 }
0x136b   :  { %v12775_v8 = vadd.f32 1e-06, %v12773_v32 }
0x136c   :  { %v12774_v40 = vadd.f32 1e-06, %v12772_v34 }
0x136d   :  { %40857 = vrsqrt.f32 %v12775_v8 }
0x136e   :  { %40859 = vrsqrt.f32 %v12774_v40 }
0x1377   :  { %v40858_v23 = vpop.eup %40857 }
0x1378   :  { %v40860_v37 = vpop.eup %40859  ;;  %v12779_v38 = vmul.f32 %v40858_v23, %v41715_v49  ;;  %v13504_v23 = vsub.f32 %v13351_v5, %v13386_v6 }
0x1379   :  { %v12778_v36 = vmul.f32 %v40860_v37, %v41717_v52  ;;  %v13511_v37 = vsub.f32 %v13352_v53, %v13389_v9 }
0x137a   :  { %v12788_v11 = vmul.f32 %v32609_v35, %v12779_v38 }
0x137b   :  { %v12787_v7 = vmul.f32 %v32609_v35, %v12778_v36 }
0x137c   :  { %v41773_v39 = vadd.f32 %v32610_v13, %v12788_v11  ;;  %v13512_v11 = vand.u32 4294901760, %v13511_v37 }
0x137d   :  { %v41775_v41 = vadd.f32 %v32610_v13, %v12787_v7  ;;  %v13505_v13 = vand.u32 4294901760, %v13504_v23 }
0x137e   :  { %v12813_v44 = vsel %vm91_vm0, %v41773_v39, 0 }
0x137f   :  { %v12810_v45 = vsel %vm91_vm0, %v41775_v41, 0  ;;  %v12894_v46 = vand.u32 4294901760, %v12813_v44 }
0x1380   :  { %v12884_v47 = vand.u32 4294901760, %v12810_v45 }
0x1381   :  { %v12895_v48 = vsub.f32 %v12813_v44, %v12894_v46  ;;  %v13506_v44 = vsub.f32 %v13504_v23, %v13505_v13 }
0x1382   :  { %v12885_v49 = vsub.f32 %v12810_v45, %v12884_v47  ;;  %v38866_v45 = vpack.c.bf16 %v13512_v11, %v13505_v13 }
0x1383   :  { %v12896_v52 = vand.u32 4294901760, %v12895_v48 }
0x1384   :  { %v12886_v25 = vand.u32 4294901760, %v12885_v49 }
0x1385   :  { %v12897_v24 = vsub.f32 %v12895_v48, %v12896_v52 }
0x1386   :  { %v12887_v63 = vsub.f32 %v12885_v49, %v12886_v25 }
0x1387   :  { %v12898_v55 = vand.u32 4294901760, %v12897_v24 }
0x1388   :  { %v12888_v54 = vand.u32 4294901760, %v12887_v63  ;;  %v38834_v63 = vpack.c.bf16 %v13511_v37, %v13504_v23  ;;  %v32627_v23 = vld [vmem:[%s43202_s7 + $0x80] sm:$0xff] }
0x138a   :  { %35870 = vmatprep.mubr.f32.mxu1 %v12888_v54  ;;  %v32611_v54 = vld [vmem:[%s43209_s14] ss:$0 sm:$0xff] }
0x138b   :  { %35871 = vmatmul.mubr.f32.vlgmr.msra.gmra.mrb[22].mxu1 %v12898_v55 }
0x138c   :  { %38753 = vmatpush3.bf16.msra.mxu1 %v38750_v12  ;;  %35881 = vmatprep.mubr.f32.mxu1 %v12884_v47  ;;  %v13471_v12 = vsub.f32 %v13469_v17, %v13470_v15 }
0x138d   :  { %38755 = vmatprep.subr.bf16.mxu1 %v38754_v27 }
0x138e   :  { %v13472_v26 = vand.u32 4294901760, %v13471_v12 }
0x1390   :  { %38757 = vmatpush3.bf16.msra.mxu1 %v38754_v27  ;;  %v13477_v27 = vand.u32 4294901760, %v13476_v10 }
0x1391   :  { %38759 = vmatprep.subr.bf16.mxu1 %v38758_v28 }
0x1393   :  { %35882 = vmatmul.mubr.f32.vlgmr.msra.gmra.mrb[22].mxu1 %v12894_v46 }
0x1394   :  { %38761 = vmatpush3.bf16.msra.mxu1 %v38758_v28  ;;  %35892 = vmatprep.mubr.f32.mxu1 %v12885_v49  ;;  %v13484_v28 = vand.u32 4294901760, %v13483_v16 }
0x1395   :  { %38763 = vmatprep.subr.bf16.mxu1 %v38762_v22 }
0x1396   :  { %v38858_v31 = vpack.c.bf16 %v13484_v28, %v13477_v27  ;;  %v13485_v42 = vsub.f32 %v13483_v16, %v13484_v28 }
0x1398   :  { %38765 = vmatpush3.bf16.msra.mxu1 %v38762_v22  ;;  %v38806_v22 = vpack.c.bf16 %v13472_v26, %v13465_v21  ;;  %v13486_v33 = vand.u32 4294901760, %v13485_v42 }
0x1399   :  { %38767 = vmatprep.subr.bf16.mxu1 %v41737_v0 }
0x139b   :  { %35893 = vmatmul.mubr.f32.vlgmr.msra.gmra.mrb[22].mxu1 %v12895_v48 }
0x139c   :  { %38769 = vmatpush3.bf16.msra.mxu1 %v41737_v0  ;;  %35903 = vmatprep.mubr.f32.mxu1 %v12886_v25  ;;  %v38826_v25 = vpack.c.bf16 %v13483_v16, %v13476_v10 }
0x139d   :  { %38771 = vmatprep.subr.bf16.mxu1 %v41739_v3 }
0x13a0   :  { %38773 = vmatpush3.bf16.msra.mxu1 %v41739_v3 }
0x13a1   :  { %38775 = vmatprep.subr.bf16.mxu1 %v38774_v29 }
0x13a3   :  { %35904 = vmatmul.mubr.f32.vlgmr.msra.gmra.mrb[22].mxu1 %v12896_v52  ;;  %v38822_v52 = vpack.c.bf16 %v13469_v17, %v13462_v14 }
0x13a4   :  { %38777 = vmatpush3.bf16.msra.mxu1 %v38774_v29  ;;  %35914 = vmatprep.mubr.f32.mxu1 %v12884_v47  ;;  %v13478_v29 = vsub.f32 %v13476_v10, %v13477_v27 }
0x13a5   :  { %38779 = vmatprep.subr.bf16.mxu1 %v38778_v30 }
0x13a6   :  { %v13479_v43 = vand.u32 4294901760, %v13478_v29 }
0x13a8   :  { %38781 = vmatpush3.bf16.msra.mxu1 %v38778_v30  ;;  %v38810_v35 = vpack.c.bf16 %v13486_v33, %v13479_v43  ;;  %v32615_v33 = vld [vmem:[%s43232_s29 + $0x80] sm:$0xff] }
0x13a9   :  { %38783 = vmatprep.subr.bf16.mxu1 %v41737_v0 }
0x13ab   :  { %35915 = vmatmul.mubr.f32.vlgmr.msra.gmra.mrb[22].mxu1 %v12894_v46 }
0x13ac   :  { %38785 = vmatpush3.bf16.msra.mxu1 %v41737_v0  ;;  %35925 = vmatprep.mubr.f32.mxu1 %v12884_v47  ;;  %v13380_v0 = vand.u32 4294901760, %v13349_v61  ;;  %v13507_v47 = vand.u32 4294901760, %v13506_v44  ;;  %v32617_v44 = vld [vmem:[%s43232_s29 + $0x90] sm:$0xff] }
0x13ad   :  { %38787 = vmatprep.subr.bf16.mxu1 %v41739_v3 }
0x13ae   :  { %v13490_v30 = vsub.f32 %v13349_v61, %v13380_v0 }
0x13b0   :  { %38789 = vmatpush3.bf16.msra.mxu1 %v41739_v3  ;;  %v13383_v3 = vand.u32 4294901760, %v13350_v62  ;;  %v13491_v51 = vand.u32 4294901760, %v13490_v30 }
0x13b1   :  { %38791 = vmatprep.subr.bf16.mxu1 %v41761_v50 }
0x13b2   :  { %v41809_v4 = vpack.c.bf16 %v13383_v3, %v13380_v0  ;;  %v13497_v2 = vsub.f32 %v13350_v62, %v13383_v3  ;;  %v13492_v8 = vsub.f32 %v13490_v30, %v13491_v51 }
0x13b3   :  { %35926 = vmatmul.mubr.f32.vlgmr.msra.gmra.mrb[22].mxu1 %v12894_v46  ;;  %v13513_v46 = vsub.f32 %v13511_v37, %v13512_v11  ;;  %v15095_v37 = vand.u32 4294901760, %v32627_v23 }
0x13b4   :  { %38793 = vmatpush3.bf16.msra.mxu1 %v41761_v50  ;;  %38847 = vmatprep.subr.bf16.mxu0 %v41809_v4  ;;  %v13498_v32 = vand.u32 4294901760, %v13497_v2  ;;  %v13493_v38 = vand.u32 4294901760, %v13492_v8  ;;  %v38830_v24 = vpack.c.bf16 %v13497_v2, %v13490_v30  ;;  %v14013_v8 = vand.u32 4294901760, %v32615_v33 }
0x13b5   :  { %38795 = vmatprep.subr.bf16.mxu1 %v41797_v60  ;;  %38849 = vmatpush3.bf16.msra.mxu0 %v41809_v4  ;;  %v13514_v48 = vand.u32 4294901760, %v13513_v46  ;;  %v15185_v46 = vsub.f32 %v32627_v23, %v15095_v37 }
0x13b6   :  { %38851 = vmatprep.subr.bf16.mxu0 %v41821_v1  ;;  %v38862_v34 = vpack.c.bf16 %v13498_v32, %v13491_v51  ;;  %v13499_v40 = vsub.f32 %v13497_v2, %v13498_v32  ;;  %v14103_v13 = vsub.f32 %v32615_v33, %v14013_v8 }
0x13b7   :  { %v38818_v49 = vpack.c.bf16 %v13514_v48, %v13507_v47  ;;  %v14019_v48 = vand.u32 4294901760, %v32617_v44 }
0x13b8   :  { %38797 = vmatpush3.bf16.msra.mxu1 %v41797_v60  ;;  %v13500_v36 = vand.u32 4294901760, %v13499_v40 }
0x13b9   :  { %38799 = vmatprep.subr.bf16.mxu1 %v41809_v4  ;;  %38853 = vmatpush3.bf16.msra.mxu0 %v41821_v1 }
0x13ba   :  { %38855 = vmatprep.subr.bf16.mxu0 %v38854_v19  ;;  %v38814_v7 = vpack.c.bf16 %v13500_v36, %v13493_v38 }
0x13bc   :  { %38801 = vmatpush3.bf16.msra.mxu1 %v41809_v4 }
0x13bd   :  { %38803 = vmatprep.subr.bf16.mxu1 %v41821_v1 }
0x13c0   :  { %38805 = vmatpush3.bf16.msra.mxu1 %v41821_v1 }
0x13c1   :  { %38807 = vmatprep.subr.bf16.mxu1 %v38806_v22 }
0x1486   :  { %v35927_v55 = vpop.f32.mrb[22].mxu1 }
0x1487   :  { %v40118_v56 = vadd.f32 %v35927_v55, %v32611_v54  ;;  %v13333_v57 = vpop.f32.mrb[23].mxu1 }
0x1488   :  { %v40119_v58 = vadd.f32 %v32611_v54, %v13333_v57 }
0x1489   :  { %v13344_v59 = vmax.f32 %v40118_v56, 0.0  ;;  %v15186_v56 = vand.u32 4294901760, %v15185_v46 }
0x148a   :  { %v13343_v61 = vmax.f32 %v40119_v58, 0.0 }
0x148b   :  { %v13365_v62 = vsel %vm13360_vm3, %v13344_v59, 0 }
0x148c   :  { %v13450_v0 = vand.u32 4294901760, %v13365_v62  ;;  %v13362_v3 = vsel %vm13360_vm3, %v13343_v61, 0 }
0x148d   :  { %v13440_v5 = vand.u32 4294901760, %v13362_v3 }
0x148e   :  { %v13451_v53 = vsub.f32 %v13365_v62, %v13450_v0  ;;  %v14117_v62 = vsub.f32 %v32617_v44, %v14019_v48 }
0x148f   :  { %v13441_v6 = vsub.f32 %v13362_v3, %v13440_v5  ;;  %v15187_v3 = vsub.f32 %v15185_v46, %v15186_v56 }
0x1490   :  { %v13452_v9 = vand.u32 4294901760, %v13451_v53 }
0x1491   :  { %v13442_v14 = vand.u32 4294901760, %v13441_v6 }
0x1492   :  { %v13453_v17 = vsub.f32 %v13451_v53, %v13452_v9 }
0x1493   :  { %36001 = vmatprep.mubr.f32.mxu0 %v13442_v14  ;;  %v13443_v18 = vsub.f32 %v13441_v6, %v13442_v14  ;;  %v14118_v14 = vand.u32 4294901760, %v14117_v62 }
0x1494   :  { %36002 = vmatmul.mubr.f32.vlgmr.msra.gmra.mrb[20].mxu0 %v13452_v9  ;;  %v13454_v20 = vand.u32 4294901760, %v13453_v17 }
0x1495   :  { %38857 = vmatpush3.bf16.msra.mxu0 %v38854_v19  ;;  %36020 = vmatprep.mubr.f32.mxu0 %v13440_v5  ;;  %v13444_v15 = vand.u32 4294901760, %v13443_v18  ;;  %v15188_v18 = vand.u32 4294901760, %v15187_v3 }
0x1496   :  { %38859 = vmatprep.subr.bf16.mxu0 %v38858_v31 }
0x1497   :  { %35944 = vmatprep.mubr.f32.mxu1 %v13444_v15 }
0x1498   :  { %35945 = vmatmul.mubr.f32.vlgmr.msra.gmra.mrb[24].mxu1 %v13454_v20 }
0x1499   :  { %38809 = vmatpush3.bf16.msra.mxu1 %v38806_v22  ;;  %38861 = vmatpush3.bf16.msra.mxu0 %v38858_v31 }
0x149a   :  { %35963 = vmatprep.mubr.f32.mxu1 %v13440_v5  ;;  %38811 = vmatprep.subr.bf16.mxu1 %v38810_v35 }
0x149b   :  { %38863 = vmatprep.subr.bf16.mxu0 %v38862_v34 }
0x149d   :  { %38813 = vmatpush3.bf16.msra.mxu1 %v38810_v35  ;;  %38865 = vmatpush3.bf16.msra.mxu0 %v38862_v34  ;;  %v32616_v34 = vld [vmem:[%s43232_s29 + $0x88] sm:$0xff] }
0x149e   :  { %38815 = vmatprep.subr.bf16.mxu1 %v38814_v7  ;;  %38867 = vmatprep.subr.bf16.mxu0 %v38866_v45  ;;  %v14016_v40 = vand.u32 4294901760, %v32616_v34  ;;  %v32628_v35 = vld [vmem:[%s43202_s7 + $0x88] sm:$0xff] }
0x149f   :  { %v15098_v38 = vand.u32 4294901760, %v32628_v35 }
0x14a0   :  { %v41875_v36 = vpack.c.bf16 %v14016_v40, %v14013_v8  ;;  %v14110_v11 = vsub.f32 %v32616_v34, %v14016_v40 }
0x14a1   :  { %38817 = vmatpush3.bf16.msra.mxu1 %v38814_v7  ;;  %38869 = vmatpush3.bf16.msra.mxu0 %v38866_v45  ;;  %v41877_v7 = vpack.c.bf16 %v15098_v38, %v15095_v37  ;;  %v32618_v45 = vld [vmem:[%s43232_s29 + $0x98] sm:$0xff]  ;;  %v15192_v47 = vsub.f32 %v32628_v35, %v15098_v38 }
0x14a2   :  { %38819 = vmatprep.subr.bf16.mxu1 %v38818_v49  ;;  %38871 = vmatprep.subr.bf16.mxu0 %v41761_v50 }
0x14a3   :  { %v15193_v57 = vand.u32 4294901760, %v15192_v47 }
0x14a4   :  { %36021 = vmatmul.mubr.f32.vlgmr.msra.gmra.mrb[20].mxu0 %v13450_v0 }
0x14a5   :  { %38821 = vmatpush3.bf16.msra.mxu1 %v38818_v49  ;;  %38873 = vmatpush3.bf16.msra.mxu0 %v41761_v50  ;;  %v14022_v49 = vand.u32 4294901760, %v32618_v45 }
0x14a6   :  { %36039 = vmatprep.mubr.f32.mxu0 %v13440_v5  ;;  %38823 = vmatprep.subr.bf16.mxu1 %v38822_v52  ;;  %v15194_v5 = vsub.f32 %v15192_v47, %v15193_v57 }
0x14a7   :  { %38875 = vmatprep.subr.bf16.mxu0 %v41797_v60  ;;  %v41895_v58 = vpack.c.bf16 %v14022_v49, %v14019_v48 }
0x14a8   :  { %35964 = vmatmul.mubr.f32.vlgmr.msra.gmra.mrb[24].mxu1 %v13450_v0  ;;  %v15195_v15 = vand.u32 4294901760, %v15194_v5  ;;  %v32621_v5 = vld [vmem:[%s43233_s1 + $0x80] sm:$0xff] }
0x14a9   :  { %38825 = vmatpush3.bf16.msra.mxu1 %v38822_v52  ;;  %35982 = vmatprep.mubr.f32.mxu1 %v13441_v6  ;;  %v32629_v52 = vld [vmem:[%s43202_s7 + $0x90] sm:$0xff] }
0x14aa   :  { %38877 = vmatpush3.bf16.msra.mxu0 %v41797_v60  ;;  %38827 = vmatprep.subr.bf16.mxu1 %v38826_v25  ;;  %v32612_v60 = vld [vmem:[%s43211_s16] ss:$0 sm:$0xff]  ;;  %v15101_v54 = vand.u32 4294901760, %v32629_v52 }
0x14ab   :  { %38879 = vmatprep.subr.bf16.mxu0 %v41809_v4 }
0x14ac   :  { %v15199_v17 = vsub.f32 %v32629_v52, %v15101_v54 }
0x14ad   :  { %38829 = vmatpush3.bf16.msra.mxu1 %v38826_v25  ;;  %v32630_v25 = vld [vmem:[%s43202_s7 + $0x98] sm:$0xff] }
0x14ae   :  { %38881 = vmatpush3.bf16.msra.mxu0 %v41809_v4  ;;  %38831 = vmatprep.subr.bf16.mxu1 %v38830_v24  ;;  %v15104_v55 = vand.u32 4294901760, %v32630_v25 }
0x14af   :  { %38883 = vmatprep.subr.bf16.mxu0 %v41821_v1 }
0x14b1   :  { %38833 = vmatpush3.bf16.msra.mxu1 %v38830_v24  ;;  %v14104_v24 = vand.u32 4294901760, %v14103_v13 }
0x14b2   :  { %38885 = vmatpush3.bf16.msra.mxu0 %v41821_v1  ;;  %38835 = vmatprep.subr.bf16.mxu1 %v38834_v63 }
0x14b3   :  { %38983 = vmatprep.subr.bf16.mxu0 %v41877_v7  ;;  %v14105_v59 = vsub.f32 %v14103_v13, %v14104_v24 }
0x14b5   :  { %36040 = vmatmul.mubr.f32.vlgmr.msra.gmra.mrb[20].mxu0 %v13450_v0  ;;  %38837 = vmatpush3.bf16.msra.mxu1 %v38834_v63  ;;  %v14111_v63 = vand.u32 4294901760, %v14110_v11  ;;  %v41897_v0 = vpack.c.bf16 %v15104_v55, %v15101_v54  ;;  %v14106_v6 = vand.u32 4294901760, %v14105_v59 }
0x14b6   :  { %38887 = vmatprep.subr.bf16.mxu1 %v41875_v36  ;;  %38985 = vmatpush3.bf16.msra.mxu0 %v41877_v7 }
0x14b7   :  { %v14112_v61 = vsub.f32 %v14110_v11, %v14111_v63  ;;  %38987 = vmatprep.subr.bf16.mxu0 %v41897_v0 }
0x14b8   :  { %35983 = vmatmul.mubr.f32.vlgmr.msra.gmra.mrb[24].mxu1 %v13451_v53  ;;  %v14124_v53 = vsub.f32 %v32618_v45, %v14022_v49 }
0x14b9   :  { %38889 = vmatpush3.bf16.msra.mxu1 %v41875_v36  ;;  %v14113_v9 = vand.u32 4294901760, %v14112_v61 }
0x14ba   :  { %38891 = vmatprep.subr.bf16.mxu1 %v41895_v58  ;;  %v14125_v20 = vand.u32 4294901760, %v14124_v53  ;;  %38989 = vmatpush3.bf16.msra.mxu0 %v41897_v0 }
0x14bc   :  { %v41907_v33 = vpack.c.bf16 %v14125_v20, %v14118_v14 }
0x14bd   :  { %38893 = vmatpush3.bf16.msra.mxu1 %v41895_v58 }
0x1588   :  { %v36041_v50 = vpop.f32.mrb[20].mxu0 }
0x1589   :  { %v13937_v19 = vpop.f32.mrb[21].mxu0 }
0x158b   :  { %v35984_v12 = vpop.f32.mrb[24].mxu1 }
0x158c   :  { %v40120_v10 = vadd.f32 %v35984_v12, %v32612_v60  ;;  %v13661_v16 = vpop.f32.mrb[25].mxu1  ;;  %v15200_v12 = vand.u32 4294901760, %v15199_v17 }
0x158d   :  { %v40122_v4 = vadd.f32 %v32612_v60, %v13661_v16  ;;  %v14119_v60 = vsub.f32 %v14117_v62, %v14118_v14  ;;  %v14126_v16 = vsub.f32 %v14124_v53, %v14125_v20  ;;  %v32623_v14 = vld [vmem:[%s43233_s1 + $0x90] sm:$0xff] }
0x158e   :  { %v40121_v21 = vadd.f32 %v40120_v10, %v36041_v50  ;;  %v15206_v50 = vsub.f32 %v32630_v25, %v15104_v55  ;;  %v38990_v10 = vpack.c.bf16 %v15195_v15, %v15188_v18  ;;  %v14560_v18 = vand.u32 4294901760, %v32623_v14 }
0x158f   :  { %v40123_v26 = vadd.f32 %v40122_v4, %v13937_v19  ;;  %v38894_v19 = vpack.c.bf16 %v14113_v9, %v14106_v6  ;;  %v14554_v6 = vand.u32 4294901760, %v32621_v5 }
0x1590   :  { %v13948_v27 = vadd.f32 %v40121_v21, %v41773_v39  ;;  %v15207_v4 = vand.u32 4294901760, %v15206_v50  ;;  %v14120_v21 = vand.u32 4294901760, %v14119_v60  ;;  %38991 = vmatprep.subr.bf16.mxu0 %v38990_v10 }
0x1591   :  { %v13947_v1 = vadd.f32 %v40123_v26, %v41775_v41  ;;  %38895 = vmatprep.subr.bf16.mxu1 %v38894_v19  ;;  %v15201_v26 = vsub.f32 %v15199_v17, %v15200_v12  ;;  %v41992_v20 = vsub.f32 %v32621_v5, %v14554_v6 }
0x1592   :  { %v13952_v28 = vsel %vm91_vm0, %v13948_v27, 0.0  ;;  %v41909_v34 = vpack.c.bf16 %v15207_v4, %v15200_v12  ;;  %v14658_v12 = vsub.f32 %v32623_v14, %v14560_v18 }
0x1593   :  { %13953 = vadd.xlane.f32.xlu1 %v13952_v28  ;;  %v13949_v22 = vsel %vm91_vm0, %v13947_v1, 0.0  ;;  %v15202_v28 = vand.u32 4294901760, %v15201_v26 }
0x1594   :  { %13950 = vadd.xlane.f32.xlu0 %v13949_v22  ;;  %v14659_v26 = vand.u32 4294901760, %v14658_v12 }
0x1620   :  { %v13954_v29 = vpop.xlane.xlu1 %13953 }
0x1621   :  { %v13956_v30 = vmul.f32 0.03125, %v13954_v29  ;;  %v13951_v2 = vpop.xlane.xlu0 %13950 }
0x1622   :  { %v13955_v31 = vmul.f32 0.03125, %v13951_v2  ;;  %v38902_v2 = vpack.c.bf16 %v14110_v11, %v14103_v13  ;;  %v32613_v11 = vld [vmem:[%s43212_s17] ss:$0 sm:$0xff] }
0x1623   :  { %v41853_v42 = vsub.f32 %v13948_v27, %v13956_v30  ;;  %v14127_v27 = vand.u32 4294901760, %v14126_v16 }
0x1624   :  { %v41855_v43 = vsub.f32 %v13947_v1, %v13955_v31  ;;  %v15208_v1 = vsub.f32 %v15206_v50, %v15207_v4  ;;  %v38998_v31 = vpack.c.bf16 %v15192_v47, %v15185_v46  ;;  %v32614_v46 = vld [vmem:[%s43213_s18] ss:$0 sm:$0xff] }
0x1625   :  { %v13960_v51 = vmul.f32 %v41853_v42, %v41853_v42  ;;  %v38898_v22 = vpack.c.bf16 %v14127_v27, %v14120_v21 }
0x1626   :  { %v13959_v39 = vmul.f32 %v41855_v43, %v41855_v43  ;;  %v15209_v29 = vand.u32 4294901760, %v15208_v1 }
0x1627   :  { %v13964_v41 = vsel %vm91_vm0, %v13960_v51, 0.0  ;;  %v38906_v51 = vpack.c.bf16 %v14124_v53, %v14117_v62  ;;  %v32622_v53 = vld [vmem:[%s43233_s1 + $0x88] sm:$0xff] }
0x1628   :  { %13965 = vadd.xlane.f32.xlu1 %v13964_v41  ;;  %v13961_v32 = vsel %vm91_vm0, %v13959_v39, 0.0  ;;  %v38994_v30 = vpack.c.bf16 %v15209_v29, %v15202_v28  ;;  %v39002_v39 = vpack.c.bf16 %v15206_v50, %v15199_v17  ;;  %v41903_v41 = vpack.c.bf16 %v14111_v63, %v14104_v24  ;;  %v32624_v17 = vld [vmem:[%s43233_s1 + $0x98] sm:$0xff] }
0x1629   :  { %13962 = vadd.xlane.f32.xlu0 %v13961_v32  ;;  %v41905_v32 = vpack.c.bf16 %v15193_v57, %v15186_v56  ;;  %v14557_v9 = vand.u32 4294901760, %v32622_v53  ;;  %v14563_v15 = vand.u32 4294901760, %v32624_v17  ;;  %v14660_v28 = vsub.f32 %v14658_v12, %v14659_v26 }
0x162b   :  { %v41994_v50 = vsub.f32 %v32622_v53, %v14557_v9  ;;  %v38934_v16 = vpack.c.bf16 %v14557_v9, %v14554_v6 }
0x162d   :  { %v14652_v60 = vand.u32 4294901760, %v41994_v50 }
0x162f   :  { %v14653_v21 = vsub.f32 %v41994_v50, %v14652_v60 }
0x16b5   :  { %v13966_v8 = vpop.xlane.xlu1 %13965 }
0x16b6   :  { %v13968_v40 = vmul.f32 0.03125, %v13966_v8  ;;  %v13963_v23 = vpop.xlane.xlu0 %13962 }
0x16b7   :  { %v13967_v35 = vmul.f32 0.03125, %v13963_v23 }
0x16b8   :  { %v13970_v37 = vadd.f32 1e-06, %v13968_v40 }
0x16b9   :  { %v13969_v38 = vadd.f32 1e-06, %v13967_v35 }
0x16ba   :  { %40861 = vrsqrt.f32 %v13970_v37 }
0x16bb   :  { %40863 = vrsqrt.f32 %v13969_v38 }
0x16c4   :  { %v40862_v13 = vpop.eup %40861 }
0x16c5   :  { %v40864_v44 = vpop.eup %40863  ;;  %v13974_v45 = vmul.f32 %v40862_v13, %v41853_v42 }
0x16c6   :  { %v13973_v47 = vmul.f32 %v40864_v44, %v41855_v43 }
0x16c7   :  { %v13983_v48 = vmul.f32 %v32613_v11, %v13974_v45 }
0x16c8   :  { %v13982_v49 = vmul.f32 %v32613_v11, %v13973_v47 }
0x16c9   :  { %v41919_v52 = vadd.f32 %v32614_v46, %v13983_v48 }
0x16ca   :  { %v41921_v25 = vadd.f32 %v32614_v46, %v13982_v49 }
0x16cb   :  { %v14010_v24 = vsel %vm91_vm0, %v41919_v52, 0 }
0x16cc   :  { %v41925_v63 = vand.u32 4294901760, %v14010_v24  ;;  %v14007_v42 = vsel %vm91_vm0, %v41921_v25, 0 }
0x16cd   :  { %v41929_v54 = vand.u32 4294901760, %v14007_v42 }
0x16ce   :  { %v41932_v55 = vsub.f32 %v14010_v24, %v41925_v63 }
0x16cf   :  { %v41935_v43 = vsub.f32 %v14007_v42, %v41929_v54 }
0x16d0   :  { %v41938_v56 = vand.u32 4294901760, %v41932_v55 }
0x16d1   :  { %v41941_v57 = vand.u32 4294901760, %v41935_v43 }
0x16d2   :  { %v14094_v59 = vsub.f32 %v41932_v55, %v41938_v56 }
0x16d3   :  { %v14084_v61 = vsub.f32 %v41935_v43, %v41941_v57 }
0x16d4   :  { %v41949_v3 = vand.u32 4294901760, %v14094_v59 }
0x16d5   :  { %v41947_v62 = vand.u32 4294901760, %v14084_v61 }
0x16d7   :  { %36050 = vmatprep.mubr.f32.mxu1 %v41947_v62  ;;  %36182 = vmatprep.mubr.f32.mxu0 %v41947_v62 }
0x16d8   :  { %36051 = vmatmul.mubr.f32.vlgmr.msra.gmra.mrb[26].mxu1 %v41949_v3  ;;  %36183 = vmatmul.mubr.f32.vlgmr.msra.gmra.mrb[22].mxu0 %v41949_v3 }
0x16d9   :  { %38897 = vmatpush3.bf16.msra.mxu1 %v38894_v19  ;;  %36061 = vmatprep.mubr.f32.mxu1 %v41929_v54  ;;  %v14645_v19 = vand.u32 4294901760, %v41992_v20 }
0x16da   :  { %38993 = vmatpush3.bf16.msra.mxu0 %v38990_v10  ;;  %36193 = vmatprep.mubr.f32.mxu0 %v41929_v54  ;;  %v14665_v10 = vsub.f32 %v32624_v17, %v14563_v15 }
0x16db   :  { %38899 = vmatprep.subr.bf16.mxu1 %v38898_v22  ;;  %38995 = vmatprep.subr.bf16.mxu0 %v38994_v30  ;;  %v14646_v4 = vsub.f32 %v41992_v20, %v14645_v19 }
0x16dc   :  { %v14666_v27 = vand.u32 4294901760, %v14665_v10 }
0x16dd   :  { %38901 = vmatpush3.bf16.msra.mxu1 %v38898_v22  ;;  %v14647_v1 = vand.u32 4294901760, %v14646_v4 }
0x16de   :  { %38997 = vmatpush3.bf16.msra.mxu0 %v38994_v30  ;;  %38903 = vmatprep.subr.bf16.mxu1 %v38902_v2  ;;  %v14667_v22 = vsub.f32 %v14665_v10, %v14666_v27  ;;  %v14661_v30 = vand.u32 4294901760, %v14660_v28 }
0x16df   :  { %38999 = vmatprep.subr.bf16.mxu0 %v38998_v31 }
0x16e0   :  { %36062 = vmatmul.mubr.f32.vlgmr.msra.gmra.mrb[26].mxu1 %v41925_v63 }
0x16e1   :  { %38905 = vmatpush3.bf16.msra.mxu1 %v38902_v2  ;;  %36194 = vmatmul.mubr.f32.vlgmr.msra.gmra.mrb[22].mxu0 %v41925_v63  ;;  %v14668_v2 = vand.u32 4294901760, %v14667_v22 }
0x16e2   :  { %36072 = vmatprep.mubr.f32.mxu1 %v41935_v43  ;;  %39001 = vmatpush3.bf16.msra.mxu0 %v38998_v31  ;;  %v38954_v31 = vpack.c.bf16 %v14665_v10, %v14658_v12 }
0x16e3   :  { %36204 = vmatprep.mubr.f32.mxu0 %v41935_v43  ;;  %38907 = vmatprep.subr.bf16.mxu1 %v38906_v51 }
0x16e4   :  { %39003 = vmatprep.subr.bf16.mxu0 %v39002_v39 }
0x16e5   :  { %38909 = vmatpush3.bf16.msra.mxu1 %v38906_v51  ;;  %v38966_v51 = vpack.c.bf16 %v14652_v60, %v14645_v19 }
0x16e6   :  { %39005 = vmatpush3.bf16.msra.mxu0 %v39002_v39  ;;  %38911 = vmatprep.subr.bf16.mxu1 %v41875_v36  ;;  %v38970_v39 = vpack.c.bf16 %v14666_v27, %v14659_v26 }
0x16e7   :  { %39007 = vmatprep.subr.bf16.mxu0 %v41877_v7 }
0x16e8   :  { %36073 = vmatmul.mubr.f32.vlgmr.msra.gmra.mrb[26].mxu1 %v41932_v55 }
0x16e9   :  { %38913 = vmatpush3.bf16.msra.mxu1 %v41875_v36  ;;  %36205 = vmatmul.mubr.f32.vlgmr.msra.gmra.mrb[22].mxu0 %v41932_v55 }
0x16ea   :  { %36083 = vmatprep.mubr.f32.mxu1 %v41941_v57  ;;  %39009 = vmatpush3.bf16.msra.mxu0 %v41877_v7 }
0x16eb   :  { %36215 = vmatprep.mubr.f32.mxu0 %v41941_v57  ;;  %38915 = vmatprep.subr.bf16.mxu1 %v41895_v58 }
0x16ec   :  { %39011 = vmatprep.subr.bf16.mxu0 %v41897_v0 }
0x16ed   :  { %38917 = vmatpush3.bf16.msra.mxu1 %v41895_v58 }
0x16ee   :  { %39013 = vmatpush3.bf16.msra.mxu0 %v41897_v0  ;;  %38919 = vmatprep.subr.bf16.mxu1 %v41903_v41 }
0x16ef   :  { %39015 = vmatprep.subr.bf16.mxu0 %v41905_v32 }
0x16f0   :  { %36084 = vmatmul.mubr.f32.vlgmr.msra.gmra.mrb[26].mxu1 %v41938_v56 }
0x16f1   :  { %38921 = vmatpush3.bf16.msra.mxu1 %v41903_v41  ;;  %36216 = vmatmul.mubr.f32.vlgmr.msra.gmra.mrb[22].mxu0 %v41938_v56  ;;  %v32620_v41 = vld [vmem:[%s43236_s30 + $0x4] ss:$0 sm:$0xff] }
0x16f2   :  { %36094 = vmatprep.mubr.f32.mxu1 %v41929_v54  ;;  %39017 = vmatpush3.bf16.msra.mxu0 %v41905_v32  ;;  %v32632_v32 = vld [vmem:[%s43203_s8 + $0x4] ss:$0 sm:$0xff] }
0x16f3   :  { %36226 = vmatprep.mubr.f32.mxu0 %v41929_v54  ;;  %38923 = vmatprep.subr.bf16.mxu1 %v41907_v33 }
0x16f4   :  { %39019 = vmatprep.subr.bf16.mxu0 %v41909_v34 }
0x16f5   :  { %38925 = vmatpush3.bf16.msra.mxu1 %v41907_v33 }
0x16f6   :  { %39021 = vmatpush3.bf16.msra.mxu0 %v41909_v34  ;;  %38927 = vmatprep.subr.bf16.mxu1 %v41875_v36 }
0x16f7   :  { %39023 = vmatprep.subr.bf16.mxu0 %v41877_v7 }
0x16f8   :  { %36095 = vmatmul.mubr.f32.vlgmr.msra.gmra.mrb[26].mxu1 %v41925_v63 }
0x16f9   :  { %38929 = vmatpush3.bf16.msra.mxu1 %v41875_v36  ;;  %36227 = vmatmul.mubr.f32.vlgmr.msra.gmra.mrb[22].mxu0 %v41925_v63  ;;  %v38938_v36 = vpack.c.bf16 %v14563_v15, %v14560_v18 }
0x16fa   :  { %36105 = vmatprep.mubr.f32.mxu1 %v41929_v54  ;;  %39025 = vmatpush3.bf16.msra.mxu0 %v41877_v7  ;;  %v14654_v7 = vand.u32 4294901760, %v14653_v21 }
0x16fb   :  { %36237 = vmatprep.mubr.f32.mxu0 %v41929_v54  ;;  %38931 = vmatprep.subr.bf16.mxu1 %v41895_v58 }
0x16fc   :  { %39027 = vmatprep.subr.bf16.mxu0 %v41897_v0  ;;  %v38942_v29 = vpack.c.bf16 %v14654_v7, %v14647_v1 }
0x16fd   :  { %38933 = vmatpush3.bf16.msra.mxu1 %v41895_v58  ;;  %v38946_v58 = vpack.c.bf16 %v14668_v2, %v14661_v30 }
0x16fe   :  { %39029 = vmatpush3.bf16.msra.mxu0 %v41897_v0  ;;  %38935 = vmatprep.subr.bf16.mxu1 %v38934_v16  ;;  %v38950_v0 = vpack.c.bf16 %v41994_v50, %v41992_v20  ;;  %v32626_v50 = vld [vmem:[%s43237_s23 + $0x4] ss:$0 sm:$0xff] }
0x1700   :  { %36106 = vmatmul.mubr.f32.vlgmr.msra.gmra.mrb[26].mxu1 %v41925_v63 }
0x1701   :  { %38937 = vmatpush3.bf16.msra.mxu1 %v38934_v16  ;;  %36238 = vmatmul.mubr.f32.vlgmr.msra.gmra.mrb[22].mxu0 %v41925_v63 }
0x1702   :  { %36116 = vmatprep.mubr.f32.mxu1 %v41947_v62  ;;  %38939 = vmatprep.subr.bf16.mxu1 %v38938_v36 }
0x1705   :  { %38941 = vmatpush3.bf16.msra.mxu1 %v38938_v36 }
0x1706   :  { %38943 = vmatprep.subr.bf16.mxu1 %v38942_v29 }
0x1708   :  { %36117 = vmatmul.mubr.f32.vlgmr.msra.gmra.mrb[28].mxu1 %v41949_v3 }
0x1709   :  { %38945 = vmatpush3.bf16.msra.mxu1 %v38942_v29  ;;  %36127 = vmatprep.mubr.f32.mxu1 %v41929_v54 }
0x170a   :  { %38947 = vmatprep.subr.bf16.mxu1 %v38946_v58 }
0x170d   :  { %38949 = vmatpush3.bf16.msra.mxu1 %v38946_v58 }
0x170e   :  { %38951 = vmatprep.subr.bf16.mxu1 %v38950_v0 }
0x1710   :  { %36128 = vmatmul.mubr.f32.vlgmr.msra.gmra.mrb[28].mxu1 %v41925_v63 }
0x1711   :  { %38953 = vmatpush3.bf16.msra.mxu1 %v38950_v0  ;;  %36138 = vmatprep.mubr.f32.mxu1 %v41935_v43 }
0x1712   :  { %38955 = vmatprep.subr.bf16.mxu1 %v38954_v31 }
0x1715   :  { %38957 = vmatpush3.bf16.msra.mxu1 %v38954_v31 }
0x1716   :  { %38959 = vmatprep.subr.bf16.mxu1 %v38934_v16 }
0x1718   :  { %36139 = vmatmul.mubr.f32.vlgmr.msra.gmra.mrb[28].mxu1 %v41932_v55 }
0x1719   :  { %38961 = vmatpush3.bf16.msra.mxu1 %v38934_v16  ;;  %36149 = vmatprep.mubr.f32.mxu1 %v41941_v57 }
0x171a   :  { %38963 = vmatprep.subr.bf16.mxu1 %v38938_v36 }
0x171d   :  { %38965 = vmatpush3.bf16.msra.mxu1 %v38938_v36 }
0x171e   :  { %38967 = vmatprep.subr.bf16.mxu1 %v38966_v51 }
0x1720   :  { %36150 = vmatmul.mubr.f32.vlgmr.msra.gmra.mrb[28].mxu1 %v41938_v56 }
0x1721   :  { %38969 = vmatpush3.bf16.msra.mxu1 %v38966_v51  ;;  %36160 = vmatprep.mubr.f32.mxu1 %v41929_v54 }
0x1722   :  { %38971 = vmatprep.subr.bf16.mxu1 %v38970_v39 }
0x1725   :  { %38973 = vmatpush3.bf16.msra.mxu1 %v38970_v39 }
0x1726   :  { %38975 = vmatprep.subr.bf16.mxu1 %v38934_v16 }
0x1728   :  { %36161 = vmatmul.mubr.f32.vlgmr.msra.gmra.mrb[28].mxu1 %v41925_v63 }
0x1729   :  { %38977 = vmatpush3.bf16.msra.mxu1 %v38934_v16  ;;  %36171 = vmatprep.mubr.f32.mxu1 %v41929_v54 }
0x172a   :  { %38979 = vmatprep.subr.bf16.mxu1 %v38938_v36 }
0x172d   :  { %38981 = vmatpush3.bf16.msra.mxu1 %v38938_v36 }
0x1730   :  { %36172 = vmatmul.mubr.f32.vlgmr.msra.gmra.mrb[28].mxu1 %v41925_v63 }
0x17d3   :  { %v36107_v33 = vpop.f32.mrb[26].mxu1 }
0x17d4   :  { %v36239_v34 = vpop.f32.mrb[22].mxu0  ;;  %v14530_v8 = vpop.f32.mrb[27].mxu1  ;;  %v40124_v15 = vadd.f32 %v36107_v33, %v32620_v41 }
0x17d5   :  { %v40128_v40 = vadd.f32 %v36239_v34, %v32632_v32  ;;  %v40125_v23 = vadd.f32 %v32620_v41, %v14530_v8  ;;  %v15612_v35 = vpop.f32.mrb[23].mxu0  ;;  %v32634_v34 = vld [vmem:[%s43232_s29 + $0xa0] sm:$0xff]  ;;  %v32635_v8 = vld [vmem:[%s43232_s29 + $0xa8] sm:$0xff] }
0x17d6   :  { %v40129_v37 = vadd.f32 %v32632_v32, %v15612_v35  ;;  %v15626_v20 = vsel %vm1704_vm1, %v40124_v15, 0  ;;  %v32636_v35 = vld [vmem:[%s43232_s29 + $0xb0] sm:$0xff] }
0x17d7   :  { %v16168_v38 = vand.u32 4294901760, %v40128_v40  ;;  %v15623_v13 = vsel %vm1704_vm1, %v40125_v23, 0  ;;  %v42058_v19 = vand.u32 4294901760, %v15626_v20  ;;  %v16685_v23 = vand.u32 4294901760, %v32635_v8 }
0x17d8   :  { %v42040_v11 = vand.u32 4294901760, %v15623_v13  ;;  %v16165_v44 = vand.u32 4294901760, %v40129_v37 }
0x17d9   :  { %v16260_v45 = vsub.f32 %v40128_v40, %v16168_v38  ;;  %v15712_v4 = vsub.f32 %v15626_v20, %v42058_v19  ;;  %v16682_v40 = vand.u32 4294901760, %v32634_v34 }
0x17da   :  { %v15702_v46 = vsub.f32 %v15623_v13, %v42040_v11  ;;  %v42043_v47 = vpack.c.bf16 %v16168_v38, %v16165_v44  ;;  %v16253_v48 = vsub.f32 %v40129_v37, %v16165_v44  ;;  %v32637_v37 = vld [vmem:[%s43232_s29 + $0xb8] sm:$0xff]  ;;  %v16688_v38 = vand.u32 4294901760, %v32636_v35 }
0x17db   :  { %v16261_v49 = vand.u32 4294901760, %v16260_v45  ;;  %v15713_v7 = vand.u32 4294901760, %v15712_v4  ;;  %v16691_v13 = vand.u32 4294901760, %v32637_v37  ;;  %v16772_v44 = vsub.f32 %v32634_v34, %v16682_v40 }
0x17dc   :  { %v16254_v24 = vand.u32 4294901760, %v16253_v48  ;;  %39055 = vmatprep.subr.bf16.mxu0 %v42043_v47  ;;  %v15703_v42 = vand.u32 4294901760, %v15702_v46  ;;  %v42046_v59 = vpack.c.bf16 %v16260_v45, %v16253_v48 }
0x17dd   :  { %39057 = vmatpush3.bf16.msra.mxu0 %v42043_v47  ;;  %v16262_v61 = vsub.f32 %v16260_v45, %v16261_v49  ;;  %v15714_v0 = vsub.f32 %v15712_v4, %v15713_v7  ;;  %v16779_v45 = vsub.f32 %v32635_v8, %v16685_v23 }
0x17de   :  { %v15704_v5 = vsub.f32 %v15702_v46, %v15703_v42  ;;  %v16255_v53 = vsub.f32 %v16253_v48, %v16254_v24  ;;  %v42049_v6 = vpack.c.bf16 %v16261_v49, %v16254_v24  ;;  %v16773_v48 = vand.u32 4294901760, %v16772_v44 }
0x17df   :  { %v16263_v9 = vand.u32 4294901760, %v16262_v61  ;;  %v15715_v32 = vand.u32 4294901760, %v15714_v0  ;;  %v16780_v49 = vand.u32 4294901760, %v16779_v45  ;;  %v16786_v24 = vsub.f32 %v32636_v35, %v16688_v38 }
0x17e0   :  { %v15705_v14 = vand.u32 4294901760, %v15704_v5  ;;  %v16256_v17 = vand.u32 4294901760, %v16255_v53  ;;  %v16774_v61 = vsub.f32 %v16772_v44, %v16773_v48 }
0x17e1   :  { %v16781_v5 = vsub.f32 %v16779_v45, %v16780_v49  ;;  %v16787_v53 = vand.u32 4294901760, %v16786_v24 }
0x17e2   :  { %36244 = vmatprep.mubr.f32.mxu1 %v15705_v14  ;;  %v42051_v18 = vpack.c.bf16 %v16263_v9, %v16256_v17  ;;  %v42083_v14 = vpack.c.bf16 %v16691_v13, %v16688_v38  ;;  %v16775_v17 = vand.u32 4294901760, %v16774_v61  ;;  %v42136_v61 = vld [vmem:[%s43238_s0 + $0x8] sm:$0xff] }
0x17e3   :  { %v16782_v15 = vand.u32 4294901760, %v16781_v5  ;;  %v16788_v20 = vsub.f32 %v16786_v24, %v16787_v53 }
0x17e4   :  { %39059 = vmatprep.subr.bf16.mxu0 %v42051_v18 }
0x1803   :  { %v36173_v60 = vpop.f32.mrb[28].mxu1 }
0x1804   :  { %v40126_v12 = vadd.f32 %v36173_v60, %v32626_v50  ;;  %v15071_v10 = vpop.f32.mrb[29].mxu1  ;;  %v16789_v60 = vand.u32 4294901760, %v16788_v20  ;;  %v42150_v20 = vld [vmem:[%s43236_s30 + $0x5] ss:$0 sm:$0xff] }
0x1805   :  { %v40127_v16 = vadd.f32 %v32626_v50, %v15071_v10 }
0x1806   :  { %v15632_v21 = vsel %vm1704_vm1, %v40126_v12, 0 }
0x1807   :  { %v15638_v26 = vand.u32 4294901760, %v15632_v21  ;;  %v15629_v27 = vsel %vm1704_vm1, %v40127_v16, 0 }
0x1808   :  { %v15635_v36 = vand.u32 4294901760, %v15629_v27 }
0x1809   :  { %v15730_v1 = vsub.f32 %v15632_v21, %v15638_v26  ;;  %v32646_v21 = vld [vmem:[%s43202_s7 + $0xa0] sm:$0xff] }
0x180a   :  { %v39030_v28 = vpack.c.bf16 %v15638_v26, %v15635_v36  ;;  %v15723_v22 = vsub.f32 %v15629_v27, %v15635_v36  ;;  %v32647_v26 = vld [vmem:[%s43202_s7 + $0xa8] sm:$0xff]  ;;  %v17764_v36 = vand.u32 4294901760, %v32646_v21 }
0x180b   :  { %v15731_v29 = vand.u32 4294901760, %v15730_v1 }
0x180c   :  { %v15724_v30 = vand.u32 4294901760, %v15723_v22  ;;  %39031 = vmatprep.subr.bf16.mxu1 %v39030_v28  ;;  %v39038_v2 = vpack.c.bf16 %v15730_v1, %v15723_v22 }
0x180d   :  { %39033 = vmatpush3.bf16.xpose.msra.mxu1 %v39030_v28  ;;  %v15732_v58 = vsub.f32 %v15730_v1, %v15731_v29  ;;  %v17767_v1 = vand.u32 4294901760, %v32647_v26 }
0x180e   :  { %v15725_v31 = vsub.f32 %v15723_v22, %v15724_v30  ;;  %v39046_v51 = vpack.c.bf16 %v15731_v29, %v15724_v30  ;;  %v17854_v30 = vsub.f32 %v32646_v21, %v17764_v36 }
0x180f   :  { %v15733_v39 = vand.u32 4294901760, %v15732_v58 }
0x1810   :  { %v15726_v41 = vand.u32 4294901760, %v15725_v31  ;;  %v17855_v58 = vand.u32 4294901760, %v17854_v30 }
0x1812   :  { %v39034_v33 = vpack.c.bf16 %v15733_v39, %v15726_v41  ;;  %v39174_v39 = vpack.c.bf16 %v17767_v1, %v17764_v36  ;;  %v17856_v41 = vsub.f32 %v17854_v30, %v17855_v58 }
0x1814   :  { %36245 = vmatmul.mubr.f32.vlgmr.msra.gmra.mrb[30].mxu1 %v15715_v32  ;;  %39035 = vmatprep.subr.bf16.mxu1 %v39034_v33 }
0x1815   :  { %39037 = vmatpush3.bf16.xpose.msra.mxu1 %v39034_v33  ;;  %36251 = vmatprep.mubr.f32.mxu1 %v42040_v11 }
0x1816   :  { %39039 = vmatprep.subr.bf16.mxu1 %v39038_v2 }
0x181c   :  { %36252 = vmatmul.mubr.f32.vlgmr.msra.gmra.mrb[30].mxu1 %v42058_v19 }
0x181d   :  { %39041 = vmatpush3.bf16.xpose.msra.mxu1 %v39038_v2  ;;  %36258 = vmatprep.mubr.f32.mxu1 %v15702_v46  ;;  %v42078_v46 = vpack.c.bf16 %v16685_v23, %v16682_v40  ;;  %v17861_v2 = vsub.f32 %v32647_v26, %v17767_v1  ;;  %v17857_v40 = vand.u32 4294901760, %v17856_v41 }
0x181e   :  { %39043 = vmatprep.subr.bf16.mxu1 %v39030_v28 }
0x181f   :  { %v17862_v0 = vand.u32 4294901760, %v17861_v2 }
0x1821   :  { %v17863_v32 = vsub.f32 %v17861_v2, %v17862_v0 }
0x1823   :  { %v17864_v23 = vand.u32 4294901760, %v17863_v32 }
0x1824   :  { %36259 = vmatmul.mubr.f32.vlgmr.msra.gmra.mrb[30].mxu1 %v15712_v4  ;;  %v39110_v4 = vpack.c.bf16 %v16780_v49, %v16773_v48  ;;  %v39206_v49 = vpack.c.bf16 %v17862_v0, %v17855_v58 }
0x1825   :  { %39045 = vmatpush3.bf16.xpose.msra.mxu1 %v39030_v28  ;;  %36265 = vmatprep.mubr.f32.mxu1 %v15703_v42  ;;  %v16793_v42 = vsub.f32 %v32637_v37, %v16691_v13  ;;  %v39182_v38 = vpack.c.bf16 %v17864_v23, %v17857_v40 }
0x1826   :  { %39047 = vmatprep.subr.bf16.mxu1 %v39046_v51 }
0x1827   :  { %v16794_v9 = vand.u32 4294901760, %v16793_v42  ;;  %v39098_v16 = vpack.c.bf16 %v16793_v42, %v16786_v24 }
0x1829   :  { %v16795_v50 = vsub.f32 %v16793_v42, %v16794_v9  ;;  %v39114_v27 = vpack.c.bf16 %v16794_v9, %v16787_v53  ;;  %v42142_v9 = vld [vmem:[%s43238_s0] sm:$0xff] }
0x182b   :  { %v16796_v12 = vand.u32 4294901760, %v16795_v50 }
0x182c   :  { %36266 = vmatmul.mubr.f32.vlgmr.msra.gmra.mrb[30].mxu1 %v15713_v7  ;;  %v32648_v7 = vld [vmem:[%s43202_s7 + $0xb0] sm:$0xff] }
0x182d   :  { %39049 = vmatpush3.bf16.xpose.msra.mxu1 %v39046_v51  ;;  %36272 = vmatprep.mubr.f32.mxu1 %v42040_v11  ;;  %v39090_v10 = vpack.c.bf16 %v16796_v12, %v16789_v60  ;;  %v17770_v22 = vand.u32 4294901760, %v32648_v7  ;;  %v32651_v12 = vld [vmem:[%s43203_s8 + $0x5] ss:$0 sm:$0xff] }
0x182e   :  { %39051 = vmatprep.subr.bf16.mxu1 %v39030_v28 }
0x182f   :  { %v17868_v31 = vsub.f32 %v32648_v7, %v17770_v22 }
0x1831   :  { %v17869_v33 = vand.u32 4294901760, %v17868_v31 }
0x1833   :  { %v17870_v35 = vsub.f32 %v17868_v31, %v17869_v33 }
0x1834   :  { %36273 = vmatmul.mubr.f32.vlgmr.msra.gmra.mrb[30].mxu1 %v42058_v19 }
0x1835   :  { %39053 = vmatpush3.bf16.xpose.msra.mxu1 %v39030_v28  ;;  %36279 = vmatprep.mubr.f32.mxu1 %v42040_v11  ;;  %v39086_v11 = vpack.c.bf16 %v16782_v15, %v16775_v17  ;;  %v32649_v28 = vld [vmem:[%s43202_s7 + $0xb8] sm:$0xff]  ;;  %v17871_v13 = vand.u32 4294901760, %v17870_v35 }
0x1836   :  { %39079 = vmatprep.subr.bf16.mxu1 %v42078_v46  ;;  %v17773_v29 = vand.u32 4294901760, %v32649_v28 }
0x1838   :  { %v17875_v51 = vsub.f32 %v32649_v28, %v17773_v29  ;;  %v39178_v8 = vpack.c.bf16 %v17773_v29, %v17770_v22 }
0x183a   :  { %v17876_v34 = vand.u32 4294901760, %v17875_v51  ;;  %v39194_v48 = vpack.c.bf16 %v17875_v51, %v17868_v31 }
0x183c   :  { %36280 = vmatmul.mubr.f32.vlgmr.msra.gmra.mrb[30].mxu1 %v42058_v19  ;;  %v39094_v19 = vpack.c.bf16 %v16779_v45, %v16772_v44  ;;  %v17877_v37 = vsub.f32 %v17875_v51, %v17876_v34  ;;  %v39210_v24 = vpack.c.bf16 %v17876_v34, %v17869_v33 }
0x183d   :  { %39081 = vmatpush3.bf16.msra.mxu1 %v42078_v46  ;;  %36332 = vmatprep.mubr.f32.mxu1 %v41947_v62 }
0x183e   :  { %39083 = vmatprep.subr.bf16.mxu1 %v42083_v14  ;;  %v17878_v44 = vand.u32 4294901760, %v17877_v37 }
0x1840   :  { %v39186_v45 = vpack.c.bf16 %v17878_v44, %v17871_v13 }
0x1841   :  { %39085 = vmatpush3.bf16.msra.mxu1 %v42083_v14 }
0x1842   :  { %39087 = vmatprep.subr.bf16.mxu1 %v39086_v11 }
0x1844   :  { %36333 = vmatmul.mubr.f32.vlgmr.msra.gmra.mrb[32].mxu1 %v41949_v3 }
0x1845   :  { %39089 = vmatpush3.bf16.msra.mxu1 %v39086_v11  ;;  %36343 = vmatprep.mubr.f32.mxu1 %v41929_v54 }
0x1846   :  { %39091 = vmatprep.subr.bf16.mxu1 %v39090_v10 }
0x1849   :  { %39093 = vmatpush3.bf16.msra.mxu1 %v39090_v10 }
0x184a   :  { %39095 = vmatprep.subr.bf16.mxu1 %v39094_v19 }
0x184c   :  { %36344 = vmatmul.mubr.f32.vlgmr.msra.gmra.mrb[32].mxu1 %v41925_v63 }
0x184d   :  { %39097 = vmatpush3.bf16.msra.mxu1 %v39094_v19  ;;  %36354 = vmatprep.mubr.f32.mxu1 %v41935_v43 }
0x184e   :  { %39099 = vmatprep.subr.bf16.mxu1 %v39098_v16 }
0x1851   :  { %39101 = vmatpush3.bf16.msra.mxu1 %v39098_v16 }
0x1852   :  { %39103 = vmatprep.subr.bf16.mxu1 %v42078_v46 }
0x1854   :  { %36355 = vmatmul.mubr.f32.vlgmr.msra.gmra.mrb[32].mxu1 %v41932_v55 }
0x1855   :  { %39105 = vmatpush3.bf16.msra.mxu1 %v42078_v46  ;;  %36365 = vmatprep.mubr.f32.mxu1 %v41941_v57 }
0x1856   :  { %39107 = vmatprep.subr.bf16.mxu1 %v42083_v14 }
0x1859   :  { %39109 = vmatpush3.bf16.msra.mxu1 %v42083_v14 }
0x185a   :  { %39111 = vmatprep.subr.bf16.mxu1 %v39110_v4 }
0x185c   :  { %36366 = vmatmul.mubr.f32.vlgmr.msra.gmra.mrb[32].mxu1 %v41938_v56 }
0x185d   :  { %39113 = vmatpush3.bf16.msra.mxu1 %v39110_v4  ;;  %36376 = vmatprep.mubr.f32.mxu1 %v41929_v54 }
0x185e   :  { %39115 = vmatprep.subr.bf16.mxu1 %v39114_v27 }
0x1861   :  { %39117 = vmatpush3.bf16.msra.mxu1 %v39114_v27 }
0x1862   :  { %39119 = vmatprep.subr.bf16.mxu1 %v42078_v46 }
0x1864   :  { %36377 = vmatmul.mubr.f32.vlgmr.msra.gmra.mrb[32].mxu1 %v41925_v63 }
0x1865   :  { %39121 = vmatpush3.bf16.msra.mxu1 %v42078_v46  ;;  %36387 = vmatprep.mubr.f32.mxu1 %v41929_v54  ;;  %v39190_v46 = vpack.c.bf16 %v17861_v2, %v17854_v30 }
0x1866   :  { %39123 = vmatprep.subr.bf16.mxu1 %v42083_v14 }
0x1869   :  { %39125 = vmatpush3.bf16.msra.mxu1 %v42083_v14 }
0x186a   :  { %39175 = vmatprep.subr.bf16.mxu1 %v39174_v39 }
0x186c   :  { %36388 = vmatmul.mubr.f32.vlgmr.msra.gmra.mrb[32].mxu1 %v41925_v63 }
0x186d   :  { %39177 = vmatpush3.bf16.msra.mxu1 %v39174_v39  ;;  %36464 = vmatprep.mubr.f32.mxu1 %v41947_v62 }
0x186e   :  { %39179 = vmatprep.subr.bf16.mxu1 %v39178_v8 }
0x1871   :  { %39181 = vmatpush3.bf16.msra.mxu1 %v39178_v8 }
0x1872   :  { %39183 = vmatprep.subr.bf16.mxu1 %v39182_v38 }
0x1874   :  { %36465 = vmatmul.mubr.f32.vlgmr.msra.gmra.mrb[34].mxu1 %v41949_v3 }
0x1875   :  { %39185 = vmatpush3.bf16.msra.mxu1 %v39182_v38  ;;  %36475 = vmatprep.mubr.f32.mxu1 %v41929_v54 }
0x1876   :  { %39187 = vmatprep.subr.bf16.mxu1 %v39186_v45 }
0x1879   :  { %39189 = vmatpush3.bf16.msra.mxu1 %v39186_v45 }
0x187a   :  { %39191 = vmatprep.subr.bf16.mxu1 %v39190_v46 }
0x187c   :  { %36476 = vmatmul.mubr.f32.vlgmr.msra.gmra.mrb[34].mxu1 %v41925_v63 }
0x187d   :  { %39193 = vmatpush3.bf16.msra.mxu1 %v39190_v46  ;;  %36486 = vmatprep.mubr.f32.mxu1 %v41935_v43 }
0x187e   :  { %39195 = vmatprep.subr.bf16.mxu1 %v39194_v48 }
0x1881   :  { %39197 = vmatpush3.bf16.msra.mxu1 %v39194_v48 }
0x1882   :  { %39199 = vmatprep.subr.bf16.mxu1 %v39174_v39 }
0x1884   :  { %36487 = vmatmul.mubr.f32.vlgmr.msra.gmra.mrb[34].mxu1 %v41932_v55 }
0x1885   :  { %39201 = vmatpush3.bf16.msra.mxu1 %v39174_v39  ;;  %36497 = vmatprep.mubr.f32.mxu1 %v41941_v57 }
0x1886   :  { %39203 = vmatprep.subr.bf16.mxu1 %v39178_v8 }
0x1889   :  { %39205 = vmatpush3.bf16.msra.mxu1 %v39178_v8 }
0x188a   :  { %39207 = vmatprep.subr.bf16.mxu1 %v39206_v49 }
0x188c   :  { %36498 = vmatmul.mubr.f32.vlgmr.msra.gmra.mrb[34].mxu1 %v41938_v56 }
0x188d   :  { %39209 = vmatpush3.bf16.msra.mxu1 %v39206_v49  ;;  %36508 = vmatprep.mubr.f32.mxu1 %v41929_v54 }
0x188e   :  { %39211 = vmatprep.subr.bf16.mxu1 %v39210_v24 }
0x1891   :  { %39213 = vmatpush3.bf16.msra.mxu1 %v39210_v24 }
0x1892   :  { %39215 = vmatprep.subr.bf16.mxu1 %v39174_v39 }
0x1894   :  { %36509 = vmatmul.mubr.f32.vlgmr.msra.gmra.mrb[34].mxu1 %v41925_v63 }
0x1895   :  { %39217 = vmatpush3.bf16.msra.mxu1 %v39174_v39  ;;  %36519 = vmatprep.mubr.f32.mxu1 %v41929_v54 }
0x1896   :  { %39219 = vmatprep.subr.bf16.mxu1 %v39178_v8 }
0x1899   :  { %39221 = vmatpush3.bf16.msra.mxu1 %v39178_v8 }
0x189c   :  { %36520 = vmatmul.mubr.f32.vlgmr.msra.gmra.mrb[34].mxu1 %v41925_v63 }
0x190f   :  { %v36281_v42 = vpop.f32.mrb[30].mxu1 }
0x1910   :  { %v40130_v5 = vadd.f32 %v42136_v61, %v36281_v42  ;;  %v16126_v53 = vpop.f32.mrb[31].mxu1 }
0x1911   :  { %v40131_v14 = vadd.f32 %v42142_v9, %v16126_v53 }
0x1912   :  { %v16139_v17 = vsel %vm2219_vm2, %v40130_v5, -inf }
0x1913   :  { %16140 = vmax.xlane.f32.xlu1 %v16139_v17  ;;  %v16136_v15 = vsel %vm2219_vm2, %v40131_v14, -inf }
0x1914   :  { %16137 = vmax.xlane.f32.xlu0 %v16136_v15 }
0x193f   :  { %v36389_v50 = vpop.f32.mrb[32].mxu1 }
0x1940   :  { %v42153_v11 = vadd.f32 %v36389_v50, %v42150_v20  ;;  %v42155_v60 = vpop.f32.mrb[33].mxu1 }
0x196f   :  { %v36521_v10 = vpop.f32.mrb[34].mxu1 }
0x1970   :  { %v40136_v19 = vadd.f32 %v36521_v10, %v32651_v12  ;;  %v18281_v16 = vpop.f32.mrb[35].mxu1 }
0x1971   :  { %v40137_v4 = vadd.f32 %v32651_v12, %v18281_v16 }
0x1972   :  { %v18837_v21 = vand.u32 4294901760, %v40136_v19 }
0x1973   :  { %v18834_v26 = vand.u32 4294901760, %v40137_v4 }
0x1974   :  { %v18929_v27 = vsub.f32 %v40136_v19, %v18837_v21  ;;  %v32640_v19 = vld [vmem:[%s43233_s1 + $0xa0] sm:$0xff] }
0x1975   :  { %v42160_v36 = vpack.c.bf16 %v18837_v21, %v18834_v26  ;;  %v18922_v1 = vsub.f32 %v40137_v4, %v18834_v26  ;;  %v17223_v16 = vand.u32 4294901760, %v32640_v19  ;;  %v32643_v21 = vld [vmem:[%s43233_s1 + $0xb8] sm:$0xff] }
0x1976   :  { %v18930_v7 = vand.u32 4294901760, %v18929_v27 }
0x1977   :  { %v18923_v28 = vand.u32 4294901760, %v18922_v1  ;;  %39247 = vmatprep.subr.bf16.mxu1 %v42160_v36  ;;  %v42163_v22 = vpack.c.bf16 %v18929_v27, %v18922_v1 }
0x1978   :  { %39249 = vmatpush3.bf16.msra.mxu1 %v42160_v36  ;;  %v18931_v29 = vsub.f32 %v18929_v27, %v18930_v7  ;;  %v17232_v27 = vand.u32 4294901760, %v32643_v21 }
0x1979   :  { %v18924_v30 = vsub.f32 %v18922_v1, %v18923_v28  ;;  %v42166_v2 = vpack.c.bf16 %v18930_v7, %v18923_v28  ;;  %v17313_v1 = vsub.f32 %v32640_v19, %v17223_v16 }
0x197a   :  { %v18932_v58 = vand.u32 4294901760, %v18931_v29 }
0x197b   :  { %v18925_v0 = vand.u32 4294901760, %v18924_v30  ;;  %v17314_v29 = vand.u32 4294901760, %v17313_v1 }
0x197d   :  { %v42168_v31 = vpack.c.bf16 %v18932_v58, %v18925_v0  ;;  %v17334_v0 = vsub.f32 %v32643_v21, %v17232_v27 }
0x197f   :  { %39251 = vmatprep.subr.bf16.mxu1 %v42168_v31 }
0x19a0   :  { %v16141_v51 = vpop.xlane.xlu1 %16140 }
0x19a1   :  { %v16143_v39 = vsub.f32 %v40130_v5, %v16141_v51  ;;  %v16138_v41 = vpop.xlane.xlu0 %16137  ;;  %v17315_v51 = vsub.f32 %v17313_v1, %v17314_v29 }
0x19a2   :  { %v16142_v32 = vsub.f32 %v40131_v14, %v16138_v41  ;;  %v17335_v41 = vand.u32 4294901760, %v17334_v0 }
0x19a3   :  { %v16146_v33 = vmul.f32 1.442695, %v16143_v39 }
0x19a4   :  { %v16144_v34 = vmul.f32 1.442695, %v16142_v32 }
0x19a5   :  { %40865 = vpow2.f32 %v16146_v33  ;;  %v17316_v33 = vand.u32 4294901760, %v17315_v51 }
0x19a6   :  { %40867 = vpow2.f32 %v16144_v34 }
0x19af   :  { %v40866_v8 = vpop.eup %40865 }
0x19b0   :  { %v40868_v40 = vpop.eup %40867  ;;  %v16151_v23 = vsel %vm2219_vm2, %v40866_v8, 0.0 }
0x19b1   :  { %16152 = vadd.xlane.f32.xlu1 %v16151_v23  ;;  %v16148_v35 = vsel %vm2219_vm2, %v40868_v40, 0.0 }
0x19b2   :  { %16149 = vadd.xlane.f32.xlu0 %v16148_v35 }
0x1a3e   :  { %v16153_v37 = vpop.xlane.xlu1 %16152 }
0x1a3f   :  { %40869 = vrcp.f32 %v16153_v37  ;;  %v16150_v38 = vpop.xlane.xlu0 %16149 }
0x1a40   :  { %40871 = vrcp.f32 %v16150_v38 }
0x1a49   :  { %v40870_v13 = vpop.eup %40869 }
0x1a4a   :  { %v40872_v44 = vpop.eup %40871  ;;  %v16157_v45 = vmul.f32 %v40870_v13, %v40866_v8 }
0x1a4b   :  { %v16156_v46 = vmul.f32 %v40872_v44, %v40868_v40  ;;  %v17336_v40 = vsub.f32 %v17334_v0, %v17335_v41  ;;  %v40133_v44 = vadd.f32 %v42150_v20, %v42155_v60 }
0x1a4c   :  { %v16162_v48 = vsel %vm2219_vm2, %v16157_v45, 0 }
0x1a4d   :  { %v16159_v49 = vsel %vm2219_vm2, %v16156_v46, 0  ;;  %v16241_v24 = vand.u32 4294901760, %v16162_v48  ;;  %v17337_v37 = vand.u32 4294901760, %v17336_v40  ;;  %v18292_v46 = vsel %vm1704_vm1, %v40133_v44, 0 }
0x1a4e   :  { %v16231_v42 = vand.u32 4294901760, %v16159_v49 }
0x1a4f   :  { %v16242_v5 = vsub.f32 %v16162_v48, %v16241_v24 }
0x1a50   :  { %v16232_v53 = vsub.f32 %v16159_v49, %v16231_v42  ;;  %v42206_v49 = vand.u32 4294901760, %v18292_v46 }
0x1a51   :  { %v16243_v14 = vand.u32 4294901760, %v16242_v5 }
0x1a52   :  { %v16233_v17 = vand.u32 4294901760, %v16232_v53  ;;  %v18371_v20 = vsub.f32 %v18292_v46, %v42206_v49 }
0x1a53   :  { %v16244_v15 = vsub.f32 %v16242_v5, %v16243_v14 }
0x1a54   :  { %v16234_v50 = vsub.f32 %v16232_v53, %v16233_v17  ;;  %v18372_v60 = vand.u32 4294901760, %v18371_v20 }
0x1a55   :  { %v16245_v10 = vand.u32 4294901760, %v16244_v15 }
0x1a56   :  { %v16235_v12 = vand.u32 4294901760, %v16234_v50 }
0x1a58   :  { %36286 = vmatprep.mubr.f32.mxu0 %v16235_v12 }
0x1a59   :  { %36287 = vmatmul.mubr.f32.vlgmr.msra.gmra.mrb[24].mxu0 %v16245_v10 }
0x1a5a   :  { %39061 = vmatpush3.bf16.msra.mxu0 %v42051_v18  ;;  %36293 = vmatprep.mubr.f32.mxu0 %v16231_v42  ;;  %v32641_v18 = vld [vmem:[%s43233_s1 + $0xa8] sm:$0xff] }
0x1a5b   :  { %39063 = vmatprep.subr.bf16.mxu0 %v42046_v59  ;;  %v17226_v4 = vand.u32 4294901760, %v32641_v18 }
0x1a5d   :  { %v17320_v7 = vsub.f32 %v32641_v18, %v17226_v4  ;;  %v39126_v28 = vpack.c.bf16 %v17226_v4, %v17223_v16 }
0x1a5f   :  { %v17321_v30 = vand.u32 4294901760, %v17320_v7  ;;  %v39142_v38 = vpack.c.bf16 %v17320_v7, %v17313_v1 }
0x1a61   :  { %36294 = vmatmul.mubr.f32.vlgmr.msra.gmra.mrb[24].mxu0 %v16241_v24  ;;  %v17322_v39 = vsub.f32 %v17320_v7, %v17321_v30  ;;  %v39158_v45 = vpack.c.bf16 %v17321_v30, %v17314_v29 }
0x1a62   :  { %39065 = vmatpush3.bf16.msra.mxu0 %v42046_v59  ;;  %36300 = vmatprep.mubr.f32.mxu0 %v16232_v53  ;;  %v32642_v59 = vld [vmem:[%s43233_s1 + $0xb0] sm:$0xff] }
0x1a63   :  { %39067 = vmatprep.subr.bf16.mxu0 %v42043_v47  ;;  %v17229_v26 = vand.u32 4294901760, %v32642_v59  ;;  %v17323_v34 = vand.u32 4294901760, %v17322_v39 }
0x1a65   :  { %v17327_v58 = vsub.f32 %v32642_v59, %v17229_v26  ;;  %v39130_v32 = vpack.c.bf16 %v17232_v27, %v17229_v26  ;;  %v39134_v23 = vpack.c.bf16 %v17323_v34, %v17316_v33 }
0x1a67   :  { %v39146_v13 = vpack.c.bf16 %v17334_v0, %v17327_v58 }
0x1a69   :  { %36301 = vmatmul.mubr.f32.vlgmr.msra.gmra.mrb[24].mxu0 %v16242_v5 }
0x1a6a   :  { %39069 = vmatpush3.bf16.msra.mxu0 %v42043_v47  ;;  %36307 = vmatprep.mubr.f32.mxu0 %v16233_v17  ;;  %v32645_v17 = vld [vmem:[%s43237_s23 + $0x5] ss:$0 sm:$0xff] }
0x1a6b   :  { %39071 = vmatprep.subr.bf16.mxu0 %v42049_v6 }
0x1a71   :  { %36308 = vmatmul.mubr.f32.vlgmr.msra.gmra.mrb[24].mxu0 %v16243_v14  ;;  %v18295_v14 = vsel %vm1704_vm1, %v42153_v11, 0 }
0x1a72   :  { %39073 = vmatpush3.bf16.msra.mxu0 %v42049_v6  ;;  %36314 = vmatprep.mubr.f32.mxu0 %v16231_v42  ;;  %v17328_v6 = vand.u32 4294901760, %v17327_v58  ;;  %v18380_v15 = vand.u32 4294901760, %v18295_v14 }
0x1a73   :  { %39075 = vmatprep.subr.bf16.mxu0 %v42043_v47 }
0x1a74   :  { %v17329_v8 = vsub.f32 %v17327_v58, %v17328_v6  ;;  %v39162_v48 = vpack.c.bf16 %v17335_v41, %v17328_v6  ;;  %v18381_v18 = vsub.f32 %v18295_v14, %v18380_v15 }
0x1a76   :  { %v17330_v35 = vand.u32 4294901760, %v17329_v8  ;;  %v18382_v27 = vand.u32 4294901760, %v18381_v18 }
0x1a78   :  { %v18383_v58 = vsub.f32 %v18381_v18, %v18382_v27 }
0x1a79   :  { %36315 = vmatmul.mubr.f32.vlgmr.msra.gmra.mrb[24].mxu0 %v16241_v24 }
0x1a7a   :  { %39077 = vmatpush3.bf16.msra.mxu0 %v42043_v47  ;;  %36321 = vmatprep.mubr.f32.mxu0 %v16231_v42  ;;  %v39138_v47 = vpack.c.bf16 %v17337_v37, %v17330_v35  ;;  %v18384_v41 = vand.u32 4294901760, %v18383_v58 }
0x1a7b   :  { %39127 = vmatprep.subr.bf16.mxu0 %v39126_v28 }
0x1a81   :  { %36322 = vmatmul.mubr.f32.vlgmr.msra.gmra.mrb[24].mxu0 %v16241_v24  ;;  %v18373_v24 = vsub.f32 %v18371_v20, %v18372_v60 }
0x1a82   :  { %39129 = vmatpush3.bf16.msra.mxu0 %v39126_v28  ;;  %36398 = vmatprep.mubr.f32.mxu0 %v41947_v62 }
0x1a83   :  { %39131 = vmatprep.subr.bf16.mxu0 %v39130_v32  ;;  %v18374_v42 = vand.u32 4294901760, %v18373_v24 }
0x1a86   :  { %39133 = vmatpush3.bf16.msra.mxu0 %v39130_v32 }
0x1a87   :  { %39135 = vmatprep.subr.bf16.mxu0 %v39134_v23 }
0x1a89   :  { %36399 = vmatmul.mubr.f32.vlgmr.msra.gmra.mrb[26].mxu0 %v41949_v3 }
0x1a8a   :  { %39137 = vmatpush3.bf16.msra.mxu0 %v39134_v23  ;;  %36409 = vmatprep.mubr.f32.mxu0 %v41929_v54 }
0x1a8b   :  { %39139 = vmatprep.subr.bf16.mxu0 %v39138_v47 }
0x1a8e   :  { %39141 = vmatpush3.bf16.msra.mxu0 %v39138_v47 }
0x1a8f   :  { %39143 = vmatprep.subr.bf16.mxu0 %v39142_v38 }
0x1a91   :  { %36410 = vmatmul.mubr.f32.vlgmr.msra.gmra.mrb[26].mxu0 %v41925_v63 }
0x1a92   :  { %39145 = vmatpush3.bf16.msra.mxu0 %v39142_v38  ;;  %36420 = vmatprep.mubr.f32.mxu0 %v41935_v43 }
0x1a93   :  { %39147 = vmatprep.subr.bf16.mxu0 %v39146_v13 }
0x1a96   :  { %39149 = vmatpush3.bf16.msra.mxu0 %v39146_v13 }
0x1a97   :  { %39151 = vmatprep.subr.bf16.mxu0 %v39126_v28 }
0x1a99   :  { %36421 = vmatmul.mubr.f32.vlgmr.msra.gmra.mrb[26].mxu0 %v41932_v55 }
0x1a9a   :  { %39153 = vmatpush3.bf16.msra.mxu0 %v39126_v28  ;;  %36431 = vmatprep.mubr.f32.mxu0 %v41941_v57 }
0x1a9b   :  { %39155 = vmatprep.subr.bf16.mxu0 %v39130_v32 }
0x1a9e   :  { %39157 = vmatpush3.bf16.msra.mxu0 %v39130_v32 }
0x1a9f   :  { %39159 = vmatprep.subr.bf16.mxu0 %v39158_v45 }
0x1aa1   :  { %36432 = vmatmul.mubr.f32.vlgmr.msra.gmra.mrb[26].mxu0 %v41938_v56 }
0x1aa2   :  { %39161 = vmatpush3.bf16.msra.mxu0 %v39158_v45  ;;  %36442 = vmatprep.mubr.f32.mxu0 %v41929_v54 }
0x1aa3   :  { %39163 = vmatprep.subr.bf16.mxu0 %v39162_v48 }
0x1aa6   :  { %39165 = vmatpush3.bf16.msra.mxu0 %v39162_v48 }
0x1aa7   :  { %39167 = vmatprep.subr.bf16.mxu0 %v39126_v28 }
0x1aa9   :  { %36443 = vmatmul.mubr.f32.vlgmr.msra.gmra.mrb[26].mxu0 %v41925_v63 }
0x1aaa   :  { %39169 = vmatpush3.bf16.msra.mxu0 %v39126_v28  ;;  %36453 = vmatprep.mubr.f32.mxu0 %v41929_v54 }
0x1aab   :  { %39171 = vmatprep.subr.bf16.mxu0 %v39130_v32 }
0x1aae   :  { %39173 = vmatpush3.bf16.msra.mxu0 %v39130_v32 }
0x1ab1   :  { %36454 = vmatmul.mubr.f32.vlgmr.msra.gmra.mrb[26].mxu0 %v41925_v63 }
0x1ab2   :  { %36526 = vmatprep.mubr.f32.mxu0 %v18374_v42 }
0x1b54   :  { %v42214_v5 = vpop.f32.mrb[24].mxu0 }
0x1b55   :  { %v42216_v53 = vpop.f32.mrb[25].mxu0 }
0x1b84   :  { %v36455_v50 = vpop.f32.mrb[26].mxu0 }
0x1b85   :  { %v40134_v12 = vadd.f32 %v36455_v50, %v32645_v17  ;;  %v17740_v10 = vpop.f32.mrb[27].mxu0 }
0x1b86   :  { %v40135_v19 = vadd.f32 %v32645_v17, %v17740_v10 }
0x1b87   :  { %v18301_v16 = vsel %vm1704_vm1, %v40134_v12, 0 }
0x1b88   :  { %v18307_v4 = vand.u32 4294901760, %v18301_v16  ;;  %v18298_v59 = vsel %vm1704_vm1, %v40135_v19, 0 }
0x1b89   :  { %v18304_v21 = vand.u32 4294901760, %v18298_v59 }
0x1b8a   :  { %v18399_v26 = vsub.f32 %v18301_v16, %v18307_v4 }
0x1b8b   :  { %v39222_v1 = vpack.c.bf16 %v18307_v4, %v18304_v21  ;;  %v18392_v11 = vsub.f32 %v18298_v59, %v18304_v21 }
0x1b8c   :  { %v18400_v7 = vand.u32 4294901760, %v18399_v26 }
0x1b8d   :  { %v18393_v28 = vand.u32 4294901760, %v18392_v11  ;;  %39223 = vmatprep.subr.bf16.mxu0 %v39222_v1  ;;  %v39230_v29 = vpack.c.bf16 %v18399_v26, %v18392_v11 }
0x1b8e   :  { %39225 = vmatpush3.bf16.xpose.msra.mxu0 %v39222_v1  ;;  %v18401_v30 = vsub.f32 %v18399_v26, %v18400_v7 }
0x1b8f   :  { %v18394_v0 = vsub.f32 %v18392_v11, %v18393_v28  ;;  %v39238_v51 = vpack.c.bf16 %v18400_v7, %v18393_v28  ;;  %v32656_v7 = vld [vmem:[%s43232_s29 + $0xd8] sm:$0xff] }
0x1b90   :  { %v18402_v39 = vand.u32 4294901760, %v18401_v30 }
0x1b91   :  { %v18395_v6 = vand.u32 4294901760, %v18394_v0 }
0x1b93   :  { %v39226_v32 = vpack.c.bf16 %v18402_v39, %v18395_v6 }
0x1b95   :  { %36527 = vmatmul.mubr.f32.vlgmr.msra.gmra.mrb[28].mxu0 %v18384_v41  ;;  %39227 = vmatprep.subr.bf16.mxu0 %v39226_v32 }
0x1b96   :  { %39229 = vmatpush3.bf16.xpose.msra.mxu0 %v39226_v32  ;;  %36533 = vmatprep.mubr.f32.mxu0 %v42206_v49 }
0x1b97   :  { %39231 = vmatprep.subr.bf16.mxu0 %v39230_v29 }
0x1b9d   :  { %36534 = vmatmul.mubr.f32.vlgmr.msra.gmra.mrb[28].mxu0 %v18380_v15 }
0x1b9e   :  { %39233 = vmatpush3.bf16.xpose.msra.mxu0 %v39230_v29  ;;  %36540 = vmatprep.mubr.f32.mxu0 %v18371_v20  ;;  %v20350_v29 = vand.u32 4294901760, %v32656_v7 }
0x1b9f   :  { %39235 = vmatprep.subr.bf16.mxu0 %v39222_v1 }
0x1ba0   :  { %v20452_v41 = vsub.f32 %v32656_v7, %v20350_v29 }
0x1ba5   :  { %36541 = vmatmul.mubr.f32.vlgmr.msra.gmra.mrb[28].mxu0 %v18381_v18 }
0x1ba6   :  { %39237 = vmatpush3.bf16.xpose.msra.mxu0 %v39222_v1  ;;  %36547 = vmatprep.mubr.f32.mxu0 %v18372_v60 }
0x1ba7   :  { %39239 = vmatprep.subr.bf16.mxu0 %v39238_v51 }
0x1bad   :  { %36548 = vmatmul.mubr.f32.vlgmr.msra.gmra.mrb[28].mxu0 %v18382_v27  ;;  %v32653_v27 = vld [vmem:[%s43232_s29 + $0xc0] sm:$0xff] }
0x1bae   :  { %39241 = vmatpush3.bf16.xpose.msra.mxu0 %v39238_v51  ;;  %36554 = vmatprep.mubr.f32.mxu0 %v42206_v49 }
0x1baf   :  { %39243 = vmatprep.subr.bf16.mxu0 %v39222_v1 }
0x1bb5   :  { %36555 = vmatmul.mubr.f32.vlgmr.msra.gmra.mrb[28].mxu0 %v18380_v15 }
0x1bb6   :  { %39245 = vmatpush3.bf16.xpose.msra.mxu0 %v39222_v1  ;;  %36561 = vmatprep.mubr.f32.mxu0 %v42206_v49  ;;  %v20341_v1 = vand.u32 4294901760, %v32653_v27 }
0x1bb8   :  { %v20431_v30 = vsub.f32 %v32653_v27, %v20341_v1 }
0x1bba   :  { %v20432_v51 = vand.u32 4294901760, %v20431_v30 }
0x1bbd   :  { %36562 = vmatmul.mubr.f32.vlgmr.msra.gmra.mrb[28].mxu0 %v18380_v15 }
0x1c90   :  { %v36563_v33 = vpop.f32.mrb[28].mxu0 }
0x1c91   :  { %v40138_v34 = vadd.f32 %v42136_v61, %v36563_v33  ;;  %v18795_v8 = vpop.f32.mrb[29].mxu0 }
0x1c92   :  { %v40139_v40 = vadd.f32 %v42142_v9, %v18795_v8 }
0x1c93   :  { %v18808_v23 = vsel %vm2219_vm2, %v40138_v34, -inf }
0x1c94   :  { %18809 = vmax.xlane.f32.xlu1 %v18808_v23  ;;  %v18805_v35 = vsel %vm2219_vm2, %v40139_v40, -inf }
0x1c95   :  { %18806 = vmax.xlane.f32.xlu0 %v18805_v35 }
0x1d21   :  { %v18810_v37 = vpop.xlane.xlu1 %18809 }
0x1d22   :  { %v18812_v47 = vsub.f32 %v40138_v34, %v18810_v37  ;;  %v18807_v38 = vpop.xlane.xlu0 %18806  ;;  %v20453_v34 = vand.u32 4294901760, %v20452_v41 }
0x1d23   :  { %v18811_v13 = vsub.f32 %v40139_v40, %v18807_v38 }
0x1d24   :  { %v18815_v44 = vmul.f32 1.442695, %v18812_v47  ;;  %v20454_v37 = vsub.f32 %v20452_v41, %v20453_v34 }
0x1d25   :  { %v18813_v45 = vmul.f32 1.442695, %v18811_v13 }
0x1d26   :  { %40873 = vpow2.f32 %v18815_v44  ;;  %v20455_v38 = vand.u32 4294901760, %v20454_v37 }
0x1d27   :  { %40875 = vpow2.f32 %v18813_v45 }
0x1d30   :  { %v40874_v46 = vpop.eup %40873 }
0x1d31   :  { %v40876_v48 = vpop.eup %40875  ;;  %v18820_v61 = vsel %vm2219_vm2, %v40874_v46, 0.0 }
0x1d32   :  { %18821 = vadd.xlane.f32.xlu1 %v18820_v61  ;;  %v18817_v9 = vsel %vm2219_vm2, %v40876_v48, 0.0  ;;  %v32666_v61 = vld [vmem:[%s43202_s7 + $0xc8] sm:$0xff] }
0x1d33   :  { %18818 = vadd.xlane.f32.xlu0 %v18817_v9 }
0x1dbf   :  { %v18822_v49 = vpop.xlane.xlu1 %18821 }
0x1dc0   :  { %40877 = vrcp.f32 %v18822_v49  ;;  %v18819_v20 = vpop.xlane.xlu0 %18818 }
0x1dc1   :  { %40879 = vrcp.f32 %v18819_v20  ;;  %v21426_v20 = vand.u32 4294901760, %v32666_v61 }
0x1dca   :  { %v40878_v60 = vpop.eup %40877 }
0x1dcb   :  { %v40880_v24 = vpop.eup %40879  ;;  %v18826_v42 = vmul.f32 %v40878_v60, %v40874_v46  ;;  %v32667_v60 = vld [vmem:[%s43202_s7 + $0xd0] sm:$0xff] }
0x1dcc   :  { %v18825_v14 = vmul.f32 %v40880_v24, %v40876_v48  ;;  %v32665_v48 = vld [vmem:[%s43202_s7 + $0xc0] sm:$0xff]  ;;  %v32668_v24 = vld [vmem:[%s43202_s7 + $0xd8] sm:$0xff] }
0x1dcd   :  { %v18831_v17 = vsel %vm2219_vm2, %v18826_v42, 0  ;;  %v21423_v49 = vand.u32 4294901760, %v32665_v48  ;;  %v21429_v42 = vand.u32 4294901760, %v32667_v60 }
0x1dce   :  { %v18828_v15 = vsel %vm2219_vm2, %v18825_v14, 0  ;;  %v18910_v50 = vand.u32 4294901760, %v18831_v17  ;;  %v21432_v14 = vand.u32 4294901760, %v32668_v24 }
0x1dcf   :  { %v18900_v12 = vand.u32 4294901760, %v18828_v15 }
0x1dd0   :  { %v18911_v10 = vsub.f32 %v18831_v17, %v18910_v50  ;;  %v21513_v17 = vsub.f32 %v32665_v48, %v21423_v49 }
0x1dd1   :  { %v18901_v19 = vsub.f32 %v18828_v15, %v18900_v12  ;;  %v21520_v15 = vsub.f32 %v32666_v61, %v21426_v20  ;;  %v32633_v61 = vld [vmem:[%s43204_s9 + $0x20] sm:$0xff] }
0x1dd2   :  { %v18912_v18 = vand.u32 4294901760, %v18911_v10 }
0x1dd3   :  { %v18902_v16 = vand.u32 4294901760, %v18901_v19 }
0x1dd4   :  { %v18913_v4 = vsub.f32 %v18911_v10, %v18912_v18 }
0x1dd5   :  { %v18903_v59 = vsub.f32 %v18901_v19, %v18902_v16 }
0x1dd6   :  { %v18914_v26 = vand.u32 4294901760, %v18913_v4 }
0x1dd7   :  { %v18904_v21 = vand.u32 4294901760, %v18903_v59 }
0x1dd9   :  { %36568 = vmatprep.mubr.f32.mxu1 %v18904_v21 }
0x1dda   :  { %36569 = vmatmul.mubr.f32.vlgmr.msra.gmra.mrb[36].mxu1 %v18914_v26  ;;  %v39370_v26 = vpack.c.bf16 %v21432_v14, %v21429_v42 }
0x1ddb   :  { %39253 = vmatpush3.bf16.msra.mxu1 %v42168_v31  ;;  %36575 = vmatprep.mubr.f32.mxu1 %v18900_v12  ;;  %v32654_v31 = vld [vmem:[%s43232_s29 + $0xc8] sm:$0xff] }
0x1ddc   :  { %39255 = vmatprep.subr.bf16.mxu1 %v42163_v22  ;;  %v20344_v11 = vand.u32 4294901760, %v32654_v31 }
0x1dde   :  { %v20438_v58 = vsub.f32 %v32654_v31, %v20344_v11  ;;  %v42256_v0 = vpack.c.bf16 %v20344_v11, %v20341_v1 }
0x1de0   :  { %v20439_v39 = vand.u32 4294901760, %v20438_v58  ;;  %v39286_v44 = vpack.c.bf16 %v20438_v58, %v20431_v30 }
0x1de2   :  { %36576 = vmatmul.mubr.f32.vlgmr.msra.gmra.mrb[36].mxu1 %v18910_v50  ;;  %v20440_v32 = vsub.f32 %v20438_v58, %v20439_v39  ;;  %v39302_v46 = vpack.c.bf16 %v20439_v39, %v20432_v51  ;;  %v32652_v39 = vld [vmem:[%s43204_s9 + $0x28] sm:$0xff] }
0x1de3   :  { %39257 = vmatpush3.bf16.msra.mxu1 %v42163_v22  ;;  %36582 = vmatprep.mubr.f32.mxu1 %v18901_v19  ;;  %v32655_v22 = vld [vmem:[%s43232_s29 + $0xd0] sm:$0xff]  ;;  %v21534_v19 = vsub.f32 %v32668_v24, %v21432_v14  ;;  %v19836_v24 = vsel %vm1704_vm1, %v42214_v5, 0 }
0x1de4   :  { %39259 = vmatprep.subr.bf16.mxu1 %v42160_v36  ;;  %v20347_v28 = vand.u32 4294901760, %v32655_v22  ;;  %v20441_v23 = vand.u32 4294901760, %v20440_v32  ;;  %v42327_v14 = vand.u32 4294901760, %v19836_v24 }
0x1de5   :  { %v21535_v21 = vand.u32 4294901760, %v21534_v19 }
0x1de6   :  { %v20445_v6 = vsub.f32 %v32655_v22, %v20347_v28  ;;  %v42260_v8 = vpack.c.bf16 %v20350_v29, %v20347_v28 }
0x1de7   :  { %v21536_v11 = vsub.f32 %v21534_v19, %v21535_v21 }
0x1de8   :  { %v20446_v33 = vand.u32 4294901760, %v20445_v6  ;;  %v39290_v45 = vpack.c.bf16 %v20452_v41, %v20445_v6 }
0x1de9   :  { %v21537_v28 = vand.u32 4294901760, %v21536_v11 }
0x1dea   :  { %36583 = vmatmul.mubr.f32.vlgmr.msra.gmra.mrb[36].mxu1 %v18911_v10  ;;  %v20447_v35 = vsub.f32 %v20445_v6, %v20446_v33  ;;  %v39306_v9 = vpack.c.bf16 %v20453_v34, %v20446_v33  ;;  %v21527_v10 = vsub.f32 %v32667_v60, %v21429_v42  ;;  %v19344_v6 = vand.u32 4294901760, %v32652_v39 }
0x1deb   :  { %39261 = vmatpush3.bf16.msra.mxu1 %v42160_v36  ;;  %36589 = vmatprep.mubr.f32.mxu1 %v18902_v16 }
0x1dec   :  { %39263 = vmatprep.subr.bf16.mxu1 %v42166_v2  ;;  %v20448_v47 = vand.u32 4294901760, %v20447_v35  ;;  %v21528_v59 = vand.u32 4294901760, %v21527_v10  ;;  %v39386_v58 = vpack.c.bf16 %v21534_v19, %v21527_v10  ;;  %36606 = vmatprep.subr.mxu0 %v19344_v6  ;;  %v19431_v41 = vsub.f32 %v32652_v39, %v19344_v6 }
0x1ded   :  { %36607 = vmatpush3.msra.mxu0 %v19344_v6 }
0x1dee   :  { %v39282_v13 = vpack.c.bf16 %v20455_v38, %v20448_v47  ;;  %v21529_v1 = vsub.f32 %v21527_v10, %v21528_v59 }
0x1df0   :  { %v21530_v7 = vand.u32 4294901760, %v21529_v1 }
0x1df2   :  { %36590 = vmatmul.mubr.f32.vlgmr.msra.gmra.mrb[36].mxu1 %v18912_v18  ;;  %v39366_v18 = vpack.c.bf16 %v21426_v20, %v21423_v49  ;;  %v39378_v29 = vpack.c.bf16 %v21537_v28, %v21530_v7  ;;  %v42319_v49 = vand.u32 4294901760, %v32633_v61  ;;  %v32662_v7 = vld [vmem:[%s43233_s1 + $0xd8] sm:$0xff] }
0x1df3   :  { %39265 = vmatpush3.bf16.msra.mxu1 %v42166_v2  ;;  %36596 = vmatprep.mubr.f32.mxu1 %v18900_v12  ;;  %v20433_v2 = vsub.f32 %v20431_v30, %v20432_v51  ;;  %v39382_v30 = vpack.c.bf16 %v21520_v15, %v21513_v17  ;;  %v39402_v51 = vpack.c.bf16 %v21535_v21, %v21528_v59 }
0x1df4   :  { %39267 = vmatprep.subr.bf16.mxu1 %v42160_v36  ;;  %v19926_v60 = vsub.f32 %v32633_v61, %v42319_v49 }
0x1df5   :  { %v20434_v40 = vand.u32 4294901760, %v20433_v2  ;;  %v19432_v2 = vand.u32 4294901760, %v19431_v41 }
0x1df7   :  { %v19433_v32 = vsub.f32 %v19431_v41, %v19432_v2 }
0x1df9   :  { %v19434_v33 = vand.u32 4294901760, %v19433_v32 }
0x1dfa   :  { %36597 = vmatmul.mubr.f32.vlgmr.msra.gmra.mrb[36].mxu1 %v18910_v50 }
0x1dfb   :  { %39269 = vmatpush3.bf16.msra.mxu1 %v42160_v36  ;;  %36603 = vmatprep.mubr.f32.mxu1 %v18900_v12  ;;  %v39278_v36 = vpack.c.bf16 %v20441_v23, %v20434_v40  ;;  %v21521_v12 = vand.u32 4294901760, %v21520_v15 }
0x1dfc   :  { %39271 = vmatprep.subr.bf16.mxu1 %v42256_v0  ;;  %36611 = vmatprep.subr.mxu0 %v19434_v33 }
0x1dfd   :  { %v21522_v4 = vsub.f32 %v21520_v15, %v21521_v12 }
0x1dff   :  { %v21523_v31 = vand.u32 4294901760, %v21522_v4 }
0x1e02   :  { %36604 = vmatmul.mubr.f32.vlgmr.msra.gmra.mrb[36].mxu1 %v18910_v50  ;;  %v21514_v50 = vand.u32 4294901760, %v21513_v17 }
0x1e03   :  { %39273 = vmatpush3.bf16.msra.mxu1 %v42256_v0  ;;  %36674 = vmatprep.mubr.f32.mxu1 %v41947_v62 }
0x1e04   :  { %39275 = vmatprep.subr.bf16.mxu1 %v42260_v8  ;;  %v21515_v16 = vsub.f32 %v21513_v17, %v21514_v50  ;;  %v19927_v17 = vand.u32 4294901760, %v19926_v60 }
0x1e06   :  { %v21516_v27 = vand.u32 4294901760, %v21515_v16  ;;  %v19928_v5 = vsub.f32 %v19926_v60, %v19927_v17 }
0x1e07   :  { %39277 = vmatpush3.bf16.msra.mxu1 %v42260_v8 }
0x1e08   :  { %39279 = vmatprep.subr.bf16.mxu1 %v39278_v36  ;;  %v39374_v22 = vpack.c.bf16 %v21523_v31, %v21516_v27  ;;  %v19929_v4 = vand.u32 4294901760, %v19928_v5  ;;  %v32659_v27 = vld [vmem:[%s43233_s1 + $0xc0] sm:$0xff]  ;;  %v32660_v31 = vld [vmem:[%s43233_s1 + $0xc8] sm:$0xff] }
0x1e09   :  { %v20882_v1 = vand.u32 4294901760, %v32659_v27  ;;  %v20885_v11 = vand.u32 4294901760, %v32660_v31 }
0x1e0a   :  { %36675 = vmatmul.mubr.f32.vlgmr.msra.gmra.mrb[38].mxu1 %v41949_v3 }
0x1e0b   :  { %39281 = vmatpush3.bf16.msra.mxu1 %v39278_v36  ;;  %36685 = vmatprep.mubr.f32.mxu1 %v41929_v54  ;;  %v42359_v28 = vsub.f32 %v32659_v27, %v20882_v1  ;;  %v42366_v39 = vpack.c.bf16 %v20885_v11, %v20882_v1 }
0x1e0c   :  { %39283 = vmatprep.subr.bf16.mxu1 %v39282_v13 }
0x1e0f   :  { %39285 = vmatpush3.bf16.msra.mxu1 %v39282_v13 }
0x1e10   :  { %39287 = vmatprep.subr.bf16.mxu1 %v39286_v44 }
0x1e12   :  { %36686 = vmatmul.mubr.f32.vlgmr.msra.gmra.mrb[38].mxu1 %v41925_v63 }
0x1e13   :  { %39289 = vmatpush3.bf16.msra.mxu1 %v39286_v44  ;;  %36696 = vmatprep.mubr.f32.mxu1 %v41935_v43 }
0x1e14   :  { %39291 = vmatprep.subr.bf16.mxu1 %v39290_v45 }
0x1e17   :  { %39293 = vmatpush3.bf16.msra.mxu1 %v39290_v45 }
0x1e18   :  { %39295 = vmatprep.subr.bf16.mxu1 %v42256_v0 }
0x1e1a   :  { %36697 = vmatmul.mubr.f32.vlgmr.msra.gmra.mrb[38].mxu1 %v41932_v55 }
0x1e1b   :  { %39297 = vmatpush3.bf16.msra.mxu1 %v42256_v0  ;;  %36707 = vmatprep.mubr.f32.mxu1 %v41941_v57 }
0x1e1c   :  { %39299 = vmatprep.subr.bf16.mxu1 %v42260_v8 }
0x1e1f   :  { %39301 = vmatpush3.bf16.msra.mxu1 %v42260_v8 }
0x1e20   :  { %39303 = vmatprep.subr.bf16.mxu1 %v39302_v46 }
0x1e22   :  { %36708 = vmatmul.mubr.f32.vlgmr.msra.gmra.mrb[38].mxu1 %v41938_v56 }
0x1e23   :  { %39305 = vmatpush3.bf16.msra.mxu1 %v39302_v46  ;;  %36718 = vmatprep.mubr.f32.mxu1 %v41929_v54 }
0x1e24   :  { %39307 = vmatprep.subr.bf16.mxu1 %v39306_v9 }
0x1e27   :  { %39309 = vmatpush3.bf16.msra.mxu1 %v39306_v9  ;;  %v19833_v9 = vsel %vm1704_vm1, %v42216_v53, 0  ;;  %v42332_v53 = vld [vmem:[%s43236_s30 + $0x6] ss:$0 sm:$0xff] }
0x1e28   :  { %39311 = vmatprep.subr.bf16.mxu1 %v42256_v0  ;;  %v42321_v20 = vand.u32 4294901760, %v19833_v9 }
0x1e2a   :  { %36719 = vmatmul.mubr.f32.vlgmr.msra.gmra.mrb[38].mxu1 %v41925_v63  ;;  %v19905_v42 = vsub.f32 %v19833_v9, %v42321_v20 }
0x1e2b   :  { %39313 = vmatpush3.bf16.msra.mxu1 %v42256_v0  ;;  %36729 = vmatprep.mubr.f32.mxu1 %v41929_v54  ;;  %v39398_v0 = vpack.c.bf16 %v21521_v12, %v21514_v50  ;;  %v19915_v50 = vsub.f32 %v19836_v24, %v42327_v14 }
0x1e2c   :  { %39315 = vmatprep.subr.bf16.mxu1 %v42260_v8  ;;  %v19906_v15 = vand.u32 4294901760, %v19905_v42 }
0x1e2d   :  { %v19916_v16 = vand.u32 4294901760, %v19915_v50 }
0x1e2f   :  { %39317 = vmatpush3.bf16.msra.mxu1 %v42260_v8  ;;  %v19917_v21 = vsub.f32 %v19915_v50, %v19916_v16 }
0x1e30   :  { %39367 = vmatprep.subr.bf16.mxu1 %v39366_v18 }
0x1e32   :  { %36730 = vmatmul.mubr.f32.vlgmr.msra.gmra.mrb[38].mxu1 %v41925_v63 }
0x1e33   :  { %39369 = vmatpush3.bf16.msra.mxu1 %v39366_v18  ;;  %36806 = vmatprep.mubr.f32.mxu1 %v41947_v62 }
0x1e34   :  { %39371 = vmatprep.subr.bf16.mxu1 %v39370_v26 }
0x1e37   :  { %39373 = vmatpush3.bf16.msra.mxu1 %v39370_v26 }
0x1e38   :  { %39375 = vmatprep.subr.bf16.mxu1 %v39374_v22 }
0x1e3a   :  { %36807 = vmatmul.mubr.f32.vlgmr.msra.gmra.mrb[40].mxu1 %v41949_v3 }
0x1e3b   :  { %39377 = vmatpush3.bf16.msra.mxu1 %v39374_v22  ;;  %36817 = vmatprep.mubr.f32.mxu1 %v41929_v54  ;;  %v32661_v22 = vld [vmem:[%s43233_s1 + $0xd0] sm:$0xff] }
0x1e3c   :  { %39379 = vmatprep.subr.bf16.mxu1 %v39378_v29 }
0x1e3f   :  { %39381 = vmatpush3.bf16.msra.mxu1 %v39378_v29  ;;  %v42361_v29 = vsub.f32 %v32660_v31, %v20885_v11 }
0x1e40   :  { %39383 = vmatprep.subr.bf16.mxu1 %v39382_v30 }
0x1e42   :  { %36818 = vmatmul.mubr.f32.vlgmr.msra.gmra.mrb[40].mxu1 %v41925_v63 }
0x1e43   :  { %39385 = vmatpush3.bf16.msra.mxu1 %v39382_v30  ;;  %36828 = vmatprep.mubr.f32.mxu1 %v41935_v43  ;;  %v20888_v30 = vand.u32 4294901760, %v32661_v22 }
0x1e44   :  { %39387 = vmatprep.subr.bf16.mxu1 %v39386_v58 }
0x1e47   :  { %39389 = vmatpush3.bf16.msra.mxu1 %v39386_v58  ;;  %v20891_v58 = vand.u32 4294901760, %v32662_v7 }
0x1e48   :  { %39391 = vmatprep.subr.bf16.mxu1 %v39366_v18 }
0x1e4a   :  { %36829 = vmatmul.mubr.f32.vlgmr.msra.gmra.mrb[40].mxu1 %v41932_v55 }
0x1e4b   :  { %39393 = vmatpush3.bf16.msra.mxu1 %v39366_v18  ;;  %36839 = vmatprep.mubr.f32.mxu1 %v41941_v57 }
0x1e4c   :  { %39395 = vmatprep.subr.bf16.mxu1 %v39370_v26 }
0x1e4f   :  { %39397 = vmatpush3.bf16.msra.mxu1 %v39370_v26 }
0x1e50   :  { %39399 = vmatprep.subr.bf16.mxu1 %v39398_v0 }
0x1e52   :  { %36840 = vmatmul.mubr.f32.vlgmr.msra.gmra.mrb[40].mxu1 %v41938_v56 }
0x1e53   :  { %39401 = vmatpush3.bf16.msra.mxu1 %v39398_v0  ;;  %36850 = vmatprep.mubr.f32.mxu1 %v41929_v54  ;;  %v20973_v0 = vand.u32 4294901760, %v42359_v28 }
0x1e54   :  { %39403 = vmatprep.subr.bf16.mxu1 %v39402_v51 }
0x1e55   :  { %v20974_v32 = vsub.f32 %v42359_v28, %v20973_v0 }
0x1e57   :  { %39405 = vmatpush3.bf16.msra.mxu1 %v39402_v51  ;;  %v20980_v51 = vand.u32 4294901760, %v42361_v29 }
0x1e58   :  { %39407 = vmatprep.subr.bf16.mxu1 %v39366_v18 }
0x1e5a   :  { %36851 = vmatmul.mubr.f32.vlgmr.msra.gmra.mrb[40].mxu1 %v41925_v63 }
0x1e5b   :  { %39409 = vmatpush3.bf16.msra.mxu1 %v39366_v18  ;;  %36861 = vmatprep.mubr.f32.mxu1 %v41929_v54  ;;  %v19907_v18 = vsub.f32 %v19905_v42, %v19906_v15 }
0x1e5c   :  { %39411 = vmatprep.subr.bf16.mxu1 %v39370_v26 }
0x1e5d   :  { %v19908_v59 = vand.u32 4294901760, %v19907_v18 }
0x1e5f   :  { %39413 = vmatpush3.bf16.msra.mxu1 %v39370_v26  ;;  %v19918_v26 = vand.u32 4294901760, %v19917_v21 }
0x1e62   :  { %36862 = vmatmul.mubr.f32.vlgmr.msra.gmra.mrb[40].mxu1 %v41925_v63 }
0x1ed5   :  { %v36605_v34 = vpop.f32.mrb[36].mxu1 }
0x1ed6   :  { %v19341_v8 = vsel %vm1704_vm1, %v36605_v34, 0  ;;  %v19325_v40 = vpop.f32.mrb[37].mxu1 }
0x1ed7   :  { %v19419_v23 = vand.u32 4294901760, %v19341_v8  ;;  %v19338_v35 = vsel %vm1704_vm1, %v19325_v40, 0 }
0x1ed8   :  { %v19409_v37 = vand.u32 4294901760, %v19338_v35 }
0x1ed9   :  { %v19420_v36 = vsub.f32 %v19341_v8, %v19419_v23 }
0x1eda   :  { %v19410_v47 = vsub.f32 %v19338_v35, %v19409_v37 }
0x1edb   :  { %v19421_v38 = vand.u32 4294901760, %v19420_v36 }
0x1edc   :  { %v19411_v13 = vand.u32 4294901760, %v19410_v47 }
0x1edd   :  { %v19422_v44 = vsub.f32 %v19420_v36, %v19421_v38 }
0x1ede   :  { %v19412_v45 = vsub.f32 %v19410_v47, %v19411_v13 }
0x1edf   :  { %v19423_v48 = vand.u32 4294901760, %v19422_v44  ;;  %v42387_v44 = vpack.c.bf16 %v20891_v58, %v20888_v30 }
0x1ee0   :  { %v19413_v46 = vand.u32 4294901760, %v19412_v45 }
0x1ee2   :  { %36608 = vmatprep.mubr.f32.mxu0 %v19413_v46 }
0x1ee3   :  { %36609 = vmatmul.mubr.f32.vlgmr.msra.gmra.mrb[30].mxu0 %v19423_v48 }
0x1ee4   :  { %36613 = vmatprep.mubr.f32.mxu0 %v19409_v37  ;;  %36612 = vmatpush3.msra.mxu0 %v19434_v33  ;;  %v20981_v33 = vsub.f32 %v42361_v29, %v20980_v51 }
0x1ee5   :  { %36616 = vmatprep.subr.mxu0 %v19431_v41 }
0x1eeb   :  { %36614 = vmatmul.mubr.f32.vlgmr.msra.gmra.mrb[30].mxu0 %v19419_v23 }
0x1eec   :  { %36618 = vmatprep.mubr.f32.mxu0 %v19410_v47  ;;  %36617 = vmatpush3.msra.mxu0 %v19431_v41  ;;  %v42370_v41 = vsub.f32 %v32662_v7, %v20891_v58  ;;  %v20975_v47 = vand.u32 4294901760, %v20974_v32 }
0x1eed   :  { %36621 = vmatprep.subr.mxu0 %v19344_v6 }
0x1eee   :  { %v20994_v40 = vand.u32 4294901760, %v42370_v41 }
0x1ef0   :  { %v20995_v46 = vsub.f32 %v42370_v41, %v20994_v40 }
0x1ef3   :  { %36619 = vmatmul.mubr.f32.vlgmr.msra.gmra.mrb[30].mxu0 %v19420_v36 }
0x1ef4   :  { %36623 = vmatprep.mubr.f32.mxu0 %v19411_v13  ;;  %36622 = vmatpush3.msra.mxu0 %v19344_v6 }
0x1ef5   :  { %36626 = vmatprep.subr.mxu0 %v19432_v2 }
0x1efb   :  { %36624 = vmatmul.mubr.f32.vlgmr.msra.gmra.mrb[30].mxu0 %v19421_v38  ;;  %v20982_v38 = vand.u32 4294901760, %v20981_v33 }
0x1efc   :  { %36628 = vmatprep.mubr.f32.mxu0 %v19409_v37  ;;  %36627 = vmatpush3.msra.mxu0 %v19432_v2  ;;  %v32670_v2 = vld [vmem:[%s43203_s8 + $0x6] ss:$0 sm:$0xff] }
0x1efd   :  { %36631 = vmatprep.subr.mxu0 %v19344_v6 }
0x1f03   :  { %36629 = vmatmul.mubr.f32.vlgmr.msra.gmra.mrb[30].mxu0 %v19419_v23 }
0x1f04   :  { %36633 = vmatprep.mubr.f32.mxu0 %v19409_v37  ;;  %36632 = vmatpush3.msra.mxu0 %v19344_v6  ;;  %v42368_v6 = vsub.f32 %v32661_v22, %v20888_v30 }
0x1f05   :  { %v36731_v12 = vpop.f32.mrb[38].mxu1  ;;  %36636 = vmatprep.subr.mxu0 %v42319_v49 }
0x1f06   :  { %v42337_v10 = vadd.f32 %v36731_v12, %v42332_v53  ;;  %v42339_v19 = vpop.f32.mrb[39].mxu1  ;;  %v20987_v8 = vand.u32 4294901760, %v42368_v6 }
0x1f07   :  { %v40141_v21 = vadd.f32 %v42332_v53, %v42339_v19 }
0x1f08   :  { %v20988_v45 = vsub.f32 %v42368_v6, %v20987_v8  ;;  %v39354_v31 = vpack.c.bf16 %v20994_v40, %v20987_v8  ;;  %v21954_v7 = vsel %vm1704_vm1, %v42337_v10, 0 }
0x1f09   :  { %v21951_v27 = vsel %vm1704_vm1, %v40141_v21, 0 }
0x1f0a   :  { %v20989_v24 = vand.u32 4294901760, %v20988_v45  ;;  %v42428_v53 = vand.u32 4294901760, %v21951_v27 }
0x1f0b   :  { %36634 = vmatmul.mubr.f32.vlgmr.msra.gmra.mrb[30].mxu0 %v19419_v23 }
0x1f0c   :  { %36638 = vmatprep.mubr.f32.mxu0 %v19908_v59  ;;  %36637 = vmatpush3.msra.mxu0 %v42319_v49  ;;  %v39338_v59 = vpack.c.bf16 %v42370_v41, %v42368_v6  ;;  %v22030_v19 = vsub.f32 %v21951_v27, %v42428_v53 }
0x1f0d   :  { %36641 = vmatprep.subr.mxu0 %v19929_v4 }
0x1f0e   :  { %v22031_v1 = vand.u32 4294901760, %v22030_v19 }
0x1f10   :  { %v22032_v11 = vsub.f32 %v22030_v19, %v22031_v1 }
0x1f12   :  { %v22033_v22 = vand.u32 4294901760, %v22032_v11 }
0x1f13   :  { %36639 = vmatmul.mubr.f32.vlgmr.msra.gmra.mrb[30].mxu0 %v19918_v26  ;;  %v39350_v26 = vpack.c.bf16 %v20980_v51, %v20973_v0 }
0x1f14   :  { %36643 = vmatprep.mubr.f32.mxu0 %v42321_v20  ;;  %36642 = vmatpush3.msra.mxu0 %v19929_v4  ;;  %v39334_v4 = vpack.c.bf16 %v42361_v29, %v42359_v28  ;;  %v32664_v28 = vld [vmem:[%s43237_s23 + $0x6] ss:$0 sm:$0xff]  ;;  %v22039_v29 = vand.u32 4294901760, %v21954_v7 }
0x1f15   :  { %36646 = vmatprep.subr.mxu0 %v19926_v60 }
0x1f1b   :  { %36644 = vmatmul.mubr.f32.vlgmr.msra.gmra.mrb[30].mxu0 %v42327_v14 }
0x1f1c   :  { %36648 = vmatprep.mubr.f32.mxu0 %v19905_v42  ;;  %36647 = vmatpush3.msra.mxu0 %v19926_v60  ;;  %v20996_v42 = vand.u32 4294901760, %v20995_v46 }
0x1f1d   :  { %36651 = vmatprep.subr.mxu0 %v42319_v49 }
0x1f1e   :  { %v39330_v18 = vpack.c.bf16 %v20996_v42, %v20989_v24 }
0x1f23   :  { %36649 = vmatmul.mubr.f32.vlgmr.msra.gmra.mrb[30].mxu0 %v19915_v50 }
0x1f24   :  { %36653 = vmatprep.mubr.f32.mxu0 %v19906_v15  ;;  %36652 = vmatpush3.msra.mxu0 %v42319_v49 }
0x1f25   :  { %36656 = vmatprep.subr.mxu0 %v19927_v17 }
0x1f2b   :  { %36654 = vmatmul.mubr.f32.vlgmr.msra.gmra.mrb[30].mxu0 %v19916_v16 }
0x1f2c   :  { %36658 = vmatprep.mubr.f32.mxu0 %v42321_v20  ;;  %36657 = vmatpush3.msra.mxu0 %v19927_v17 }
0x1f2d   :  { %36661 = vmatprep.subr.mxu0 %v42319_v49 }
0x1f33   :  { %36659 = vmatmul.mubr.f32.vlgmr.msra.gmra.mrb[30].mxu0 %v42327_v14 }
0x1f34   :  { %36663 = vmatprep.mubr.f32.mxu0 %v42321_v20  ;;  %36662 = vmatpush3.msra.mxu0 %v42319_v49  ;;  %v39326_v20 = vpack.c.bf16 %v20982_v38, %v20975_v47 }
0x1f35   :  { %v36863_v34 = vpop.f32.mrb[40].mxu1  ;;  %39319 = vmatprep.subr.bf16.mxu0 %v42366_v39 }
0x1f36   :  { %v40144_v23 = vadd.f32 %v36863_v34, %v32670_v2  ;;  %v21940_v35 = vpop.f32.mrb[41].mxu1 }
0x1f37   :  { %v40145_v37 = vadd.f32 %v32670_v2, %v21940_v35 }
0x1f38   :  { %v22496_v36 = vand.u32 4294901760, %v40144_v23 }
0x1f39   :  { %v22493_v13 = vand.u32 4294901760, %v40145_v37 }
0x1f3a   :  { %v22588_v48 = vsub.f32 %v40144_v23, %v22496_v36 }
0x1f3b   :  { %v42391_v61 = vpack.c.bf16 %v22496_v36, %v22493_v13  ;;  %v22581_v9 = vsub.f32 %v40145_v37, %v22493_v13  ;;  %36664 = vmatmul.mubr.f32.vlgmr.msra.gmra.mrb[30].mxu0 %v42327_v14 }
0x1f3c   :  { %v22589_v49 = vand.u32 4294901760, %v22588_v48  ;;  %39321 = vmatpush3.bf16.msra.mxu0 %v42366_v39  ;;  %36740 = vmatprep.mubr.f32.mxu0 %v41947_v62 }
0x1f3d   :  { %v22582_v60 = vand.u32 4294901760, %v22581_v9  ;;  %39439 = vmatprep.subr.bf16.mxu1 %v42391_v61  ;;  %39323 = vmatprep.subr.bf16.mxu0 %v42387_v44  ;;  %v42398_v17 = vpack.c.bf16 %v22588_v48, %v22581_v9 }
0x1f3e   :  { %39441 = vmatpush3.bf16.msra.mxu1 %v42391_v61  ;;  %v22590_v15 = vsub.f32 %v22588_v48, %v22589_v49 }
0x1f3f   :  { %v22583_v50 = vsub.f32 %v22581_v9, %v22582_v60  ;;  %v42401_v14 = vpack.c.bf16 %v22589_v49, %v22582_v60  ;;  %v42453_v9 = vld [vmem:[%s43238_s0 + $0x8] sm:$0xff]  ;;  %v42459_v60 = vld [vmem:[%s43238_s0] sm:$0xff] }
0x1f40   :  { %39325 = vmatpush3.bf16.msra.mxu0 %v42387_v44  ;;  %v22591_v12 = vand.u32 4294901760, %v22590_v15 }
0x1f41   :  { %39327 = vmatprep.subr.bf16.mxu0 %v39326_v20  ;;  %v22584_v5 = vand.u32 4294901760, %v22583_v50 }
0x1f43   :  { %36741 = vmatmul.mubr.f32.vlgmr.msra.gmra.mrb[32].mxu0 %v41949_v3  ;;  %v42405_v16 = vpack.c.bf16 %v22591_v12, %v22584_v5 }
0x1f44   :  { %39329 = vmatpush3.bf16.msra.mxu0 %v39326_v20  ;;  %36751 = vmatprep.mubr.f32.mxu0 %v41929_v54 }
0x1f45   :  { %39443 = vmatprep.subr.bf16.mxu1 %v42405_v16  ;;  %39331 = vmatprep.subr.bf16.mxu0 %v39330_v18 }
0x1f48   :  { %39333 = vmatpush3.bf16.msra.mxu0 %v39330_v18 }
0x1f49   :  { %39335 = vmatprep.subr.bf16.mxu0 %v39334_v4 }
0x1f4b   :  { %36752 = vmatmul.mubr.f32.vlgmr.msra.gmra.mrb[32].mxu0 %v41925_v63 }
0x1f4c   :  { %39337 = vmatpush3.bf16.msra.mxu0 %v39334_v4  ;;  %36762 = vmatprep.mubr.f32.mxu0 %v41935_v43 }
0x1f4d   :  { %39339 = vmatprep.subr.bf16.mxu0 %v39338_v59 }
0x1f50   :  { %39341 = vmatpush3.bf16.msra.mxu0 %v39338_v59 }
0x1f51   :  { %39343 = vmatprep.subr.bf16.mxu0 %v42366_v39 }
0x1f53   :  { %36763 = vmatmul.mubr.f32.vlgmr.msra.gmra.mrb[32].mxu0 %v41932_v55 }
0x1f54   :  { %39345 = vmatpush3.bf16.msra.mxu0 %v42366_v39  ;;  %36773 = vmatprep.mubr.f32.mxu0 %v41941_v57 }
0x1f55   :  { %39347 = vmatprep.subr.bf16.mxu0 %v42387_v44 }
0x1f58   :  { %39349 = vmatpush3.bf16.msra.mxu0 %v42387_v44 }
0x1f59   :  { %39351 = vmatprep.subr.bf16.mxu0 %v39350_v26 }
0x1f5b   :  { %36774 = vmatmul.mubr.f32.vlgmr.msra.gmra.mrb[32].mxu0 %v41938_v56 }
0x1f5c   :  { %39353 = vmatpush3.bf16.msra.mxu0 %v39350_v26  ;;  %36784 = vmatprep.mubr.f32.mxu0 %v41929_v54 }
0x1f5d   :  { %39355 = vmatprep.subr.bf16.mxu0 %v39354_v31 }
0x1f60   :  { %39357 = vmatpush3.bf16.msra.mxu0 %v39354_v31 }
0x1f61   :  { %39359 = vmatprep.subr.bf16.mxu0 %v42366_v39 }
0x1f63   :  { %36785 = vmatmul.mubr.f32.vlgmr.msra.gmra.mrb[32].mxu0 %v41925_v63 }
0x1f64   :  { %39361 = vmatpush3.bf16.msra.mxu0 %v42366_v39  ;;  %36795 = vmatprep.mubr.f32.mxu0 %v41929_v54  ;;  %v22040_v39 = vsub.f32 %v21954_v7, %v22039_v29 }
0x1f65   :  { %39363 = vmatprep.subr.bf16.mxu0 %v42387_v44 }
0x1f66   :  { %v22041_v34 = vand.u32 4294901760, %v22040_v39 }
0x1f68   :  { %39365 = vmatpush3.bf16.msra.mxu0 %v42387_v44  ;;  %v22042_v36 = vsub.f32 %v22040_v39, %v22041_v34 }
0x1f6a   :  { %v22043_v45 = vand.u32 4294901760, %v22042_v36 }
0x1f6b   :  { %36796 = vmatmul.mubr.f32.vlgmr.msra.gmra.mrb[32].mxu0 %v41925_v63 }
0x1f6c   :  { %36868 = vmatprep.mubr.f32.mxu0 %v22033_v22 }
0x203e   :  { %v36797_v30 = vpop.f32.mrb[32].mxu0 }
0x203f   :  { %v40142_v58 = vadd.f32 %v36797_v30, %v32664_v28  ;;  %v21399_v0 = vpop.f32.mrb[33].mxu0 }
0x2040   :  { %v40143_v51 = vadd.f32 %v32664_v28, %v21399_v0 }
0x2041   :  { %v21960_v6 = vsel %vm1704_vm1, %v40142_v58, 0 }
0x2042   :  { %v21966_v41 = vand.u32 4294901760, %v21960_v6  ;;  %v21957_v2 = vsel %vm1704_vm1, %v40143_v51, 0 }
0x2043   :  { %v21963_v32 = vand.u32 4294901760, %v21957_v2 }
0x2044   :  { %v22058_v33 = vsub.f32 %v21960_v6, %v21966_v41 }
0x2045   :  { %v39414_v8 = vpack.c.bf16 %v21966_v41, %v21963_v32  ;;  %v22051_v10 = vsub.f32 %v21957_v2, %v21963_v32 }
0x2046   :  { %v22059_v40 = vand.u32 4294901760, %v22058_v33 }
0x2047   :  { %v22052_v23 = vand.u32 4294901760, %v22051_v10  ;;  %39415 = vmatprep.subr.bf16.mxu0 %v39414_v8  ;;  %v39422_v35 = vpack.c.bf16 %v22058_v33, %v22051_v10 }
0x2048   :  { %39417 = vmatpush3.bf16.xpose.msra.mxu0 %v39414_v8  ;;  %v22060_v37 = vsub.f32 %v22058_v33, %v22059_v40 }
0x2049   :  { %v22053_v47 = vsub.f32 %v22051_v10, %v22052_v23  ;;  %v39430_v38 = vpack.c.bf16 %v22059_v40, %v22052_v23  ;;  %v32675_v40 = vld [vmem:[%s43232_s29 + $0xf8] sm:$0xff] }
0x204a   :  { %v22061_v13 = vand.u32 4294901760, %v22060_v37 }
0x204b   :  { %v22054_v44 = vand.u32 4294901760, %v22053_v47 }
0x204d   :  { %v39418_v46 = vpack.c.bf16 %v22061_v13, %v22054_v44 }
0x204f   :  { %36869 = vmatmul.mubr.f32.vlgmr.msra.gmra.mrb[34].mxu0 %v22043_v45  ;;  %39419 = vmatprep.subr.bf16.mxu0 %v39418_v46 }
0x2050   :  { %39421 = vmatpush3.bf16.xpose.msra.mxu0 %v39418_v46  ;;  %36875 = vmatprep.mubr.f32.mxu0 %v42428_v53 }
0x2051   :  { %39423 = vmatprep.subr.bf16.mxu0 %v39422_v35 }
0x2057   :  { %36876 = vmatmul.mubr.f32.vlgmr.msra.gmra.mrb[34].mxu0 %v22039_v29 }
0x2058   :  { %39425 = vmatpush3.bf16.xpose.msra.mxu0 %v39422_v35  ;;  %36882 = vmatprep.mubr.f32.mxu0 %v22030_v19  ;;  %v23516_v35 = vand.u32 4294901760, %v32675_v40 }
0x2059   :  { %39427 = vmatprep.subr.bf16.mxu0 %v39414_v8 }
0x205a   :  { %v23618_v45 = vsub.f32 %v32675_v40, %v23516_v35 }
0x205f   :  { %36883 = vmatmul.mubr.f32.vlgmr.msra.gmra.mrb[34].mxu0 %v22040_v39 }
0x2060   :  { %39429 = vmatpush3.bf16.xpose.msra.mxu0 %v39414_v8  ;;  %36889 = vmatprep.mubr.f32.mxu0 %v22031_v1 }
0x2061   :  { %39431 = vmatprep.subr.bf16.mxu0 %v39430_v38 }
0x2067   :  { %36890 = vmatmul.mubr.f32.vlgmr.msra.gmra.mrb[34].mxu0 %v22041_v34  ;;  %v32672_v34 = vld [vmem:[%s43232_s29 + $0xe0] sm:$0xff] }
0x2068   :  { %39433 = vmatpush3.bf16.xpose.msra.mxu0 %v39430_v38  ;;  %36896 = vmatprep.mubr.f32.mxu0 %v42428_v53 }
0x2069   :  { %39435 = vmatprep.subr.bf16.mxu0 %v39414_v8 }
0x206f   :  { %36897 = vmatmul.mubr.f32.vlgmr.msra.gmra.mrb[34].mxu0 %v22039_v29 }
0x2070   :  { %39437 = vmatpush3.bf16.xpose.msra.mxu0 %v39414_v8  ;;  %36903 = vmatprep.mubr.f32.mxu0 %v42428_v53  ;;  %v23507_v8 = vand.u32 4294901760, %v32672_v34 }
0x2072   :  { %v23597_v37 = vsub.f32 %v32672_v34, %v23507_v8 }
0x2074   :  { %v23598_v38 = vand.u32 4294901760, %v23597_v37 }
0x2077   :  { %36904 = vmatmul.mubr.f32.vlgmr.msra.gmra.mrb[34].mxu0 %v22039_v29 }
0x214a   :  { %v36905_v48 = vpop.f32.mrb[34].mxu0 }
0x214b   :  { %v40146_v49 = vadd.f32 %v42453_v9, %v36905_v48  ;;  %v22454_v20 = vpop.f32.mrb[35].mxu0 }
0x214c   :  { %v40147_v24 = vadd.f32 %v42459_v60, %v22454_v20 }
0x214d   :  { %v22467_v42 = vsel %vm2219_vm2, %v40146_v49, -inf }
0x214e   :  { %22468 = vmax.xlane.f32.xlu1 %v22467_v42  ;;  %v22464_v15 = vsel %vm2219_vm2, %v40147_v24, -inf }
0x214f   :  { %22465 = vmax.xlane.f32.xlu0 %v22464_v15 }
0x21db   :  { %v22469_v50 = vpop.xlane.xlu1 %22468 }
0x21dc   :  { %v22471_v12 = vsub.f32 %v40146_v49, %v22469_v50  ;;  %v22466_v5 = vpop.xlane.xlu0 %22465  ;;  %v23619_v49 = vand.u32 4294901760, %v23618_v45 }
0x21dd   :  { %v22470_v18 = vsub.f32 %v40147_v24, %v22466_v5 }
0x21de   :  { %v22474_v4 = vmul.f32 1.442695, %v22471_v12  ;;  %v23620_v50 = vsub.f32 %v23618_v45, %v23619_v49 }
0x21df   :  { %v22472_v59 = vmul.f32 1.442695, %v22470_v18 }
0x21e0   :  { %40881 = vpow2.f32 %v22474_v4  ;;  %v23621_v5 = vand.u32 4294901760, %v23620_v50 }
0x21e1   :  { %40883 = vpow2.f32 %v22472_v59 }
0x21ea   :  { %v40882_v21 = vpop.eup %40881 }
0x21eb   :  { %v40884_v26 = vpop.eup %40883  ;;  %v22479_v27 = vsel %vm2219_vm2, %v40882_v21, 0.0 }
0x21ec   :  { %22480 = vadd.xlane.f32.xlu1 %v22479_v27  ;;  %v22476_v31 = vsel %vm2219_vm2, %v40884_v26, 0.0  ;;  %v32685_v27 = vld [vmem:[%s43202_s7 + $0xe8] sm:$0xff] }
0x21ed   :  { %22477 = vadd.xlane.f32.xlu0 %v22476_v31 }
0x2279   :  { %v22481_v53 = vpop.xlane.xlu1 %22480 }
0x227a   :  { %40885 = vrcp.f32 %v22481_v53  ;;  %v22478_v19 = vpop.xlane.xlu0 %22477 }
0x227b   :  { %40887 = vrcp.f32 %v22478_v19  ;;  %v24592_v19 = vand.u32 4294901760, %v32685_v27 }
0x2284   :  { %v40886_v1 = vpop.eup %40885 }
0x2285   :  { %v40888_v11 = vpop.eup %40887  ;;  %v22485_v22 = vmul.f32 %v40886_v1, %v40882_v21  ;;  %v32686_v1 = vld [vmem:[%s43202_s7 + $0xf0] sm:$0xff] }
0x2286   :  { %v22484_v7 = vmul.f32 %v40888_v11, %v40884_v26  ;;  %v32684_v26 = vld [vmem:[%s43202_s7 + $0xe0] sm:$0xff]  ;;  %v32687_v11 = vld [vmem:[%s43202_s7 + $0xf8] sm:$0xff] }
0x2287   :  { %v22490_v28 = vsel %vm2219_vm2, %v22485_v22, 0  ;;  %v24589_v53 = vand.u32 4294901760, %v32684_v26  ;;  %v24595_v22 = vand.u32 4294901760, %v32686_v1 }
0x2288   :  { %v22487_v29 = vsel %vm2219_vm2, %v22484_v7, 0  ;;  %v22569_v30 = vand.u32 4294901760, %v22490_v28  ;;  %v24598_v7 = vand.u32 4294901760, %v32687_v11 }
0x2289   :  { %v22559_v58 = vand.u32 4294901760, %v22487_v29 }
0x228a   :  { %v22570_v0 = vsub.f32 %v22490_v28, %v22569_v30  ;;  %v24679_v28 = vsub.f32 %v32684_v26, %v24589_v53 }
0x228b   :  { %v22560_v51 = vsub.f32 %v22487_v29, %v22559_v58  ;;  %v24686_v29 = vsub.f32 %v32685_v27, %v24592_v19  ;;  %v32678_v27 = vld [vmem:[%s43233_s1 + $0xe0] sm:$0xff] }
0x228c   :  { %v22571_v39 = vand.u32 4294901760, %v22570_v0 }
0x228d   :  { %v22561_v6 = vand.u32 4294901760, %v22560_v51 }
0x228e   :  { %v22572_v41 = vsub.f32 %v22570_v0, %v22571_v39 }
0x228f   :  { %v22562_v2 = vsub.f32 %v22560_v51, %v22561_v6 }
0x2290   :  { %v22573_v33 = vand.u32 4294901760, %v22572_v41 }
0x2291   :  { %v22563_v32 = vand.u32 4294901760, %v22562_v2 }
0x2293   :  { %36910 = vmatprep.mubr.f32.mxu1 %v22563_v32 }
0x2294   :  { %36911 = vmatmul.mubr.f32.vlgmr.msra.gmra.mrb[42].mxu1 %v22573_v33  ;;  %v39562_v33 = vpack.c.bf16 %v24598_v7, %v24595_v22 }
0x2295   :  { %39445 = vmatpush3.bf16.msra.mxu1 %v42405_v16  ;;  %36917 = vmatprep.mubr.f32.mxu1 %v22559_v58  ;;  %v32673_v16 = vld [vmem:[%s43232_s29 + $0xe8] sm:$0xff] }
0x2296   :  { %39447 = vmatprep.subr.bf16.mxu1 %v42398_v17  ;;  %v23510_v10 = vand.u32 4294901760, %v32673_v16 }
0x2298   :  { %v23604_v36 = vsub.f32 %v32673_v16, %v23510_v10  ;;  %v42488_v47 = vpack.c.bf16 %v23510_v10, %v23507_v8 }
0x229a   :  { %v23605_v13 = vand.u32 4294901760, %v23604_v36  ;;  %v39478_v4 = vpack.c.bf16 %v23604_v36, %v23597_v37 }
0x229c   :  { %36918 = vmatmul.mubr.f32.vlgmr.msra.gmra.mrb[42].mxu1 %v22569_v30  ;;  %v23606_v46 = vsub.f32 %v23604_v36, %v23605_v13  ;;  %v39494_v21 = vpack.c.bf16 %v23605_v13, %v23598_v38  ;;  %v32671_v13 = vld [vmem:[%s43204_s9 + $0x30] sm:$0xff] }
0x229d   :  { %39449 = vmatpush3.bf16.msra.mxu1 %v42398_v17  ;;  %36924 = vmatprep.mubr.f32.mxu1 %v22560_v51  ;;  %v32674_v17 = vld [vmem:[%s43232_s29 + $0xf0] sm:$0xff]  ;;  %v24700_v51 = vsub.f32 %v32687_v11, %v24598_v7  ;;  %v32681_v11 = vld [vmem:[%s43233_s1 + $0xf8] sm:$0xff] }
0x229e   :  { %39451 = vmatprep.subr.bf16.mxu1 %v42391_v61  ;;  %v23513_v23 = vand.u32 4294901760, %v32674_v17  ;;  %v23607_v42 = vand.u32 4294901760, %v23606_v46  ;;  %v24057_v7 = vand.u32 4294901760, %v32681_v11 }
0x229f   :  { %v24701_v32 = vand.u32 4294901760, %v24700_v51 }
0x22a0   :  { %v23611_v44 = vsub.f32 %v32674_v17, %v23513_v23  ;;  %v42492_v20 = vpack.c.bf16 %v23516_v35, %v23513_v23 }
0x22a1   :  { %v24702_v10 = vsub.f32 %v24700_v51, %v24701_v32 }
0x22a2   :  { %v23612_v48 = vand.u32 4294901760, %v23611_v44  ;;  %v39482_v59 = vpack.c.bf16 %v23618_v45, %v23611_v44 }
0x22a3   :  { %v24703_v23 = vand.u32 4294901760, %v24702_v10 }
0x22a4   :  { %36925 = vmatmul.mubr.f32.vlgmr.msra.gmra.mrb[42].mxu1 %v22570_v0  ;;  %v23613_v15 = vsub.f32 %v23611_v44, %v23612_v48  ;;  %v39498_v31 = vpack.c.bf16 %v23619_v49, %v23612_v48  ;;  %v24693_v0 = vsub.f32 %v32686_v1, %v24595_v22  ;;  %v23003_v44 = vand.u32 4294901760, %v32671_v13  ;;  %v32680_v1 = vld [vmem:[%s43233_s1 + $0xf0] sm:$0xff] }
0x22a5   :  { %39453 = vmatpush3.bf16.msra.mxu1 %v42391_v61  ;;  %36931 = vmatprep.mubr.f32.mxu1 %v22561_v6  ;;  %v24054_v22 = vand.u32 4294901760, %v32680_v1 }
0x22a6   :  { %39455 = vmatprep.subr.bf16.mxu1 %v42401_v14  ;;  %v23614_v12 = vand.u32 4294901760, %v23613_v15  ;;  %v24694_v2 = vand.u32 4294901760, %v24693_v0  ;;  %v39578_v36 = vpack.c.bf16 %v24700_v51, %v24693_v0  ;;  %36948 = vmatprep.subr.mxu0 %v23003_v44  ;;  %v23090_v45 = vsub.f32 %v32671_v13, %v23003_v44 }
0x22a7   :  { %36949 = vmatpush3.msra.mxu0 %v23003_v44  ;;  %v24152_v51 = vsub.f32 %v32680_v1, %v24054_v22  ;;  %v39514_v10 = vpack.c.bf16 %v24057_v7, %v24054_v22 }
0x22a8   :  { %v39474_v18 = vpack.c.bf16 %v23621_v5, %v23614_v12  ;;  %v24695_v8 = vsub.f32 %v24693_v0, %v24694_v2 }
0x22aa   :  { %v24696_v40 = vand.u32 4294901760, %v24695_v8 }
0x22ac   :  { %36932 = vmatmul.mubr.f32.vlgmr.msra.gmra.mrb[42].mxu1 %v22571_v39  ;;  %v39558_v39 = vpack.c.bf16 %v24592_v19, %v24589_v53  ;;  %v39570_v35 = vpack.c.bf16 %v24703_v23, %v24696_v40  ;;  %v24048_v53 = vand.u32 4294901760, %v32678_v27 }
0x22ad   :  { %39457 = vmatpush3.bf16.msra.mxu1 %v42401_v14  ;;  %36938 = vmatprep.mubr.f32.mxu1 %v22559_v58  ;;  %v23599_v14 = vsub.f32 %v23597_v37, %v23598_v38  ;;  %v39574_v37 = vpack.c.bf16 %v24686_v29, %v24679_v28  ;;  %v39594_v38 = vpack.c.bf16 %v24701_v32, %v24694_v2 }
0x22ae   :  { %39459 = vmatprep.subr.bf16.mxu1 %v42391_v61 }
0x22af   :  { %v23600_v24 = vand.u32 4294901760, %v23599_v14  ;;  %v23091_v14 = vand.u32 4294901760, %v23090_v45 }
0x22b1   :  { %v23092_v46 = vsub.f32 %v23090_v45, %v23091_v14 }
0x22b3   :  { %v23093_v48 = vand.u32 4294901760, %v23092_v46 }
0x22b4   :  { %36939 = vmatmul.mubr.f32.vlgmr.msra.gmra.mrb[42].mxu1 %v22569_v30 }
0x22b5   :  { %39461 = vmatpush3.bf16.msra.mxu1 %v42391_v61  ;;  %36945 = vmatprep.mubr.f32.mxu1 %v22559_v58  ;;  %v39470_v61 = vpack.c.bf16 %v23607_v42, %v23600_v24  ;;  %v24687_v58 = vand.u32 4294901760, %v24686_v29 }
0x22b6   :  { %39463 = vmatprep.subr.bf16.mxu1 %v42488_v47  ;;  %36953 = vmatprep.subr.mxu0 %v23093_v48 }
0x22b7   :  { %v24688_v41 = vsub.f32 %v24686_v29, %v24687_v58 }
0x22b9   :  { %v24689_v16 = vand.u32 4294901760, %v24688_v41 }
0x22bc   :  { %36946 = vmatmul.mubr.f32.vlgmr.msra.gmra.mrb[42].mxu1 %v22569_v30  ;;  %v24680_v30 = vand.u32 4294901760, %v24679_v28 }
0x22bd   :  { %39465 = vmatpush3.bf16.msra.mxu1 %v42488_v47  ;;  %36986 = vmatprep.mubr.f32.mxu1 %v41947_v62 }
0x22be   :  { %39467 = vmatprep.subr.bf16.mxu1 %v42492_v20  ;;  %v24681_v6 = vsub.f32 %v24679_v28, %v24680_v30  ;;  %v24138_v28 = vsub.f32 %v32678_v27, %v24048_v53 }
0x22c0   :  { %v24682_v34 = vand.u32 4294901760, %v24681_v6  ;;  %v32677_v6 = vld [vmem:[%s43236_s30 + $0x7] ss:$0 sm:$0xff] }
0x22c1   :  { %39469 = vmatpush3.bf16.msra.mxu1 %v42492_v20 }
0x22c2   :  { %39471 = vmatprep.subr.bf16.mxu1 %v39470_v61  ;;  %v39566_v17 = vpack.c.bf16 %v24689_v16, %v24682_v34 }
0x22c4   :  { %36987 = vmatmul.mubr.f32.vlgmr.msra.gmra.mrb[44].mxu1 %v41949_v3 }
0x22c5   :  { %39473 = vmatpush3.bf16.msra.mxu1 %v39470_v61  ;;  %36997 = vmatprep.mubr.f32.mxu1 %v41929_v54 }
0x22c6   :  { %39475 = vmatprep.subr.bf16.mxu1 %v39474_v18 }
0x22c9   :  { %39477 = vmatpush3.bf16.msra.mxu1 %v39474_v18 }
0x22ca   :  { %39479 = vmatprep.subr.bf16.mxu1 %v39478_v4 }
0x22cc   :  { %36998 = vmatmul.mubr.f32.vlgmr.msra.gmra.mrb[44].mxu1 %v41925_v63 }
0x22cd   :  { %39481 = vmatpush3.bf16.msra.mxu1 %v39478_v4  ;;  %37008 = vmatprep.mubr.f32.mxu1 %v41935_v43 }
0x22ce   :  { %39483 = vmatprep.subr.bf16.mxu1 %v39482_v59 }
0x22d1   :  { %39485 = vmatpush3.bf16.msra.mxu1 %v39482_v59 }
0x22d2   :  { %39487 = vmatprep.subr.bf16.mxu1 %v42488_v47 }
0x22d4   :  { %37009 = vmatmul.mubr.f32.vlgmr.msra.gmra.mrb[44].mxu1 %v41932_v55 }
0x22d5   :  { %39489 = vmatpush3.bf16.msra.mxu1 %v42488_v47  ;;  %37019 = vmatprep.mubr.f32.mxu1 %v41941_v57 }
0x22d6   :  { %39491 = vmatprep.subr.bf16.mxu1 %v42492_v20 }
0x22d9   :  { %39493 = vmatpush3.bf16.msra.mxu1 %v42492_v20 }
0x22da   :  { %39495 = vmatprep.subr.bf16.mxu1 %v39494_v21 }
0x22dc   :  { %37020 = vmatmul.mubr.f32.vlgmr.msra.gmra.mrb[44].mxu1 %v41938_v56 }
0x22dd   :  { %39497 = vmatpush3.bf16.msra.mxu1 %v39494_v21  ;;  %37030 = vmatprep.mubr.f32.mxu1 %v41929_v54 }
0x22de   :  { %39499 = vmatprep.subr.bf16.mxu1 %v39498_v31 }
0x22e1   :  { %39501 = vmatpush3.bf16.msra.mxu1 %v39498_v31  ;;  %v32679_v31 = vld [vmem:[%s43233_s1 + $0xe8] sm:$0xff] }
0x22e2   :  { %39503 = vmatprep.subr.bf16.mxu1 %v42488_v47  ;;  %v24051_v19 = vand.u32 4294901760, %v32679_v31 }
0x22e4   :  { %37031 = vmatmul.mubr.f32.vlgmr.msra.gmra.mrb[44].mxu1 %v41925_v63  ;;  %v24145_v29 = vsub.f32 %v32679_v31, %v24051_v19 }
0x22e5   :  { %39505 = vmatpush3.bf16.msra.mxu1 %v42488_v47  ;;  %37041 = vmatprep.mubr.f32.mxu1 %v41929_v54  ;;  %v39590_v47 = vpack.c.bf16 %v24687_v58, %v24680_v30  ;;  %v42558_v30 = vpack.c.bf16 %v24051_v19, %v24048_v53  ;;  %v24139_v58 = vand.u32 4294901760, %v24138_v28  ;;  %v32683_v19 = vld [vmem:[%s43237_s23 + $0x7] ss:$0 sm:$0xff] }
0x22e6   :  { %39507 = vmatprep.subr.bf16.mxu1 %v42492_v20  ;;  %v24146_v0 = vand.u32 4294901760, %v24145_v29  ;;  %v39526_v13 = vpack.c.bf16 %v24145_v29, %v24138_v28 }
0x22e7   :  { %v24140_v2 = vsub.f32 %v24138_v28, %v24139_v58 }
0x22e8   :  { %v24147_v32 = vsub.f32 %v24145_v29, %v24146_v0 }
0x22e9   :  { %39509 = vmatpush3.bf16.msra.mxu1 %v42492_v20 }
0x22ea   :  { %39559 = vmatprep.subr.bf16.mxu1 %v39558_v39  ;;  %v24148_v40 = vand.u32 4294901760, %v24147_v32 }
0x22ec   :  { %37042 = vmatmul.mubr.f32.vlgmr.msra.gmra.mrb[44].mxu1 %v41925_v63 }
0x22ed   :  { %39561 = vmatpush3.bf16.msra.mxu1 %v39558_v39  ;;  %37118 = vmatprep.mubr.f32.mxu1 %v41947_v62 }
0x22ee   :  { %39563 = vmatprep.subr.bf16.mxu1 %v39562_v33 }
0x22f1   :  { %39565 = vmatpush3.bf16.msra.mxu1 %v39562_v33 }
0x22f2   :  { %39567 = vmatprep.subr.bf16.mxu1 %v39566_v17 }
0x22f4   :  { %37119 = vmatmul.mubr.f32.vlgmr.msra.gmra.mrb[46].mxu1 %v41949_v3 }
0x22f5   :  { %39569 = vmatpush3.bf16.msra.mxu1 %v39566_v17  ;;  %37129 = vmatprep.mubr.f32.mxu1 %v41929_v54  ;;  %v24141_v17 = vand.u32 4294901760, %v24140_v2 }
0x22f6   :  { %39571 = vmatprep.subr.bf16.mxu1 %v39570_v35 }
0x22f9   :  { %39573 = vmatpush3.bf16.msra.mxu1 %v39570_v35 }
0x22fa   :  { %39575 = vmatprep.subr.bf16.mxu1 %v39574_v37 }
0x22fc   :  { %37130 = vmatmul.mubr.f32.vlgmr.msra.gmra.mrb[46].mxu1 %v41925_v63 }
0x22fd   :  { %39577 = vmatpush3.bf16.msra.mxu1 %v39574_v37  ;;  %37140 = vmatprep.mubr.f32.mxu1 %v41935_v43  ;;  %v39518_v37 = vpack.c.bf16 %v24148_v40, %v24141_v17 }
0x22fe   :  { %39579 = vmatprep.subr.bf16.mxu1 %v39578_v36 }
0x2301   :  { %39581 = vmatpush3.bf16.msra.mxu1 %v39578_v36 }
0x2302   :  { %39583 = vmatprep.subr.bf16.mxu1 %v39558_v39 }
0x2304   :  { %37141 = vmatmul.mubr.f32.vlgmr.msra.gmra.mrb[46].mxu1 %v41932_v55 }
0x2305   :  { %39585 = vmatpush3.bf16.msra.mxu1 %v39558_v39  ;;  %37151 = vmatprep.mubr.f32.mxu1 %v41941_v57 }
0x2306   :  { %39587 = vmatprep.subr.bf16.mxu1 %v39562_v33 }
0x2309   :  { %39589 = vmatpush3.bf16.msra.mxu1 %v39562_v33 }
0x230a   :  { %39591 = vmatprep.subr.bf16.mxu1 %v39590_v47 }
0x230c   :  { %37152 = vmatmul.mubr.f32.vlgmr.msra.gmra.mrb[46].mxu1 %v41938_v56 }
0x230d   :  { %39593 = vmatpush3.bf16.msra.mxu1 %v39590_v47  ;;  %37162 = vmatprep.mubr.f32.mxu1 %v41929_v54 }
0x230e   :  { %39595 = vmatprep.subr.bf16.mxu1 %v39594_v38 }
0x2311   :  { %39597 = vmatpush3.bf16.msra.mxu1 %v39594_v38 }
0x2312   :  { %39599 = vmatprep.subr.bf16.mxu1 %v39558_v39 }
0x2314   :  { %37163 = vmatmul.mubr.f32.vlgmr.msra.gmra.mrb[46].mxu1 %v41925_v63 }
0x2315   :  { %39601 = vmatpush3.bf16.msra.mxu1 %v39558_v39  ;;  %37173 = vmatprep.mubr.f32.mxu1 %v41929_v54  ;;  %v24159_v39 = vsub.f32 %v32681_v11, %v24057_v7 }
0x2316   :  { %39603 = vmatprep.subr.bf16.mxu1 %v39562_v33 }
0x2317   :  { %v24160_v34 = vand.u32 4294901760, %v24159_v39 }
0x2319   :  { %39605 = vmatpush3.bf16.msra.mxu1 %v39562_v33  ;;  %v24153_v33 = vand.u32 4294901760, %v24152_v51  ;;  %v24161_v35 = vsub.f32 %v24159_v39, %v24160_v34 }
0x231b   :  { %v24154_v23 = vsub.f32 %v24152_v51, %v24153_v33  ;;  %v24162_v47 = vand.u32 4294901760, %v24161_v35 }
0x231c   :  { %37174 = vmatmul.mubr.f32.vlgmr.msra.gmra.mrb[46].mxu1 %v41925_v63 }
0x231d   :  { %v24155_v36 = vand.u32 4294901760, %v24154_v23 }
0x231f   :  { %v39522_v38 = vpack.c.bf16 %v24162_v47, %v24155_v36 }
0x238f   :  { %v36947_v49 = vpop.f32.mrb[42].mxu1 }
0x2390   :  { %v23000_v20 = vsel %vm1704_vm1, %v36947_v49, 0  ;;  %v22984_v24 = vpop.f32.mrb[43].mxu1 }
0x2391   :  { %v23078_v42 = vand.u32 4294901760, %v23000_v20  ;;  %v22997_v15 = vsel %vm1704_vm1, %v22984_v24, 0 }
0x2392   :  { %v23068_v50 = vand.u32 4294901760, %v22997_v15 }
0x2393   :  { %v23079_v61 = vsub.f32 %v23000_v20, %v23078_v42 }
0x2394   :  { %v23069_v12 = vsub.f32 %v22997_v15, %v23068_v50 }
0x2395   :  { %v23080_v5 = vand.u32 4294901760, %v23079_v61 }
0x2396   :  { %v23070_v18 = vand.u32 4294901760, %v23069_v12 }
0x2397   :  { %v23081_v4 = vsub.f32 %v23079_v61, %v23080_v5 }
0x2398   :  { %v23071_v59 = vsub.f32 %v23069_v12, %v23070_v18 }
0x2399   :  { %v23082_v26 = vand.u32 4294901760, %v23081_v4 }
0x239a   :  { %v23072_v21 = vand.u32 4294901760, %v23071_v59 }
0x239c   :  { %36950 = vmatprep.mubr.f32.mxu0 %v23072_v21 }
0x239d   :  { %36951 = vmatmul.mubr.f32.vlgmr.msra.gmra.mrb[30].mxu0 %v23082_v26 }
0x239e   :  { %36955 = vmatprep.mubr.f32.mxu0 %v23068_v50  ;;  %36954 = vmatpush3.msra.mxu0 %v23093_v48 }
0x239f   :  { %36958 = vmatprep.subr.mxu0 %v23090_v45 }
0x23a5   :  { %36956 = vmatmul.mubr.f32.vlgmr.msra.gmra.mrb[30].mxu0 %v23078_v42 }
0x23a6   :  { %36960 = vmatprep.mubr.f32.mxu0 %v23069_v12  ;;  %36959 = vmatpush3.msra.mxu0 %v23090_v45 }
0x23a7   :  { %36963 = vmatprep.subr.mxu0 %v23003_v44 }
0x23ad   :  { %36961 = vmatmul.mubr.f32.vlgmr.msra.gmra.mrb[30].mxu0 %v23079_v61 }
0x23ae   :  { %36965 = vmatprep.mubr.f32.mxu0 %v23070_v18  ;;  %36964 = vmatpush3.msra.mxu0 %v23003_v44 }
0x23af   :  { %36968 = vmatprep.subr.mxu0 %v23091_v14 }
0x23b5   :  { %36966 = vmatmul.mubr.f32.vlgmr.msra.gmra.mrb[30].mxu0 %v23080_v5 }
0x23b6   :  { %36970 = vmatprep.mubr.f32.mxu0 %v23068_v50  ;;  %36969 = vmatpush3.msra.mxu0 %v23091_v14  ;;  %v39546_v14 = vpack.c.bf16 %v24160_v34, %v24153_v33 }
0x23b7   :  { %36973 = vmatprep.subr.mxu0 %v23003_v44 }
0x23bd   :  { %36971 = vmatmul.mubr.f32.vlgmr.msra.gmra.mrb[30].mxu0 %v23078_v42 }
0x23be   :  { %36975 = vmatprep.mubr.f32.mxu0 %v23068_v50  ;;  %36974 = vmatpush3.msra.mxu0 %v23003_v44  ;;  %v39530_v44 = vpack.c.bf16 %v24159_v39, %v24152_v51 }
0x23bf   :  { %v37043_v41 = vpop.f32.mrb[44].mxu1  ;;  %39511 = vmatprep.subr.bf16.mxu0 %v42558_v30 }
0x23c0   :  { %v42564_v16 = vadd.f32 %v37043_v41, %v32677_v6  ;;  %v24024_v8 = vpop.f32.mrb[45].mxu1 }
0x23c5   :  { %36976 = vmatmul.mubr.f32.vlgmr.msra.gmra.mrb[30].mxu0 %v23078_v42 }
0x23c6   :  { %39513 = vmatpush3.bf16.msra.mxu0 %v42558_v30  ;;  %37052 = vmatprep.mubr.f32.mxu0 %v41947_v62  ;;  %v40149_v62 = vadd.f32 %v32677_v6, %v24024_v8 }
0x23c7   :  { %39515 = vmatprep.subr.bf16.mxu0 %v39514_v10 }
0x23c8   :  { %v25117_v45 = vsel %vm1704_vm1, %v40149_v62, 0 }
0x23c9   :  { %v42577_v46 = vand.u32 4294901760, %v25117_v45 }
0x23ca   :  { %39517 = vmatpush3.bf16.msra.mxu0 %v39514_v10 }
0x23cb   :  { %39519 = vmatprep.subr.bf16.mxu0 %v39518_v37 }
0x23cd   :  { %37053 = vmatmul.mubr.f32.vlgmr.msra.gmra.mrb[36].mxu0 %v41949_v3  ;;  %v39542_v3 = vpack.c.bf16 %v24146_v0, %v24139_v58 }
0x23ce   :  { %39521 = vmatpush3.bf16.msra.mxu0 %v39518_v37  ;;  %37063 = vmatprep.mubr.f32.mxu0 %v41929_v54 }
0x23cf   :  { %39523 = vmatprep.subr.bf16.mxu0 %v39522_v38 }
0x23d2   :  { %39525 = vmatpush3.bf16.msra.mxu0 %v39522_v38 }
0x23d3   :  { %39527 = vmatprep.subr.bf16.mxu0 %v39526_v13 }
0x23d5   :  { %37064 = vmatmul.mubr.f32.vlgmr.msra.gmra.mrb[36].mxu0 %v41925_v63 }
0x23d6   :  { %39529 = vmatpush3.bf16.msra.mxu0 %v39526_v13  ;;  %37074 = vmatprep.mubr.f32.mxu0 %v41935_v43 }
0x23d7   :  { %39531 = vmatprep.subr.bf16.mxu0 %v39530_v44 }
0x23da   :  { %39533 = vmatpush3.bf16.msra.mxu0 %v39530_v44 }
0x23db   :  { %39535 = vmatprep.subr.bf16.mxu0 %v42558_v30 }
0x23dd   :  { %37075 = vmatmul.mubr.f32.vlgmr.msra.gmra.mrb[36].mxu0 %v41932_v55  ;;  %v42582_v55 = vsub.f32 %v25117_v45, %v42577_v46 }
0x23de   :  { %39537 = vmatpush3.bf16.msra.mxu0 %v42558_v30  ;;  %37085 = vmatprep.mubr.f32.mxu0 %v41941_v57  ;;  %v32689_v57 = vld [vmem:[%s43203_s8 + $0x7] ss:$0 sm:$0xff] }
0x23df   :  { %39539 = vmatprep.subr.bf16.mxu0 %v39514_v10  ;;  %v25197_v43 = vand.u32 4294901760, %v42582_v55 }
0x23e1   :  { %v25198_v20 = vsub.f32 %v42582_v55, %v25197_v43 }
0x23e2   :  { %39541 = vmatpush3.bf16.msra.mxu0 %v39514_v10 }
0x23e3   :  { %39543 = vmatprep.subr.bf16.mxu0 %v39542_v3  ;;  %v25199_v61 = vand.u32 4294901760, %v25198_v20 }
0x23e5   :  { %37086 = vmatmul.mubr.f32.vlgmr.msra.gmra.mrb[36].mxu0 %v41938_v56 }
0x23e6   :  { %39545 = vmatpush3.bf16.msra.mxu0 %v39542_v3  ;;  %37096 = vmatprep.mubr.f32.mxu0 %v41929_v54 }
0x23e7   :  { %39547 = vmatprep.subr.bf16.mxu0 %v39546_v14 }
0x23ea   :  { %39549 = vmatpush3.bf16.msra.mxu0 %v39546_v14 }
0x23eb   :  { %39551 = vmatprep.subr.bf16.mxu0 %v42558_v30 }
0x23ed   :  { %37097 = vmatmul.mubr.f32.vlgmr.msra.gmra.mrb[36].mxu0 %v41925_v63 }
0x23ee   :  { %39553 = vmatpush3.bf16.msra.mxu0 %v42558_v30  ;;  %37107 = vmatprep.mubr.f32.mxu0 %v41929_v54 }
0x23ef   :  { %v37175_v56 = vpop.f32.mrb[46].mxu1  ;;  %39555 = vmatprep.subr.bf16.mxu0 %v39514_v10 }
0x23f0   :  { %v40152_v48 = vadd.f32 %v37175_v56, %v32689_v57  ;;  %v25106_v49 = vpop.f32.mrb[47].mxu1 }
0x23f1   :  { %v40153_v24 = vadd.f32 %v32689_v57, %v25106_v49 }
0x23f2   :  { %v25662_v42 = vand.u32 4294901760, %v40152_v48  ;;  %39557 = vmatpush3.bf16.msra.mxu0 %v39514_v10 }
0x23f3   :  { %v25659_v15 = vand.u32 4294901760, %v40153_v24 }
0x23f4   :  { %v25754_v50 = vsub.f32 %v40152_v48, %v25662_v42 }
0x23f5   :  { %v42595_v12 = vpack.c.bf16 %v25662_v42, %v25659_v15  ;;  %v25747_v5 = vsub.f32 %v40153_v24, %v25659_v15  ;;  %37108 = vmatmul.mubr.f32.vlgmr.msra.gmra.mrb[36].mxu0 %v41925_v63  ;;  %v25120_v63 = vsel %vm1704_vm1, %v42564_v16, 0 }
0x23f6   :  { %v25755_v54 = vand.u32 4294901760, %v25754_v50  ;;  %37180 = vmatprep.mubr.f32.mxu0 %v25199_v61  ;;  %v25205_v1 = vand.u32 4294901760, %v25120_v63 }
0x23f7   :  { %v25748_v18 = vand.u32 4294901760, %v25747_v5  ;;  %39631 = vmatprep.subr.bf16.mxu1 %v42595_v12  ;;  %v42599_v4 = vpack.c.bf16 %v25754_v50, %v25747_v5 }
0x23f8   :  { %39633 = vmatpush3.bf16.msra.mxu1 %v42595_v12  ;;  %v25756_v59 = vsub.f32 %v25754_v50, %v25755_v54  ;;  %v25206_v29 = vsub.f32 %v25120_v63, %v25205_v1 }
0x23f9   :  { %v25749_v21 = vsub.f32 %v25747_v5, %v25748_v18  ;;  %v42602_v26 = vpack.c.bf16 %v25755_v54, %v25748_v18 }
0x23fa   :  { %v25757_v27 = vand.u32 4294901760, %v25756_v59  ;;  %v25207_v6 = vand.u32 4294901760, %v25206_v29 }
0x23fb   :  { %v25750_v31 = vand.u32 4294901760, %v25749_v21 }
0x23fc   :  { %v25208_v8 = vsub.f32 %v25206_v29, %v25207_v6 }
0x23fd   :  { %v42604_v53 = vpack.c.bf16 %v25757_v27, %v25750_v31 }
0x23fe   :  { %v25209_v35 = vand.u32 4294901760, %v25208_v8  ;;  %v32692_v8 = vld [vmem:[%s43205_s10 + $0x1] ss:$0 sm:$0xff] }
0x23ff   :  { %39635 = vmatprep.subr.bf16.mxu1 %v42604_v53 }
0x24c8   :  { %v37109_v11 = vpop.f32.mrb[36].mxu0 }
0x24c9   :  { %v40150_v22 = vadd.f32 %v37109_v11, %v32683_v19  ;;  %v24565_v7 = vpop.f32.mrb[37].mxu0 }
0x24ca   :  { %v40151_v28 = vadd.f32 %v32683_v19, %v24565_v7 }
0x24cb   :  { %v25126_v30 = vsel %vm1704_vm1, %v40150_v22, 0 }
0x24cc   :  { %v25132_v58 = vand.u32 4294901760, %v25126_v30  ;;  %v25123_v0 = vsel %vm1704_vm1, %v40151_v28, 0 }
0x24cd   :  { %v25129_v51 = vand.u32 4294901760, %v25123_v0 }
0x24ce   :  { %v25224_v39 = vsub.f32 %v25126_v30, %v25132_v58 }
0x24cf   :  { %v39606_v41 = vpack.c.bf16 %v25132_v58, %v25129_v51  ;;  %v25217_v2 = vsub.f32 %v25123_v0, %v25129_v51 }
0x24d0   :  { %v25225_v32 = vand.u32 4294901760, %v25224_v39 }
0x24d1   :  { %v25218_v33 = vand.u32 4294901760, %v25217_v2  ;;  %39607 = vmatprep.subr.bf16.mxu0 %v39606_v41  ;;  %v39614_v34 = vpack.c.bf16 %v25224_v39, %v25217_v2 }
0x24d2   :  { %39609 = vmatpush3.bf16.xpose.msra.mxu0 %v39606_v41  ;;  %v25226_v16 = vsub.f32 %v25224_v39, %v25225_v32 }
0x24d3   :  { %v25219_v10 = vsub.f32 %v25217_v2, %v25218_v33  ;;  %v39622_v17 = vpack.c.bf16 %v25225_v32, %v25218_v33 }
0x24d4   :  { %v25227_v40 = vand.u32 4294901760, %v25226_v16 }
0x24d5   :  { %v25220_v23 = vand.u32 4294901760, %v25219_v10 }
0x24d7   :  { %v39610_v37 = vpack.c.bf16 %v25227_v40, %v25220_v23 }
0x24d9   :  { %37181 = vmatmul.mubr.f32.vlgmr.msra.gmra.mrb[38].mxu0 %v25209_v35  ;;  %39611 = vmatprep.subr.bf16.mxu0 %v39610_v37 }
0x24da   :  { %39613 = vmatpush3.bf16.xpose.msra.mxu0 %v39610_v37  ;;  %37187 = vmatprep.mubr.f32.mxu0 %v42577_v46 }
0x24db   :  { %39615 = vmatprep.subr.bf16.mxu0 %v39614_v34 }
0x24e1   :  { %37188 = vmatmul.mubr.f32.vlgmr.msra.gmra.mrb[38].mxu0 %v25205_v1 }
0x24e2   :  { %39617 = vmatpush3.bf16.xpose.msra.mxu0 %v39614_v34  ;;  %37194 = vmatprep.mubr.f32.mxu0 %v42582_v55 }
0x24e3   :  { %39619 = vmatprep.subr.bf16.mxu0 %v39606_v41 }
0x24e9   :  { %37195 = vmatmul.mubr.f32.vlgmr.msra.gmra.mrb[38].mxu0 %v25206_v29 }
0x24ea   :  { %39621 = vmatpush3.bf16.xpose.msra.mxu0 %v39606_v41  ;;  %37201 = vmatprep.mubr.f32.mxu0 %v25197_v43 }
0x24eb   :  { %39623 = vmatprep.subr.bf16.mxu0 %v39622_v17 }
0x24f1   :  { %37202 = vmatmul.mubr.f32.vlgmr.msra.gmra.mrb[38].mxu0 %v25207_v6 }
0x24f2   :  { %39625 = vmatpush3.bf16.xpose.msra.mxu0 %v39622_v17  ;;  %37208 = vmatprep.mubr.f32.mxu0 %v42577_v46 }
0x24f3   :  { %39627 = vmatprep.subr.bf16.mxu0 %v39606_v41 }
0x24f9   :  { %37209 = vmatmul.mubr.f32.vlgmr.msra.gmra.mrb[38].mxu0 %v25205_v1 }
0x24fa   :  { %39629 = vmatpush3.bf16.xpose.msra.mxu0 %v39606_v41  ;;  %37215 = vmatprep.mubr.f32.mxu0 %v42577_v46 }
0x2501   :  { %37216 = vmatmul.mubr.f32.vlgmr.msra.gmra.mrb[38].mxu0 %v25205_v1 }
0x25d4   :  { %v37217_v36 = vpop.f32.mrb[38].mxu0 }
0x25d5   :  { %v40154_v47 = vadd.f32 %v42453_v9, %v37217_v36  ;;  %v25620_v38 = vpop.f32.mrb[39].mxu0 }
0x25d6   :  { %v40155_v13 = vadd.f32 %v42459_v60, %v25620_v38 }
0x25d7   :  { %v25633_v44 = vsel %vm2219_vm2, %v40154_v47, -inf }
0x25d8   :  { %25634 = vmax.xlane.f32.xlu1 %v25633_v44  ;;  %v25630_v62 = vsel %vm2219_vm2, %v40155_v13, -inf }
0x25d9   :  { %25631 = vmax.xlane.f32.xlu0 %v25630_v62 }
0x2665   :  { %v25635_v3 = vpop.xlane.xlu1 %25634 }
0x2666   :  { %v25637_v45 = vsub.f32 %v40154_v47, %v25635_v3  ;;  %v25632_v14 = vpop.xlane.xlu0 %25631 }
0x2667   :  { %v25636_v55 = vsub.f32 %v40155_v13, %v25632_v14 }
0x2668   :  { %v25640_v43 = vmul.f32 1.442695, %v25637_v45 }
0x2669   :  { %v25638_v57 = vmul.f32 1.442695, %v25636_v55  ;;  %v32697_v55 = vld [vmem:[%s43208_s13 + $0x20] sm:$0xff] }
0x266a   :  { %40889 = vpow2.f32 %v25640_v43  ;;  %v32698_v43 = vld [vmem:[%s43208_s13 + $0x28] sm:$0xff] }
0x266b   :  { %40891 = vpow2.f32 %v25638_v57  ;;  %v32699_v57 = vld [vmem:[%s43208_s13 + $0x30] sm:$0xff] }
0x2674   :  { %v40890_v46 = vpop.eup %40889 }
0x2675   :  { %v40892_v56 = vpop.eup %40891  ;;  %v25645_v9 = vsel %vm2219_vm2, %v40890_v46, 0.0 }
0x2676   :  { %25646 = vadd.xlane.f32.xlu1 %v25645_v9  ;;  %v25642_v60 = vsel %vm2219_vm2, %v40892_v56, 0.0  ;;  %v32700_v9 = vld [vmem:[%s43208_s13 + $0x38] sm:$0xff] }
0x2677   :  { %25643 = vadd.xlane.f32.xlu0 %v25642_v60  ;;  %v26743_v60 = vand.u32 4294901760, %v32699_v57 }
0x2703   :  { %v25647_v48 = vpop.xlane.xlu1 %25646 }
0x2704   :  { %40893 = vrcp.f32 %v25647_v48  ;;  %v25644_v49 = vpop.xlane.xlu0 %25643  ;;  %v26746_v48 = vand.u32 4294901760, %v32700_v9 }
0x2705   :  { %40895 = vrcp.f32 %v25644_v49 }
0x270e   :  { %v40894_v20 = vpop.eup %40893 }
0x270f   :  { %v40896_v24 = vpop.eup %40895  ;;  %v25651_v42 = vmul.f32 %v40894_v20, %v40890_v46  ;;  %v26737_v46 = vand.u32 4294901760, %v32697_v55  ;;  %v42665_v20 = vpack.c.bf16 %v26746_v48, %v26743_v60 }
0x2710   :  { %v25650_v15 = vmul.f32 %v40896_v24, %v40892_v56  ;;  %v26740_v56 = vand.u32 4294901760, %v32698_v43 }
0x2711   :  { %v25656_v50 = vsel %vm2219_vm2, %v25651_v42, 0  ;;  %v26827_v24 = vsub.f32 %v32697_v55, %v26737_v46 }
0x2712   :  { %v25653_v61 = vsel %vm2219_vm2, %v25650_v15, 0  ;;  %v25735_v5 = vand.u32 4294901760, %v25656_v50  ;;  %v42663_v49 = vpack.c.bf16 %v26740_v56, %v26737_v46  ;;  %v26834_v42 = vsub.f32 %v32698_v43, %v26740_v56  ;;  %v32705_v43 = vld [vmem:[%s43210_s15 + $0x50] sm:$0xff] }
0x2713   :  { %v25725_v54 = vand.u32 4294901760, %v25653_v61  ;;  %v26828_v15 = vand.u32 4294901760, %v26827_v24  ;;  %v27296_v46 = vand.u32 4294901760, %v32705_v43 }
0x2714   :  { %v25736_v18 = vsub.f32 %v25656_v50, %v25735_v5  ;;  %v26835_v50 = vand.u32 4294901760, %v26834_v42 }
0x2715   :  { %v25726_v59 = vsub.f32 %v25653_v61, %v25725_v54  ;;  %v26829_v61 = vsub.f32 %v26827_v24, %v26828_v15 }
0x2716   :  { %v25737_v21 = vand.u32 4294901760, %v25736_v18 }
0x2717   :  { %v25727_v27 = vand.u32 4294901760, %v25726_v59 }
0x2718   :  { %v25738_v31 = vsub.f32 %v25736_v18, %v25737_v21 }
0x2719   :  { %v25728_v63 = vsub.f32 %v25726_v59, %v25727_v27 }
0x271a   :  { %v25739_v1 = vand.u32 4294901760, %v25738_v31 }
0x271b   :  { %v25729_v19 = vand.u32 4294901760, %v25728_v63 }
0x271d   :  { %37222 = vmatprep.mubr.f32.mxu1 %v25729_v19 }
0x271e   :  { %37223 = vmatmul.mubr.f32.vlgmr.msra.gmra.mrb[48].mxu1 %v25739_v1 }
0x271f   :  { %39637 = vmatpush3.bf16.msra.mxu1 %v42604_v53  ;;  %37229 = vmatprep.mubr.f32.mxu1 %v25725_v54 }
0x2720   :  { %39639 = vmatprep.subr.bf16.mxu1 %v42599_v4 }
0x2726   :  { %37230 = vmatmul.mubr.f32.vlgmr.msra.gmra.mrb[48].mxu1 %v25735_v5 }
0x2727   :  { %39641 = vmatpush3.bf16.msra.mxu1 %v42599_v4  ;;  %37236 = vmatprep.mubr.f32.mxu1 %v25726_v59  ;;  %v32690_v4 = vld [vmem:[%s43204_s9 + $0x38] sm:$0xff]  ;;  %v26830_v59 = vand.u32 4294901760, %v26829_v61 }
0x2728   :  { %39643 = vmatprep.subr.bf16.mxu1 %v42595_v12  ;;  %v26169_v53 = vand.u32 4294901760, %v32690_v4  ;;  %v32710_v61 = vld [vmem:[%s43210_s15 + $0x78] sm:$0xff] }
0x272a   :  { %37260 = vmatprep.subr.mxu0 %v26169_v53  ;;  %v26256_v11 = vsub.f32 %v32690_v4, %v26169_v53 }
0x272b   :  { %37261 = vmatpush3.msra.mxu0 %v26169_v53 }
0x272c   :  { %v26257_v22 = vand.u32 4294901760, %v26256_v11 }
0x272e   :  { %37237 = vmatmul.mubr.f32.vlgmr.msra.gmra.mrb[48].mxu1 %v25736_v18  ;;  %v26258_v7 = vsub.f32 %v26256_v11, %v26257_v22  ;;  %v26848_v18 = vsub.f32 %v32700_v9, %v26746_v48  ;;  %v32708_v48 = vld [vmem:[%s43210_s15 + $0x68] sm:$0xff] }
0x272f   :  { %39645 = vmatpush3.bf16.msra.mxu1 %v42595_v12  ;;  %37243 = vmatprep.mubr.f32.mxu1 %v25727_v27 }
0x2730   :  { %39647 = vmatprep.subr.bf16.mxu1 %v42602_v26  ;;  %v26259_v28 = vand.u32 4294901760, %v26258_v7  ;;  %v26849_v31 = vand.u32 4294901760, %v26848_v18 }
0x2732   :  { %37265 = vmatprep.subr.mxu0 %v26259_v28  ;;  %v26850_v1 = vsub.f32 %v26848_v18, %v26849_v31 }
0x2736   :  { %37244 = vmatmul.mubr.f32.vlgmr.msra.gmra.mrb[48].mxu1 %v25737_v21 }
0x2737   :  { %39649 = vmatpush3.bf16.msra.mxu1 %v42602_v26  ;;  %37250 = vmatprep.mubr.f32.mxu1 %v25725_v54 }
0x2738   :  { %39651 = vmatprep.subr.bf16.mxu1 %v42595_v12 }
0x273e   :  { %37251 = vmatmul.mubr.f32.vlgmr.msra.gmra.mrb[48].mxu1 %v25735_v5 }
0x273f   :  { %39653 = vmatpush3.bf16.msra.mxu1 %v42595_v12  ;;  %37257 = vmatprep.mubr.f32.mxu1 %v25725_v54  ;;  %v26841_v54 = vsub.f32 %v32699_v57, %v26743_v60  ;;  %v32706_v57 = vld [vmem:[%s43210_s15 + $0x58] sm:$0xff]  ;;  %v32707_v60 = vld [vmem:[%s43210_s15 + $0x60] sm:$0xff] }
0x2740   :  { %39655 = vmatprep.subr.bf16.mxu1 %v42663_v49  ;;  %v27299_v56 = vand.u32 4294901760, %v32706_v57 }
0x2741   :  { %v26842_v27 = vand.u32 4294901760, %v26841_v54  ;;  %v39674_v7 = vpack.c.bf16 %v26848_v18, %v26841_v54 }
0x2742   :  { %v42709_v9 = vpack.c.bf16 %v27299_v56, %v27296_v46 }
0x2743   :  { %v26843_v19 = vsub.f32 %v26841_v54, %v26842_v27  ;;  %v27311_v54 = vand.u32 4294901760, %v32710_v61 }
0x2745   :  { %v26844_v4 = vand.u32 4294901760, %v26843_v19  ;;  %v27405_v19 = vsub.f32 %v32706_v57, %v27299_v56 }
0x2746   :  { %37258 = vmatmul.mubr.f32.vlgmr.msra.gmra.mrb[48].mxu1 %v25735_v5  ;;  %v26836_v5 = vsub.f32 %v26834_v42, %v26835_v50 }
0x2747   :  { %39657 = vmatpush3.bf16.msra.mxu1 %v42663_v49 }
0x2748   :  { %39659 = vmatprep.subr.bf16.mxu1 %v42665_v20  ;;  %v26837_v21 = vand.u32 4294901760, %v26836_v5 }
0x274a   :  { %v39662_v63 = vpack.c.bf16 %v26837_v21, %v26830_v59 }
0x274b   :  { %39661 = vmatpush3.bf16.msra.mxu1 %v42665_v20 }
0x274c   :  { %39663 = vmatprep.subr.bf16.mxu1 %v39662_v63 }
0x2819   :  { %v37259_v26 = vpop.f32.mrb[48].mxu1 }
0x281a   :  { %v26166_v29 = vsel %vm1704_vm1, %v37259_v26, 0  ;;  %v26150_v30 = vpop.f32.mrb[49].mxu1  ;;  %v39690_v26 = vpack.c.bf16 %v26849_v31, %v26842_v27 }
0x281b   :  { %v26244_v58 = vand.u32 4294901760, %v26166_v29  ;;  %v26163_v12 = vsel %vm1704_vm1, %v26150_v30, 0 }
0x281c   :  { %v26234_v0 = vand.u32 4294901760, %v26163_v12 }
0x281d   :  { %v26245_v51 = vsub.f32 %v26166_v29, %v26244_v58 }
0x281e   :  { %v26235_v39 = vsub.f32 %v26163_v12, %v26234_v0 }
0x281f   :  { %v26246_v6 = vand.u32 4294901760, %v26245_v51 }
0x2820   :  { %v26236_v41 = vand.u32 4294901760, %v26235_v39 }
0x2821   :  { %v26247_v2 = vsub.f32 %v26245_v51, %v26246_v6 }
0x2822   :  { %v26237_v32 = vsub.f32 %v26235_v39, %v26236_v41 }
0x2823   :  { %v26248_v34 = vand.u32 4294901760, %v26247_v2 }
0x2824   :  { %v26238_v33 = vand.u32 4294901760, %v26237_v32 }
0x2826   :  { %37262 = vmatprep.mubr.f32.mxu0 %v26238_v33  ;;  %v32696_v33 = vld [vmem:[%s43207_s12 + $0x1] ss:$0 sm:$0xff] }
0x2827   :  { %37263 = vmatmul.mubr.f32.vlgmr.msra.gmra.mrb[30].mxu0 %v26248_v34 }
0x2828   :  { %37267 = vmatprep.mubr.f32.mxu0 %v26234_v0  ;;  %37266 = vmatpush3.msra.mxu0 %v26259_v28  ;;  %v39686_v28 = vpack.c.bf16 %v26835_v50, %v26828_v15  ;;  %v32709_v50 = vld [vmem:[%s43210_s15 + $0x70] sm:$0xff] }
0x2829   :  { %37270 = vmatprep.subr.mxu0 %v26256_v11  ;;  %v27308_v5 = vand.u32 4294901760, %v32709_v50 }
0x282b   :  { %v42729_v21 = vpack.c.bf16 %v27311_v54, %v27308_v5 }
0x282f   :  { %37268 = vmatmul.mubr.f32.vlgmr.msra.gmra.mrb[30].mxu0 %v26244_v58 }
0x2830   :  { %37272 = vmatprep.mubr.f32.mxu0 %v26235_v39  ;;  %37271 = vmatpush3.msra.mxu0 %v26256_v11 }
0x2831   :  { %37275 = vmatprep.subr.mxu0 %v26169_v53 }
0x2837   :  { %37273 = vmatmul.mubr.f32.vlgmr.msra.gmra.mrb[30].mxu0 %v26245_v51 }
0x2838   :  { %37277 = vmatprep.mubr.f32.mxu0 %v26236_v41  ;;  %37276 = vmatpush3.msra.mxu0 %v26169_v53 }
0x2839   :  { %37280 = vmatprep.subr.mxu0 %v26257_v22 }
0x283f   :  { %37278 = vmatmul.mubr.f32.vlgmr.msra.gmra.mrb[30].mxu0 %v26246_v6  ;;  %v32694_v6 = vld [vmem:[%s43206_s11 + $0x1] ss:$0 sm:$0xff] }
0x2840   :  { %37282 = vmatprep.mubr.f32.mxu0 %v26234_v0  ;;  %37281 = vmatpush3.msra.mxu0 %v26257_v22  ;;  %v39670_v22 = vpack.c.bf16 %v26834_v42, %v26827_v24 }
0x2841   :  { %37285 = vmatprep.subr.mxu0 %v26169_v53 }
0x2847   :  { %37283 = vmatmul.mubr.f32.vlgmr.msra.gmra.mrb[30].mxu0 %v26244_v58 }
0x2848   :  { %37287 = vmatprep.mubr.f32.mxu0 %v26234_v0  ;;  %37286 = vmatpush3.msra.mxu0 %v26169_v53  ;;  %v26851_v53 = vand.u32 4294901760, %v26850_v1 }
0x284a   :  { %v39666_v11 = vpack.c.bf16 %v26851_v53, %v26844_v4 }
0x284f   :  { %37288 = vmatmul.mubr.f32.vlgmr.msra.gmra.mrb[30].mxu0 %v26244_v58 }
0x2922   :  { %v37289_v16 = vpop.f32.mrb[30].mxu0 }
0x2923   :  { %v26660_v10 = vadd.f32 %v37289_v16, %v41919_v52  ;;  %v26647_v17 = vpop.f32.mrb[31].mxu0 }
0x2924   :  { %v26659_v40 = vadd.f32 %v26647_v17, %v41921_v25 }
0x2925   :  { %v26670_v23 = vadd.f32 %v32692_v8, %v26660_v10 }
0x2926   :  { %v26669_v35 = vadd.f32 %v32692_v8, %v26659_v40 }
0x2927   :  { %v26674_v37 = vsel %vm91_vm0, %v26670_v23, 0.0 }
0x2928   :  { %26675 = vadd.xlane.f32.xlu1 %v26674_v37  ;;  %v26671_v36 = vsel %vm91_vm0, %v26669_v35, 0.0 }
0x2929   :  { %26672 = vadd.xlane.f32.xlu0 %v26671_v36 }
0x29b5   :  { %v26676_v47 = vpop.xlane.xlu1 %26675 }
0x29b6   :  { %v26678_v38 = vmul.f32 0.03125, %v26676_v47  ;;  %v26673_v13 = vpop.xlane.xlu0 %26672 }
0x29b7   :  { %v26677_v44 = vmul.f32 0.03125, %v26673_v13 }
0x29b8   :  { %v26680_v62 = vsub.f32 %v26670_v23, %v26678_v38 }
0x29b9   :  { %v26679_v3 = vsub.f32 %v26669_v35, %v26677_v44 }
0x29ba   :  { %v26682_v45 = vmul.f32 %v26680_v62, %v26680_v62 }
0x29bb   :  { %v26681_v14 = vmul.f32 %v26679_v3, %v26679_v3 }
0x29bc   :  { %v26686_v52 = vsel %vm91_vm0, %v26682_v45, 0.0  ;;  %v32703_v45 = vld [vmem:[%s43210_s15 + $0x40] sm:$0xff] }
0x29bd   :  { %26687 = vadd.xlane.f32.xlu1 %v26686_v52  ;;  %v26683_v25 = vsel %vm91_vm0, %v26681_v14, 0.0  ;;  %v32704_v14 = vld [vmem:[%s43210_s15 + $0x48] sm:$0xff]  ;;  %v27290_v52 = vand.u32 4294901760, %v32703_v45 }
0x29be   :  { %26684 = vadd.xlane.f32.xlu0 %v26683_v25  ;;  %v27293_v25 = vand.u32 4294901760, %v32704_v14 }
0x29bf   :  { %v27384_v42 = vsub.f32 %v32703_v45, %v27290_v52 }
0x29c0   :  { %v42699_v55 = vpack.c.bf16 %v27293_v25, %v27290_v52  ;;  %v27391_v15 = vsub.f32 %v32704_v14, %v27293_v25  ;;  %v32702_v52 = vld [vmem:[%s43209_s14 + $0x1] ss:$0 sm:$0xff] }
0x29c1   :  { %v27385_v18 = vand.u32 4294901760, %v27384_v42 }
0x29c2   :  { %39703 = vmatprep.subr.bf16.mxu0 %v42699_v55  ;;  %v27392_v59 = vand.u32 4294901760, %v27391_v15 }
0x29c3   :  { %39705 = vmatpush3.bf16.msra.mxu0 %v42699_v55  ;;  %v27386_v27 = vsub.f32 %v27384_v42, %v27385_v18 }
0x29c4   :  { %39707 = vmatprep.subr.bf16.mxu0 %v42709_v9  ;;  %v27393_v31 = vsub.f32 %v27391_v15, %v27392_v59 }
0x29c5   :  { %v27387_v1 = vand.u32 4294901760, %v27386_v27 }
0x29c6   :  { %v27394_v4 = vand.u32 4294901760, %v27393_v31  ;;  %v32712_v31 = vld [vmem:[%s43211_s16 + $0x1] ss:$0 sm:$0xff] }
0x29c7   :  { %39709 = vmatpush3.bf16.msra.mxu0 %v42709_v9 }
0x2a4a   :  { %v26688_v29 = vpop.xlane.xlu1 %26687 }
0x2a4b   :  { %v26690_v30 = vmul.f32 0.03125, %v26688_v29  ;;  %v26685_v58 = vpop.xlane.xlu0 %26684 }
0x2a4c   :  { %v26689_v12 = vmul.f32 0.03125, %v26685_v58 }
0x2a4d   :  { %v26692_v0 = vadd.f32 1e-06, %v26690_v30 }
0x2a4e   :  { %v26691_v51 = vadd.f32 1e-06, %v26689_v12 }
0x2a4f   :  { %40897 = vrsqrt.f32 %v26692_v0 }
0x2a50   :  { %40899 = vrsqrt.f32 %v26691_v51 }
0x2a59   :  { %v40898_v39 = vpop.eup %40897 }
0x2a5a   :  { %v40900_v41 = vpop.eup %40899  ;;  %v26696_v2 = vmul.f32 %v40898_v39, %v26680_v62 }
0x2a5b   :  { %v26695_v32 = vmul.f32 %v40900_v41, %v26679_v3  ;;  %v27433_v41 = vsub.f32 %v32710_v61, %v27311_v54 }
0x2a5c   :  { %v26706_v34 = vmul.f32 %v32694_v6, %v26696_v2 }
0x2a5d   :  { %v26705_v16 = vmul.f32 %v32694_v6, %v26695_v32  ;;  %v27426_v6 = vsub.f32 %v32709_v50, %v27308_v5 }
0x2a5e   :  { %v42677_v8 = vadd.f32 %v32696_v33, %v26706_v34 }
0x2a5f   :  { %v42679_v10 = vadd.f32 %v32696_v33, %v26705_v16  ;;  %v27427_v34 = vand.u32 4294901760, %v27426_v6  ;;  %v27434_v16 = vand.u32 4294901760, %v27433_v41 }
0x2a60   :  { %v26734_v17 = vsel %vm91_vm0, %v42677_v8, 0 }
0x2a61   :  { %v26731_v40 = vsel %vm91_vm0, %v42679_v10, 0  ;;  %v26815_v23 = vand.u32 4294901760, %v26734_v17  ;;  %v39778_v14 = vpack.c.bf16 %v27434_v16, %v27427_v34 }
0x2a62   :  { %v26805_v35 = vand.u32 4294901760, %v26731_v40 }
0x2a63   :  { %v26816_v37 = vsub.f32 %v26734_v17, %v26815_v23 }
0x2a64   :  { %v26806_v36 = vsub.f32 %v26731_v40, %v26805_v35  ;;  %v27428_v40 = vsub.f32 %v27426_v6, %v27427_v34 }
0x2a65   :  { %v26817_v47 = vand.u32 4294901760, %v26816_v37 }
0x2a66   :  { %v26807_v38 = vand.u32 4294901760, %v26806_v36 }
0x2a67   :  { %v26818_v13 = vsub.f32 %v26816_v37, %v26817_v47 }
0x2a68   :  { %v26808_v44 = vsub.f32 %v26806_v36, %v26807_v38 }
0x2a69   :  { %v26819_v3 = vand.u32 4294901760, %v26818_v13 }
0x2a6a   :  { %v26809_v62 = vand.u32 4294901760, %v26808_v44  ;;  %v39746_v44 = vpack.c.bf16 %v27433_v41, %v27426_v6 }
0x2a6c   :  { %37298 = vmatprep.mubr.f32.mxu1 %v26809_v62  ;;  %v39766_v62 = vpack.c.bf16 %v27392_v59, %v27385_v18 }
0x2a6d   :  { %37299 = vmatmul.mubr.f32.vlgmr.msra.gmra.mrb[50].mxu1 %v26819_v3 }
0x2a6e   :  { %39665 = vmatpush3.bf16.msra.mxu1 %v39662_v63  ;;  %37309 = vmatprep.mubr.f32.mxu1 %v26805_v35  ;;  %v27398_v63 = vsub.f32 %v32705_v43, %v27296_v46 }
0x2a6f   :  { %39667 = vmatprep.subr.bf16.mxu1 %v39666_v11 }
0x2a70   :  { %v27399_v53 = vand.u32 4294901760, %v27398_v63 }
0x2a72   :  { %39669 = vmatpush3.bf16.msra.mxu1 %v39666_v11  ;;  %v27406_v11 = vand.u32 4294901760, %v27405_v19 }
0x2a73   :  { %39671 = vmatprep.subr.bf16.mxu1 %v39670_v22 }
0x2a74   :  { %v27407_v29 = vsub.f32 %v27405_v19, %v27406_v11  ;;  %v39770_v3 = vpack.c.bf16 %v27406_v11, %v27399_v53 }
0x2a75   :  { %37310 = vmatmul.mubr.f32.vlgmr.msra.gmra.mrb[50].mxu1 %v26815_v23 }
0x2a76   :  { %39673 = vmatpush3.bf16.msra.mxu1 %v39670_v22  ;;  %37320 = vmatprep.mubr.f32.mxu1 %v26806_v36  ;;  %v39718_v22 = vpack.c.bf16 %v27394_v4, %v27387_v1  ;;  %v27408_v0 = vand.u32 4294901760, %v27407_v29 }
0x2a77   :  { %39675 = vmatprep.subr.bf16.mxu1 %v39674_v7 }
0x2a7a   :  { %39677 = vmatpush3.bf16.msra.mxu1 %v39674_v7  ;;  %v27400_v7 = vsub.f32 %v27398_v63, %v27399_v53 }
0x2a7b   :  { %39679 = vmatprep.subr.bf16.mxu1 %v42663_v49 }
0x2a7c   :  { %v27401_v30 = vand.u32 4294901760, %v27400_v7 }
0x2a7d   :  { %37321 = vmatmul.mubr.f32.vlgmr.msra.gmra.mrb[50].mxu1 %v26816_v37 }
0x2a7e   :  { %39681 = vmatpush3.bf16.msra.mxu1 %v42663_v49  ;;  %37331 = vmatprep.mubr.f32.mxu1 %v26807_v38  ;;  %v39722_v2 = vpack.c.bf16 %v27408_v0, %v27401_v30  ;;  %v39738_v38 = vpack.c.bf16 %v27405_v19, %v27398_v63 }
0x2a7f   :  { %39683 = vmatprep.subr.bf16.mxu1 %v42665_v20 }
0x2a82   :  { %39685 = vmatpush3.bf16.msra.mxu1 %v42665_v20 }
0x2a83   :  { %39687 = vmatprep.subr.bf16.mxu1 %v39686_v28 }
0x2a85   :  { %37332 = vmatmul.mubr.f32.vlgmr.msra.gmra.mrb[50].mxu1 %v26817_v47  ;;  %v39734_v47 = vpack.c.bf16 %v27391_v15, %v27384_v42 }
0x2a86   :  { %39689 = vmatpush3.bf16.msra.mxu1 %v39686_v28  ;;  %37342 = vmatprep.mubr.f32.mxu1 %v26805_v35 }
0x2a87   :  { %39691 = vmatprep.subr.bf16.mxu1 %v39690_v26 }
0x2a8a   :  { %39693 = vmatpush3.bf16.msra.mxu1 %v39690_v26 }
0x2a8b   :  { %39695 = vmatprep.subr.bf16.mxu1 %v42663_v49 }
0x2a8d   :  { %37343 = vmatmul.mubr.f32.vlgmr.msra.gmra.mrb[50].mxu1 %v26815_v23 }
0x2a8e   :  { %39697 = vmatpush3.bf16.msra.mxu1 %v42663_v49  ;;  %37353 = vmatprep.mubr.f32.mxu1 %v26805_v35  ;;  %v27302_v49 = vand.u32 4294901760, %v32707_v60  ;;  %v27429_v35 = vand.u32 4294901760, %v27428_v40 }
0x2a8f   :  { %39699 = vmatprep.subr.bf16.mxu1 %v42665_v20 }
0x2a90   :  { %v27412_v28 = vsub.f32 %v32707_v60, %v27302_v49 }
0x2a92   :  { %39701 = vmatpush3.bf16.msra.mxu1 %v42665_v20  ;;  %v27305_v20 = vand.u32 4294901760, %v32708_v48  ;;  %v27413_v58 = vand.u32 4294901760, %v27412_v28 }
0x2a94   :  { %v42719_v24 = vpack.c.bf16 %v27305_v20, %v27302_v49  ;;  %v27419_v26 = vsub.f32 %v32708_v48, %v27305_v20  ;;  %v27414_v51 = vsub.f32 %v27412_v28, %v27413_v58 }
0x2a95   :  { %37354 = vmatmul.mubr.f32.vlgmr.msra.gmra.mrb[50].mxu1 %v26815_v23  ;;  %v27435_v23 = vsub.f32 %v27433_v41, %v27434_v16 }
0x2a96   :  { %39711 = vmatprep.subr.bf16.mxu0 %v42719_v24  ;;  %v27420_v12 = vand.u32 4294901760, %v27419_v26  ;;  %v27415_v32 = vand.u32 4294901760, %v27414_v51  ;;  %v39742_v13 = vpack.c.bf16 %v27419_v26, %v27412_v28 }
0x2a97   :  { %39713 = vmatpush3.bf16.msra.mxu0 %v42719_v24  ;;  %v27436_v37 = vand.u32 4294901760, %v27435_v23 }
0x2a98   :  { %39715 = vmatprep.subr.bf16.mxu0 %v42729_v21  ;;  %v27421_v39 = vsub.f32 %v27419_v26, %v27420_v12  ;;  %v39774_v45 = vpack.c.bf16 %v27420_v12, %v27413_v58  ;;  %v27918_v12 = vld [vmem:[%s43214_s19 + $0x8] sm:$0xff] }
0x2a99   :  { %v39730_v36 = vpack.c.bf16 %v27436_v37, %v27429_v35  ;;  %v27931_v51 = vand.u32 4294901760, %v27918_v12 }
0x2a9a   :  { %v27422_v33 = vand.u32 4294901760, %v27421_v39 }
0x2a9b   :  { %39717 = vmatpush3.bf16.msra.mxu0 %v42729_v21  ;;  %v28025_v41 = vsub.f32 %v27918_v12, %v27931_v51  ;;  %v32720_v12 = vld [vmem:[%s43214_s19 + $0x38] sm:$0xff] }
0x2a9c   :  { %39719 = vmatprep.subr.bf16.mxu0 %v39718_v22  ;;  %v39726_v17 = vpack.c.bf16 %v27422_v33, %v27415_v32  ;;  %v27920_v32 = vld [vmem:[%s43214_s19 + $0x18] sm:$0xff] }
0x2a9d   :  { %v27937_v34 = vand.u32 4294901760, %v27920_v32 }
0x2b68   :  { %v37355_v25 = vpop.f32.mrb[50].mxu1 }
0x2b69   :  { %v40156_v43 = vadd.f32 %v37355_v25, %v32702_v52  ;;  %v27254_v57 = vpop.f32.mrb[51].mxu1 }
0x2b6a   :  { %v40157_v46 = vadd.f32 %v32702_v52, %v27254_v57 }
0x2b6b   :  { %v27265_v56 = vmax.f32 %v40156_v43, 0.0 }
0x2b6c   :  { %v27264_v60 = vmax.f32 %v40157_v46, 0.0 }
0x2b6d   :  { %v27287_v48 = vsel %vm13360_vm3, %v27265_v56, 0 }
0x2b6e   :  { %v27372_v49 = vand.u32 4294901760, %v27287_v48  ;;  %v27284_v20 = vsel %vm13360_vm3, %v27264_v60, 0 }
0x2b6f   :  { %v27362_v42 = vand.u32 4294901760, %v27284_v20 }
0x2b70   :  { %v27373_v15 = vsub.f32 %v27287_v48, %v27372_v49 }
0x2b71   :  { %v27363_v50 = vsub.f32 %v27284_v20, %v27362_v42 }
0x2b72   :  { %v27374_v61 = vand.u32 4294901760, %v27373_v15 }
0x2b73   :  { %v27364_v5 = vand.u32 4294901760, %v27363_v50 }
0x2b74   :  { %v27375_v54 = vsub.f32 %v27373_v15, %v27374_v61 }
0x2b75   :  { %v27365_v18 = vsub.f32 %v27363_v50, %v27364_v5 }
0x2b76   :  { %v27376_v27 = vand.u32 4294901760, %v27375_v54 }
0x2b77   :  { %v27366_v59 = vand.u32 4294901760, %v27365_v18  ;;  %v32716_v18 = vld [vmem:[%s43213_s18 + $0x1] ss:$0 sm:$0xff] }
0x2b79   :  { %37372 = vmatprep.mubr.f32.mxu0 %v27366_v59 }
0x2b7a   :  { %37373 = vmatmul.mubr.f32.vlgmr.msra.gmra.mrb[40].mxu0 %v27376_v27 }
0x2b7b   :  { %39721 = vmatpush3.bf16.msra.mxu0 %v39718_v22  ;;  %37391 = vmatprep.mubr.f32.mxu0 %v27362_v42 }
0x2b7c   :  { %39723 = vmatprep.subr.bf16.mxu0 %v39722_v2 }
0x2b7f   :  { %39725 = vmatpush3.bf16.msra.mxu0 %v39722_v2  ;;  %v27919_v2 = vld [vmem:[%s43214_s19 + $0x10] sm:$0xff] }
0x2b80   :  { %39727 = vmatprep.subr.bf16.mxu0 %v39726_v17  ;;  %v27934_v33 = vand.u32 4294901760, %v27919_v2 }
0x2b82   :  { %v42779_v40 = vpack.c.bf16 %v27937_v34, %v27934_v33  ;;  %v28032_v37 = vsub.f32 %v27919_v2, %v27934_v33 }
0x2b83   :  { %39729 = vmatpush3.bf16.msra.mxu0 %v39726_v17  ;;  %v28026_v17 = vand.u32 4294901760, %v28025_v41 }
0x2b84   :  { %39731 = vmatprep.subr.bf16.mxu0 %v39730_v36 }
0x2b85   :  { %v28027_v35 = vsub.f32 %v28025_v41, %v28026_v17 }
0x2b87   :  { %39733 = vmatpush3.bf16.msra.mxu0 %v39730_v36  ;;  %v28039_v36 = vsub.f32 %v27920_v32, %v27937_v34 }
0x2b88   :  { %39735 = vmatprep.subr.bf16.mxu0 %v39734_v47 }
0x2b89   :  { %v39818_v57 = vpack.c.bf16 %v28039_v36, %v28032_v37 }
0x2b8a   :  { %37392 = vmatmul.mubr.f32.vlgmr.msra.gmra.mrb[40].mxu0 %v27372_v49 }
0x2b8b   :  { %39737 = vmatpush3.bf16.msra.mxu0 %v39734_v47  ;;  %37410 = vmatprep.mubr.f32.mxu0 %v27363_v50 }
0x2b8c   :  { %39739 = vmatprep.subr.bf16.mxu0 %v39738_v38 }
0x2b8f   :  { %39741 = vmatpush3.bf16.msra.mxu0 %v39738_v38  ;;  %v28028_v38 = vand.u32 4294901760, %v28027_v35 }
0x2b90   :  { %39743 = vmatprep.subr.bf16.mxu0 %v39742_v13 }
0x2b93   :  { %39745 = vmatpush3.bf16.msra.mxu0 %v39742_v13  ;;  %v28033_v13 = vand.u32 4294901760, %v28032_v37 }
0x2b94   :  { %39747 = vmatprep.subr.bf16.mxu0 %v39746_v44 }
0x2b97   :  { %39749 = vmatpush3.bf16.msra.mxu0 %v39746_v44  ;;  %v28040_v44 = vand.u32 4294901760, %v28039_v36 }
0x2b98   :  { %39751 = vmatprep.subr.bf16.mxu0 %v42699_v55 }
0x2b99   :  { %v42783_v56 = vpack.c.bf16 %v28040_v44, %v28033_v13 }
0x2b9a   :  { %37411 = vmatmul.mubr.f32.vlgmr.msra.gmra.mrb[40].mxu0 %v27373_v15 }
0x2b9b   :  { %39753 = vmatpush3.bf16.msra.mxu0 %v42699_v55  ;;  %37429 = vmatprep.mubr.f32.mxu0 %v27364_v5 }
0x2b9c   :  { %39755 = vmatprep.subr.bf16.mxu0 %v42709_v9 }
0x2b9f   :  { %39757 = vmatpush3.bf16.msra.mxu0 %v42709_v9 }
0x2ba0   :  { %39759 = vmatprep.subr.bf16.mxu0 %v42719_v24 }
0x2ba3   :  { %39761 = vmatpush3.bf16.msra.mxu0 %v42719_v24 }
0x2ba4   :  { %39763 = vmatprep.subr.bf16.mxu0 %v42729_v21 }
0x2ba7   :  { %39765 = vmatpush3.bf16.msra.mxu0 %v42729_v21 }
0x2ba8   :  { %39767 = vmatprep.subr.bf16.mxu0 %v39766_v62 }
0x2baa   :  { %37430 = vmatmul.mubr.f32.vlgmr.msra.gmra.mrb[40].mxu0 %v27374_v61  ;;  %v32714_v61 = vld [vmem:[%s43212_s17 + $0x1] ss:$0 sm:$0xff] }
0x2bab   :  { %39769 = vmatpush3.bf16.msra.mxu0 %v39766_v62  ;;  %37448 = vmatprep.mubr.f32.mxu0 %v27362_v42 }
0x2bac   :  { %39771 = vmatprep.subr.bf16.mxu0 %v39770_v3 }
0x2baf   :  { %39773 = vmatpush3.bf16.msra.mxu0 %v39770_v3  ;;  %v28034_v3 = vsub.f32 %v28032_v37, %v28033_v13 }
0x2bb0   :  { %39775 = vmatprep.subr.bf16.mxu0 %v39774_v45 }
0x2bb3   :  { %39777 = vmatpush3.bf16.msra.mxu0 %v39774_v45  ;;  %v28041_v45 = vsub.f32 %v28039_v36, %v28040_v44 }
0x2bb4   :  { %39779 = vmatprep.subr.bf16.mxu0 %v39778_v14 }
0x2bb5   :  { %v28042_v52 = vand.u32 4294901760, %v28041_v45 }
0x2bb7   :  { %39781 = vmatpush3.bf16.msra.mxu0 %v39778_v14  ;;  %v28035_v14 = vand.u32 4294901760, %v28034_v3 }
0x2bb8   :  { %39783 = vmatprep.subr.bf16.mxu0 %v42699_v55 }
0x2bb9   :  { %v39810_v25 = vpack.c.bf16 %v28042_v52, %v28035_v14 }
0x2bba   :  { %37449 = vmatmul.mubr.f32.vlgmr.msra.gmra.mrb[40].mxu0 %v27372_v49 }
0x2bbb   :  { %39785 = vmatpush3.bf16.msra.mxu0 %v42699_v55  ;;  %37467 = vmatprep.mubr.f32.mxu0 %v27362_v42 }
0x2bbc   :  { %39787 = vmatprep.subr.bf16.mxu0 %v42709_v9 }
0x2bbf   :  { %39789 = vmatpush3.bf16.msra.mxu0 %v42709_v9 }
0x2bc0   :  { %39791 = vmatprep.subr.bf16.mxu0 %v42719_v24 }
0x2bc3   :  { %39793 = vmatpush3.bf16.msra.mxu0 %v42719_v24 }
0x2bc4   :  { %39795 = vmatprep.subr.bf16.mxu0 %v42729_v21 }
0x2bc7   :  { %39797 = vmatpush3.bf16.msra.mxu0 %v42729_v21 }
0x2bca   :  { %37468 = vmatmul.mubr.f32.vlgmr.msra.gmra.mrb[40].mxu0 %v27372_v49 }
0x2c9d   :  { %v37469_v63 = vpop.f32.mrb[40].mxu0 }
0x2c9e   :  { %v40158_v55 = vadd.f32 %v37469_v63, %v32712_v31  ;;  %v27859_v19 = vpop.f32.mrb[41].mxu0 }
0x2c9f   :  { %v40159_v1 = vadd.f32 %v32712_v31, %v27859_v19 }
0x2ca0   :  { %v27870_v4 = vadd.f32 %v40158_v55, %v42677_v8 }
0x2ca1   :  { %v27869_v9 = vadd.f32 %v40159_v1, %v42679_v10  ;;  %v27917_v10 = vld [vmem:[%s43214_s19] sm:$0xff] }
0x2ca2   :  { %v27874_v53 = vsel %vm91_vm0, %v27870_v4, 0.0  ;;  %v27928_v0 = vand.u32 4294901760, %v27917_v10 }
0x2ca3   :  { %27875 = vadd.xlane.f32.xlu1 %v27874_v53  ;;  %v27871_v24 = vsel %vm91_vm0, %v27869_v9, 0.0 }
0x2ca4   :  { %27872 = vadd.xlane.f32.xlu0 %v27871_v24  ;;  %v42769_v39 = vpack.c.bf16 %v27931_v51, %v27928_v0  ;;  %v28018_v6 = vsub.f32 %v27917_v10, %v27928_v0  ;;  %v32719_v10 = vld [vmem:[%s43214_s19 + $0x30] sm:$0xff]  ;;  %v28474_v51 = vand.u32 4294901760, %v32720_v12 }
0x2ca5   :  { %v28471_v0 = vand.u32 4294901760, %v32719_v10 }
0x2ca6   :  { %39799 = vmatprep.subr.bf16.mxu1 %v42769_v39  ;;  %v28019_v16 = vand.u32 4294901760, %v28018_v6  ;;  %v39814_v43 = vpack.c.bf16 %v28025_v41, %v28018_v6  ;;  %v28576_v34 = vsub.f32 %v32720_v12, %v28474_v51 }
0x2ca7   :  { %39801 = vmatpush3.bf16.msra.mxu1 %v42769_v39  ;;  %v28569_v33 = vsub.f32 %v32719_v10, %v28471_v0  ;;  %v42852_v36 = vpack.c.bf16 %v28474_v51, %v28471_v0  ;;  %v32733_v51 = vld [vmem:[%s43214_s19 + $0x60] sm:$0xff] }
0x2ca8   :  { %v28020_v23 = vsub.f32 %v28018_v6, %v28019_v16  ;;  %39803 = vmatprep.subr.bf16.mxu1 %v42779_v40  ;;  %v39830_v46 = vpack.c.bf16 %v28026_v17, %v28019_v16  ;;  %v28577_v37 = vand.u32 4294901760, %v28576_v34 }
0x2ca9   :  { %v28570_v35 = vand.u32 4294901760, %v28569_v33  ;;  %v39866_v14 = vpack.c.bf16 %v28576_v34, %v28569_v33 }
0x2caa   :  { %v28021_v47 = vand.u32 4294901760, %v28020_v23 }
0x2cab   :  { %39805 = vmatpush3.bf16.msra.mxu1 %v42779_v40  ;;  %v28571_v13 = vsub.f32 %v28569_v33, %v28570_v35  ;;  %v32735_v33 = vld [vmem:[%s43214_s19 + $0x70] sm:$0xff] }
0x2cac   :  { %v39806_v62 = vpack.c.bf16 %v28028_v38, %v28021_v47 }
0x2cae   :  { %39807 = vmatprep.subr.bf16.mxu1 %v39806_v62 }
0x2d30   :  { %v27876_v21 = vpop.xlane.xlu1 %27875 }
0x2d31   :  { %v27878_v11 = vmul.f32 0.03125, %v27876_v21  ;;  %v27873_v22 = vpop.xlane.xlu0 %27872 }
0x2d32   :  { %v27877_v7 = vmul.f32 0.03125, %v27873_v22 }
0x2d33   :  { %v27880_v28 = vsub.f32 %v27870_v4, %v27878_v11 }
0x2d34   :  { %v27879_v26 = vsub.f32 %v27869_v9, %v27877_v7 }
0x2d35   :  { %v27882_v29 = vmul.f32 %v27880_v28, %v27880_v28 }
0x2d36   :  { %v27881_v30 = vmul.f32 %v27879_v26, %v27879_v26 }
0x2d37   :  { %v27886_v58 = vsel %vm91_vm0, %v27882_v29, 0.0  ;;  %v32717_v29 = vld [vmem:[%s43214_s19 + $0x20] sm:$0xff] }
0x2d38   :  { %27887 = vadd.xlane.f32.xlu1 %v27886_v58  ;;  %v27883_v8 = vsel %vm91_vm0, %v27881_v30, 0.0  ;;  %v32718_v30 = vld [vmem:[%s43214_s19 + $0x28] sm:$0xff]  ;;  %v28465_v58 = vand.u32 4294901760, %v32717_v29 }
0x2d39   :  { %27884 = vadd.xlane.f32.xlu0 %v27883_v8  ;;  %v28468_v8 = vand.u32 4294901760, %v32718_v30 }
0x2d3a   :  { %v28555_v6 = vsub.f32 %v32717_v29, %v28465_v58 }
0x2d3b   :  { %v28562_v41 = vsub.f32 %v32718_v30, %v28468_v8  ;;  %v42848_v16 = vpack.c.bf16 %v28468_v8, %v28465_v58 }
0x2d3c   :  { %v28556_v2 = vand.u32 4294901760, %v28555_v6 }
0x2d3d   :  { %v28563_v32 = vand.u32 4294901760, %v28562_v41  ;;  %v39862_v45 = vpack.c.bf16 %v28562_v41, %v28555_v6 }
0x2d3e   :  { %v28557_v17 = vsub.f32 %v28555_v6, %v28556_v2  ;;  %v32734_v6 = vld [vmem:[%s43214_s19 + $0x68] sm:$0xff] }
0x2d3f   :  { %v28564_v23 = vsub.f32 %v28562_v41, %v28563_v32  ;;  %v39878_v52 = vpack.c.bf16 %v28563_v32, %v28556_v2  ;;  %v31345_v2 = vand.u32 4294901760, %v32733_v51  ;;  %v31348_v32 = vand.u32 4294901760, %v32734_v6 }
0x2d40   :  { %v28558_v47 = vand.u32 4294901760, %v28557_v17 }
0x2d41   :  { %v28565_v38 = vand.u32 4294901760, %v28564_v23  ;;  %v31435_v23 = vsub.f32 %v32733_v51, %v31345_v2 }
0x2d43   :  { %v39854_v44 = vpack.c.bf16 %v28565_v38, %v28558_v47 }
0x2dc5   :  { %v27888_v60 = vpop.xlane.xlu1 %27887 }
0x2dc6   :  { %v27890_v48 = vmul.f32 0.03125, %v27888_v60  ;;  %v27885_v49 = vpop.xlane.xlu0 %27884  ;;  %v32727_v60 = vld [vmem:[%s43214_s19 + $0x50] sm:$0xff] }
0x2dc7   :  { %v27889_v20 = vmul.f32 0.03125, %v27885_v49  ;;  %v30209_v49 = vand.u32 4294901760, %v32727_v60 }
0x2dc8   :  { %v27892_v42 = vadd.f32 1e-06, %v27890_v48  ;;  %v32728_v48 = vld [vmem:[%s43214_s19 + $0x58] sm:$0xff] }
0x2dc9   :  { %v27891_v15 = vadd.f32 1e-06, %v27889_v20  ;;  %v30212_v20 = vand.u32 4294901760, %v32728_v48 }
0x2dca   :  { %40901 = vrsqrt.f32 %v27892_v42 }
0x2dcb   :  { %40903 = vrsqrt.f32 %v27891_v15 }
0x2dd4   :  { %v40902_v50 = vpop.eup %40901 }
0x2dd5   :  { %v40904_v5 = vpop.eup %40903  ;;  %v27896_v54 = vmul.f32 %v40902_v50, %v27880_v28 }
0x2dd6   :  { %v27895_v59 = vmul.f32 %v40904_v5, %v27879_v26  ;;  %v30307_v5 = vsub.f32 %v32727_v60, %v30209_v49 }
0x2dd7   :  { %v27906_v27 = vmul.f32 %v32714_v61, %v27896_v54  ;;  %v30314_v54 = vsub.f32 %v32728_v48, %v30212_v20 }
0x2dd8   :  { %v27905_v31 = vmul.f32 %v32714_v61, %v27895_v59 }
0x2dd9   :  { %v27916_v63 = vadd.f32 %v32716_v18, %v27906_v27  ;;  %v39962_v12 = vpack.c.bf16 %v30314_v54, %v30307_v5 }
0x2dda   :  { %v27915_v55 = vadd.f32 %v32716_v18, %v27905_v31  ;;  %v30308_v31 = vand.u32 4294901760, %v30307_v5 }
0x2ddb   :  { %v27925_v19 = vsel %vm91_vm0, %v27916_v63, 0  ;;  %v30315_v63 = vand.u32 4294901760, %v30314_v54 }
0x2ddc   :  { %v42792_v1 = vand.u32 4294901760, %v27925_v19  ;;  %v27922_v4 = vsel %vm91_vm0, %v27915_v55, 0  ;;  %v42892_v55 = vpack.c.bf16 %v30212_v20, %v30209_v49  ;;  %v32721_v49 = vld [vmem:[%s43216_s21 + $0x20] sm:$0xff] }
0x2ddd   :  { %v42795_v9 = vand.u32 4294901760, %v27922_v4  ;;  %v39978_v41 = vpack.c.bf16 %v30315_v63, %v30308_v31 }
0x2dde   :  { %v42798_v53 = vsub.f32 %v27925_v19, %v42792_v1 }
0x2ddf   :  { %v42801_v24 = vsub.f32 %v27922_v4, %v42795_v9 }
0x2de0   :  { %v42804_v21 = vand.u32 4294901760, %v42798_v53 }
0x2de1   :  { %v42807_v11 = vand.u32 4294901760, %v42801_v24 }
0x2de2   :  { %v28009_v22 = vsub.f32 %v42798_v53, %v42804_v21 }
0x2de3   :  { %v27999_v7 = vsub.f32 %v42801_v24, %v42807_v11 }
0x2de4   :  { %v42815_v26 = vand.u32 4294901760, %v28009_v22  ;;  %v30309_v22 = vsub.f32 %v30307_v5, %v30308_v31 }
0x2de5   :  { %v42813_v28 = vand.u32 4294901760, %v27999_v7  ;;  %v30316_v7 = vsub.f32 %v30314_v54, %v30315_v63 }
0x2de6   :  { %v30310_v30 = vand.u32 4294901760, %v30309_v22 }
0x2de7   :  { %37478 = vmatprep.mubr.f32.mxu1 %v42813_v28  ;;  %v30317_v58 = vand.u32 4294901760, %v30316_v7 }
0x2de8   :  { %37479 = vmatmul.mubr.f32.vlgmr.msra.gmra.mrb[52].mxu1 %v42815_v26 }
0x2de9   :  { %39809 = vmatpush3.bf16.msra.mxu1 %v39806_v62  ;;  %37489 = vmatprep.mubr.f32.mxu1 %v42795_v9  ;;  %v28572_v62 = vand.u32 4294901760, %v28571_v13  ;;  %v39954_v8 = vpack.c.bf16 %v30317_v58, %v30310_v30  ;;  %v40014_v13 = vpack.c.bf16 %v31348_v32, %v31345_v2 }
0x2dea   :  { %39811 = vmatprep.subr.bf16.mxu1 %v39810_v25 }
0x2ded   :  { %39813 = vmatpush3.bf16.msra.mxu1 %v39810_v25  ;;  %v32725_v25 = vld [vmem:[%s43214_s19 + $0x40] sm:$0xff] }
0x2dee   :  { %39815 = vmatprep.subr.bf16.mxu1 %v39814_v43 }
0x2df0   :  { %37490 = vmatmul.mubr.f32.vlgmr.msra.gmra.mrb[52].mxu1 %v42792_v1 }
0x2df1   :  { %39817 = vmatpush3.bf16.msra.mxu1 %v39814_v43  ;;  %37500 = vmatprep.mubr.f32.mxu1 %v42801_v24  ;;  %v32726_v43 = vld [vmem:[%s43214_s19 + $0x48] sm:$0xff] }
0x2df2   :  { %39819 = vmatprep.subr.bf16.mxu1 %v39818_v57 }
0x2df5   :  { %39821 = vmatpush3.bf16.msra.mxu1 %v39818_v57  ;;  %v39882_v57 = vpack.c.bf16 %v28577_v37, %v28570_v35  ;;  %v31442_v35 = vsub.f32 %v32734_v6, %v31348_v32 }
0x2df6   :  { %39823 = vmatprep.subr.bf16.mxu1 %v42769_v39 }
0x2df7   :  { %v40030_v60 = vpack.c.bf16 %v31442_v35, %v31435_v23 }
0x2df8   :  { %37501 = vmatmul.mubr.f32.vlgmr.msra.gmra.mrb[52].mxu1 %v42798_v53 }
0x2df9   :  { %39825 = vmatpush3.bf16.msra.mxu1 %v42769_v39  ;;  %37511 = vmatprep.mubr.f32.mxu1 %v42807_v11 }
0x2dfa   :  { %39827 = vmatprep.subr.bf16.mxu1 %v42779_v40 }
0x2dfd   :  { %39829 = vmatpush3.bf16.msra.mxu1 %v42779_v40 }
0x2dfe   :  { %39831 = vmatprep.subr.bf16.mxu1 %v39830_v46 }
0x2e00   :  { %37512 = vmatmul.mubr.f32.vlgmr.msra.gmra.mrb[52].mxu1 %v42804_v21 }
0x2e01   :  { %39833 = vmatpush3.bf16.msra.mxu1 %v39830_v46  ;;  %37522 = vmatprep.mubr.f32.mxu1 %v42795_v9  ;;  %v30203_v46 = vand.u32 4294901760, %v32725_v25 }
0x2e02   :  { %39835 = vmatprep.subr.bf16.mxu1 %v42783_v56 }
0x2e03   :  { %v30293_v42 = vsub.f32 %v32725_v25, %v30203_v46 }
0x2e05   :  { %39837 = vmatpush3.bf16.msra.mxu1 %v42783_v56  ;;  %v30206_v56 = vand.u32 4294901760, %v32726_v43  ;;  %v30294_v50 = vand.u32 4294901760, %v30293_v42 }
0x2e06   :  { %39839 = vmatprep.subr.bf16.mxu1 %v42769_v39 }
0x2e07   :  { %v30300_v15 = vsub.f32 %v32726_v43, %v30206_v56  ;;  %v42888_v18 = vpack.c.bf16 %v30206_v56, %v30203_v46  ;;  %v30295_v59 = vsub.f32 %v30293_v42, %v30294_v50 }
0x2e08   :  { %37523 = vmatmul.mubr.f32.vlgmr.msra.gmra.mrb[52].mxu1 %v42792_v1 }
0x2e09   :  { %39841 = vmatpush3.bf16.msra.mxu1 %v42769_v39  ;;  %37533 = vmatprep.mubr.f32.mxu1 %v42795_v9  ;;  %v28578_v39 = vsub.f32 %v28576_v34, %v28577_v37  ;;  %v30301_v61 = vand.u32 4294901760, %v30300_v15  ;;  %v30296_v19 = vand.u32 4294901760, %v30295_v59  ;;  %v39958_v10 = vpack.c.bf16 %v30300_v15, %v30293_v42  ;;  %v32736_v34 = vld [vmem:[%s43214_s19 + $0x78] sm:$0xff] }
0x2e0a   :  { %39843 = vmatprep.subr.bf16.mxu1 %v42779_v40  ;;  %v31354_v17 = vand.u32 4294901760, %v32736_v34  ;;  %v31436_v37 = vand.u32 4294901760, %v31435_v23 }
0x2e0b   :  { %v28579_v3 = vand.u32 4294901760, %v28578_v39  ;;  %v30302_v27 = vsub.f32 %v30300_v15, %v30301_v61  ;;  %v39974_v0 = vpack.c.bf16 %v30301_v61, %v30294_v50 }
0x2e0c   :  { %v31456_v38 = vsub.f32 %v32736_v34, %v31354_v17  ;;  %v31437_v39 = vsub.f32 %v31435_v23, %v31436_v37 }
0x2e0d   :  { %39845 = vmatpush3.bf16.msra.mxu1 %v42779_v40  ;;  %v39858_v40 = vpack.c.bf16 %v28579_v3, %v28572_v62  ;;  %v30303_v4 = vand.u32 4294901760, %v30302_v27 }
0x2e0e   :  { %39847 = vmatprep.subr.bf16.mxu1 %v42848_v16  ;;  %v31457_v3 = vand.u32 4294901760, %v31456_v38 }
0x2e0f   :  { %v39950_v29 = vpack.c.bf16 %v30303_v4, %v30296_v19 }
0x2e10   :  { %37534 = vmatmul.mubr.f32.vlgmr.msra.gmra.mrb[52].mxu1 %v42792_v1  ;;  %v31458_v25 = vsub.f32 %v31456_v38, %v31457_v3 }
0x2e11   :  { %39849 = vmatpush3.bf16.msra.mxu1 %v42848_v16  ;;  %37544 = vmatprep.mubr.f32.mxu1 %v42813_v28 }
0x2e12   :  { %39851 = vmatprep.subr.bf16.mxu1 %v42852_v36  ;;  %v31459_v46 = vand.u32 4294901760, %v31458_v25 }
0x2e15   :  { %39853 = vmatpush3.bf16.msra.mxu1 %v42852_v36 }
0x2e16   :  { %39855 = vmatprep.subr.bf16.mxu1 %v39854_v44 }
0x2e18   :  { %37545 = vmatmul.mubr.f32.vlgmr.msra.gmra.mrb[54].mxu1 %v42815_v26 }
0x2e19   :  { %39857 = vmatpush3.bf16.msra.mxu1 %v39854_v44  ;;  %37555 = vmatprep.mubr.f32.mxu1 %v42795_v9 }
0x2e1a   :  { %39859 = vmatprep.subr.bf16.mxu1 %v39858_v40 }
0x2e1d   :  { %39861 = vmatpush3.bf16.msra.mxu1 %v39858_v40 }
0x2e1e   :  { %39863 = vmatprep.subr.bf16.mxu1 %v39862_v45 }
0x2e20   :  { %37556 = vmatmul.mubr.f32.vlgmr.msra.gmra.mrb[54].mxu1 %v42792_v1 }
0x2e21   :  { %39865 = vmatpush3.bf16.msra.mxu1 %v39862_v45  ;;  %37566 = vmatprep.mubr.f32.mxu1 %v42801_v24  ;;  %v31438_v45 = vand.u32 4294901760, %v31437_v39 }
0x2e22   :  { %39867 = vmatprep.subr.bf16.mxu1 %v39866_v14 }
0x2e25   :  { %39869 = vmatpush3.bf16.msra.mxu1 %v39866_v14 }
0x2e26   :  { %39871 = vmatprep.subr.bf16.mxu1 %v42848_v16 }
0x2e28   :  { %37567 = vmatmul.mubr.f32.vlgmr.msra.gmra.mrb[54].mxu1 %v42798_v53 }
0x2e29   :  { %39873 = vmatpush3.bf16.msra.mxu1 %v42848_v16  ;;  %37577 = vmatprep.mubr.f32.mxu1 %v42807_v11 }
0x2e2a   :  { %39875 = vmatprep.subr.bf16.mxu1 %v42852_v36 }
0x2e2d   :  { %39877 = vmatpush3.bf16.msra.mxu1 %v42852_v36 }
0x2e2e   :  { %39879 = vmatprep.subr.bf16.mxu1 %v39878_v52 }
0x2e30   :  { %37578 = vmatmul.mubr.f32.vlgmr.msra.gmra.mrb[54].mxu1 %v42804_v21 }
0x2e31   :  { %39881 = vmatpush3.bf16.msra.mxu1 %v39878_v52  ;;  %37588 = vmatprep.mubr.f32.mxu1 %v42795_v9 }
0x2e32   :  { %39883 = vmatprep.subr.bf16.mxu1 %v39882_v57 }
0x2e35   :  { %39885 = vmatpush3.bf16.msra.mxu1 %v39882_v57 }
0x2e36   :  { %39887 = vmatprep.subr.bf16.mxu1 %v42848_v16 }
0x2e38   :  { %37589 = vmatmul.mubr.f32.vlgmr.msra.gmra.mrb[54].mxu1 %v42792_v1 }
0x2e39   :  { %39889 = vmatpush3.bf16.msra.mxu1 %v42848_v16  ;;  %37599 = vmatprep.mubr.f32.mxu1 %v42795_v9  ;;  %v31351_v16 = vand.u32 4294901760, %v32735_v33 }
0x2e3a   :  { %39891 = vmatprep.subr.bf16.mxu1 %v42852_v36 }
0x2e3b   :  { %v31449_v47 = vsub.f32 %v32735_v33, %v31351_v16  ;;  %v40018_v40 = vpack.c.bf16 %v31354_v17, %v31351_v16 }
0x2e3d   :  { %39893 = vmatpush3.bf16.msra.mxu1 %v42852_v36  ;;  %v31443_v36 = vand.u32 4294901760, %v31442_v35  ;;  %v31450_v62 = vand.u32 4294901760, %v31449_v47  ;;  %v40034_v48 = vpack.c.bf16 %v31456_v38, %v31449_v47 }
0x2e3e   :  { %39943 = vmatprep.subr.bf16.mxu1 %v42888_v18 }
0x2e3f   :  { %v31444_v44 = vsub.f32 %v31442_v35, %v31443_v36  ;;  %v31451_v52 = vsub.f32 %v31449_v47, %v31450_v62 }
0x2e40   :  { %37600 = vmatmul.mubr.f32.vlgmr.msra.gmra.mrb[54].mxu1 %v42792_v1 }
0x2e41   :  { %39945 = vmatpush3.bf16.msra.mxu1 %v42888_v18  ;;  %37730 = vmatprep.mubr.f32.mxu1 %v42813_v28  ;;  %v31445_v14 = vand.u32 4294901760, %v31444_v44  ;;  %v31452_v57 = vand.u32 4294901760, %v31451_v52 }
0x2e42   :  { %39947 = vmatprep.subr.bf16.mxu1 %v42892_v55 }
0x2e43   :  { %v40022_v43 = vpack.c.bf16 %v31445_v14, %v31438_v45  ;;  %v40026_v56 = vpack.c.bf16 %v31459_v46, %v31452_v57 }
0x2e45   :  { %39949 = vmatpush3.bf16.msra.mxu1 %v42892_v55 }
0x2e46   :  { %39951 = vmatprep.subr.bf16.mxu1 %v39950_v29 }
0x2e48   :  { %37731 = vmatmul.mubr.f32.vlgmr.msra.gmra.mrb[56].mxu1 %v42815_v26 }
0x2e49   :  { %39953 = vmatpush3.bf16.msra.mxu1 %v39950_v29  ;;  %37741 = vmatprep.mubr.f32.mxu1 %v42795_v9  ;;  %v32723_v29 = vld [vmem:[%s43216_s21 + $0x30] sm:$0xff] }
0x2e4a   :  { %39955 = vmatprep.subr.bf16.mxu1 %v39954_v8  ;;  %v29004_v58 = vsel %vm2219_vm2, %v32723_v29, 0 }
0x2e4d   :  { %39957 = vmatpush3.bf16.msra.mxu1 %v39954_v8  ;;  %v32724_v8 = vld [vmem:[%s43216_s21 + $0x38] sm:$0xff] }
0x2e4e   :  { %39959 = vmatprep.subr.bf16.mxu1 %v39958_v10 }
0x2e50   :  { %37742 = vmatmul.mubr.f32.vlgmr.msra.gmra.mrb[56].mxu1 %v42792_v1 }
0x2e51   :  { %39961 = vmatpush3.bf16.msra.mxu1 %v39958_v10  ;;  %37752 = vmatprep.mubr.f32.mxu1 %v42801_v24 }
0x2e52   :  { %39963 = vmatprep.subr.bf16.mxu1 %v39962_v12 }
0x2e55   :  { %39965 = vmatpush3.bf16.msra.mxu1 %v39962_v12  ;;  %v42977_v12 = vand.u32 4294901760, %v29004_v58 }
0x2e56   :  { %39967 = vmatprep.subr.bf16.mxu1 %v42888_v18 }
0x2e58   :  { %37753 = vmatmul.mubr.f32.vlgmr.msra.gmra.mrb[56].mxu1 %v42798_v53 }
0x2e59   :  { %39969 = vmatpush3.bf16.msra.mxu1 %v42888_v18  ;;  %37763 = vmatprep.mubr.f32.mxu1 %v42807_v11 }
0x2e5a   :  { %39971 = vmatprep.subr.bf16.mxu1 %v42892_v55 }
0x2e5d   :  { %39973 = vmatpush3.bf16.msra.mxu1 %v42892_v55 }
0x2e5e   :  { %39975 = vmatprep.subr.bf16.mxu1 %v39974_v0 }
0x2e60   :  { %37764 = vmatmul.mubr.f32.vlgmr.msra.gmra.mrb[56].mxu1 %v42804_v21 }
0x2e61   :  { %39977 = vmatpush3.bf16.msra.mxu1 %v39974_v0  ;;  %37774 = vmatprep.mubr.f32.mxu1 %v42795_v9  ;;  %v29007_v0 = vsel %vm2219_vm2, %v32724_v8, 0 }
0x2e62   :  { %39979 = vmatprep.subr.bf16.mxu1 %v39978_v41  ;;  %v42981_v6 = vand.u32 4294901760, %v29007_v0 }
0x2e64   :  { %v29107_v32 = vsub.f32 %v29007_v0, %v42981_v6 }
0x2e65   :  { %39981 = vmatpush3.bf16.msra.mxu1 %v39978_v41  ;;  %v29097_v41 = vsub.f32 %v29004_v58, %v42977_v12 }
0x2e66   :  { %39983 = vmatprep.subr.bf16.mxu1 %v42888_v18 }
0x2e67   :  { %v29098_v33 = vand.u32 4294901760, %v29097_v41 }
0x2e68   :  { %37775 = vmatmul.mubr.f32.vlgmr.msra.gmra.mrb[56].mxu1 %v42792_v1 }
0x2e69   :  { %39985 = vmatpush3.bf16.msra.mxu1 %v42888_v18  ;;  %37785 = vmatprep.mubr.f32.mxu1 %v42795_v9  ;;  %v29099_v47 = vsub.f32 %v29097_v41, %v29098_v33 }
0x2e6a   :  { %39987 = vmatprep.subr.bf16.mxu1 %v42892_v55 }
0x2e6b   :  { %v29100_v14 = vand.u32 4294901760, %v29099_v47  ;;  %v32730_v47 = vld [vmem:[%s43216_s21 + $0x48] sm:$0xff] }
0x2e6d   :  { %39989 = vmatpush3.bf16.msra.mxu1 %v42892_v55 }
0x2e6e   :  { %40015 = vmatprep.subr.bf16.mxu1 %v40014_v13 }
0x2e70   :  { %37786 = vmatmul.mubr.f32.vlgmr.msra.gmra.mrb[56].mxu1 %v42792_v1 }
0x2e71   :  { %40017 = vmatpush3.bf16.msra.mxu1 %v40014_v13  ;;  %37856 = vmatprep.mubr.f32.mxu1 %v42813_v28  ;;  %v40046_v28 = vpack.c.bf16 %v31443_v36, %v31436_v37  ;;  %v29108_v37 = vand.u32 4294901760, %v29107_v32 }
0x2e72   :  { %40019 = vmatprep.subr.bf16.mxu1 %v40018_v40 }
0x2e75   :  { %40021 = vmatpush3.bf16.msra.mxu1 %v40018_v40 }
0x2e76   :  { %40023 = vmatprep.subr.bf16.mxu1 %v40022_v43 }
0x2e78   :  { %37857 = vmatmul.mubr.f32.vlgmr.msra.gmra.mrb[58].mxu1 %v42815_v26  ;;  %v40050_v26 = vpack.c.bf16 %v31457_v3, %v31450_v62  ;;  %v29109_v3 = vsub.f32 %v29107_v32, %v29108_v37 }
0x2e79   :  { %40025 = vmatpush3.bf16.msra.mxu1 %v40022_v43  ;;  %37867 = vmatprep.mubr.f32.mxu1 %v42795_v9 }
0x2e7a   :  { %40027 = vmatprep.subr.bf16.mxu1 %v40026_v56  ;;  %v29110_v57 = vand.u32 4294901760, %v29109_v3 }
0x2e7d   :  { %40029 = vmatpush3.bf16.msra.mxu1 %v40026_v56 }
0x2e7e   :  { %40031 = vmatprep.subr.bf16.mxu1 %v40030_v60 }
0x2e80   :  { %37868 = vmatmul.mubr.f32.vlgmr.msra.gmra.mrb[58].mxu1 %v42792_v1 }
0x2e81   :  { %40033 = vmatpush3.bf16.msra.mxu1 %v40030_v60  ;;  %37878 = vmatprep.mubr.f32.mxu1 %v42801_v24  ;;  %v28998_v24 = vsel %vm2219_vm2, %v32721_v49, 0  ;;  %v28455_v60 = vld [vmem:[%s43216_s21] sm:$0xff] }
0x2e82   :  { %40035 = vmatprep.subr.bf16.mxu1 %v40034_v48 }
0x2e85   :  { %40037 = vmatpush3.bf16.msra.mxu1 %v40034_v48  ;;  %v29598_v48 = vsel %vm2219_vm2, %v28455_v60, 0 }
0x2e86   :  { %40039 = vmatprep.subr.bf16.mxu1 %v40014_v13  ;;  %v43002_v49 = vand.u32 4294901760, %v29598_v48 }
0x2e88   :  { %37879 = vmatmul.mubr.f32.vlgmr.msra.gmra.mrb[58].mxu1 %v42798_v53  ;;  %v42944_v53 = vand.u32 4294901760, %v28998_v24 }
0x2e89   :  { %40041 = vmatpush3.bf16.msra.mxu1 %v40014_v13  ;;  %37889 = vmatprep.mubr.f32.mxu1 %v42807_v11 }
0x2e8a   :  { %40043 = vmatprep.subr.bf16.mxu1 %v40018_v40  ;;  %v42947_v11 = vsub.f32 %v28998_v24, %v42944_v53 }
0x2e8c   :  { %v29078_v20 = vand.u32 4294901760, %v42947_v11 }
0x2e8d   :  { %40045 = vmatpush3.bf16.msra.mxu1 %v40018_v40 }
0x2e8e   :  { %40047 = vmatprep.subr.bf16.mxu1 %v40046_v28 }
0x2e90   :  { %37890 = vmatmul.mubr.f32.vlgmr.msra.gmra.mrb[58].mxu1 %v42804_v21  ;;  %v29079_v21 = vsub.f32 %v42947_v11, %v29078_v20 }
0x2e91   :  { %40049 = vmatpush3.bf16.msra.mxu1 %v40046_v28  ;;  %37900 = vmatprep.mubr.f32.mxu1 %v42795_v9  ;;  %v28456_v28 = vld [vmem:[%s43216_s21 + $0x8] sm:$0xff] }
0x2e92   :  { %40051 = vmatprep.subr.bf16.mxu1 %v40050_v26  ;;  %v29080_v42 = vand.u32 4294901760, %v29079_v21  ;;  %v29601_v24 = vsel %vm2219_vm2, %v28456_v28, 0 }
0x2e93   :  { %v43009_v21 = vand.u32 4294901760, %v29601_v24 }
0x2e94   :  { %37606 = vmatprep.mubr.f32.mxu0 %v29080_v42  ;;  %v43013_v42 = vsub.f32 %v29598_v48, %v43002_v49 }
0x2e95   :  { %40053 = vmatpush3.bf16.msra.mxu1 %v40050_v26  ;;  %v28457_v26 = vld [vmem:[%s43216_s21 + $0x10] sm:$0xff] }
0x2e96   :  { %40055 = vmatprep.subr.bf16.mxu1 %v40014_v13 }
0x2e98   :  { %37901 = vmatmul.mubr.f32.vlgmr.msra.gmra.mrb[58].mxu1 %v42792_v1 }
0x2e99   :  { %40057 = vmatpush3.bf16.msra.mxu1 %v40014_v13  ;;  %37911 = vmatprep.mubr.f32.mxu1 %v42795_v9 }
0x2e9a   :  { %40059 = vmatprep.subr.bf16.mxu1 %v40018_v40 }
0x2e9d   :  { %40061 = vmatpush3.bf16.msra.mxu1 %v40018_v40 }
0x2ea0   :  { %37912 = vmatmul.mubr.f32.vlgmr.msra.gmra.mrb[58].mxu1 %v42792_v1  ;;  %v32722_v1 = vld [vmem:[%s43216_s21 + $0x28] sm:$0xff] }
0x2ea1   :  { %v29001_v30 = vsel %vm2219_vm2, %v32722_v1, 0 }
0x2ea2   :  { %v42975_v10 = vand.u32 4294901760, %v29001_v30 }
0x2ea4   :  { %v29087_v51 = vsub.f32 %v29001_v30, %v42975_v10 }
0x2ea6   :  { %v29088_v2 = vand.u32 4294901760, %v29087_v51 }
0x2ea8   :  { %v29089_v35 = vsub.f32 %v29087_v51, %v29088_v2 }
0x2eaa   :  { %v29090_v62 = vand.u32 4294901760, %v29089_v35 }
0x2ee3   :  { %v37535_v15 = vpop.f32.mrb[52].mxu1 }
0x2ee4   :  { %v29613_v50 = vand.u32 4294901760, %v37535_v15  ;;  %v28445_v61 = vpop.f32.mrb[53].mxu1 }
0x2ee5   :  { %v29610_v5 = vand.u32 4294901760, %v28445_v61 }
0x2ee6   :  { %v29725_v54 = vsub.f32 %v37535_v15, %v29613_v50 }
0x2ee7   :  { %v42956_v18 = vpack.c.bf16 %v29613_v50, %v29610_v5  ;;  %v29718_v59 = vsub.f32 %v28445_v61, %v29610_v5  ;;  %v43020_v61 = vsub.f32 %v29601_v24, %v43009_v21 }
0x2ee8   :  { %v29726_v27 = vand.u32 4294901760, %v29725_v54 }
0x2ee9   :  { %v29719_v31 = vand.u32 4294901760, %v29718_v59  ;;  %v42958_v63 = vpack.c.bf16 %v29725_v54, %v29718_v59 }
0x2eea   :  { %v29727_v55 = vsub.f32 %v29725_v54, %v29726_v27  ;;  %v29678_v54 = vand.u32 4294901760, %v43013_v42 }
0x2eeb   :  { %v29720_v9 = vsub.f32 %v29718_v59, %v29719_v31  ;;  %v42960_v19 = vpack.c.bf16 %v29726_v27, %v29719_v31  ;;  %v29688_v27 = vand.u32 4294901760, %v43020_v61 }
0x2eec   :  { %v29728_v4 = vand.u32 4294901760, %v29727_v55  ;;  %v29679_v55 = vsub.f32 %v43013_v42, %v29678_v54 }
0x2eed   :  { %v29721_v22 = vand.u32 4294901760, %v29720_v9  ;;  %v29689_v30 = vsub.f32 %v43020_v61, %v29688_v27 }
0x2eee   :  { %v29680_v0 = vand.u32 4294901760, %v29679_v55 }
0x2eef   :  { %v42962_v7 = vpack.c.bf16 %v29728_v4, %v29721_v22 }
0x2f13   :  { %v37601_v34 = vpop.f32.mrb[54].mxu1 }
0x2f14   :  { %v29013_v16 = vand.u32 4294901760, %v37601_v34  ;;  %v28982_v17 = vpop.f32.mrb[55].mxu1 }
0x2f15   :  { %v29010_v23 = vand.u32 4294901760, %v28982_v17 }
0x2f16   :  { %v29125_v36 = vsub.f32 %v37601_v34, %v29013_v16 }
0x2f17   :  { %v39894_v38 = vpack.c.bf16 %v29013_v16, %v29010_v23  ;;  %v29118_v13 = vsub.f32 %v28982_v17, %v29010_v23 }
0x2f18   :  { %v29126_v39 = vand.u32 4294901760, %v29125_v36 }
0x2f19   :  { %v29119_v44 = vand.u32 4294901760, %v29118_v13  ;;  %39895 = vmatprep.subr.bf16.mxu0 %v39894_v38  ;;  %v39902_v40 = vpack.c.bf16 %v29125_v36, %v29118_v13 }
0x2f1a   :  { %v29127_v45 = vsub.f32 %v29125_v36, %v29126_v39  ;;  %39897 = vmatpush3.bf16.msra.mxu0 %v39894_v38 }
0x2f1b   :  { %v29120_v52 = vsub.f32 %v29118_v13, %v29119_v44  ;;  %v39910_v25 = vpack.c.bf16 %v29126_v39, %v29119_v44  ;;  %v30739_v39 = vsel %vm2219_vm2, %v32730_v47, 0 }
0x2f1c   :  { %v29128_v43 = vand.u32 4294901760, %v29127_v45  ;;  %v43083_v3 = vand.u32 4294901760, %v30739_v39 }
0x2f1d   :  { %37607 = vmatmul.mubr.f32.vlgmr.msra.gmra.mrb[42].mxu0 %v29090_v62  ;;  %v29121_v46 = vand.u32 4294901760, %v29120_v52  ;;  %v32732_v62 = vld [vmem:[%s43216_s21 + $0x58] sm:$0xff] }
0x2f1e   :  { %37609 = vmatprep.mubr.f32.mxu0 %v29100_v14  ;;  %v30745_v45 = vsel %vm2219_vm2, %v32732_v62, 0  ;;  %v43094_v14 = vsub.f32 %v30739_v39, %v43083_v3 }
0x2f1f   :  { %v39898_v56 = vpack.c.bf16 %v29128_v43, %v29121_v46  ;;  %v43096_v52 = vand.u32 4294901760, %v30745_v45 }
0x2f21   :  { %37610 = vmatmul.mubr.f32.gmra.mrb[44].mxu0 %v29110_v57  ;;  %39899 = vmatprep.subr.bf16.mxu0 %v39898_v56  ;;  %v30826_v57 = vand.u32 4294901760, %v43094_v14  ;;  %v43106_v46 = vsub.f32 %v30745_v45, %v43096_v52 }
0x2f22   :  { %39901 = vmatpush3.bf16.msra.mxu0 %v39898_v56  ;;  %37616 = vmatprep.mubr.f32.mxu0 %v42944_v53 }
0x2f23   :  { %39903 = vmatprep.subr.bf16.mxu0 %v39902_v40  ;;  %v30827_v24 = vsub.f32 %v43094_v14, %v30826_v57 }
0x2f25   :  { %37617 = vmatmul.mubr.f32.vlgmr.msra.gmra.mrb[42].mxu0 %v42975_v10 }
0x2f26   :  { %39905 = vmatpush3.bf16.msra.mxu0 %v39902_v40  ;;  %37619 = vmatprep.mubr.f32.mxu0 %v42977_v12 }
0x2f27   :  { %39907 = vmatprep.subr.bf16.mxu0 %v39894_v38 }
0x2f29   :  { %37620 = vmatmul.mubr.f32.gmra.mrb[44].mxu0 %v42981_v6 }
0x2f2a   :  { %37626 = vmatprep.mubr.f32.mxu0 %v42947_v11  ;;  %v29604_v11 = vsel %vm2219_vm2, %v28457_v26, 0 }
0x2f2b   :  { %v43015_v15 = vand.u32 4294901760, %v29604_v11 }
0x2f2d   :  { %37627 = vmatmul.mubr.f32.vlgmr.msra.gmra.mrb[42].mxu0 %v29087_v51  ;;  %v29697_v59 = vsub.f32 %v29604_v11, %v43015_v15  ;;  %v30846_v11 = vand.u32 4294901760, %v43106_v46 }
0x2f2e   :  { %39909 = vmatpush3.bf16.msra.mxu0 %v39894_v38  ;;  %37629 = vmatprep.mubr.f32.mxu0 %v29097_v41 }
0x2f2f   :  { %39911 = vmatprep.subr.bf16.mxu0 %v39910_v25  ;;  %v29698_v9 = vand.u32 4294901760, %v29697_v59 }
0x2f31   :  { %37630 = vmatmul.mubr.f32.gmra.mrb[44].mxu0 %v29107_v32 }
0x2f32   :  { %37636 = vmatprep.mubr.f32.mxu0 %v29078_v20  ;;  %v28458_v20 = vld [vmem:[%s43216_s21 + $0x18] sm:$0xff] }
0x2f33   :  { %v29607_v50 = vsel %vm2219_vm2, %v28458_v20, 0 }
0x2f34   :  { %v43022_v5 = vand.u32 4294901760, %v29607_v50 }
0x2f35   :  { %37637 = vmatmul.mubr.f32.vlgmr.msra.gmra.mrb[42].mxu0 %v29088_v2 }
0x2f36   :  { %39913 = vmatpush3.bf16.msra.mxu0 %v39910_v25  ;;  %37639 = vmatprep.mubr.f32.mxu0 %v29098_v33  ;;  %v43031_v31 = vsub.f32 %v29607_v50, %v43022_v5 }
0x2f37   :  { %39915 = vmatprep.subr.bf16.mxu0 %v39894_v38 }
0x2f38   :  { %v29708_v58 = vand.u32 4294901760, %v43031_v31 }
0x2f39   :  { %37640 = vmatmul.mubr.f32.gmra.mrb[44].mxu0 %v29108_v37 }
0x2f3a   :  { %37646 = vmatprep.mubr.f32.mxu0 %v42944_v53  ;;  %v29709_v33 = vsub.f32 %v43031_v31, %v29708_v58 }
0x2f3c   :  { %v29710_v37 = vand.u32 4294901760, %v29709_v33 }
0x2f3d   :  { %37647 = vmatmul.mubr.f32.vlgmr.msra.gmra.mrb[42].mxu0 %v42975_v10 }
0x2f3e   :  { %39917 = vmatpush3.bf16.msra.mxu0 %v39894_v38  ;;  %37649 = vmatprep.mubr.f32.mxu0 %v42977_v12  ;;  %v32731_v38 = vld [vmem:[%s43216_s21 + $0x50] sm:$0xff] }
0x2f3f   :  { %39919 = vmatprep.subr.bf16.mxu0 %v42956_v18  ;;  %v30742_v44 = vsel %vm2219_vm2, %v32731_v38, 0 }
0x2f40   :  { %v43089_v40 = vand.u32 4294901760, %v30742_v44 }
0x2f41   :  { %37650 = vmatmul.mubr.f32.gmra.mrb[44].mxu0 %v42981_v6 }
0x2f42   :  { %37656 = vmatprep.mubr.f32.mxu0 %v42944_v53  ;;  %v29699_v53 = vsub.f32 %v29697_v59, %v29698_v9  ;;  %v30835_v43 = vsub.f32 %v30742_v44, %v43089_v40 }
0x2f43   :  { %v37787_v4 = vpop.f32.mrb[56].mxu1 }
0x2f44   :  { %v30751_v22 = vand.u32 4294901760, %v37787_v4  ;;  %v30720_v1 = vpop.f32.mrb[57].mxu1  ;;  %v29700_v17 = vand.u32 4294901760, %v29699_v53 }
0x2f45   :  { %v30748_v29 = vand.u32 4294901760, %v30720_v1  ;;  %37657 = vmatmul.mubr.f32.vlgmr.msra.gmra.mrb[42].mxu0 %v42975_v10  ;;  %v29690_v10 = vand.u32 4294901760, %v29689_v30  ;;  %v32737_v30 = vld [vmem:[%s43216_s21 + $0x60] sm:$0xff] }
0x2f46   :  { %v30863_v8 = vsub.f32 %v37787_v4, %v30751_v22  ;;  %39921 = vmatpush3.bf16.msra.mxu0 %v42956_v18  ;;  %37659 = vmatprep.mubr.f32.mxu0 %v42977_v12 }
0x2f47   :  { %v43040_v51 = vpack.c.bf16 %v30751_v22, %v30748_v29  ;;  %v30856_v41 = vsub.f32 %v30720_v1, %v30748_v29  ;;  %39923 = vmatprep.subr.bf16.mxu0 %v42962_v7 }
0x2f48   :  { %v30864_v2 = vand.u32 4294901760, %v30863_v8 }
0x2f49   :  { %v30857_v32 = vand.u32 4294901760, %v30856_v41  ;;  %37660 = vmatmul.mubr.f32.gmra.mrb[44].mxu0 %v42981_v6  ;;  %v43045_v34 = vpack.c.bf16 %v30863_v8, %v30856_v41 }
0x2f4a   :  { %v30865_v16 = vsub.f32 %v30863_v8, %v30864_v2  ;;  %37666 = vmatprep.mubr.f32.mxu0 %v29680_v0  ;;  %v32738_v8 = vld [vmem:[%s43216_s21 + $0x68] sm:$0xff]  ;;  %v32739_v0 = vld [vmem:[%s43216_s21 + $0x70] sm:$0xff] }
0x2f4b   :  { %v30858_v12 = vsub.f32 %v30856_v41, %v30857_v32  ;;  %v43047_v23 = vpack.c.bf16 %v30864_v2, %v30857_v32  ;;  %v31881_v41 = vsel %vm2219_vm2, %v32738_v8, 0  ;;  %v31884_v2 = vsel %vm2219_vm2, %v32739_v0, 0  ;;  %v32740_v32 = vld [vmem:[%s43216_s21 + $0x78] sm:$0xff] }
0x2f4c   :  { %v30866_v35 = vand.u32 4294901760, %v30865_v16  ;;  %v31887_v16 = vsel %vm2219_vm2, %v32740_v32, 0 }
0x2f4d   :  { %37667 = vmatmul.mubr.f32.vlgmr.msra.gmra.mrb[42].mxu0 %v29690_v10  ;;  %v30859_v36 = vand.u32 4294901760, %v30858_v12  ;;  %v31966_v10 = vand.u32 4294901760, %v31881_v41  ;;  %v31986_v12 = vand.u32 4294901760, %v31887_v16 }
0x2f4e   :  { %39925 = vmatpush3.bf16.msra.mxu0 %v42962_v7  ;;  %37669 = vmatprep.mubr.f32.mxu0 %v29700_v17  ;;  %v32729_v7 = vld [vmem:[%s43216_s21 + $0x40] sm:$0xff] }
0x2f4f   :  { %39927 = vmatprep.subr.bf16.mxu0 %v42958_v63  ;;  %v43051_v6 = vpack.c.bf16 %v30866_v35, %v30859_v36  ;;  %v31967_v17 = vsub.f32 %v31881_v41, %v31966_v10  ;;  %v31987_v36 = vsub.f32 %v31887_v16, %v31986_v12 }
0x2f51   :  { %37670 = vmatmul.mubr.f32.gmra.mrb[44].mxu0 %v29710_v37  ;;  %v31968_v37 = vand.u32 4294901760, %v31967_v17  ;;  %v31988_v47 = vand.u32 4294901760, %v31987_v36 }
0x2f52   :  { %37676 = vmatprep.mubr.f32.mxu0 %v43002_v49 }
0x2f53   :  { %v31989_v44 = vsub.f32 %v31987_v36, %v31988_v47 }
0x2f55   :  { %37677 = vmatmul.mubr.f32.vlgmr.msra.gmra.mrb[42].mxu0 %v43009_v21 }
0x2f56   :  { %39929 = vmatpush3.bf16.msra.mxu0 %v42958_v63  ;;  %37679 = vmatprep.mubr.f32.mxu0 %v43015_v15  ;;  %v30736_v63 = vsel %vm2219_vm2, %v32729_v7, 0 }
0x2f57   :  { %39931 = vmatprep.subr.bf16.mxu0 %v42956_v18  ;;  %v43075_v13 = vand.u32 4294901760, %v30736_v63 }
0x2f59   :  { %37680 = vmatmul.mubr.f32.gmra.mrb[44].mxu0 %v43022_v5 }
0x2f5a   :  { %37686 = vmatprep.mubr.f32.mxu0 %v43013_v42 }
0x2f5d   :  { %37687 = vmatmul.mubr.f32.vlgmr.msra.gmra.mrb[42].mxu0 %v43020_v61 }
0x2f5e   :  { %39933 = vmatpush3.bf16.msra.mxu0 %v42956_v18  ;;  %37689 = vmatprep.mubr.f32.mxu0 %v29697_v59 }
0x2f5f   :  { %39935 = vmatprep.subr.bf16.mxu0 %v42960_v19 }
0x2f61   :  { %37690 = vmatmul.mubr.f32.gmra.mrb[44].mxu0 %v43031_v31 }
0x2f62   :  { %37696 = vmatprep.mubr.f32.mxu0 %v29678_v54 }
0x2f65   :  { %37697 = vmatmul.mubr.f32.vlgmr.msra.gmra.mrb[42].mxu0 %v29688_v27  ;;  %v30847_v27 = vsub.f32 %v43106_v46, %v30846_v11 }
0x2f66   :  { %39937 = vmatpush3.bf16.msra.mxu0 %v42960_v19  ;;  %37699 = vmatprep.mubr.f32.mxu0 %v29698_v9  ;;  %v43087_v19 = vsub.f32 %v30736_v63, %v43075_v13  ;;  %v31969_v63 = vsub.f32 %v31967_v17, %v31968_v37 }
0x2f67   :  { %39939 = vmatprep.subr.bf16.mxu0 %v42956_v18  ;;  %v30848_v29 = vand.u32 4294901760, %v30847_v27 }
0x2f68   :  { %v30816_v25 = vand.u32 4294901760, %v43087_v19  ;;  %v31970_v39 = vand.u32 4294901760, %v31969_v63 }
0x2f69   :  { %37700 = vmatmul.mubr.f32.gmra.mrb[44].mxu0 %v29708_v58  ;;  %v31878_v58 = vsel %vm2219_vm2, %v32737_v30, 0 }
0x2f6a   :  { %37706 = vmatprep.mubr.f32.mxu0 %v43002_v49  ;;  %v30817_v56 = vsub.f32 %v43087_v19, %v30816_v25  ;;  %v43148_v53 = vand.u32 4294901760, %v31878_v58 }
0x2f6c   :  { %v30818_v42 = vand.u32 4294901760, %v30817_v56  ;;  %v31957_v33 = vsub.f32 %v31878_v58, %v43148_v53 }
0x2f6d   :  { %37707 = vmatmul.mubr.f32.vlgmr.msra.gmra.mrb[42].mxu0 %v43009_v21 }
0x2f6e   :  { %39941 = vmatpush3.bf16.msra.mxu0 %v42956_v18  ;;  %37709 = vmatprep.mubr.f32.mxu0 %v43015_v15  ;;  %v30836_v18 = vand.u32 4294901760, %v30835_v43 }
0x2f6f   :  { %39991 = vmatprep.subr.bf16.mxu0 %v43040_v51 }
0x2f71   :  { %37710 = vmatmul.mubr.f32.gmra.mrb[44].mxu0 %v43022_v5 }
0x2f72   :  { %37716 = vmatprep.mubr.f32.mxu0 %v43002_v49  ;;  %v30837_v49 = vsub.f32 %v30835_v43, %v30836_v18 }
0x2f73   :  { %v37913_v60 = vpop.f32.mrb[58].mxu1 }
0x2f74   :  { %v31893_v48 = vand.u32 4294901760, %v37913_v60  ;;  %v31862_v28 = vpop.f32.mrb[59].mxu1  ;;  %v30838_v9 = vand.u32 4294901760, %v30837_v49 }
0x2f75   :  { %v31890_v26 = vand.u32 4294901760, %v31862_v28  ;;  %37717 = vmatmul.mubr.f32.vlgmr.msra.gmra.mrb[42].mxu0 %v43009_v21  ;;  %v30828_v21 = vand.u32 4294901760, %v30827_v24 }
0x2f76   :  { %v32005_v20 = vsub.f32 %v37913_v60, %v31893_v48  ;;  %39993 = vmatpush3.bf16.msra.mxu0 %v43040_v51  ;;  %37719 = vmatprep.mubr.f32.mxu0 %v43015_v15 }
0x2f77   :  { %v43115_v50 = vpack.c.bf16 %v31893_v48, %v31890_v26  ;;  %v31998_v61 = vsub.f32 %v31862_v28, %v31890_v26  ;;  %39995 = vmatprep.subr.bf16.mxu0 %v43051_v6 }
0x2f78   :  { %v32006_v54 = vand.u32 4294901760, %v32005_v20 }
0x2f79   :  { %v31999_v59 = vand.u32 4294901760, %v31998_v61  ;;  %37720 = vmatmul.mubr.f32.gmra.mrb[44].mxu0 %v43022_v5  ;;  %v43120_v31 = vpack.c.bf16 %v32005_v20, %v31998_v61 }
0x2f7a   :  { %v32007_v55 = vsub.f32 %v32005_v20, %v32006_v54  ;;  %37792 = vmatprep.mubr.f32.mxu0 %v30818_v42 }
0x2f7b   :  { %v32000_v15 = vsub.f32 %v31998_v61, %v31999_v59  ;;  %v43122_v4 = vpack.c.bf16 %v32006_v54, %v31999_v59 }
0x2f7c   :  { %v32008_v22 = vand.u32 4294901760, %v32007_v55 }
0x2f7d   :  { %v32001_v1 = vand.u32 4294901760, %v32000_v15  ;;  %37793 = vmatmul.mubr.f32.vlgmr.msra.gmra.mrb[42].mxu0 %v30828_v21 }
0x2f7e   :  { %39997 = vmatpush3.bf16.msra.mxu0 %v43051_v6  ;;  %37795 = vmatprep.mubr.f32.mxu0 %v30838_v9 }
0x2f7f   :  { %39999 = vmatprep.subr.bf16.mxu0 %v43045_v34  ;;  %v40066_v5 = vpack.c.bf16 %v32008_v22, %v32001_v1 }
0x2f81   :  { %37796 = vmatmul.mubr.f32.gmra.mrb[44].mxu0 %v30848_v29 }
0x2f82   :  { %37802 = vmatprep.mubr.f32.mxu0 %v43075_v13 }
0x2f85   :  { %37803 = vmatmul.mubr.f32.vlgmr.msra.gmra.mrb[42].mxu0 %v43083_v3 }
0x2f86   :  { %40001 = vmatpush3.bf16.msra.mxu0 %v43045_v34  ;;  %37805 = vmatprep.mubr.f32.mxu0 %v43089_v40  ;;  %v31976_v34 = vand.u32 4294901760, %v31884_v2 }
0x2f87   :  { %40003 = vmatprep.subr.bf16.mxu0 %v43040_v51 }
0x2f88   :  { %v31977_v35 = vsub.f32 %v31884_v2, %v31976_v34 }
0x2f89   :  { %37806 = vmatmul.mubr.f32.gmra.mrb[44].mxu0 %v43096_v52 }
0x2f8a   :  { %37812 = vmatprep.mubr.f32.mxu0 %v43087_v19  ;;  %v31978_v7 = vand.u32 4294901760, %v31977_v35 }
0x2f8c   :  { %v31979_v38 = vsub.f32 %v31977_v35, %v31978_v7 }
0x2f8d   :  { %37813 = vmatmul.mubr.f32.vlgmr.msra.gmra.mrb[42].mxu0 %v43094_v14 }
0x2f8e   :  { %40005 = vmatpush3.bf16.msra.mxu0 %v43040_v51  ;;  %37815 = vmatprep.mubr.f32.mxu0 %v30835_v43  ;;  %v31980_v62 = vand.u32 4294901760, %v31979_v38 }
0x2f8f   :  { %40007 = vmatprep.subr.bf16.mxu0 %v43047_v23 }
0x2f91   :  { %37816 = vmatmul.mubr.f32.gmra.mrb[44].mxu0 %v43106_v46 }
0x2f92   :  { %37822 = vmatprep.mubr.f32.mxu0 %v30816_v25 }
0x2f95   :  { %37823 = vmatmul.mubr.f32.vlgmr.msra.gmra.mrb[42].mxu0 %v30826_v57 }
0x2f96   :  { %40009 = vmatpush3.bf16.msra.mxu0 %v43047_v23  ;;  %37825 = vmatprep.mubr.f32.mxu0 %v30836_v18  ;;  %v31958_v23 = vand.u32 4294901760, %v31957_v33 }
0x2f97   :  { %40011 = vmatprep.subr.bf16.mxu0 %v43040_v51 }
0x2f98   :  { %v31959_v6 = vsub.f32 %v31957_v33, %v31958_v23 }
0x2f99   :  { %37826 = vmatmul.mubr.f32.gmra.mrb[44].mxu0 %v30846_v11 }
0x2f9a   :  { %37832 = vmatprep.mubr.f32.mxu0 %v43075_v13 }
0x2f9d   :  { %37833 = vmatmul.mubr.f32.vlgmr.msra.gmra.mrb[42].mxu0 %v43083_v3 }
0x2f9e   :  { %40013 = vmatpush3.bf16.msra.mxu0 %v43040_v51  ;;  %37835 = vmatprep.mubr.f32.mxu0 %v43089_v40  ;;  %v31960_v51 = vand.u32 4294901760, %v31959_v6 }
0x2f9f   :  { %40063 = vmatprep.subr.bf16.mxu0 %v43115_v50 }
0x2fa1   :  { %37836 = vmatmul.mubr.f32.gmra.mrb[44].mxu0 %v43096_v52 }
0x2fa2   :  { %37842 = vmatprep.mubr.f32.mxu0 %v43075_v13  ;;  %v31990_v13 = vand.u32 4294901760, %v31989_v44 }
0x2fa5   :  { %37843 = vmatmul.mubr.f32.vlgmr.msra.gmra.mrb[42].mxu0 %v43083_v3  ;;  %v32741_v3 = vld [vmem:[%s43215_s20] ss:$0 sm:$0xff]  ;;  %s40951_s20 = smov [#allocation2]  }
0x2fa6   :  { %40065 = vmatpush3.bf16.msra.mxu0 %v43115_v50  ;;  %37845 = vmatprep.mubr.f32.mxu0 %v43089_v40  ;;  %s32537_s18 = sshll.u32 %s40951_s20, 4  ;;  %s32538_s18 = int_to_ptr.vmem [resolvable:$true] %s32537_s18 }
0x2fa7   :  { %40067 = vmatprep.subr.bf16.mxu0 %v40066_v5  ;;  %s40927_s7 = scalar_lea.vmem %s32538_s18, 512  ;;  %p40932_p1 = scmp.lt.s32.totalorder %s32538_s18, %s32538_s18 }
0x2fa8   :  { %p40928_p0 = scmp.ne.s32.totalorder %s32538_s18, %s40927_s7  ;;  %p40933_p2 = scmp.lt.s32.totalorder %s40927_s7, %s40927_s7 }
0x2fa9   :  { %37846 = vmatmul.mubr.f32.gmra.mrb[44].mxu0 %v43096_v52 }
0x2faa   :  { %37918 = vmatprep.mubr.f32.mxu0 %v31960_v51  ;;  %p40934_p3 = por %p40933_p2, %p40932_p1 }
0x2fac   :  { %p40935_p4 = pnand %p40934_p3, %p40928_p0 }
0x2fad   :  { %37919 = vmatmul.mubr.f32.vlgmr.msra.gmra.mrb[42].mxu0 %v31970_v39 }
0x2fae   :  { %40069 = vmatpush3.bf16.msra.mxu0 %v40066_v5  ;;  %37921 = vmatprep.mubr.f32.mxu0 %v31980_v62 }
0x2faf   :  { %40071 = vmatprep.subr.bf16.mxu0 %v43120_v31 }
0x2fb1   :  { %37922 = vmatmul.mubr.f32.gmra.mrb[44].mxu0 %v31990_v13 }
0x2fb2   :  { %37928 = vmatprep.mubr.f32.mxu0 %v43148_v53 }
0x2fb5   :  { %37929 = vmatmul.mubr.f32.vlgmr.msra.gmra.mrb[42].mxu0 %v31966_v10 }
0x2fb6   :  { %40073 = vmatpush3.bf16.msra.mxu0 %v43120_v31  ;;  %37931 = vmatprep.mubr.f32.mxu0 %v31976_v34 }
0x2fb7   :  { %40075 = vmatprep.subr.bf16.mxu0 %v43115_v50 }
0x2fb9   :  { %37932 = vmatmul.mubr.f32.gmra.mrb[44].mxu0 %v31986_v12 }
0x2fba   :  { %37938 = vmatprep.mubr.f32.mxu0 %v31957_v33 }
0x2fbd   :  { %37939 = vmatmul.mubr.f32.vlgmr.msra.gmra.mrb[42].mxu0 %v31967_v17 }
0x2fbe   :  { %40077 = vmatpush3.bf16.msra.mxu0 %v43115_v50  ;;  %37941 = vmatprep.mubr.f32.mxu0 %v31977_v35 }
0x2fbf   :  { %40079 = vmatprep.subr.bf16.mxu0 %v43122_v4 }
0x2fc1   :  { %37942 = vmatmul.mubr.f32.gmra.mrb[44].mxu0 %v31987_v36 }
0x2fc2   :  { %37948 = vmatprep.mubr.f32.mxu0 %v31958_v23 }
0x2fc5   :  { %37949 = vmatmul.mubr.f32.vlgmr.msra.gmra.mrb[42].mxu0 %v31968_v37 }
0x2fc6   :  { %40081 = vmatpush3.bf16.msra.mxu0 %v43122_v4  ;;  %37951 = vmatprep.mubr.f32.mxu0 %v31978_v7 }
0x2fc7   :  { %40083 = vmatprep.subr.bf16.mxu0 %v43115_v50 }
0x2fc9   :  { %37952 = vmatmul.mubr.f32.gmra.mrb[44].mxu0 %v31988_v47 }
0x2fca   :  { %37958 = vmatprep.mubr.f32.mxu0 %v43148_v53 }
0x2fcd   :  { %37959 = vmatmul.mubr.f32.vlgmr.msra.gmra.mrb[42].mxu0 %v31966_v10 }
0x2fce   :  { %40085 = vmatpush3.bf16.msra.mxu0 %v43115_v50  ;;  %37961 = vmatprep.mubr.f32.mxu0 %v31976_v34 }
0x2fd1   :  { %37962 = vmatmul.mubr.f32.gmra.mrb[44].mxu0 %v31986_v12 }
0x2fd2   :  { %37968 = vmatprep.mubr.f32.mxu0 %v43148_v53 }
0x2fd5   :  { %37969 = vmatmul.mubr.f32.vlgmr.msra.gmra.mrb[42].mxu0 %v31966_v10 }
0x2fd6   :  { %37971 = vmatprep.mubr.f32.mxu0 %v31976_v34 }
0x2fd9   :  { %37972 = vmatmul.mubr.f32.gmra.mrb[44].mxu0 %v31986_v12 }
0x30a8   :  { %v37970_v19 = vpop.f32.mrb[42].mxu0 }
0x30a9   :  { %v32489_v40 = vadd.f32 %v37970_v19, %v32741_v3  ;;  %v32455_v45 = vpop.f32.mrb[43].mxu0 }
0x30aa   :  { %v32488_v14 = vadd.f32 %v32741_v3, %v32455_v45 }
0x30ab   :  { %32494 = vmax.xlane.f32.xlu1 %v32489_v40 }
0x30ac   :  { %32492 = vmax.xlane.f32.xlu0 %v32488_v14  ;;  %v37973_v52 = vpop.f32.mrb[44].mxu0 }
0x30ad   :  { %v32491_v25 = vadd.f32 %v37973_v52, %v32741_v3  ;;  %v32467_v43 = vpop.f32.mrb[45].mxu0 }
0x30ae   :  { %v32490_v57 = vadd.f32 %v32741_v3, %v32467_v43 }
0x30af   :  { %32498 = vmax.xlane.f32.xlu1 %v32491_v25 }
0x30b0   :  { %32496 = vmax.xlane.f32.xlu0 %v32490_v57 }
0x3138   :  { %v32495_v46 = vpop.xlane.xlu1 %32494 }
0x3139   :  { %v32501_v56 = vsub.f32 %v32489_v40, %v32495_v46  ;;  %v32493_v18 = vpop.xlane.xlu0 %32492 }
0x313a   :  { %v32500_v60 = vsub.f32 %v32488_v14, %v32493_v18 }
0x313b   :  { %v32506_v48 = vmul.f32 1.442695, %v32501_v56 }
0x313c   :  { %v32504_v28 = vmul.f32 1.442695, %v32500_v60  ;;  %v32499_v26 = vpop.xlane.xlu1 %32498 }
0x313d   :  { %40905 = vpow2.f32 %v32506_v48  ;;  %v32503_v24 = vsub.f32 %v32491_v25, %v32499_v26  ;;  %v32497_v11 = vpop.xlane.xlu0 %32496 }
0x313e   :  { %40907 = vpow2.f32 %v32504_v28  ;;  %v32502_v20 = vsub.f32 %v32490_v57, %v32497_v11 }
0x313f   :  { %v32510_v42 = vmul.f32 1.442695, %v32503_v24 }
0x3140   :  { %v32508_v49 = vmul.f32 1.442695, %v32502_v20 }
0x3141   :  { %40909 = vpow2.f32 %v32510_v42 }
0x3142   :  { %40911 = vpow2.f32 %v32508_v49 }
0x3147   :  { %v40906_v50 = vpop.eup %40905 }
0x3148   :  { %v40908_v61 = vpop.eup %40907  ;;  %32514 = vadd.xlane.f32.xlu1 %v40906_v50 }
0x3149   :  { %32512 = vadd.xlane.f32.xlu0 %v40908_v61 }
0x314b   :  { %v40910_v54 = vpop.eup %40909 }
0x314c   :  { %v40912_v59 = vpop.eup %40911  ;;  %32518 = vadd.xlane.f32.xlu1 %v40910_v54 }
0x314d   :  { %32516 = vadd.xlane.f32.xlu0 %v40912_v59 }
0x31d5   :  { %v32515_v21 = vpop.xlane.xlu1 %32514 }
0x31d6   :  { %40913 = vrcp.f32 %v32515_v21  ;;  %v32513_v27 = vpop.xlane.xlu0 %32512 }
0x31d7   :  { %40915 = vrcp.f32 %v32513_v27 }
0x31d9   :  { %v32519_v31 = vpop.xlane.xlu1 %32518 }
0x31da   :  { %40917 = vrcp.f32 %v32519_v31  ;;  %v32517_v55 = vpop.xlane.xlu0 %32516 }
0x31db   :  { %40919 = vrcp.f32 %v32517_v55 }
0x31e0   :  { %v40914_v9 = vpop.eup %40913 }
0x31e1   :  { %v40916_v15 = vpop.eup %40915  ;;  %v32525_v4 = vmul.f32 %v40914_v9, %v40906_v50 }
0x31e2   :  { %v32524_v22 = vmul.f32 %v40916_v15, %v40908_v61 }
0x31e3   :  { %32529 = vst [vmem:[#allocation2 + $0x8] sm:$0xff] %v32525_v4 }
0x31e4   :  { %v40918_v1 = vpop.eup %40917  ;;  %32528 = vst [vmem:[#allocation2] sm:$0xff] %v32524_v22 }
0x31e5   :  { %v40920_v29 = vpop.eup %40919  ;;  %v32527_v5 = vmul.f32 %v40918_v1, %v40910_v54 }
0x31e6   :  { %v32526_v30 = vmul.f32 %v40920_v29, %v40912_v59 }
0x31e7   :  { %32531 = vst [vmem:[#allocation2 + $0x18] sm:$0xff] %v32527_v5 }
0x31e8   :  { %32530 = vst [vmem:[#allocation2 + $0x10] sm:$0xff] %v32526_v30 }
0x31e9   :  { %40938 = shalt.err (!%p40935_p4)
}
0x31ea   :  { %s40939_s10 = scalar_lea.hbm %s43217_s22, 512 }
0x31eb   :  { %p40940_p5 = scmp.ne.s32.totalorder %s43217_s22, %s40939_s10  ;;  %p40943_p6 = scmp.lt.u32.totalorder %s40939_s10, %s43217_s22 }
0x31ed   :  { %p40945_p7 = pnand %p40943_p6, %p40940_p5 }
0x31ef   :  { %40948 = shalt.err (!%p40945_p7)
}
0x31f0   :  { %s40952_s25 = smov 128   ;;  %s40953_s15 = smov 8  }
0x31f1   :  { %32543 = dma.vmem_to_hbm [thread:$0]  %s32538_s18, 512, %s43217_s22, [#allocation3], %s40952_s25, %s40952_s25, %s40953_s15  }
0x31f2   :  { %40949 = dma.done.wait [#allocation3], 512  }
0x31f3   :  { %40950 = vsyncadd [#allocation3], 4294966784 }
0x31f4   :  { %32547 = vsyncpa [#allocation3], 1 }

</bundles_post_ra>
